<compile_context>
chip_gen: v6e
topology: v6e:2x2x1
jax: 0.10.0
libtpu: 0.0.40
codegen_flags: <defaults>
</compile_context>

<pallas_src>
import functools
import math

import jax
import jax.numpy as jnp
from jax import lax
from jax.experimental import pallas as pl
from jax.experimental.pallas import tpu as pltpu

D_MODEL = 512
NUM_HEADS = 8
HEAD_SIZE = D_MODEL // NUM_HEADS
LN_EPS = 1e-5


def _layernorm(x, gamma, beta):
    mu = jnp.mean(x, axis=-1, keepdims=True)
    var = jnp.mean(x * x, axis=-1, keepdims=True) - mu * mu
    return (x - mu) * lax.rsqrt(var + LN_EPS) * gamma + beta


def transformer_block_kernel(x_ref, g1_ref, b1_ref, wqkv_ref, wo_ref, bo_ref,
                             g2_ref, b2_ref, w1_ref, fb1_ref, w2_ref, fb2_ref,
                             o_ref):
    # x block: (Bb, T, D) -> Bb batch elements per grid step.
    x = x_ref[...]
    Bb, T, D = x.shape
    N = Bb * T
    xf = x.reshape(N, D).astype(jnp.float32)

    # ---------------- attention sub-block: x + MHA(LN1(x)) ----------------
    xn = _layernorm(xf, g1_ref[...], b1_ref[...])               # (N, D) f32

    # Fused QKV matmul (attention scale pre-folded into the Wq columns).
    # bf16 operands, f32 accumulate; f32 result dies right after the cast.
    qkv = jnp.dot(xn.astype(jnp.bfloat16), wqkv_ref[...],
                  preferred_element_type=jnp.float32).astype(jnp.bfloat16)

    # Causal mask, shared by all heads.
    row = lax.broadcasted_iota(jnp.int32, (T, T), 0)
    col = lax.broadcasted_iota(jnp.int32, (T, T), 1)
    causal = row >= col

    # Per-head attention core (hs=64 contraction is intrinsic). Head outputs
    # are lane-concatenated so the output projection is a single K=512 matmul.
    head_outs = []
    for h in range(NUM_HEADS):
        lo = h * HEAD_SIZE
        q = qkv[:, lo:lo + HEAD_SIZE].reshape(Bb, T, HEAD_SIZE)
        k = qkv[:, D + lo:D + lo + HEAD_SIZE].reshape(Bb, T, HEAD_SIZE)
        v = qkv[:, 2 * D + lo:2 * D + lo + HEAD_SIZE].reshape(Bb, T, HEAD_SIZE)

        # Batched Q @ K^T with the head dim contracted (no materialized k.T).
        s = jnp.einsum("bqd,bkd->bqk", q, k,
                       preferred_element_type=jnp.float32)      # (Bb, T, T)
        s = jnp.where(causal, s, -jnp.inf)
        s = s - jnp.max(s, axis=-1, keepdims=True)
        p = jnp.exp(s)
        p = p * pl.reciprocal(jnp.sum(p, axis=-1, keepdims=True), approx=True)
        # TODO(synk): attention-weight dropout skipped (identity in eval mode)

        oh = jnp.einsum("bqk,bkd->bqd", p.astype(jnp.bfloat16), v,
                        preferred_element_type=jnp.float32)      # (Bb, T, hs)
        head_outs.append(oh.reshape(N, HEAD_SIZE))

    att_in = jnp.concatenate(head_outs, axis=-1).astype(jnp.bfloat16)  # (N, D)
    att = jnp.dot(att_in, wo_ref[...],
                  preferred_element_type=jnp.float32) + bo_ref[...]
    x1 = xf + att
    # TODO(synk): post-projection dropout skipped (identity in eval mode)

    # ---------------- feedforward sub-block: x + FFN(LN2(x)) ----------------
    xn2 = _layernorm(x1, g2_ref[...], b2_ref[...])
    hdn = jnp.dot(xn2.astype(jnp.bfloat16), w1_ref[...],
                  preferred_element_type=jnp.float32) + fb1_ref[...]
    hdn = jnp.maximum(hdn, 0.0)                                  # ReLU
    y = jnp.dot(hdn.astype(jnp.bfloat16), w2_ref[...],
                preferred_element_type=jnp.float32) + fb2_ref[...]
    # TODO(synk): FFN dropout skipped (identity in eval mode)

    o_ref[...] = (x1 + y).reshape(Bb, T, D).astype(o_ref.dtype)


def _hw_defaults():
    """(vmem_limit_bytes, target rows per grid step) per TPU generation."""
    vmem_bytes = None
    try:
        info_fn = getattr(pltpu, "get_tpu_info", None)
        if info_fn is not None:
            vmem_bytes = getattr(info_fn(), "vmem_capacity_bytes", None)
    except Exception:
        vmem_bytes = None
    if vmem_bytes is not None and vmem_bytes >= 100 * 1024 * 1024:
        return 96 * 1024 * 1024, 512        # v5e / v6e: 128 MiB physical VMEM
    return 48 * 1024 * 1024, 256            # v7x (64 MiB physical) / unknown


def _pick_block_batch(B, T, row_target):
    # Aim for Bb*T >= row_target rows per step (fills the MXU M dim), but keep
    # at least 2 grid steps whenever B >= 2 so both v7x TensorCores get work.
    bb = max(1, min(B, row_target // max(T, 1)))
    if B >= 2:
        bb = min(bb, max(1, B // 2))
    while B % bb:
        bb -= 1
    return bb


def fuse_params(p):
    """One-time weight prep (do NOT call per forward pass): fuse QKV with the
    attention scale folded into the Wq columns, cast matmul weights to bf16,
    keep LN params / biases in f32."""
    scale = 1.0 / math.sqrt(HEAD_SIZE)
    wqkv = jnp.concatenate([p["wq"] * scale, p["wk"], p["wv"]], axis=1)
    return {
        "ln1_g": p["ln1_g"].astype(jnp.float32),
        "ln1_b": p["ln1_b"].astype(jnp.float32),
        "ln2_g": p["ln2_g"].astype(jnp.float32),
        "ln2_b": p["ln2_b"].astype(jnp.float32),
        "wqkv": wqkv.astype(jnp.bfloat16),
        "wo": p["wo"].astype(jnp.bfloat16),
        "bo": p["bo"].astype(jnp.float32),
        "w1": p["w1"].astype(jnp.bfloat16),
        "b1": p["b1"].astype(jnp.float32),
        "w2": p["w2"].astype(jnp.bfloat16),
        "b2": p["b2"].astype(jnp.float32),
    }


def transformer_block(x, fp, block_batch=None):
    """x: (B, T, 512) f32; fp: output of fuse_params()."""
    B, T, D = x.shape
    assert D == D_MODEL
    vmem_limit, row_target = _hw_defaults()
    bb = _pick_block_batch(B, T, row_target) if block_batch is None else block_batch
    assert B % bb == 0

    def full_spec(shape):
        # whole-array block, same block every grid step (grid-invariant weight)
        return pl.BlockSpec(shape, lambda i: tuple(0 for _ in shape))

    x_spec = pl.BlockSpec((bb, T, D), lambda i: (i, 0, 0))

    return pl.pallas_call(
        transformer_block_kernel,
        out_shape=jax.ShapeDtypeStruct((B, T, D), x.dtype),
        grid=(B // bb,),
        in_specs=[
            x_spec,
            full_spec((1, D)), full_spec((1, D)),                 # ln1 g/b
            full_spec((D, 3 * D)),                                # fused Wqkv
            full_spec((D, D)), full_spec((1, D)),                 # Wo, bo
            full_spec((1, D)), full_spec((1, D)),                 # ln2 g/b
            full_spec((D, 4 * D)), full_spec((1, 4 * D)),         # W1, b1
            full_spec((4 * D, D)), full_spec((1, D)),             # W2, b2
        ],
        out_specs=x_spec,
        compiler_params=pltpu.CompilerParams(
            dimension_semantics=("parallel",),
            vmem_limit_bytes=vmem_limit,
        ),
    )(x, fp["ln1_g"], fp["ln1_b"], fp["wqkv"], fp["wo"], fp["bo"],
      fp["ln2_g"], fp["ln2_b"], fp["w1"], fp["b1"], fp["w2"], fp["b2"])


def init_params(key):
    ks = jax.random.split(key, 12)
    D = D_MODEL
    s = 0.02
    return {
        "ln1_g": jnp.ones((1, D), jnp.float32),
        "ln1_b": jnp.zeros((1, D), jnp.float32),
        "ln2_g": jnp.ones((1, D), jnp.float32),
        "ln2_b": jnp.zeros((1, D), jnp.float32),
        "wq": s * jax.random.normal(ks[0], (D, D), jnp.float32),
        "wk": s * jax.random.normal(ks[1], (D, D), jnp.float32),
        "wv": s * jax.random.normal(ks[2], (D, D), jnp.float32),
        "wo": s * jax.random.normal(ks[3], (D, D), jnp.float32),
        "bo": s * jax.random.normal(ks[4], (1, D), jnp.float32),
        "w1": s * jax.random.normal(ks[5], (D, 4 * D), jnp.float32),
        "b1": s * jax.random.normal(ks[6], (1, 4 * D), jnp.float32),
        "w2": s * jax.random.normal(ks[7], (4 * D, D), jnp.float32),
        "b2": s * jax.random.normal(ks[8], (1, D), jnp.float32),
    }


def reference_block(x, p):
    """Pure-JAX f32 reference (same math as the PyTorch module, eval mode)."""
    def ln(v, g, b):
        mu = jnp.mean(v, axis=-1, keepdims=True)
        var = jnp.mean((v - mu) ** 2, axis=-1, keepdims=True)
        return (v - mu) * lax.rsqrt(var + LN_EPS) * g + b

    B, T, D = x.shape
    xn = ln(x, p["ln1_g"], p["ln1_b"])
    heads = []
    mask = jnp.tril(jnp.ones((T, T), bool))
    for h in range(NUM_HEADS):
        lo, hi = h * HEAD_SIZE, (h + 1) * HEAD_SIZE
        q = xn @ p["wq"][:, lo:hi]
        k = xn @ p["wk"][:, lo:hi]
        v = xn @ p["wv"][:, lo:hi]
        s = jnp.einsum("btd,bsd->bts", q, k) / math.sqrt(HEAD_SIZE)
        s = jnp.where(mask, s, -jnp.inf)
        w = jax.nn.softmax(s, axis=-1)
        heads.append(jnp.einsum("bts,bsd->btd", w, v))
    att = jnp.concatenate(heads, axis=-1) @ p["wo"] + p["bo"]
    x = x + att
    xn2 = ln(x, p["ln2_g"], p["ln2_b"])
    h = jnp.maximum(xn2 @ p["w1"] + p["b1"], 0.0)
    return x + (h @ p["w2"] + p["b2"])


if __name__ == "__main__":
    key = jax.random.PRNGKey(0)
    pkey, xkey = jax.random.split(key)
    params = init_params(pkey)
    fused = fuse_params(params)            # one-time weight prep (not per call)

    B, T = 2, 16  # T <= context_length (128); d_model fixed at 512 by module
    x = jax.random.normal(xkey, (B, T, D_MODEL), jnp.float32)

    out = jax.block_until_ready(transformer_block(x, fused))

    ref = reference_block(x, params)
    assert out.shape == (B, T, D_MODEL)
    # bf16 matmul operands (f32 accumulate) => looser tolerance than pure f32.
    assert jnp.allclose(out, ref, atol=3e-2, rtol=3e-2), (
        float(jnp.max(jnp.abs(out - ref))))
    print("KERNEL_OK")
</pallas_src>

<mosaic_0001>
module attributes {stable_mosaic.version = 11 : i64} {
  func.func @transformer_block_kernel(%arg0: i32, %arg1: memref<1x16x512xf32, #tpu.memory_space<vmem>>, %arg2: memref<1x512xf32, #tpu.memory_space<vmem>>, %arg3: memref<1x512xf32, #tpu.memory_space<vmem>>, %arg4: memref<512x1536xbf16, #tpu.memory_space<vmem>>, %arg5: memref<512x512xbf16, #tpu.memory_space<vmem>>, %arg6: memref<1x512xf32, #tpu.memory_space<vmem>>, %arg7: memref<1x512xf32, #tpu.memory_space<vmem>>, %arg8: memref<1x512xf32, #tpu.memory_space<vmem>>, %arg9: memref<512x2048xbf16, #tpu.memory_space<vmem>>, %arg10: memref<1x2048xf32, #tpu.memory_space<vmem>>, %arg11: memref<2048x512xbf16, #tpu.memory_space<vmem>>, %arg12: memref<1x512xf32, #tpu.memory_space<vmem>>, %arg13: memref<1x16x512xf32, #tpu.memory_space<vmem>>) attributes {dimension_semantics = [#tpu.dimension_semantics<parallel>], iteration_bounds = array<i64: 2>, scalar_prefetch = 0 : i64, scratch_operands = 0 : i64, tpu.core_type = #tpu.core_type<tc>, window_params = [{transform_indices = @transform_0, window_bounds = array<i64: 1, 16, 512>}, {pipeline_mode = #tpu.pipeline_mode<synchronous>, transform_indices = @transform_1, window_bounds = array<i64: 1, 512>}, {pipeline_mode = #tpu.pipeline_mode<synchronous>, transform_indices = @transform_2, window_bounds = array<i64: 1, 512>}, {pipeline_mode = #tpu.pipeline_mode<synchronous>, transform_indices = @transform_3, window_bounds = array<i64: 512, 1536>}, {pipeline_mode = #tpu.pipeline_mode<synchronous>, transform_indices = @transform_4, window_bounds = array<i64: 512, 512>}, {pipeline_mode = #tpu.pipeline_mode<synchronous>, transform_indices = @transform_5, window_bounds = array<i64: 1, 512>}, {pipeline_mode = #tpu.pipeline_mode<synchronous>, transform_indices = @transform_6, window_bounds = array<i64: 1, 512>}, {pipeline_mode = #tpu.pipeline_mode<synchronous>, transform_indices = @transform_7, window_bounds = array<i64: 1, 512>}, {pipeline_mode = #tpu.pipeline_mode<synchronous>, transform_indices = @transform_8, window_bounds = array<i64: 512, 2048>}, {pipeline_mode = #tpu.pipeline_mode<synchronous>, transform_indices = @transform_9, window_bounds = array<i64: 1, 2048>}, {pipeline_mode = #tpu.pipeline_mode<synchronous>, transform_indices = @transform_10, window_bounds = array<i64: 2048, 512>}, {pipeline_mode = #tpu.pipeline_mode<synchronous>, transform_indices = @transform_11, window_bounds = array<i64: 1, 512>}, {transform_indices = @transform_12, window_bounds = array<i64: 1, 16, 512>}]} {
    %c0 = arith.constant 0 : index
    %c0_0 = arith.constant 0 : index
    %c0_1 = arith.constant 0 : index
    %0 = vector.load %arg1[%c0, %c0_0, %c0_1] : memref<1x16x512xf32, #tpu.memory_space<vmem>>, vector<1x16x512xf32>
    %1 = vector.shape_cast %0 : vector<1x16x512xf32> to vector<16x512xf32>
    %c0_2 = arith.constant 0 : index
    %c0_3 = arith.constant 0 : index
    %2 = vector.load %arg2[%c0_2, %c0_3] : memref<1x512xf32, #tpu.memory_space<vmem>>, vector<1x512xf32>
    %c0_4 = arith.constant 0 : index
    %c0_5 = arith.constant 0 : index
    %3 = vector.load %arg3[%c0_4, %c0_5] : memref<1x512xf32, #tpu.memory_space<vmem>>, vector<1x512xf32>
    %cst = arith.constant dense<0.000000e+00> : vector<16xf32>
    %4 = vector.multi_reduction <add>, %1, %cst [1] : vector<16x512xf32> to vector<16xf32>
    %5 = vector.shape_cast %4 : vector<16xf32> to vector<16x1xf32>
    %cst_6 = arith.constant 5.120000e+02 : f32
    %6 = vector.broadcast %cst_6 : f32 to vector<16x1xf32>
    %7 = arith.divf %5, %6 : vector<16x1xf32>
    %8 = arith.mulf %1, %1 : vector<16x512xf32>
    %cst_7 = arith.constant dense<0.000000e+00> : vector<16xf32>
    %9 = vector.multi_reduction <add>, %8, %cst_7 [1] : vector<16x512xf32> to vector<16xf32>
    %10 = vector.shape_cast %9 : vector<16xf32> to vector<16x1xf32>
    %cst_8 = arith.constant 5.120000e+02 : f32
    %11 = vector.broadcast %cst_8 : f32 to vector<16x1xf32>
    %12 = arith.divf %10, %11 : vector<16x1xf32>
    %13 = arith.mulf %7, %7 : vector<16x1xf32>
    %14 = arith.subf %12, %13 : vector<16x1xf32>
    %15 = vector.broadcast %7 : vector<16x1xf32> to vector<16x512xf32>
    %16 = arith.subf %1, %15 : vector<16x512xf32>
    %cst_9 = arith.constant 9.99999974E-6 : f32
    %17 = vector.broadcast %cst_9 : f32 to vector<16x1xf32>
    %18 = arith.addf %14, %17 : vector<16x1xf32>
    %19 = math.rsqrt %18 : vector<16x1xf32>
    %20 = vector.broadcast %19 : vector<16x1xf32> to vector<16x512xf32>
    %21 = arith.mulf %16, %20 : vector<16x512xf32>
    %22 = vector.broadcast %2 : vector<1x512xf32> to vector<16x512xf32>
    %23 = arith.mulf %21, %22 : vector<16x512xf32>
    %24 = vector.broadcast %3 : vector<1x512xf32> to vector<16x512xf32>
    %25 = arith.addf %23, %24 : vector<16x512xf32>
    %26 = arith.truncf %25 : vector<16x512xf32> to vector<16x512xbf16>
    %c0_10 = arith.constant 0 : index
    %c0_11 = arith.constant 0 : index
    %27 = vector.load %arg4[%c0_10, %c0_11] : memref<512x1536xbf16, #tpu.memory_space<vmem>>, vector<512x1536xbf16>
    %cst_12 = arith.constant dense<0.000000e+00> : vector<16x1536xf32>
    %28 = tpu.matmul %26, %27, %cst_12 {dimension_numbers = #tpu.dot_dimension_numbers<[1], [0], [0], [1], [0, 0, 1, 1], [], []>} : vector<16x512xbf16>, vector<512x1536xbf16>, vector<16x1536xf32> -> vector<16x1536xf32>
    %29 = arith.truncf %28 : vector<16x1536xf32> to vector<16x1536xbf16>
    %30 = tpu.iota {dimensions = array<i32: 0>} : vector<16x16xi32>
    %31 = tpu.iota {dimensions = array<i32: 1>} : vector<16x16xi32>
    %32 = arith.cmpi sge, %30, %31 : vector<16x16xi32>
    %33 = vector.extract_strided_slice %29 {offsets = [0, 0], sizes = [16, 64], strides = [1, 1]} : vector<16x1536xbf16> to vector<16x64xbf16>
    %34 = vector.shape_cast %33 : vector<16x64xbf16> to vector<1x16x64xbf16>
    %35 = vector.extract_strided_slice %29 {offsets = [0, 512], sizes = [16, 64], strides = [1, 1]} : vector<16x1536xbf16> to vector<16x64xbf16>
    %36 = vector.shape_cast %35 : vector<16x64xbf16> to vector<1x16x64xbf16>
    %37 = vector.extract_strided_slice %29 {offsets = [0, 1024], sizes = [16, 64], strides = [1, 1]} : vector<16x1536xbf16> to vector<16x64xbf16>
    %38 = vector.shape_cast %37 : vector<16x64xbf16> to vector<1x16x64xbf16>
    "tpu.trace_start"() <{level = 10 : i32, message = "bqd,bkd->bqk"}> : () -> ()
    %cst_13 = arith.constant dense<0.000000e+00> : vector<1x16x16xf32>
    %39 = tpu.matmul %34, %36, %cst_13 {dimension_numbers = #tpu.dot_dimension_numbers<[2], [2], [1], [1], [0, 0, 0, 1, 1, 1], [0], [0]>} : vector<1x16x64xbf16>, vector<1x16x64xbf16>, vector<1x16x16xf32> -> vector<1x16x16xf32>
    %cst_14 = arith.constant 0xFF800000 : f32
    "tpu.trace_stop"() : () -> ()
    %40 = vector.shape_cast %32 : vector<16x16xi1> to vector<1x16x16xi1>
    %41 = vector.broadcast %cst_14 : f32 to vector<1x16x16xf32>
    %42 = arith.select %40, %39, %41 : vector<1x16x16xi1>, vector<1x16x16xf32>
    %cst_15 = arith.constant dense<0xFF800000> : vector<1x16xf32>
    %43 = vector.multi_reduction <maximumf>, %42, %cst_15 [2] : vector<1x16x16xf32> to vector<1x16xf32>
    %44 = vector.shape_cast %43 : vector<1x16xf32> to vector<1x16x1xf32>
    %45 = vector.broadcast %44 : vector<1x16x1xf32> to vector<1x16x16xf32>
    %46 = arith.subf %42, %45 : vector<1x16x16xf32>
    %47 = math.exp %46 : vector<1x16x16xf32>
    %cst_16 = arith.constant dense<0.000000e+00> : vector<1x16xf32>
    %48 = vector.multi_reduction <add>, %47, %cst_16 [2] : vector<1x16x16xf32> to vector<1x16xf32>
    %49 = vector.shape_cast %48 : vector<1x16xf32> to vector<1x16x1xf32>
    %50 = tpu.reciprocal %49 {approx = true} : vector<1x16x1xf32> -> vector<1x16x1xf32>
    %51 = vector.broadcast %50 : vector<1x16x1xf32> to vector<1x16x16xf32>
    %52 = arith.mulf %47, %51 : vector<1x16x16xf32>
    %53 = arith.truncf %52 : vector<1x16x16xf32> to vector<1x16x16xbf16>
    "tpu.trace_start"() <{level = 10 : i32, message = "bqk,bkd->bqd"}> : () -> ()
    %cst_17 = arith.constant dense<0.000000e+00> : vector<1x16x64xf32>
    %54 = tpu.matmul %53, %38, %cst_17 {dimension_numbers = #tpu.dot_dimension_numbers<[2], [1], [1], [2], [0, 0, 0, 1, 1, 2], [0], [0]>} : vector<1x16x16xbf16>, vector<1x16x64xbf16>, vector<1x16x64xf32> -> vector<1x16x64xf32>
    "tpu.trace_stop"() : () -> ()
    %55 = vector.shape_cast %54 : vector<1x16x64xf32> to vector<16x64xf32>
    %56 = vector.extract_strided_slice %29 {offsets = [0, 64], sizes = [16, 64], strides = [1, 1]} : vector<16x1536xbf16> to vector<16x64xbf16>
    %57 = vector.shape_cast %56 : vector<16x64xbf16> to vector<1x16x64xbf16>
    %58 = vector.extract_strided_slice %29 {offsets = [0, 576], sizes = [16, 64], strides = [1, 1]} : vector<16x1536xbf16> to vector<16x64xbf16>
    %59 = vector.shape_cast %58 : vector<16x64xbf16> to vector<1x16x64xbf16>
    %60 = vector.extract_strided_slice %29 {offsets = [0, 1088], sizes = [16, 64], strides = [1, 1]} : vector<16x1536xbf16> to vector<16x64xbf16>
    %61 = vector.shape_cast %60 : vector<16x64xbf16> to vector<1x16x64xbf16>
    "tpu.trace_start"() <{level = 10 : i32, message = "bqd,bkd->bqk"}> : () -> ()
    %cst_18 = arith.constant dense<0.000000e+00> : vector<1x16x16xf32>
    %62 = tpu.matmul %57, %59, %cst_18 {dimension_numbers = #tpu.dot_dimension_numbers<[2], [2], [1], [1], [0, 0, 0, 1, 1, 1], [0], [0]>} : vector<1x16x64xbf16>, vector<1x16x64xbf16>, vector<1x16x16xf32> -> vector<1x16x16xf32>
    %cst_19 = arith.constant 0xFF800000 : f32
    "tpu.trace_stop"() : () -> ()
    %63 = vector.shape_cast %32 : vector<16x16xi1> to vector<1x16x16xi1>
    %64 = vector.broadcast %cst_19 : f32 to vector<1x16x16xf32>
    %65 = arith.select %63, %62, %64 : vector<1x16x16xi1>, vector<1x16x16xf32>
    %cst_20 = arith.constant dense<0xFF800000> : vector<1x16xf32>
    %66 = vector.multi_reduction <maximumf>, %65, %cst_20 [2] : vector<1x16x16xf32> to vector<1x16xf32>
    %67 = vector.shape_cast %66 : vector<1x16xf32> to vector<1x16x1xf32>
    %68 = vector.broadcast %67 : vector<1x16x1xf32> to vector<1x16x16xf32>
    %69 = arith.subf %65, %68 : vector<1x16x16xf32>
    %70 = math.exp %69 : vector<1x16x16xf32>
    %cst_21 = arith.constant dense<0.000000e+00> : vector<1x16xf32>
    %71 = vector.multi_reduction <add>, %70, %cst_21 [2] : vector<1x16x16xf32> to vector<1x16xf32>
    %72 = vector.shape_cast %71 : vector<1x16xf32> to vector<1x16x1xf32>
    %73 = tpu.reciprocal %72 {approx = true} : vector<1x16x1xf32> -> vector<1x16x1xf32>
    %74 = vector.broadcast %73 : vector<1x16x1xf32> to vector<1x16x16xf32>
    %75 = arith.mulf %70, %74 : vector<1x16x16xf32>
    %76 = arith.truncf %75 : vector<1x16x16xf32> to vector<1x16x16xbf16>
    "tpu.trace_start"() <{level = 10 : i32, message = "bqk,bkd->bqd"}> : () -> ()
    %cst_22 = arith.constant dense<0.000000e+00> : vector<1x16x64xf32>
    %77 = tpu.matmul %76, %61, %cst_22 {dimension_numbers = #tpu.dot_dimension_numbers<[2], [1], [1], [2], [0, 0, 0, 1, 1, 2], [0], [0]>} : vector<1x16x16xbf16>, vector<1x16x64xbf16>, vector<1x16x64xf32> -> vector<1x16x64xf32>
    "tpu.trace_stop"() : () -> ()
    %78 = vector.shape_cast %77 : vector<1x16x64xf32> to vector<16x64xf32>
    %79 = vector.extract_strided_slice %29 {offsets = [0, 128], sizes = [16, 64], strides = [1, 1]} : vector<16x1536xbf16> to vector<16x64xbf16>
    %80 = vector.shape_cast %79 : vector<16x64xbf16> to vector<1x16x64xbf16>
    %81 = vector.extract_strided_slice %29 {offsets = [0, 640], sizes = [16, 64], strides = [1, 1]} : vector<16x1536xbf16> to vector<16x64xbf16>
    %82 = vector.shape_cast %81 : vector<16x64xbf16> to vector<1x16x64xbf16>
    %83 = vector.extract_strided_slice %29 {offsets = [0, 1152], sizes = [16, 64], strides = [1, 1]} : vector<16x1536xbf16> to vector<16x64xbf16>
    %84 = vector.shape_cast %83 : vector<16x64xbf16> to vector<1x16x64xbf16>
    "tpu.trace_start"() <{level = 10 : i32, message = "bqd,bkd->bqk"}> : () -> ()
    %cst_23 = arith.constant dense<0.000000e+00> : vector<1x16x16xf32>
    %85 = tpu.matmul %80, %82, %cst_23 {dimension_numbers = #tpu.dot_dimension_numbers<[2], [2], [1], [1], [0, 0, 0, 1, 1, 1], [0], [0]>} : vector<1x16x64xbf16>, vector<1x16x64xbf16>, vector<1x16x16xf32> -> vector<1x16x16xf32>
    %cst_24 = arith.constant 0xFF800000 : f32
    "tpu.trace_stop"() : () -> ()
    %86 = vector.shape_cast %32 : vector<16x16xi1> to vector<1x16x16xi1>
    %87 = vector.broadcast %cst_24 : f32 to vector<1x16x16xf32>
    %88 = arith.select %86, %85, %87 : vector<1x16x16xi1>, vector<1x16x16xf32>
    %cst_25 = arith.constant dense<0xFF800000> : vector<1x16xf32>
    %89 = vector.multi_reduction <maximumf>, %88, %cst_25 [2] : vector<1x16x16xf32> to vector<1x16xf32>
    %90 = vector.shape_cast %89 : vector<1x16xf32> to vector<1x16x1xf32>
    %91 = vector.broadcast %90 : vector<1x16x1xf32> to vector<1x16x16xf32>
    %92 = arith.subf %88, %91 : vector<1x16x16xf32>
    %93 = math.exp %92 : vector<1x16x16xf32>
    %cst_26 = arith.constant dense<0.000000e+00> : vector<1x16xf32>
    %94 = vector.multi_reduction <add>, %93, %cst_26 [2] : vector<1x16x16xf32> to vector<1x16xf32>
    %95 = vector.shape_cast %94 : vector<1x16xf32> to vector<1x16x1xf32>
    %96 = tpu.reciprocal %95 {approx = true} : vector<1x16x1xf32> -> vector<1x16x1xf32>
    %97 = vector.broadcast %96 : vector<1x16x1xf32> to vector<1x16x16xf32>
    %98 = arith.mulf %93, %97 : vector<1x16x16xf32>
    %99 = arith.truncf %98 : vector<1x16x16xf32> to vector<1x16x16xbf16>
    "tpu.trace_start"() <{level = 10 : i32, message = "bqk,bkd->bqd"}> : () -> ()
    %cst_27 = arith.constant dense<0.000000e+00> : vector<1x16x64xf32>
    %100 = tpu.matmul %99, %84, %cst_27 {dimension_numbers = #tpu.dot_dimension_numbers<[2], [1], [1], [2], [0, 0, 0, 1, 1, 2], [0], [0]>} : vector<1x16x16xbf16>, vector<1x16x64xbf16>, vector<1x16x64xf32> -> vector<1x16x64xf32>
    "tpu.trace_stop"() : () -> ()
    %101 = vector.shape_cast %100 : vector<1x16x64xf32> to vector<16x64xf32>
    %102 = vector.extract_strided_slice %29 {offsets = [0, 192], sizes = [16, 64], strides = [1, 1]} : vector<16x1536xbf16> to vector<16x64xbf16>
    %103 = vector.shape_cast %102 : vector<16x64xbf16> to vector<1x16x64xbf16>
    %104 = vector.extract_strided_slice %29 {offsets = [0, 704], sizes = [16, 64], strides = [1, 1]} : vector<16x1536xbf16> to vector<16x64xbf16>
    %105 = vector.shape_cast %104 : vector<16x64xbf16> to vector<1x16x64xbf16>
    %106 = vector.extract_strided_slice %29 {offsets = [0, 1216], sizes = [16, 64], strides = [1, 1]} : vector<16x1536xbf16> to vector<16x64xbf16>
    %107 = vector.shape_cast %106 : vector<16x64xbf16> to vector<1x16x64xbf16>
    "tpu.trace_start"() <{level = 10 : i32, message = "bqd,bkd->bqk"}> : () -> ()
    %cst_28 = arith.constant dense<0.000000e+00> : vector<1x16x16xf32>
    %108 = tpu.matmul %103, %105, %cst_28 {dimension_numbers = #tpu.dot_dimension_numbers<[2], [2], [1], [1], [0, 0, 0, 1, 1, 1], [0], [0]>} : vector<1x16x64xbf16>, vector<1x16x64xbf16>, vector<1x16x16xf32> -> vector<1x16x16xf32>
    %cst_29 = arith.constant 0xFF800000 : f32
    "tpu.trace_stop"() : () -> ()
    %109 = vector.shape_cast %32 : vector<16x16xi1> to vector<1x16x16xi1>
    %110 = vector.broadcast %cst_29 : f32 to vector<1x16x16xf32>
    %111 = arith.select %109, %108, %110 : vector<1x16x16xi1>, vector<1x16x16xf32>
    %cst_30 = arith.constant dense<0xFF800000> : vector<1x16xf32>
    %112 = vector.multi_reduction <maximumf>, %111, %cst_30 [2] : vector<1x16x16xf32> to vector<1x16xf32>
    %113 = vector.shape_cast %112 : vector<1x16xf32> to vector<1x16x1xf32>
    %114 = vector.broadcast %113 : vector<1x16x1xf32> to vector<1x16x16xf32>
    %115 = arith.subf %111, %114 : vector<1x16x16xf32>
    %116 = math.exp %115 : vector<1x16x16xf32>
    %cst_31 = arith.constant dense<0.000000e+00> : vector<1x16xf32>
    %117 = vector.multi_reduction <add>, %116, %cst_31 [2] : vector<1x16x16xf32> to vector<1x16xf32>
    %118 = vector.shape_cast %117 : vector<1x16xf32> to vector<1x16x1xf32>
    %119 = tpu.reciprocal %118 {approx = true} : vector<1x16x1xf32> -> vector<1x16x1xf32>
    %120 = vector.broadcast %119 : vector<1x16x1xf32> to vector<1x16x16xf32>
    %121 = arith.mulf %116, %120 : vector<1x16x16xf32>
    %122 = arith.truncf %121 : vector<1x16x16xf32> to vector<1x16x16xbf16>
    "tpu.trace_start"() <{level = 10 : i32, message = "bqk,bkd->bqd"}> : () -> ()
    %cst_32 = arith.constant dense<0.000000e+00> : vector<1x16x64xf32>
    %123 = tpu.matmul %122, %107, %cst_32 {dimension_numbers = #tpu.dot_dimension_numbers<[2], [1], [1], [2], [0, 0, 0, 1, 1, 2], [0], [0]>} : vector<1x16x16xbf16>, vector<1x16x64xbf16>, vector<1x16x64xf32> -> vector<1x16x64xf32>
    "tpu.trace_stop"() : () -> ()
    %124 = vector.shape_cast %123 : vector<1x16x64xf32> to vector<16x64xf32>
    %125 = vector.extract_strided_slice %29 {offsets = [0, 256], sizes = [16, 64], strides = [1, 1]} : vector<16x1536xbf16> to vector<16x64xbf16>
    %126 = vector.shape_cast %125 : vector<16x64xbf16> to vector<1x16x64xbf16>
    %127 = vector.extract_strided_slice %29 {offsets = [0, 768], sizes = [16, 64], strides = [1, 1]} : vector<16x1536xbf16> to vector<16x64xbf16>
    %128 = vector.shape_cast %127 : vector<16x64xbf16> to vector<1x16x64xbf16>
    %129 = vector.extract_strided_slice %29 {offsets = [0, 1280], sizes = [16, 64], strides = [1, 1]} : vector<16x1536xbf16> to vector<16x64xbf16>
    %130 = vector.shape_cast %129 : vector<16x64xbf16> to vector<1x16x64xbf16>
    "tpu.trace_start"() <{level = 10 : i32, message = "bqd,bkd->bqk"}> : () -> ()
    %cst_33 = arith.constant dense<0.000000e+00> : vector<1x16x16xf32>
    %131 = tpu.matmul %126, %128, %cst_33 {dimension_numbers = #tpu.dot_dimension_numbers<[2], [2], [1], [1], [0, 0, 0, 1, 1, 1], [0], [0]>} : vector<1x16x64xbf16>, vector<1x16x64xbf16>, vector<1x16x16xf32> -> vector<1x16x16xf32>
    %cst_34 = arith.constant 0xFF800000 : f32
    "tpu.trace_stop"() : () -> ()
    %132 = vector.shape_cast %32 : vector<16x16xi1> to vector<1x16x16xi1>
    %133 = vector.broadcast %cst_34 : f32 to vector<1x16x16xf32>
    %134 = arith.select %132, %131, %133 : vector<1x16x16xi1>, vector<1x16x16xf32>
    %cst_35 = arith.constant dense<0xFF800000> : vector<1x16xf32>
    %135 = vector.multi_reduction <maximumf>, %134, %cst_35 [2] : vector<1x16x16xf32> to vector<1x16xf32>
    %136 = vector.shape_cast %135 : vector<1x16xf32> to vector<1x16x1xf32>
    %137 = vector.broadcast %136 : vector<1x16x1xf32> to vector<1x16x16xf32>
    %138 = arith.subf %134, %137 : vector<1x16x16xf32>
    %139 = math.exp %138 : vector<1x16x16xf32>
    %cst_36 = arith.constant dense<0.000000e+00> : vector<1x16xf32>
    %140 = vector.multi_reduction <add>, %139, %cst_36 [2] : vector<1x16x16xf32> to vector<1x16xf32>
    %141 = vector.shape_cast %140 : vector<1x16xf32> to vector<1x16x1xf32>
    %142 = tpu.reciprocal %141 {approx = true} : vector<1x16x1xf32> -> vector<1x16x1xf32>
    %143 = vector.broadcast %142 : vector<1x16x1xf32> to vector<1x16x16xf32>
    %144 = arith.mulf %139, %143 : vector<1x16x16xf32>
    %145 = arith.truncf %144 : vector<1x16x16xf32> to vector<1x16x16xbf16>
    "tpu.trace_start"() <{level = 10 : i32, message = "bqk,bkd->bqd"}> : () -> ()
    %cst_37 = arith.constant dense<0.000000e+00> : vector<1x16x64xf32>
    %146 = tpu.matmul %145, %130, %cst_37 {dimension_numbers = #tpu.dot_dimension_numbers<[2], [1], [1], [2], [0, 0, 0, 1, 1, 2], [0], [0]>} : vector<1x16x16xbf16>, vector<1x16x64xbf16>, vector<1x16x64xf32> -> vector<1x16x64xf32>
    "tpu.trace_stop"() : () -> ()
    %147 = vector.shape_cast %146 : vector<1x16x64xf32> to vector<16x64xf32>
    %148 = vector.extract_strided_slice %29 {offsets = [0, 320], sizes = [16, 64], strides = [1, 1]} : vector<16x1536xbf16> to vector<16x64xbf16>
    %149 = vector.shape_cast %148 : vector<16x64xbf16> to vector<1x16x64xbf16>
    %150 = vector.extract_strided_slice %29 {offsets = [0, 832], sizes = [16, 64], strides = [1, 1]} : vector<16x1536xbf16> to vector<16x64xbf16>
    %151 = vector.shape_cast %150 : vector<16x64xbf16> to vector<1x16x64xbf16>
    %152 = vector.extract_strided_slice %29 {offsets = [0, 1344], sizes = [16, 64], strides = [1, 1]} : vector<16x1536xbf16> to vector<16x64xbf16>
    %153 = vector.shape_cast %152 : vector<16x64xbf16> to vector<1x16x64xbf16>
    "tpu.trace_start"() <{level = 10 : i32, message = "bqd,bkd->bqk"}> : () -> ()
    %cst_38 = arith.constant dense<0.000000e+00> : vector<1x16x16xf32>
    %154 = tpu.matmul %149, %151, %cst_38 {dimension_numbers = #tpu.dot_dimension_numbers<[2], [2], [1], [1], [0, 0, 0, 1, 1, 1], [0], [0]>} : vector<1x16x64xbf16>, vector<1x16x64xbf16>, vector<1x16x16xf32> -> vector<1x16x16xf32>
    %cst_39 = arith.constant 0xFF800000 : f32
    "tpu.trace_stop"() : () -> ()
    %155 = vector.shape_cast %32 : vector<16x16xi1> to vector<1x16x16xi1>
    %156 = vector.broadcast %cst_39 : f32 to vector<1x16x16xf32>
    %157 = arith.select %155, %154, %156 : vector<1x16x16xi1>, vector<1x16x16xf32>
    %cst_40 = arith.constant dense<0xFF800000> : vector<1x16xf32>
    %158 = vector.multi_reduction <maximumf>, %157, %cst_40 [2] : vector<1x16x16xf32> to vector<1x16xf32>
    %159 = vector.shape_cast %158 : vector<1x16xf32> to vector<1x16x1xf32>
    %160 = vector.broadcast %159 : vector<1x16x1xf32> to vector<1x16x16xf32>
    %161 = arith.subf %157, %160 : vector<1x16x16xf32>
    %162 = math.exp %161 : vector<1x16x16xf32>
    %cst_41 = arith.constant dense<0.000000e+00> : vector<1x16xf32>
    %163 = vector.multi_reduction <add>, %162, %cst_41 [2] : vector<1x16x16xf32> to vector<1x16xf32>
    %164 = vector.shape_cast %163 : vector<1x16xf32> to vector<1x16x1xf32>
    %165 = tpu.reciprocal %164 {approx = true} : vector<1x16x1xf32> -> vector<1x16x1xf32>
    %166 = vector.broadcast %165 : vector<1x16x1xf32> to vector<1x16x16xf32>
    %167 = arith.mulf %162, %166 : vector<1x16x16xf32>
    %168 = arith.truncf %167 : vector<1x16x16xf32> to vector<1x16x16xbf16>
    "tpu.trace_start"() <{level = 10 : i32, message = "bqk,bkd->bqd"}> : () -> ()
    %cst_42 = arith.constant dense<0.000000e+00> : vector<1x16x64xf32>
    %169 = tpu.matmul %168, %153, %cst_42 {dimension_numbers = #tpu.dot_dimension_numbers<[2], [1], [1], [2], [0, 0, 0, 1, 1, 2], [0], [0]>} : vector<1x16x16xbf16>, vector<1x16x64xbf16>, vector<1x16x64xf32> -> vector<1x16x64xf32>
    "tpu.trace_stop"() : () -> ()
    %170 = vector.shape_cast %169 : vector<1x16x64xf32> to vector<16x64xf32>
    %171 = vector.extract_strided_slice %29 {offsets = [0, 384], sizes = [16, 64], strides = [1, 1]} : vector<16x1536xbf16> to vector<16x64xbf16>
    %172 = vector.shape_cast %171 : vector<16x64xbf16> to vector<1x16x64xbf16>
    %173 = vector.extract_strided_slice %29 {offsets = [0, 896], sizes = [16, 64], strides = [1, 1]} : vector<16x1536xbf16> to vector<16x64xbf16>
    %174 = vector.shape_cast %173 : vector<16x64xbf16> to vector<1x16x64xbf16>
    %175 = vector.extract_strided_slice %29 {offsets = [0, 1408], sizes = [16, 64], strides = [1, 1]} : vector<16x1536xbf16> to vector<16x64xbf16>
    %176 = vector.shape_cast %175 : vector<16x64xbf16> to vector<1x16x64xbf16>
    "tpu.trace_start"() <{level = 10 : i32, message = "bqd,bkd->bqk"}> : () -> ()
    %cst_43 = arith.constant dense<0.000000e+00> : vector<1x16x16xf32>
    %177 = tpu.matmul %172, %174, %cst_43 {dimension_numbers = #tpu.dot_dimension_numbers<[2], [2], [1], [1], [0, 0, 0, 1, 1, 1], [0], [0]>} : vector<1x16x64xbf16>, vector<1x16x64xbf16>, vector<1x16x16xf32> -> vector<1x16x16xf32>
    %cst_44 = arith.constant 0xFF800000 : f32
    "tpu.trace_stop"() : () -> ()
    %178 = vector.shape_cast %32 : vector<16x16xi1> to vector<1x16x16xi1>
    %179 = vector.broadcast %cst_44 : f32 to vector<1x16x16xf32>
    %180 = arith.select %178, %177, %179 : vector<1x16x16xi1>, vector<1x16x16xf32>
    %cst_45 = arith.constant dense<0xFF800000> : vector<1x16xf32>
    %181 = vector.multi_reduction <maximumf>, %180, %cst_45 [2] : vector<1x16x16xf32> to vector<1x16xf32>
    %182 = vector.shape_cast %181 : vector<1x16xf32> to vector<1x16x1xf32>
    %183 = vector.broadcast %182 : vector<1x16x1xf32> to vector<1x16x16xf32>
    %184 = arith.subf %180, %183 : vector<1x16x16xf32>
    %185 = math.exp %184 : vector<1x16x16xf32>
    %cst_46 = arith.constant dense<0.000000e+00> : vector<1x16xf32>
    %186 = vector.multi_reduction <add>, %185, %cst_46 [2] : vector<1x16x16xf32> to vector<1x16xf32>
    %187 = vector.shape_cast %186 : vector<1x16xf32> to vector<1x16x1xf32>
    %188 = tpu.reciprocal %187 {approx = true} : vector<1x16x1xf32> -> vector<1x16x1xf32>
    %189 = vector.broadcast %188 : vector<1x16x1xf32> to vector<1x16x16xf32>
    %190 = arith.mulf %185, %189 : vector<1x16x16xf32>
    %191 = arith.truncf %190 : vector<1x16x16xf32> to vector<1x16x16xbf16>
    "tpu.trace_start"() <{level = 10 : i32, message = "bqk,bkd->bqd"}> : () -> ()
    %cst_47 = arith.constant dense<0.000000e+00> : vector<1x16x64xf32>
    %192 = tpu.matmul %191, %176, %cst_47 {dimension_numbers = #tpu.dot_dimension_numbers<[2], [1], [1], [2], [0, 0, 0, 1, 1, 2], [0], [0]>} : vector<1x16x16xbf16>, vector<1x16x64xbf16>, vector<1x16x64xf32> -> vector<1x16x64xf32>
    "tpu.trace_stop"() : () -> ()
    %193 = vector.shape_cast %192 : vector<1x16x64xf32> to vector<16x64xf32>
    %194 = vector.extract_strided_slice %29 {offsets = [0, 448], sizes = [16, 64], strides = [1, 1]} : vector<16x1536xbf16> to vector<16x64xbf16>
    %195 = vector.shape_cast %194 : vector<16x64xbf16> to vector<1x16x64xbf16>
    %196 = vector.extract_strided_slice %29 {offsets = [0, 960], sizes = [16, 64], strides = [1, 1]} : vector<16x1536xbf16> to vector<16x64xbf16>
    %197 = vector.shape_cast %196 : vector<16x64xbf16> to vector<1x16x64xbf16>
    %198 = vector.extract_strided_slice %29 {offsets = [0, 1472], sizes = [16, 64], strides = [1, 1]} : vector<16x1536xbf16> to vector<16x64xbf16>
    %199 = vector.shape_cast %198 : vector<16x64xbf16> to vector<1x16x64xbf16>
    "tpu.trace_start"() <{level = 10 : i32, message = "bqd,bkd->bqk"}> : () -> ()
    %cst_48 = arith.constant dense<0.000000e+00> : vector<1x16x16xf32>
    %200 = tpu.matmul %195, %197, %cst_48 {dimension_numbers = #tpu.dot_dimension_numbers<[2], [2], [1], [1], [0, 0, 0, 1, 1, 1], [0], [0]>} : vector<1x16x64xbf16>, vector<1x16x64xbf16>, vector<1x16x16xf32> -> vector<1x16x16xf32>
    %cst_49 = arith.constant 0xFF800000 : f32
    "tpu.trace_stop"() : () -> ()
    %201 = vector.shape_cast %32 : vector<16x16xi1> to vector<1x16x16xi1>
    %202 = vector.broadcast %cst_49 : f32 to vector<1x16x16xf32>
    %203 = arith.select %201, %200, %202 : vector<1x16x16xi1>, vector<1x16x16xf32>
    %cst_50 = arith.constant dense<0xFF800000> : vector<1x16xf32>
    %204 = vector.multi_reduction <maximumf>, %203, %cst_50 [2] : vector<1x16x16xf32> to vector<1x16xf32>
    %205 = vector.shape_cast %204 : vector<1x16xf32> to vector<1x16x1xf32>
    %206 = vector.broadcast %205 : vector<1x16x1xf32> to vector<1x16x16xf32>
    %207 = arith.subf %203, %206 : vector<1x16x16xf32>
    %208 = math.exp %207 : vector<1x16x16xf32>
    %cst_51 = arith.constant dense<0.000000e+00> : vector<1x16xf32>
    %209 = vector.multi_reduction <add>, %208, %cst_51 [2] : vector<1x16x16xf32> to vector<1x16xf32>
    %210 = vector.shape_cast %209 : vector<1x16xf32> to vector<1x16x1xf32>
    %211 = tpu.reciprocal %210 {approx = true} : vector<1x16x1xf32> -> vector<1x16x1xf32>
    %212 = vector.broadcast %211 : vector<1x16x1xf32> to vector<1x16x16xf32>
    %213 = arith.mulf %208, %212 : vector<1x16x16xf32>
    %214 = arith.truncf %213 : vector<1x16x16xf32> to vector<1x16x16xbf16>
    "tpu.trace_start"() <{level = 10 : i32, message = "bqk,bkd->bqd"}> : () -> ()
    %cst_52 = arith.constant dense<0.000000e+00> : vector<1x16x64xf32>
    %215 = tpu.matmul %214, %199, %cst_52 {dimension_numbers = #tpu.dot_dimension_numbers<[2], [1], [1], [2], [0, 0, 0, 1, 1, 2], [0], [0]>} : vector<1x16x16xbf16>, vector<1x16x64xbf16>, vector<1x16x64xf32> -> vector<1x16x64xf32>
    "tpu.trace_stop"() : () -> ()
    %216 = vector.shape_cast %215 : vector<1x16x64xf32> to vector<16x64xf32>
    %217 = tpu.concatenate %55, %78, %101, %124, %147, %170, %193, %216 in 1 : vector<16x64xf32>, vector<16x64xf32>, vector<16x64xf32>, vector<16x64xf32>, vector<16x64xf32>, vector<16x64xf32>, vector<16x64xf32>, vector<16x64xf32> -> vector<16x512xf32>
    %218 = arith.truncf %217 : vector<16x512xf32> to vector<16x512xbf16>
    %c0_53 = arith.constant 0 : index
    %c0_54 = arith.constant 0 : index
    %219 = vector.load %arg5[%c0_53, %c0_54] : memref<512x512xbf16, #tpu.memory_space<vmem>>, vector<512x512xbf16>
    %cst_55 = arith.constant dense<0.000000e+00> : vector<16x512xf32>
    %220 = tpu.matmul %218, %219, %cst_55 {dimension_numbers = #tpu.dot_dimension_numbers<[1], [0], [0], [1], [0, 0, 1, 1], [], []>} : vector<16x512xbf16>, vector<512x512xbf16>, vector<16x512xf32> -> vector<16x512xf32>
    %c0_56 = arith.constant 0 : index
    %c0_57 = arith.constant 0 : index
    %221 = vector.load %arg6[%c0_56, %c0_57] : memref<1x512xf32, #tpu.memory_space<vmem>>, vector<1x512xf32>
    %222 = vector.broadcast %221 : vector<1x512xf32> to vector<16x512xf32>
    %223 = arith.addf %220, %222 : vector<16x512xf32>
    %224 = arith.addf %1, %223 : vector<16x512xf32>
    %c0_58 = arith.constant 0 : index
    %c0_59 = arith.constant 0 : index
    %225 = vector.load %arg7[%c0_58, %c0_59] : memref<1x512xf32, #tpu.memory_space<vmem>>, vector<1x512xf32>
    %c0_60 = arith.constant 0 : index
    %c0_61 = arith.constant 0 : index
    %226 = vector.load %arg8[%c0_60, %c0_61] : memref<1x512xf32, #tpu.memory_space<vmem>>, vector<1x512xf32>
    %cst_62 = arith.constant dense<0.000000e+00> : vector<16xf32>
    %227 = vector.multi_reduction <add>, %224, %cst_62 [1] : vector<16x512xf32> to vector<16xf32>
    %228 = vector.shape_cast %227 : vector<16xf32> to vector<16x1xf32>
    %cst_63 = arith.constant 5.120000e+02 : f32
    %229 = vector.broadcast %cst_63 : f32 to vector<16x1xf32>
    %230 = arith.divf %228, %229 : vector<16x1xf32>
    %231 = arith.mulf %224, %224 : vector<16x512xf32>
    %cst_64 = arith.constant dense<0.000000e+00> : vector<16xf32>
    %232 = vector.multi_reduction <add>, %231, %cst_64 [1] : vector<16x512xf32> to vector<16xf32>
    %233 = vector.shape_cast %232 : vector<16xf32> to vector<16x1xf32>
    %cst_65 = arith.constant 5.120000e+02 : f32
    %234 = vector.broadcast %cst_65 : f32 to vector<16x1xf32>
    %235 = arith.divf %233, %234 : vector<16x1xf32>
    %236 = arith.mulf %230, %230 : vector<16x1xf32>
    %237 = arith.subf %235, %236 : vector<16x1xf32>
    %238 = vector.broadcast %230 : vector<16x1xf32> to vector<16x512xf32>
    %239 = arith.subf %224, %238 : vector<16x512xf32>
    %cst_66 = arith.constant 9.99999974E-6 : f32
    %240 = vector.broadcast %cst_66 : f32 to vector<16x1xf32>
    %241 = arith.addf %237, %240 : vector<16x1xf32>
    %242 = math.rsqrt %241 : vector<16x1xf32>
    %243 = vector.broadcast %242 : vector<16x1xf32> to vector<16x512xf32>
    %244 = arith.mulf %239, %243 : vector<16x512xf32>
    %245 = vector.broadcast %225 : vector<1x512xf32> to vector<16x512xf32>
    %246 = arith.mulf %244, %245 : vector<16x512xf32>
    %247 = vector.broadcast %226 : vector<1x512xf32> to vector<16x512xf32>
    %248 = arith.addf %246, %247 : vector<16x512xf32>
    %249 = arith.truncf %248 : vector<16x512xf32> to vector<16x512xbf16>
    %c0_67 = arith.constant 0 : index
    %c0_68 = arith.constant 0 : index
    %250 = vector.load %arg9[%c0_67, %c0_68] : memref<512x2048xbf16, #tpu.memory_space<vmem>>, vector<512x2048xbf16>
    %cst_69 = arith.constant dense<0.000000e+00> : vector<16x2048xf32>
    %251 = tpu.matmul %249, %250, %cst_69 {dimension_numbers = #tpu.dot_dimension_numbers<[1], [0], [0], [1], [0, 0, 1, 1], [], []>} : vector<16x512xbf16>, vector<512x2048xbf16>, vector<16x2048xf32> -> vector<16x2048xf32>
    %c0_70 = arith.constant 0 : index
    %c0_71 = arith.constant 0 : index
    %252 = vector.load %arg10[%c0_70, %c0_71] : memref<1x2048xf32, #tpu.memory_space<vmem>>, vector<1x2048xf32>
    %253 = vector.broadcast %252 : vector<1x2048xf32> to vector<16x2048xf32>
    %254 = arith.addf %251, %253 : vector<16x2048xf32>
    %cst_72 = arith.constant 0.000000e+00 : f32
    %255 = vector.broadcast %cst_72 : f32 to vector<16x2048xf32>
    %256 = arith.maximumf %254, %255 : vector<16x2048xf32>
    %257 = arith.truncf %256 : vector<16x2048xf32> to vector<16x2048xbf16>
    %c0_73 = arith.constant 0 : index
    %c0_74 = arith.constant 0 : index
    %258 = vector.load %arg11[%c0_73, %c0_74] : memref<2048x512xbf16, #tpu.memory_space<vmem>>, vector<2048x512xbf16>
    %cst_75 = arith.constant dense<0.000000e+00> : vector<16x512xf32>
    %259 = tpu.matmul %257, %258, %cst_75 {dimension_numbers = #tpu.dot_dimension_numbers<[1], [0], [0], [1], [0, 0, 1, 1], [], []>} : vector<16x2048xbf16>, vector<2048x512xbf16>, vector<16x512xf32> -> vector<16x512xf32>
    %c0_76 = arith.constant 0 : index
    %c0_77 = arith.constant 0 : index
    %260 = vector.load %arg12[%c0_76, %c0_77] : memref<1x512xf32, #tpu.memory_space<vmem>>, vector<1x512xf32>
    %261 = vector.broadcast %260 : vector<1x512xf32> to vector<16x512xf32>
    %262 = arith.addf %259, %261 : vector<16x512xf32>
    %263 = arith.addf %224, %262 : vector<16x512xf32>
    %264 = vector.shape_cast %263 : vector<16x512xf32> to vector<1x16x512xf32>
    %c0_78 = arith.constant 0 : index
    %c0_79 = arith.constant 0 : index
    %c0_80 = arith.constant 0 : index
    %265 = vector.load %arg13[%c0_78, %c0_79, %c0_80] : memref<1x16x512xf32, #tpu.memory_space<vmem>>, vector<1x16x512xf32>
    tpu.vector_store %arg13[%c0_78, %c0_79, %c0_80], %264 {strides = array<i32>} : memref<1x16x512xf32, #tpu.memory_space<vmem>>, vector<1x16x512xf32>,
    return
  }
  func.func @transform_0(%arg0: i32) -> (i32, i32, i32) {
    %c0_i32 = arith.constant 0 : i32
    %c0_i32_0 = arith.constant 0 : i32
    %c0_i32_1 = arith.constant 0 : i32
    return %arg0, %c0_i32, %c0_i32_0 : i32, i32, i32
  }
  func.func @transform_1(%arg0: i32) -> (i32, i32) {
    %c0_i32 = arith.constant 0 : i32
    %c0_i32_0 = arith.constant 0 : i32
    %c0_i32_1 = arith.constant 0 : i32
    return %c0_i32, %c0_i32_0 : i32, i32
  }
  func.func @transform_2(%arg0: i32) -> (i32, i32) {
    %c0_i32 = arith.constant 0 : i32
    %c0_i32_0 = arith.constant 0 : i32
    %c0_i32_1 = arith.constant 0 : i32
    return %c0_i32, %c0_i32_0 : i32, i32
  }
  func.func @transform_3(%arg0: i32) -> (i32, i32) {
    %c0_i32 = arith.constant 0 : i32
    %c0_i32_0 = arith.constant 0 : i32
    %c0_i32_1 = arith.constant 0 : i32
    return %c0_i32, %c0_i32_0 : i32, i32
  }
  func.func @transform_4(%arg0: i32) -> (i32, i32) {
    %c0_i32 = arith.constant 0 : i32
    %c0_i32_0 = arith.constant 0 : i32
    %c0_i32_1 = arith.constant 0 : i32
    return %c0_i32, %c0_i32_0 : i32, i32
  }
  func.func @transform_5(%arg0: i32) -> (i32, i32) {
    %c0_i32 = arith.constant 0 : i32
    %c0_i32_0 = arith.constant 0 : i32
    %c0_i32_1 = arith.constant 0 : i32
    return %c0_i32, %c0_i32_0 : i32, i32
  }
  func.func @transform_6(%arg0: i32) -> (i32, i32) {
    %c0_i32 = arith.constant 0 : i32
    %c0_i32_0 = arith.constant 0 : i32
    %c0_i32_1 = arith.constant 0 : i32
    return %c0_i32, %c0_i32_0 : i32, i32
  }
  func.func @transform_7(%arg0: i32) -> (i32, i32) {
    %c0_i32 = arith.constant 0 : i32
    %c0_i32_0 = arith.constant 0 : i32
    %c0_i32_1 = arith.constant 0 : i32
    return %c0_i32, %c0_i32_0 : i32, i32
  }
  func.func @transform_8(%arg0: i32) -> (i32, i32) {
    %c0_i32 = arith.constant 0 : i32
    %c0_i32_0 = arith.constant 0 : i32
    %c0_i32_1 = arith.constant 0 : i32
    return %c0_i32, %c0_i32_0 : i32, i32
  }
  func.func @transform_9(%arg0: i32) -> (i32, i32) {
    %c0_i32 = arith.constant 0 : i32
    %c0_i32_0 = arith.constant 0 : i32
    %c0_i32_1 = arith.constant 0 : i32
    return %c0_i32, %c0_i32_0 : i32, i32
  }
  func.func @transform_10(%arg0: i32) -> (i32, i32) {
    %c0_i32 = arith.constant 0 : i32
    %c0_i32_0 = arith.constant 0 : i32
    %c0_i32_1 = arith.constant 0 : i32
    return %c0_i32, %c0_i32_0 : i32, i32
  }
  func.func @transform_11(%arg0: i32) -> (i32, i32) {
    %c0_i32 = arith.constant 0 : i32
    %c0_i32_0 = arith.constant 0 : i32
    %c0_i32_1 = arith.constant 0 : i32
    return %c0_i32, %c0_i32_0 : i32, i32
  }
  func.func @transform_12(%arg0: i32) -> (i32, i32, i32) {
    %c0_i32 = arith.constant 0 : i32
    %c0_i32_0 = arith.constant 0 : i32
    %c0_i32_1 = arith.constant 0 : i32
    return %arg0, %c0_i32, %c0_i32_0 : i32, i32, i32
  }
}

</mosaic_0001>

<bundles_post_ra>
// kernel: tpu_custom_call.1
= control target key start
LH: loop header
LB: loop body
LE: loop exit
PB: predicated region body
PF: predicated region fallthrough
CT: control target
= control target key end

     0   :  { %s18684_s0 = inlined_call_operand.hbm [shape: f32[2,16,512], index: 0, kind: input, shape index: {}]   ;;  %s18685_s1 = inlined_call_operand.hbm [shape: f32[1,512], index: 1, kind: input, shape index: {}]   ;;  %s18686_s2 = inlined_call_operand.hbm [shape: f32[1,512], index: 2, kind: input, shape index: {}]   ;;  %s18687_s3 = inlined_call_operand.hbm [shape: bf16[512,1536], index: 3, kind: input, shape index: {}]   ;;  %s18688_s4 = inlined_call_operand.hbm [shape: bf16[512,512], index: 4, kind: input, shape index: {}]   ;;  %s18689_s5 = inlined_call_operand.hbm [shape: f32[1,512], index: 5, kind: input, shape index: {}]   ;;  %s18690_s6 = inlined_call_operand.hbm [shape: f32[1,512], index: 6, kind: input, shape index: {}]   ;;  %s18691_s7 = inlined_call_operand.hbm [shape: f32[1,512], index: 7, kind: input, shape index: {}]   ;;  %s18692_s8 = inlined_call_operand.hbm [shape: bf16[512,2048], index: 8, kind: input, shape index: {}]   ;;  %s18693_s9 = inlined_call_operand.hbm [shape: f32[1,2048], index: 9, kind: input, shape index: {}]   ;;  %s18694_s10 = inlined_call_operand.hbm [shape: bf16[2048,512], index: 10, kind: input, shape index: {}]   ;;  %s18695_s11 = inlined_call_operand.hbm [shape: f32[1,512], index: 11, kind: input, shape index: {}]   ;;  %s18696_s12 = inlined_call_operand.hbm [shape: f32[2,16,512], index: 12, kind: output, shape index: {}]  }
   0x1   :  { %18703 = sst [smem:[#allocation31_spill]] %s18685_s1 }
   0x2   :  { %18704 = sst [smem:[#allocation32_spill]] %s18686_s2 }
   0x3   :  { %18705 = sst [smem:[#allocation33_spill]] %s18687_s3 }
   0x4   :  { %18706 = sst [smem:[#allocation34_spill]] %s18688_s4 }
   0x5   :  { %18707 = sst [smem:[#allocation35_spill]] %s18689_s5 }
   0x6   :  { %18708 = sst [smem:[#allocation36_spill]] %s18690_s6 }
   0x7   :  { %17 = vsyncpa [#allocation3], 0 }
   0x8   :  { %19 = vsyncpa [#allocation3 + $0x1], 0 }
   0x9   :  { %20 = vsyncpa [#allocation6], 0 }
   0xa   :  { %21 = vsyncpa [#allocation9], 0 }
   0xb   :  { %22 = vsyncpa [#allocation12], 0 }
   0xc   :  { %23 = vsyncpa [#allocation15], 0 }
   0xd   :  { %24 = vsyncpa [#allocation18], 0 }
   0xe   :  { %25 = vsyncpa [#allocation21], 0 }
   0xf   :  { %26 = vsyncpa [#allocation4], 0 }
  0x10   :  { %28 = vsyncpa [#allocation4 + $0x1], 0  ;;  %s17556_s21 = smov 0   ;;  %s17558_s22 = smov 0  }
  0x11   :  { %s17560_s23 = smov 0   ;;  %s17562_s24 = smov 0  }
  0x12 LB: > { %s17465_s25 = smov [#allocation5]   ;;  %s17577_s27 = sadd.s32 4294967295, %s17463_s24   ;;  %s17463_s24 = sphi %s17562_s24, %s18749_s24   ;;  %s17459_s23 = sphi %s17560_s23, %s18748_s23   ;;  %s17455_s22 = sphi %s17558_s22, %s18747_s22   ;;  %s17451_s21 = sphi %s17556_s21, %s18746_s21  }
  0x13   : > { %s335_s26 = sshll.u32 %s17465_s25, 4  ;;  %p13534_p0 = scmp.ge.s32.totalorder %s17463_s24, 1  ;;  %s336_s26 = int_to_ptr.vmem [resolvable:$true] %s335_s26 }
  0x14   : > { %p18697_p1 = scmp.eq.s32.totalorder %s17577_s27, 0  ;;  %p322_p2 = scmp.lt.s32.totalorder %s17463_s24, 3 }
  0x15   : > { %s17466_s29 = smov [#allocation8]   ;;  %s17467_s14 = smov [#allocation11]  }
  0x16   : > { %p17582_p3 = pnand %p13534_p0, %p322_p2  ;;  %s356_s30 = sshll.u32 %s17466_s29, 4  ;;  %s17589_s30 = int_to_ptr.vmem [resolvable:$true] %s356_s30 }
  0x17   : > { %s383_s15 = sshll.u32 %s17467_s14, 4  ;;  %s17072_s17 = scalar_lea.vmem %s336_s26, 64  ;;  %s17597_s15 = int_to_ptr.vmem [resolvable:$true] %s383_s15 }
  0x18   : > { %s18709_s28 = scalar_select %p17582_p3, 1, 0 }
  0x19   : > { %p15299_p5 = pneg %p17582_p3  ;;  %p17073_p8 = scmp.ne.s32.totalorder %s336_s26, %s17072_s17 }
  0x1a   : > { %p17080_p11 = scmp.lt.s32.totalorder %s336_s26, %s336_s26  ;;  %p17081_p12 = scmp.lt.s32.totalorder %s17072_s17, %s17072_s17 }
  0x1b   : > { %p17593_p6 = pnand %p15299_p5, %p18697_p1 }
  0x1c   : > { %p17082_p13 = por %p17081_p12, %p17080_p11 }
  0x1d   : > { %p17601_p7 = pneg %p17593_p6 }
  0x1f   : > { %p17075_p9 = pnand %p17073_p8, %p17601_p7 }
  0x21   : > { %p17076_p10 = pneg %p17075_p9 }
  0x23   : > { %p17083_p0 = pnand %p17082_p13, %p17076_p10 }
  0x25   : > { %17086 = shalt.err (!%p17083_p0)
}
  0x26   : > { %s18712_s1 = sld [smem:[#allocation31_spill]]  ;;  %s17098_s20 = scalar_lea.vmem %s17589_s30, 49152 }
  0x27   : > { %p17099_p2 = scmp.ne.s32.totalorder %s17589_s30, %s17098_s20  ;;  %p17106_p9 = scmp.lt.s32.totalorder %s17589_s30, %s17589_s30 }
  0x28   : > { %p17107_p11 = scmp.lt.s32.totalorder %s17098_s20, %s17098_s20 }
  0x29   : > { %p17101_p5 = pnand %p17099_p2, %p17601_p7 }
  0x2a   : > { %p17108_p10 = por %p17107_p11, %p17106_p9 }
  0x2b   : > { %p17102_p8 = pneg %p17101_p5 }
  0x2c   : > { %15302 = dma.hbm_to_vmem [thread:$0]  (!%p17593_p6), %s18712_s1, 64, %s336_s26, [#allocation6]  }
  0x2d   : > { %p17109_p12 = pnand %p17108_p10, %p17102_p8 }
  0x2f   : > { %17112 = shalt.err (!%p17109_p12)
}
  0x30   : > { %s17468_s25 = smov 768   ;;  %s17469_s29 = smov 48  }
  0x31   : > { %s18713_s3 = sld [smem:[#allocation33_spill]]  ;;  %s17124_s17 = scalar_lea.vmem %s17597_s15, 64 }
  0x32   : > { %p17125_p13 = scmp.ne.s32.totalorder %s17597_s15, %s17124_s17  ;;  %p17132_p5 = scmp.lt.s32.totalorder %s17597_s15, %s17597_s15 }
  0x33   : > { %p17133_p8 = scmp.lt.s32.totalorder %s17124_s17, %s17124_s17 }
  0x34   : > { %p17127_p0 = pnand %p17125_p13, %p17601_p7 }
  0x35   : > { %p17134_p9 = por %p17133_p8, %p17132_p5 }
  0x36   : > { %p17128_p2 = pneg %p17127_p0 }
  0x37   : > { %15308 = dma.hbm_to_vmem [thread:$0]  (!%p17593_p6), %s18713_s3, 49152, %s17589_s30, [#allocation9], %s17468_s25, %s17468_s25, %s17469_s29  }
  0x38   : > { %p17135_p11 = pnand %p17134_p9, %p17128_p2 }
  0x3a   : > { %17138 = shalt.err (!%p17135_p11)
}
  0x3b   : > { %s18714_s5 = sld [smem:[#allocation35_spill]]  ;;  %s17470_s30 = smov [#allocation14]  }
  0x3c   : > { %s405_s20 = sshll.u32 %s17470_s30, 4  ;;  %s17471_s25 = smov [#allocation17]   ;;  %s406_s20 = int_to_ptr.vmem [resolvable:$true] %s405_s20 }
  0x3d   : > { %s429_s29 = sshll.u32 %s17471_s25, 4  ;;  %s17150_s26 = scalar_lea.vmem %s406_s20, 64  ;;  %s430_s29 = int_to_ptr.vmem [resolvable:$true] %s429_s29 }
  0x3e   : > { %p17151_p10 = scmp.ne.s32.totalorder %s406_s20, %s17150_s26  ;;  %p17158_p0 = scmp.lt.s32.totalorder %s406_s20, %s406_s20 }
  0x3f   : > { %p17159_p2 = scmp.lt.s32.totalorder %s17150_s26, %s17150_s26 }
  0x40   : > { %p17153_p12 = pnand %p17151_p10, %p17601_p7 }
  0x41   : > { %15314 = dma.hbm_to_vmem [thread:$0]  (!%p17593_p6), %s18714_s5, 64, %s17597_s15, [#allocation12]  }
  0x42   : > { %p17154_p13 = pneg %p17153_p12  ;;  %p17160_p5 = por %p17159_p2, %p17158_p0 }
  0x44   : > { %p17161_p8 = pnand %p17160_p5, %p17154_p13 }
  0x46   : > { %17164 = shalt.err (!%p17161_p8)
}
  0x47   : > { %15320 = dma.hbm_to_vmem [thread:$0]  (!%p17593_p6), %s18691_s7, 64, %s406_s20, [#allocation15]  }
  0x48   : > { %s17176_s15 = scalar_lea.vmem %s430_s29, 256  ;;  %p17184_p10 = scmp.lt.s32.totalorder %s430_s29, %s430_s29 }
  0x49   : > { %p17177_p9 = scmp.ne.s32.totalorder %s430_s29, %s17176_s15  ;;  %p17185_p12 = scmp.lt.s32.totalorder %s17176_s15, %s17176_s15 }
  0x4b   : > { %p17179_p11 = pnand %p17177_p9, %p17601_p7  ;;  %p17186_p1 = por %p17185_p12, %p17184_p10 }
  0x4d   : > { %p17180_p4 = pneg %p17179_p11 }
  0x4f   : > { %p17187_p3 = pnand %p17186_p1, %p17180_p4 }
  0x51   : > { %17190 = shalt.err (!%p17187_p3)
}
  0x52   : > { %15326 = dma.hbm_to_vmem [thread:$0]  (!%p17593_p6), %s18693_s9, 256, %s430_s29, [#allocation18]  }
  0x53   : > { %s17472_s30 = smov [#allocation7]   ;;  %s17473_s25 = smov [#allocation10]  }
  0x54   : > { %s346_s20 = sshll.u32 %s17472_s30, 4  ;;  %s369_s26 = sshll.u32 %s17473_s25, 4  ;;  %s347_s20 = int_to_ptr.vmem [resolvable:$true] %s346_s20  ;;  %s370_s26 = int_to_ptr.vmem [resolvable:$true] %s369_s26 }
  0x55   : > { %s17202_s14 = scalar_lea.vmem %s347_s20, 64  ;;  %p17210_p5 = scmp.lt.s32.totalorder %s347_s20, %s347_s20 }
  0x56   : > { %p17203_p13 = scmp.ne.s32.totalorder %s347_s20, %s17202_s14  ;;  %p17211_p1 = scmp.lt.s32.totalorder %s17202_s14, %s17202_s14 }
  0x58   : > { %p17205_p0 = pnand %p17203_p13, %p17601_p7  ;;  %p17212_p3 = por %p17211_p1, %p17210_p5 }
  0x5a   : > { %p17206_p2 = pneg %p17205_p0 }
  0x5c   : > { %p17213_p4 = pnand %p17212_p3, %p17206_p2 }
  0x5e   : > { %17216 = shalt.err (!%p17213_p4)
}
  0x5f   : > { %s18715_s2 = sld [smem:[#allocation32_spill]]  ;;  %s17228_s29 = scalar_lea.vmem %s370_s26, 16384 }
  0x60   : > { %p17229_p8 = scmp.ne.s32.totalorder %s370_s26, %s17228_s29  ;;  %p17236_p10 = scmp.lt.s32.totalorder %s370_s26, %s370_s26 }
  0x61   : > { %p17237_p12 = scmp.lt.s32.totalorder %s17228_s29, %s17228_s29 }
  0x62   : > { %p17231_p9 = pnand %p17229_p8, %p17601_p7 }
  0x63   : > { %p17238_p13 = por %p17237_p12, %p17236_p10 }
  0x64   : > { %p17232_p11 = pneg %p17231_p9 }
  0x65   : > { %15305 = dma.hbm_to_vmem [thread:$0]  (!%p17593_p6), %s18715_s2, 64, %s347_s20, [#allocation6]  }
  0x66   : > { %p17239_p0 = pnand %p17238_p13, %p17232_p11 }
  0x68   : > { %17242 = shalt.err (!%p17239_p0)
}
  0x69   : > { %s18699_s18 = smov 256   ;;  %s18700_s19 = smov 16  }
  0x6a   : > { %s18716_s4 = sld [smem:[#allocation34_spill]]  ;;  %s17476_s25 = smov [#allocation13]  }
  0x6b   : > { %s394_s14 = sshll.u32 %s17476_s25, 4  ;;  %s17477_s17 = smov [#allocation16]   ;;  %s395_s14 = int_to_ptr.vmem [resolvable:$true] %s394_s14 }
  0x6c   : > { %s415_s15 = sshll.u32 %s17477_s17, 4  ;;  %s17254_s29 = scalar_lea.vmem %s395_s14, 64  ;;  %s416_s15 = int_to_ptr.vmem [resolvable:$true] %s415_s15 }
  0x6d   : > { %p17255_p2 = scmp.ne.s32.totalorder %s395_s14, %s17254_s29  ;;  %p17262_p3 = scmp.lt.s32.totalorder %s395_s14, %s395_s14 }
  0x6e   : > { %p17263_p4 = scmp.lt.s32.totalorder %s17254_s29, %s17254_s29 }
  0x6f   : > { %p17257_p5 = pnand %p17255_p2, %p17601_p7 }
  0x70   : > { %15311 = dma.hbm_to_vmem [thread:$0]  (!%p17593_p6), %s18716_s4, 16384, %s370_s26, [#allocation9], %s18699_s18, %s18699_s18, %s18700_s19  }
  0x71   : > { %p17258_p1 = pneg %p17257_p5  ;;  %p17264_p8 = por %p17263_p4, %p17262_p3 }
  0x73   : > { %p17265_p9 = pnand %p17264_p8, %p17258_p1 }
  0x75   : > { %17268 = shalt.err (!%p17265_p9)
}
  0x76   : > { %s18717_s6 = sld [smem:[#allocation36_spill]]  ;;  %s17280_s26 = scalar_lea.vmem %s416_s15, 65536 }
  0x77   : > { %p17281_p11 = scmp.ne.s32.totalorder %s416_s15, %s17280_s26  ;;  %p17288_p13 = scmp.lt.s32.totalorder %s416_s15, %s416_s15 }
  0x78   : > { %p17289_p0 = scmp.lt.s32.totalorder %s17280_s26, %s17280_s26 }
  0x79   : > { %p17283_p10 = pnand %p17281_p11, %p17601_p7 }
  0x7a   : > { %p17290_p2 = por %p17289_p0, %p17288_p13 }
  0x7b   : > { %p17284_p12 = pneg %p17283_p10 }
  0x7c   : > { %15317 = dma.hbm_to_vmem [thread:$0]  (!%p17593_p6), %s18717_s6, 64, %s395_s14, [#allocation12]  }
  0x7d   : > { %p17291_p5 = pnand %p17290_p2, %p17284_p12 }
  0x7f   : > { %17294 = shalt.err (!%p17291_p5)
}
  0x80   : > { %s17478_s20 = smov 1024   ;;  %s17479_s25 = smov 64  }
  0x81   : > { %15323 = dma.hbm_to_vmem [thread:$0]  (!%p17593_p6), %s18692_s8, 65536, %s416_s15, [#allocation15], %s17478_s20, %s17478_s20, %s17479_s25  }
  0x82   : > { %s17480_s14 = smov [#allocation19]   ;;  %s17481_s30 = smov [#allocation20]  }
  0x83   : > { %s439_s29 = sshll.u32 %s17480_s14, 4  ;;  %s453_s18 = sshll.u32 %s17481_s30, 4  ;;  %s440_s29 = int_to_ptr.vmem [resolvable:$true] %s439_s29  ;;  %s454_s18 = int_to_ptr.vmem [resolvable:$true] %s453_s18 }
  0x84   : > { %s17306_s19 = scalar_lea.vmem %s440_s29, 65536  ;;  %p17314_p8 = scmp.lt.s32.totalorder %s440_s29, %s440_s29 }
  0x85   : > { %p17307_p1 = scmp.ne.s32.totalorder %s440_s29, %s17306_s19  ;;  %p17315_p9 = scmp.lt.s32.totalorder %s17306_s19, %s17306_s19 }
  0x87   : > { %p17309_p3 = pnand %p17307_p1, %p17601_p7  ;;  %p17316_p11 = por %p17315_p9, %p17314_p8 }
  0x89   : > { %p17310_p4 = pneg %p17309_p3 }
  0x8b   : > { %p17317_p10 = pnand %p17316_p11, %p17310_p4 }
  0x8d   : > { %17320 = shalt.err (!%p17317_p10)
}
  0x8e   : > { %s18718_s26 = smov 16   ;;  %s18719_s17 = smov 256  }
  0x8f   : > { %15329 = dma.hbm_to_vmem [thread:$0]  (!%p17593_p6), %s18694_s10, 65536, %s440_s29, [#allocation18], %s18719_s17, %s18719_s17, %s18718_s26  }
  0x90   : > { %s17332_s25 = scalar_lea.vmem %s454_s18, 64  ;;  %p17340_p2 = scmp.lt.s32.totalorder %s454_s18, %s454_s18 }
  0x91   : > { %p17333_p12 = scmp.ne.s32.totalorder %s454_s18, %s17332_s25  ;;  %p17341_p5 = scmp.lt.s32.totalorder %s17332_s25, %s17332_s25 }
  0x93   : > { %p17335_p13 = pnand %p17333_p12, %p17601_p7  ;;  %p17342_p1 = por %p17341_p5, %p17340_p2 }
  0x95   : > { %p17336_p0 = pneg %p17335_p13 }
  0x97   : > { %p17343_p3 = pnand %p17342_p1, %p17336_p0 }
  0x99   : > { %17346 = shalt.err (!%p17343_p3)
}
  0x9a   : > { %15332 = dma.hbm_to_vmem [thread:$0]  (!%p17593_p6), %s18695_s11, 64, %s454_s18, [#allocation21]  }
  0x9b   : > { %s13533_s16 = sadd.s32 4294967294, %s17463_s24   ;;  %s17700_s13 = sadd.s32 1, %s17463_s24  }
  0x9c   : > { %s41_s14 = sadd.s32 1, %s17459_s23  ;;  %s38_s29 = ssub.s32 %s17463_s24, %s17700_s13 }
  0x9d   : > { %p48_p7 = scmp.ne.s32.totalorder %s17459_s23, %s17455_s22  ;;  %p39_p4 = scmp.eq.s32.totalorder %s38_s29, 0 }
  0x9e   : > { %p49_p8 = scmp.eq.s32.totalorder %s17463_s24, 0  ;;  %p54_p9 = scmp.ne.s32.totalorder %s17455_s22, %s17451_s21 }
  0x9f   : > { %p309_p11 = scmp.eq.s32.totalorder %s17577_s27, 1  ;;  %p18720_p12 = scmp.eq.s32.totalorder %s17577_s27, 0 }
  0xa0   : > { %s17712_s30 = scalar_select %p39_p4, %s17459_s23, %s41_s14  }
  0xa1   : > { %p50_p10 = por %p49_p8, %p48_p7  ;;  %p17716_p13 = por %p18720_p12, %p54_p9 }
  0xa2   : > { %p17720_p6 = por %p309_p11, %p48_p7  ;;  %p315_p0 = scmp.eq.s32.totalorder %s13533_s16, 1 }
  0xa3   : > { %s18721_s26 = scalar_select %p17716_p13, 1, 0 }
  0xa4   : > { %s18722_s18 = scalar_select %p17720_p6, 1, 0 }
  0xa5   : > { %p15352_p2 = scmp.lt.s32.totalorder %s17463_s24, 2  ;;  %s464_s17 = sand.u32 1, %s17459_s23  }
  0xa6   : > { %p17726_p5 = por %p315_p0, %p54_p9  ;;  %s13547_s20 = sshll.u32 %s464_s17, 6 }
  0xa7   : > { %s15121_s25 = sshll.u32 %s17463_s24, 10  ;;  %s468_s29 = scalar_lea.vmem [#allocation2], %s13547_s20 }
  0xa8   : > { %s18723_s15 = scalar_select %p17726_p5, 1, 0 }
  0xa9   : > { %s17734_s14 = scalar_lea.hbm %s18684_s0, %s15121_s25  ;;  %s475_s2 = sshll.u32 %s468_s29, 4  ;;  %s17740_s2 = int_to_ptr.vmem [resolvable:$true] %s475_s2 }
  0xaa   : > { %p17736_p1 = pnand %p15352_p2, %p50_p10  ;;  %s17742_s3 = scalar_lea.sflag [#allocation3], %s464_s17 }
  0xab   : > { %s17347_s4 = scalar_lea.hbm %s17734_s14, 1024  ;;  %s17352_s20 = scalar_lea.hbm %s18684_s0, 2048 }
  0xac   : > { %p17348_p3 = scmp.ne.s32.totalorder %s17734_s14, %s17347_s4  ;;  %p17349_p7 = pneg %p17736_p1 }
  0xad   : > { %p17353_p9 = scmp.lt.s32.totalorder %s17734_s14, %s18684_s0  ;;  %p17354_p11 = scmp.lt.s32.totalorder %s17352_s20, %s17347_s4 }
  0xae   : > { %p17350_p4 = pnand %p17349_p7, %p17348_p3 }
  0xaf   : > { %p17355_p10 = por %p17354_p11, %p17353_p9 }
  0xb0   : > { %p17351_p8 = pneg %p17350_p4 }
  0xb2   : > { %p17356_p12 = pnand %p17355_p10, %p17351_p8 }
  0xb4   : > { %17359 = shalt.err (!%p17356_p12)
}
  0xb5   : > { %s17360_s17 = scalar_lea.vmem %s17740_s2, 1024  ;;  %s17482_s5 = smov [#allocation2]  }
  0xb6   : > { %p17361_p0 = scmp.ne.s32.totalorder %s17740_s2, %s17360_s17  ;;  %s17365_s6 = sshll.u32 %s17482_s5, 4  ;;  %s17366_s6 = int_to_ptr.vmem [resolvable:$false] %s17365_s6 }
  0xb7   : > { %s17367_s25 = scalar_lea.vmem %s17366_s6, 2048  ;;  %p17368_p4 = scmp.lt.s32.totalorder %s17740_s2, %s17366_s6 }
  0xb8   : > { %p17363_p2 = pnand %p17361_p0, %p17349_p7  ;;  %p17369_p5 = scmp.lt.s32.totalorder %s17367_s25, %s17360_s17 }
  0xba   : > { %p17364_p3 = pneg %p17363_p2  ;;  %p17370_p6 = por %p17369_p5, %p17368_p4 }
  0xbc   : > { %p17371_p13 = pnand %p17370_p6, %p17364_p3 }
  0xbe   : > { %17374 = shalt.err (!%p17371_p13)
}
  0xbf   : > { %s17483_s4 = smov 512   ;;  %s17484_s19 = smov 32  }
  0xc0   : > { %15336 = dma.hbm_to_vmem [thread:$0]  (!%p17736_p1), %s17734_s14, 1024, %s17740_s2, %s17742_s3, %s17483_s4, %s17483_s4, %s17484_s19  }
  0xc1   : > { %p18725_p7 = scmp.ne.s32.totalorder %s18709_s28, 0 }
  0xc2   : > { %s17766_s5 = sand.u32 (!%p18725_p7), 1, %s17455_s22   ;;  %p18726_p13 = scmp.ne.s32.totalorder (!%p18725_p7), %s18721_s26, 0 }
  0xc3   : > { %487 = sbr.rel (%p18725_p7) target bundleno = 3397 (0xd45), region = 68  ;;  %s13551_s6 = sshll.u32 (!%p18725_p7), %s17766_s5, 6 }
  0xc4   : > { %s490_s20 = scalar_lea.sflag (!%p18725_p7), [#allocation3], %s17766_s5  ;;  %s17772_s1 = scalar_lea.vmem (!%p18725_p7), [#allocation2], %s13551_s6 }
  0xc8   : > { %17418 = dma.done.wait (%p18726_p13), %s490_s20, 1024  }
  0xc9   : > { %17420 = vsyncadd (%p18726_p13), %s490_s20, 4294966272  ;;  %p18727_p6 = scmp.eq.s32.totalorder %s17577_s27, 0 }
  0xcb   : > { %17422 = dma.done.wait (%p18727_p6), [#allocation6], 128   ;;  %p18728_p5 = pmov %p18727_p6 }
  0xcd   : > { %17424 = vsyncadd (%p18728_p5), [#allocation6], 4294967168  ;;  %p18729_p1 = pmov %p18728_p5 }
  0xcf   : > { %17426 = dma.done.wait (%p18729_p1), [#allocation9], 65536   ;;  %p18730_p8 = pmov %p18729_p1 }
  0xd0   : > { %p18731_p9 = pmov %p18729_p1 }
  0xd1   : > { %17428 = vsyncadd (%p18730_p8), [#allocation9], 4294901760 }
  0xd2   : > { %17430 = dma.done.wait (%p18731_p9), [#allocation12], 128   ;;  %p18732_p11 = pmov %p18729_p1 }
  0xd3   : > { %p18733_p10 = pmov %p18729_p1 }
  0xd4   : > { %17432 = vsyncadd (%p18732_p11), [#allocation12], 4294967168 }
  0xd5   : > { %17434 = dma.done.wait (%p18733_p10), [#allocation15], 65600   ;;  %p18734_p12 = pmov %p18729_p1 }
  0xd6   : > { %p18735_p0 = pmov %p18729_p1 }
  0xd7   : > { %17436 = vsyncadd (%p18734_p12), [#allocation15], 4294901696 }
  0xd8   : > { %17438 = dma.done.wait (%p18735_p0), [#allocation18], 65792   ;;  %p18736_p2 = pmov %p18735_p0 }
  0xd9   : > { %p18737_p3 = pmov %p18735_p0 }
  0xda   : > { %17440 = vsyncadd (%p18736_p2), [#allocation18], 4294901504 }
  0xdb   : > { %17442 = dma.done.wait (%p18737_p3), [#allocation21], 64   ;;  %p18738_p4 = pmov %p18735_p0 }
  0xdc   : > { %v17803_v0 = vld [vmem:[%s17772_s1] sm:$0xff]  ;;  %v17806_v1 = vld [vmem:[%s17772_s1 + $0x8] sm:$0xff]  ;;  %v17809_v2 = vld [vmem:[%s17772_s1 + $0x10] sm:$0xff]  ;;  %s17485_s2 = smov 64   ;;  %vm17487_vm0 = vmmov 0   ;;  %vm3547_vm1 = vcmask 523264  }
  0xdd   : > { %17444 = vsyncadd (%p18738_p4), [#allocation21], 4294967232  ;;  %v17812_v3 = vld [vmem:[%s17772_s1 + $0x18] sm:$0xff]  ;;  %v589_v4 = vadd.f32 %v17806_v1, %v17803_v0  ;;  %v602_v5 = vmul.f32 %v17803_v0, %v17803_v0  ;;  %v603_v6 = vmul.f32 %v17806_v1, %v17806_v1  ;;  %v604_v7 = vmul.f32 %v17809_v2, %v17809_v2  ;;  %v583_v8 = vld [vmem:[%s17772_s1 + $0x20] sm:$0xff]  ;;  %s18611_s3 = scalar_lea.vmem [#allocation22], %s13551_s6  ;;  %s15122_s26 = sshll.u32 %s17577_s27, 10 }
  0xde   : > { %v17824_v9 = vld [vmem:[%s17772_s1 + $0x28] sm:$0xff]  ;;  %v585_v10 = vld [vmem:[%s17772_s1 + $0x30] sm:$0xff]  ;;  %v17828_v11 = vld [vmem:[%s17772_s1 + $0x38] sm:$0xff]  ;;  %v606_v13 = vmul.f32 %v583_v8, %v583_v8  ;;  %v605_v16 = vmul.f32 %v17812_v3, %v17812_v3  ;;  %vm3597_vm3 = vcmask 130048   ;;  %s13355_s28 = sshll.u32 %s18611_s3, 4  ;;  %s18638_s29 = scalar_lea.hbm %s18696_s12, %s15122_s26  ;;  %s18631_s28 = int_to_ptr.vmem [resolvable:$true] %s13355_s28 }
  0xdf   : > { %v594_v12 = vadd.f32 %v17824_v9, %v583_v8  ;;  %v607_v14 = vmul.f32 %v17824_v9, %v17824_v9  ;;  %v590_v15 = vadd.f32 %v589_v4, %v17809_v2  ;;  %v610_v17 = vadd.f32 %v603_v6, %v602_v5  ;;  %v15441_v19 = vld [vmem:[#allocation8 + $0x2a4] ss:$48 sps:$4 sm:$0xff]   ;;  %v15445_v23 = vld [vmem:[#allocation8 + $0x2a0] ss:$48 sps:$4 sm:$0xff]   ;;  %s13342_s27 = scalar_lea.sflag [#allocation4], %s17766_s5  ;;  %s17375_s17 = scalar_lea.vmem %s18631_s28, 1024 }
  0xe0   : > { %v608_v18 = vmul.f32 %v585_v10, %v585_v10  ;;  %v15443_v22 = vld [vmem:[#allocation8 + $0x8a4] ss:$48 sps:$4 sm:$0xff]   ;;  %v609_v26 = vmul.f32 %v17828_v11, %v17828_v11  ;;  %3012 = vmatprep.subr.bf16.mxu0 %v15441_v19  ;;  %v15446_v27 = vld [vmem:[#allocation8 + $0x8a0] ss:$48 sps:$4 sm:$0xff]   ;;  %p17376_p7 = scmp.ne.s32.totalorder %s18631_s28, %s17375_s17  ;;  %p18743_p13 = scmp.ne.s32.totalorder %s18722_s18, 0 }
  0xe1   : > { %v595_v20 = vadd.f32 %v594_v12, %v585_v10  ;;  %v615_v21 = vadd.f32 %v607_v14, %v606_v13  ;;  %v591_v24 = vadd.f32 %v590_v15, %v17812_v3  ;;  %v611_v25 = vadd.f32 %v610_v17, %v604_v7  ;;  %3055 = vmatprep.subr.bf16.mxu1 %v15443_v22  ;;  %v15447_v29 = vld [vmem:[#allocation8 + $0x244] ss:$48 sps:$4 sm:$0xff]   ;;  %v15451_v33 = vld [vmem:[#allocation8 + $0x240] ss:$48 sps:$4 sm:$0xff]   ;;  %s17488_s25 = smov [#allocation22]  }
  0xe2   : > { %3013 = vmatpush1.bf16.msra.mxu0 %v15445_v23  ;;  %3056 = vmatpush1.bf16.msra.mxu1 %v15446_v27  ;;  %v15449_v32 = vld [vmem:[#allocation8 + $0x844] ss:$48 sps:$4 sm:$0xff]   ;;  %v15452_v34 = vld [vmem:[#allocation8 + $0x840] ss:$48 sps:$4 sm:$0xff]   ;;  %p17377_p6 = pnand %p17376_p7, %p18743_p13  ;;  %s17379_s4 = sshll.u32 %s17488_s25, 4  ;;  %s17380_s4 = int_to_ptr.vmem [resolvable:$false] %s17379_s4 }
  0xe3   : > { %v616_v28 = vadd.f32 %v615_v21, %v608_v18  ;;  %592 = vadd.xlane.f32.xlu0 %v591_v24  ;;  %v612_v30 = vadd.f32 %v611_v25, %v605_v16  ;;  %v596_v31 = vadd.f32 %v595_v20, %v17828_v11  ;;  %3014 = vmatprep.subr.bf16.mxu0 %v15447_v29  ;;  %v15453_v35 = vld [vmem:[#allocation8 + $0x1e4] ss:$48 sps:$4 sm:$0xff]   ;;  %v15457_v38 = vld [vmem:[#allocation8 + $0x1e0] ss:$48 sps:$4 sm:$0xff]   ;;  %s17381_s19 = scalar_lea.vmem %s17380_s4, 2048  ;;  %p17382_p1 = scmp.lt.s32.totalorder %s18631_s28, %s17380_s4 }
  0xe4   : > { %3057 = vmatprep.subr.bf16.mxu1 %v15449_v32  ;;  %v15455_v37 = vld [vmem:[#allocation8 + $0x7e4] ss:$48 sps:$4 sm:$0xff]   ;;  %v15458_v39 = vld [vmem:[#allocation8 + $0x7e0] ss:$48 sps:$4 sm:$0xff]   ;;  %p17378_p5 = pneg %p17377_p6  ;;  %p17383_p8 = scmp.lt.s32.totalorder %s17381_s19, %s17375_s17 }
  0xe5   : > { %613 = vadd.xlane.f32.xlu1 %v612_v30  ;;  %v617_v36 = vadd.f32 %v616_v28, %v609_v26  ;;  %v15459_v40 = vld [vmem:[#allocation8 + $0x184] ss:$48 sps:$4 sm:$0xff]   ;;  %v15463_v42 = vld [vmem:[#allocation8 + $0x180] ss:$48 sps:$4 sm:$0xff]  }
  0xe6   : > { %3015 = vmatpush1.bf16.msra.mxu0 %v15451_v33  ;;  %3058 = vmatpush1.bf16.msra.mxu1 %v15452_v34  ;;  %v15461_v41 = vld [vmem:[#allocation8 + $0x784] ss:$48 sps:$4 sm:$0xff]   ;;  %v15464_v43 = vld [vmem:[#allocation8 + $0x780] ss:$48 sps:$4 sm:$0xff]   ;;  %v15539_v34 = vld [vmem:[#allocation8 + $0x2ac] ss:$48 sps:$4 sm:$0xff]   ;;  %p17384_p9 = por %p17383_p8, %p17382_p1 }
  0xe7   : > { %597 = vadd.xlane.f32.xlu0 %v596_v31  ;;  %3016 = vmatprep.subr.bf16.mxu0 %v15453_v35  ;;  %v15465_v44 = vld [vmem:[#allocation8 + $0x124] ss:$48 sps:$4 sm:$0xff]   ;;  %v15469_v46 = vld [vmem:[#allocation8 + $0x120] ss:$48 sps:$4 sm:$0xff]   ;;  %v15542_v35 = vld [vmem:[#allocation8 + $0x8ac] ss:$48 sps:$4 sm:$0xff]  }
  0xe8   : > { %3059 = vmatprep.subr.bf16.mxu1 %v15455_v37  ;;  %v15467_v45 = vld [vmem:[#allocation8 + $0x724] ss:$48 sps:$4 sm:$0xff]   ;;  %v15470_v47 = vld [vmem:[#allocation8 + $0x720] ss:$48 sps:$4 sm:$0xff]   ;;  %p17385_p11 = pnand %p17384_p9, %p17378_p5 }
  0xe9   : > { %618 = vadd.xlane.f32.xlu1 %v617_v36  ;;  %v15471_v48 = vld [vmem:[#allocation8 + $0xc4] ss:$48 sps:$4 sm:$0xff]   ;;  %v15475_v50 = vld [vmem:[#allocation8 + $0xc0] ss:$48 sps:$4 sm:$0xff]  }
  0xea   : > { %3017 = vmatpush1.bf16.msra.mxu0 %v15457_v38  ;;  %3060 = vmatpush1.bf16.msra.mxu1 %v15458_v39  ;;  %v15473_v49 = vld [vmem:[#allocation8 + $0x6c4] ss:$48 sps:$4 sm:$0xff]   ;;  %v15476_v51 = vld [vmem:[#allocation8 + $0x6c0] ss:$48 sps:$4 sm:$0xff]  }
  0xeb   : > { %3018 = vmatprep.subr.bf16.mxu0 %v15459_v40  ;;  %3061 = vmatprep.subr.bf16.mxu1 %v15461_v41  ;;  %v15477_v52 = vld [vmem:[#allocation8 + $0x64] ss:$48 sps:$4 sm:$0xff]   ;;  %v15481_v54 = vld [vmem:[#allocation8 + $0x60] ss:$48 sps:$4 sm:$0xff]  }
  0xec   : > { %v15479_v53 = vld [vmem:[#allocation8 + $0x664] ss:$48 sps:$4 sm:$0xff]   ;;  %v15482_v55 = vld [vmem:[#allocation8 + $0x660] ss:$48 sps:$4 sm:$0xff]  }
  0xed   : > { %v15483_v56 = vld [vmem:[#allocation8 + $0x4] ss:$48 sps:$4 sm:$0xff]   ;;  %v15487_v58 = vld [vmem:[#allocation8] ss:$48 sps:$4 sm:$0xff]  }
  0xee   : > { %3019 = vmatpush1.bf16.msra.mxu0 %v15463_v42  ;;  %3062 = vmatpush1.bf16.msra.mxu1 %v15464_v43  ;;  %v15485_v57 = vld [vmem:[#allocation8 + $0x604] ss:$48 sps:$4 sm:$0xff]   ;;  %v15488_v59 = vld [vmem:[#allocation8 + $0x600] ss:$48 sps:$4 sm:$0xff]  }
  0xef   : > { %3020 = vmatprep.subr.bf16.mxu0 %v15465_v44  ;;  %3063 = vmatprep.subr.bf16.mxu1 %v15467_v45  ;;  %v15489_v60 = vld [vmem:[#allocation8 + $0x5a4] ss:$48 sps:$4 sm:$0xff]   ;;  %v15493_v62 = vld [vmem:[#allocation8 + $0x5a0] ss:$48 sps:$4 sm:$0xff]  }
  0xf0   : > { %v15491_v61 = vld [vmem:[#allocation8 + $0xba4] ss:$48 sps:$4 sm:$0xff]   ;;  %v15494_v63 = vld [vmem:[#allocation8 + $0xba0] ss:$48 sps:$4 sm:$0xff]  }
  0xf1   : > { %v15495_v4 = vld [vmem:[#allocation8 + $0x544] ss:$48 sps:$4 sm:$0xff]   ;;  %v15499_v6 = vld [vmem:[#allocation8 + $0x540] ss:$48 sps:$4 sm:$0xff]  }
  0xf2   : > { %3021 = vmatpush1.bf16.msra.mxu0 %v15469_v46  ;;  %3064 = vmatpush1.bf16.msra.mxu1 %v15470_v47  ;;  %v15497_v5 = vld [vmem:[#allocation8 + $0xb44] ss:$48 sps:$4 sm:$0xff]   ;;  %v15500_v7 = vld [vmem:[#allocation8 + $0xb40] ss:$48 sps:$4 sm:$0xff]  }
  0xf3   : > { %3022 = vmatprep.subr.bf16.mxu0 %v15471_v48  ;;  %3065 = vmatprep.subr.bf16.mxu1 %v15473_v49  ;;  %v15501_v8 = vld [vmem:[#allocation8 + $0x4e4] ss:$48 sps:$4 sm:$0xff]   ;;  %v15505_v12 = vld [vmem:[#allocation8 + $0x4e0] ss:$48 sps:$4 sm:$0xff]  }
  0xf4   : > { %v15503_v10 = vld [vmem:[#allocation8 + $0xae4] ss:$48 sps:$4 sm:$0xff]   ;;  %v15506_v13 = vld [vmem:[#allocation8 + $0xae0] ss:$48 sps:$4 sm:$0xff]  }
  0xf5   : > { %v15507_v14 = vld [vmem:[#allocation8 + $0x484] ss:$48 sps:$4 sm:$0xff]   ;;  %v15511_v16 = vld [vmem:[#allocation8 + $0x480] ss:$48 sps:$4 sm:$0xff]  }
  0xf6   : > { %3023 = vmatpush1.bf16.msra.mxu0 %v15475_v50  ;;  %3066 = vmatpush1.bf16.msra.mxu1 %v15476_v51  ;;  %v15509_v15 = vld [vmem:[#allocation8 + $0xa84] ss:$48 sps:$4 sm:$0xff]   ;;  %v15512_v17 = vld [vmem:[#allocation8 + $0xa80] ss:$48 sps:$4 sm:$0xff]   ;;  %v647_v50 = vlaneseq }
  0xf7   : > { %3024 = vmatprep.subr.bf16.mxu0 %v15477_v52  ;;  %3067 = vmatprep.subr.bf16.mxu1 %v15479_v53  ;;  %v15513_v18 = vld [vmem:[#allocation8 + $0x424] ss:$48 sps:$4 sm:$0xff]   ;;  %v15517_v20 = vld [vmem:[#allocation8 + $0x420] ss:$48 sps:$4 sm:$0xff]   ;;  %v587_v52 = vld [vmem:[#allocation5] sm:$0xf] }
  0xf8   : > { %v15515_v19 = vld [vmem:[#allocation8 + $0xa24] ss:$48 sps:$4 sm:$0xff]   ;;  %v15518_v21 = vld [vmem:[#allocation8 + $0xa20] ss:$48 sps:$4 sm:$0xff]   ;;  %v17841_v51 = vshrl.u32 %v647_v50, 7 }
  0xf9   : > { %v15519_v22 = vld [vmem:[#allocation8 + $0x3c4] ss:$48 sps:$4 sm:$0xff]   ;;  %v15523_v24 = vld [vmem:[#allocation8 + $0x3c0] ss:$48 sps:$4 sm:$0xff]  }
  0xfa   : > { %3025 = vmatpush1.bf16.msra.mxu0 %v15481_v54  ;;  %3068 = vmatpush1.bf16.msra.mxu1 %v15482_v55  ;;  %v15521_v23 = vld [vmem:[#allocation8 + $0x9c4] ss:$48 sps:$4 sm:$0xff]   ;;  %v15524_v25 = vld [vmem:[#allocation8 + $0x9c0] ss:$48 sps:$4 sm:$0xff]   ;;  %v17844_v53 = vsub.s32 1, %v17841_v51  ;;  %v17847_v54 = vsub.s32 3, %v17841_v51 }
  0xfb   : > { %3026 = vmatprep.subr.bf16.mxu0 %v15483_v56  ;;  %3069 = vmatprep.subr.bf16.mxu1 %v15485_v57  ;;  %v15525_v26 = vld [vmem:[#allocation8 + $0x364] ss:$48 sps:$4 sm:$0xff]   ;;  %v15529_v28 = vld [vmem:[#allocation8 + $0x360] ss:$48 sps:$4 sm:$0xff]   ;;  %v17850_v55 = vsub.s32 0, %v17841_v51  ;;  %v17853_v56 = vsub.s32 2, %v17841_v51 }
  0xfc   : > { %v15527_v27 = vld [vmem:[#allocation8 + $0x964] ss:$48 sps:$4 sm:$0xff]   ;;  %v15530_v29 = vld [vmem:[#allocation8 + $0x960] ss:$48 sps:$4 sm:$0xff]  }
  0xfd   : > { %v15531_v30 = vld [vmem:[#allocation8 + $0x304] ss:$48 sps:$4 sm:$0xff]   ;;  %v15535_v32 = vld [vmem:[#allocation8 + $0x300] ss:$48 sps:$4 sm:$0xff]  }
  0xfe   : > { %3027 = vmatpush1.bf16.msra.mxu0 %v15487_v58  ;;  %3070 = vmatpush1.bf16.msra.mxu1 %v15488_v59  ;;  %v15533_v31 = vld [vmem:[#allocation8 + $0x904] ss:$48 sps:$4 sm:$0xff]   ;;  %v15536_v33 = vld [vmem:[#allocation8 + $0x900] ss:$48 sps:$4 sm:$0xff]  }
  0xff   : > { %3028 = vmatprep.subr.bf16.mxu0 %v15489_v60  ;;  %3071 = vmatprep.subr.bf16.mxu1 %v15491_v61 }
 0x102   : > { %3029 = vmatpush2.bf16.msra.mxu0 %v15493_v62  ;;  %3072 = vmatpush2.bf16.msra.mxu1 %v15494_v63  ;;  %v588_v62 = vld [vmem:[#allocation7] sm:$0xf] }
 0x103   : > { %3030 = vmatprep.subr.bf16.mxu0 %v15495_v4  ;;  %3073 = vmatprep.subr.bf16.mxu1 %v15497_v5  ;;  %v654_v4 = vrot.slane %v587_v52, %v17844_v53 }
 0x106   : > { %3031 = vmatpush2.bf16.msra.mxu0 %v15499_v6  ;;  %3074 = vmatpush2.bf16.msra.mxu1 %v15500_v7  ;;  %v662_v6 = vrot.slane %v587_v52, %v17847_v54 }
 0x107   : > { %3032 = vmatprep.subr.bf16.mxu0 %v15501_v8  ;;  %3075 = vmatprep.subr.bf16.mxu1 %v15503_v10  ;;  %v650_v8 = vrot.slane %v587_v52, %v17850_v55 }
 0x10a   : > { %3033 = vmatpush2.bf16.msra.mxu0 %v15505_v12  ;;  %3076 = vmatpush2.bf16.msra.mxu1 %v15506_v13  ;;  %v691_v12 = vrot.slane %v588_v62, %v17847_v54 }
 0x10b   : > { %3034 = vmatprep.subr.bf16.mxu0 %v15507_v14  ;;  %3077 = vmatprep.subr.bf16.mxu1 %v15509_v15  ;;  %v17049_v14 = vld [vmem:[%s17772_s1 + $0x20] sm:$0xff] }
 0x10e   : > { %3035 = vmatpush2.bf16.msra.mxu0 %v15511_v16  ;;  %3078 = vmatpush2.bf16.msra.mxu1 %v15512_v17  ;;  %v17050_v16 = vld [vmem:[%s17772_s1 + $0x30] sm:$0xff] }
 0x10f   : > { %3036 = vmatprep.subr.bf16.mxu0 %v15513_v18  ;;  %3079 = vmatprep.subr.bf16.mxu1 %v15515_v19  ;;  %v679_v18 = vrot.slane %v588_v62, %v17850_v55  ;;  %v687_v19 = vrot.slane %v588_v62, %v17853_v56 }
 0x112   : > { %3037 = vmatpush2.bf16.msra.mxu0 %v15517_v20  ;;  %3080 = vmatpush2.bf16.msra.mxu1 %v15518_v21 }
 0x113   : > { %3038 = vmatprep.subr.bf16.mxu0 %v15519_v22  ;;  %3081 = vmatprep.subr.bf16.mxu1 %v15521_v23 }
 0x116   : > { %3039 = vmatpush2.bf16.msra.mxu0 %v15523_v24  ;;  %3082 = vmatpush2.bf16.msra.mxu1 %v15524_v25 }
 0x117   : > { %3040 = vmatprep.subr.bf16.mxu0 %v15525_v26  ;;  %3083 = vmatprep.subr.bf16.mxu1 %v15527_v27 }
 0x11a   : > { %3041 = vmatpush2.bf16.msra.mxu0 %v15529_v28  ;;  %3084 = vmatpush2.bf16.msra.mxu1 %v15530_v29 }
 0x11b   : > { %3042 = vmatprep.subr.bf16.mxu0 %v15531_v30  ;;  %3085 = vmatprep.subr.bf16.mxu1 %v15533_v31 }
 0x11e   : > { %3043 = vmatpush2.bf16.msra.mxu0 %v15535_v32  ;;  %3086 = vmatpush2.bf16.msra.mxu1 %v15536_v33 }
 0x11f   : > { %3098 = vmatprep.subr.bf16.mxu0 %v15539_v34  ;;  %3141 = vmatprep.subr.bf16.mxu1 %v15542_v35  ;;  %v15537_v34 = vld [vmem:[#allocation8 + $0x2a8] ss:$48 sps:$4 sm:$0xff]  }
 0x120   : > { %v15540_v35 = vld [vmem:[#allocation8 + $0x8a8] ss:$48 sps:$4 sm:$0xff]  }
 0x16c   : > { %v593_v36 = vpop.xlane.xlu0 %592 }
 0x16d   : > { %v600_v37 = vmul.f32 0.001953125, %v593_v36 }
 0x16e   : > { %v614_v38 = vpop.xlane.xlu1 %613 }
 0x16f   : > { %v620_v39 = vmul.f32 0.001953125, %v614_v38  ;;  %v622_v40 = vmul.f32 %v600_v37, %v600_v37  ;;  %v627_v57 = vsub.f32 %v17806_v1, %v600_v37  ;;  %v629_v58 = vsub.f32 %v17812_v3, %v600_v37 }
 0x170   : > { %v598_v41 = vpop.xlane.xlu0 %597  ;;  %v626_v60 = vsub.f32 %v17803_v0, %v600_v37  ;;  %v628_v61 = vsub.f32 %v17809_v2, %v600_v37  ;;  %v658_v3 = vrot.slane %v587_v52, %v17853_v56  ;;  %v683_v2 = vrot.slane %v588_v62, %v17844_v53  ;;  %v15549_v52 = vld [vmem:[#allocation8 + $0x1e8] ss:$48 sps:$4 sm:$0xff]   ;;  %v15563_v62 = vld [vmem:[#allocation8 + $0x12c] ss:$48 sps:$4 sm:$0xff]  }
 0x171   : > { %v601_v42 = vmul.f32 0.001953125, %v598_v41  ;;  %v624_v43 = vsub.f32 %v620_v39, %v622_v40 }
 0x172   : > { %v619_v44 = vpop.xlane.xlu1 %618 }
 0x173   : > { %v634_v45 = vadd.f32 1e-05, %v624_v43  ;;  %v621_v46 = vmul.f32 0.001953125, %v619_v44  ;;  %v623_v47 = vmul.f32 %v601_v42, %v601_v42  ;;  %v631_v10 = vsub.f32 %v17824_v9, %v601_v42 }
 0x174   : > { %v633_v0 = vsub.f32 %v17828_v11, %v601_v42  ;;  %v630_v15 = vsub.f32 %v17049_v14, %v601_v42  ;;  %v632_v17 = vsub.f32 %v17050_v16, %v601_v42  ;;  %v15545_v42 = vld [vmem:[#allocation8 + $0x24c] ss:$48 sps:$4 sm:$0xff]   ;;  %v15579_v14 = vld [vmem:[#allocation8 + $0x8] ss:$48 sps:$4 sm:$0xff]  }
 0x175   : > { %16977 = vrsqrt.f32 %v634_v45  ;;  %v625_v48 = vsub.f32 %v621_v46, %v623_v47  ;;  %v15543_v45 = vld [vmem:[#allocation8 + $0x248] ss:$48 sps:$4 sm:$0xff]   ;;  %v15548_v47 = vld [vmem:[#allocation8 + $0x84c] ss:$48 sps:$4 sm:$0xff]  }
 0x176   : > { %v15546_v46 = vld [vmem:[#allocation8 + $0x848] ss:$48 sps:$4 sm:$0xff]   ;;  %v15587_v16 = vld [vmem:[#allocation8 + $0x5ac] ss:$48 sps:$4 sm:$0xff]  }
 0x177   : > { %v635_v49 = vadd.f32 1e-05, %v625_v48  ;;  %v15551_v48 = vld [vmem:[#allocation8 + $0x1ec] ss:$48 sps:$4 sm:$0xff]  }
 0x179   : > { %16979 = vrsqrt.f32 %v635_v49  ;;  %v15554_v49 = vld [vmem:[#allocation8 + $0x7ec] ss:$48 sps:$4 sm:$0xff]  }
 0x182   : > { %v16978_v59 = vpop.eup %16977 }
 0x183   : > { %v639_v63 = vmul.f32 %v16978_v59, %v627_v57  ;;  %v641_v5 = vmul.f32 %v16978_v59, %v629_v58  ;;  %v638_v7 = vmul.f32 %v16978_v59, %v626_v60  ;;  %v640_v1 = vmul.f32 %v16978_v59, %v628_v61  ;;  %v15552_v57 = vld [vmem:[#allocation8 + $0x7e8] ss:$48 sps:$4 sm:$0xff]   ;;  %v15557_v58 = vld [vmem:[#allocation8 + $0x18c] ss:$48 sps:$4 sm:$0xff]  }
 0x184   : > { %v15560_v59 = vld [vmem:[#allocation8 + $0x78c] ss:$48 sps:$4 sm:$0xff]   ;;  %v15555_v60 = vld [vmem:[#allocation8 + $0x188] ss:$48 sps:$4 sm:$0xff]  }
 0x185   : > { %v668_v21 = vmul.f32 %v654_v4, %v639_v63  ;;  %v670_v23 = vmul.f32 %v662_v6, %v641_v5  ;;  %v667_v24 = vmul.f32 %v650_v8, %v638_v7  ;;  %v669_v25 = vmul.f32 %v658_v3, %v640_v1  ;;  %v15558_v61 = vld [vmem:[#allocation8 + $0x788] ss:$48 sps:$4 sm:$0xff]   ;;  %v15566_v63 = vld [vmem:[#allocation8 + $0x72c] ss:$48 sps:$4 sm:$0xff]  }
 0x186   : > { %v16980_v13 = vpop.eup %16979  ;;  %v15564_v5 = vld [vmem:[#allocation8 + $0x728] ss:$48 sps:$4 sm:$0xff]   ;;  %v15572_v7 = vld [vmem:[#allocation8 + $0x6cc] ss:$48 sps:$4 sm:$0xff]  }
 0x187   : > { %v643_v20 = vmul.f32 %v16980_v13, %v631_v10  ;;  %v645_v22 = vmul.f32 %v16980_v13, %v633_v0  ;;  %v642_v9 = vmul.f32 %v16980_v13, %v630_v15  ;;  %v644_v11 = vmul.f32 %v16980_v13, %v632_v17  ;;  %v15570_v1 = vld [vmem:[#allocation8 + $0x6c8] ss:$48 sps:$4 sm:$0xff]   ;;  %v15578_v10 = vld [vmem:[#allocation8 + $0x66c] ss:$48 sps:$4 sm:$0xff]  }
 0x188   : > { %v697_v30 = vadd.f32 %v683_v2, %v668_v21  ;;  %v699_v32 = vadd.f32 %v691_v12, %v670_v23  ;;  %v696_v36 = vadd.f32 %v679_v18, %v667_v24  ;;  %v698_v38 = vadd.f32 %v687_v19, %v669_v25  ;;  %v15573_v0 = vld [vmem:[#allocation8 + $0x68] ss:$48 sps:$4 sm:$0xff]   ;;  %v15584_v13 = vld [vmem:[#allocation8 + $0x60c] ss:$48 sps:$4 sm:$0xff]  }
 0x189   : > { %v672_v26 = vmul.f32 %v654_v4, %v643_v20  ;;  %v674_v27 = vmul.f32 %v662_v6, %v645_v22  ;;  %v671_v28 = vmul.f32 %v650_v8, %v642_v9  ;;  %v673_v29 = vmul.f32 %v658_v3, %v644_v11  ;;  %v15561_v4 = vld [vmem:[#allocation8 + $0x128] ss:$48 sps:$4 sm:$0xff]   ;;  %v15569_v6 = vld [vmem:[#allocation8 + $0xcc] ss:$48 sps:$4 sm:$0xff]  }
 0x18a   : > { %v15567_v8 = vld [vmem:[#allocation8 + $0xc8] ss:$48 sps:$4 sm:$0xff]   ;;  %v15575_v3 = vld [vmem:[#allocation8 + $0x6c] ss:$48 sps:$4 sm:$0xff]  }
 0x18b   : > { %v701_v31 = vadd.f32 %v683_v2, %v672_v26  ;;  %v703_v33 = vadd.f32 %v691_v12, %v674_v27  ;;  %v700_v37 = vadd.f32 %v679_v18, %v671_v28  ;;  %v702_v39 = vadd.f32 %v687_v19, %v673_v29  ;;  %v15576_v2 = vld [vmem:[#allocation8 + $0x668] ss:$48 sps:$4 sm:$0xff]   ;;  %v15581_v12 = vld [vmem:[#allocation8 + $0xc] ss:$48 sps:$4 sm:$0xff]  }
 0x18c   : > { %v15582_v15 = vld [vmem:[#allocation8 + $0x608] ss:$48 sps:$4 sm:$0xff]   ;;  %v15590_v17 = vld [vmem:[#allocation8 + $0xbac] ss:$48 sps:$4 sm:$0xff]  }
 0x18d   : > { %v17871_v40 = vpack.c.bf16 %v701_v31, %v697_v30  ;;  %v17873_v41 = vpack.c.bf16 %v703_v33, %v699_v32  ;;  %v17875_v43 = vpack.c.bf16 %v700_v37, %v696_v36  ;;  %v17877_v44 = vpack.c.bf16 %v702_v39, %v698_v38  ;;  %v15585_v18 = vld [vmem:[#allocation8 + $0x5a8] ss:$48 sps:$4 sm:$0xff]   ;;  %v15593_v20 = vld [vmem:[#allocation8 + $0x54c] ss:$48 sps:$4 sm:$0xff]  }
 0x18e   : > { %v15588_v19 = vld [vmem:[#allocation8 + $0xba8] ss:$48 sps:$4 sm:$0xff]   ;;  %v15596_v21 = vld [vmem:[#allocation8 + $0xb4c] ss:$48 sps:$4 sm:$0xff]  }
 0x18f   : > { %3044 = vmatprep.mubr.bf16.mxu0 %v17871_v40  ;;  %3087 = vmatprep.mubr.bf16.mxu1 %v17873_v41  ;;  %v15591_v22 = vld [vmem:[#allocation8 + $0x548] ss:$48 sps:$4 sm:$0xff]   ;;  %v15599_v9 = vld [vmem:[#allocation8 + $0x4ec] ss:$48 sps:$4 sm:$0xff]  }
 0x190   : > { %3045 = vmatmul.mubr.bf16.vlgmr.msra.gmra.mxu0 %v17875_v43  ;;  %3088 = vmatmul.mubr.bf16.vlgmr.msra.gmra.mxu1 %v17877_v44  ;;  %v15594_v23 = vld [vmem:[#allocation8 + $0xb48] ss:$48 sps:$4 sm:$0xff]   ;;  %v15602_v24 = vld [vmem:[#allocation8 + $0xaec] ss:$48 sps:$4 sm:$0xff]  }
 0x191   : > { %3099 = vmatpush1.bf16.msra.mxu0 %v15537_v34  ;;  %3142 = vmatpush1.bf16.msra.mxu1 %v15540_v35  ;;  %v15597_v11 = vld [vmem:[#allocation8 + $0x4e8] ss:$48 sps:$4 sm:$0xff]   ;;  %v15605_v26 = vld [vmem:[#allocation8 + $0x48c] ss:$48 sps:$4 sm:$0xff]  }
 0x192   : > { %3130 = vmatprep.mubr.bf16.mxu0 %v17871_v40  ;;  %3173 = vmatprep.mubr.bf16.mxu1 %v17873_v41  ;;  %v15600_v25 = vld [vmem:[#allocation8 + $0xae8] ss:$48 sps:$4 sm:$0xff]   ;;  %v15608_v27 = vld [vmem:[#allocation8 + $0xa8c] ss:$48 sps:$4 sm:$0xff]  }
 0x193   : > { %3100 = vmatprep.subr.bf16.mxu0 %v15545_v42  ;;  %3143 = vmatprep.subr.bf16.mxu1 %v15548_v47  ;;  %v15603_v28 = vld [vmem:[#allocation8 + $0x488] ss:$48 sps:$4 sm:$0xff]   ;;  %v15611_v30 = vld [vmem:[#allocation8 + $0x42c] ss:$48 sps:$4 sm:$0xff]  }
 0x194   : > { %v15606_v29 = vld [vmem:[#allocation8 + $0xa88] ss:$48 sps:$4 sm:$0xff]   ;;  %v15614_v31 = vld [vmem:[#allocation8 + $0xa2c] ss:$48 sps:$4 sm:$0xff]  }
 0x195   : > { %3101 = vmatpush1.bf16.msra.mxu0 %v15543_v45  ;;  %3144 = vmatpush1.bf16.msra.mxu1 %v15546_v46  ;;  %v15609_v32 = vld [vmem:[#allocation8 + $0x428] ss:$48 sps:$4 sm:$0xff]   ;;  %v15617_v34 = vld [vmem:[#allocation8 + $0x3cc] ss:$48 sps:$4 sm:$0xff]  }
 0x196   : > { %3102 = vmatprep.subr.bf16.mxu0 %v15551_v48  ;;  %3145 = vmatprep.subr.bf16.mxu1 %v15554_v49  ;;  %v15612_v33 = vld [vmem:[#allocation8 + $0xa28] ss:$48 sps:$4 sm:$0xff]   ;;  %v15620_v35 = vld [vmem:[#allocation8 + $0x9cc] ss:$48 sps:$4 sm:$0xff]  }
 0x197   : > { %v15615_v36 = vld [vmem:[#allocation8 + $0x3c8] ss:$48 sps:$4 sm:$0xff]   ;;  %v15623_v38 = vld [vmem:[#allocation8 + $0x36c] ss:$48 sps:$4 sm:$0xff]  }
 0x198   : > { %v15618_v37 = vld [vmem:[#allocation8 + $0x9c8] ss:$48 sps:$4 sm:$0xff]   ;;  %v15626_v39 = vld [vmem:[#allocation8 + $0x96c] ss:$48 sps:$4 sm:$0xff]  }
 0x199   : > { %3103 = vmatpush1.bf16.msra.mxu0 %v15549_v52  ;;  %3146 = vmatpush1.bf16.msra.mxu1 %v15552_v57  ;;  %v15621_v42 = vld [vmem:[#allocation8 + $0x368] ss:$48 sps:$4 sm:$0xff]   ;;  %v15629_v46 = vld [vmem:[#allocation8 + $0x30c] ss:$48 sps:$4 sm:$0xff]   ;;  %v15635_v52 = vld [vmem:[#allocation8 + $0x2b4] ss:$48 sps:$4 sm:$0xff]  }
 0x19a   : > { %3104 = vmatprep.subr.bf16.mxu0 %v15557_v58  ;;  %3147 = vmatprep.subr.bf16.mxu1 %v15560_v59  ;;  %v15624_v45 = vld [vmem:[#allocation8 + $0x968] ss:$48 sps:$4 sm:$0xff]   ;;  %v15632_v47 = vld [vmem:[#allocation8 + $0x90c] ss:$48 sps:$4 sm:$0xff]   ;;  %v15638_v57 = vld [vmem:[#allocation8 + $0x8b4] ss:$48 sps:$4 sm:$0xff]  }
 0x19b   : > { %v15627_v48 = vld [vmem:[#allocation8 + $0x308] ss:$48 sps:$4 sm:$0xff]   ;;  %v15633_v58 = vld [vmem:[#allocation8 + $0x2b0] ss:$48 sps:$4 sm:$0xff]  }
 0x19c   : > { %v15630_v49 = vld [vmem:[#allocation8 + $0x908] ss:$48 sps:$4 sm:$0xff]   ;;  %v15636_v59 = vld [vmem:[#allocation8 + $0x8b0] ss:$48 sps:$4 sm:$0xff]  }
 0x19d   : > { %3105 = vmatpush1.bf16.msra.mxu0 %v15555_v60  ;;  %3148 = vmatpush1.bf16.msra.mxu1 %v15558_v61  ;;  %v15641_v60 = vld [vmem:[#allocation8 + $0x254] ss:$48 sps:$4 sm:$0xff]  }
 0x19e   : > { %3106 = vmatprep.subr.bf16.mxu0 %v15563_v62  ;;  %3149 = vmatprep.subr.bf16.mxu1 %v15566_v63  ;;  %v15644_v61 = vld [vmem:[#allocation8 + $0x854] ss:$48 sps:$4 sm:$0xff]   ;;  %v15639_v62 = vld [vmem:[#allocation8 + $0x250] ss:$48 sps:$4 sm:$0xff]  }
 0x19f   : > { %v15642_v63 = vld [vmem:[#allocation8 + $0x850] ss:$48 sps:$4 sm:$0xff]  }
 0x1a1   : > { %3107 = vmatpush1.bf16.msra.mxu0 %v15561_v4  ;;  %3150 = vmatpush1.bf16.msra.mxu1 %v15564_v5  ;;  %v15647_v4 = vld [vmem:[#allocation8 + $0x1f4] ss:$48 sps:$4 sm:$0xff]   ;;  %v15645_v5 = vld [vmem:[#allocation8 + $0x1f0] ss:$48 sps:$4 sm:$0xff]  }
 0x1a2   : > { %3108 = vmatprep.subr.bf16.mxu0 %v15569_v6  ;;  %3151 = vmatprep.subr.bf16.mxu1 %v15572_v7  ;;  %v15650_v6 = vld [vmem:[#allocation8 + $0x7f4] ss:$48 sps:$4 sm:$0xff]   ;;  %v15648_v7 = vld [vmem:[#allocation8 + $0x7f0] ss:$48 sps:$4 sm:$0xff]  }
 0x1a5   : > { %3109 = vmatpush1.bf16.msra.mxu0 %v15567_v8  ;;  %3152 = vmatpush1.bf16.msra.mxu1 %v15570_v1  ;;  %v15653_v8 = vld [vmem:[#allocation8 + $0x194] ss:$48 sps:$4 sm:$0xff]  }
 0x1a6   : > { %3110 = vmatprep.subr.bf16.mxu0 %v15575_v3  ;;  %3153 = vmatprep.subr.bf16.mxu1 %v15578_v10  ;;  %v15656_v1 = vld [vmem:[#allocation8 + $0x794] ss:$48 sps:$4 sm:$0xff]   ;;  %v15651_v3 = vld [vmem:[#allocation8 + $0x190] ss:$48 sps:$4 sm:$0xff]  }
 0x1a7   : > { %v15654_v10 = vld [vmem:[#allocation8 + $0x790] ss:$48 sps:$4 sm:$0xff]  }
 0x1a9   : > { %3111 = vmatpush1.bf16.msra.mxu0 %v15573_v0  ;;  %3154 = vmatpush1.bf16.msra.mxu1 %v15576_v2  ;;  %v15659_v0 = vld [vmem:[#allocation8 + $0x134] ss:$48 sps:$4 sm:$0xff]   ;;  %v15657_v2 = vld [vmem:[#allocation8 + $0x130] ss:$48 sps:$4 sm:$0xff]  }
 0x1aa   : > { %3112 = vmatprep.subr.bf16.mxu0 %v15581_v12  ;;  %3155 = vmatprep.subr.bf16.mxu1 %v15584_v13  ;;  %v15662_v12 = vld [vmem:[#allocation8 + $0x734] ss:$48 sps:$4 sm:$0xff]   ;;  %v15660_v13 = vld [vmem:[#allocation8 + $0x730] ss:$48 sps:$4 sm:$0xff]  }
 0x1ad   : > { %3113 = vmatpush1.bf16.msra.mxu0 %v15579_v14  ;;  %3156 = vmatpush1.bf16.msra.mxu1 %v15582_v15  ;;  %v15665_v14 = vld [vmem:[#allocation8 + $0xd4] ss:$48 sps:$4 sm:$0xff]   ;;  %v15663_v15 = vld [vmem:[#allocation8 + $0xd0] ss:$48 sps:$4 sm:$0xff]  }
 0x1ae   : > { %3114 = vmatprep.subr.bf16.mxu0 %v15587_v16  ;;  %3157 = vmatprep.subr.bf16.mxu1 %v15590_v17  ;;  %v15668_v16 = vld [vmem:[#allocation8 + $0x6d4] ss:$48 sps:$4 sm:$0xff]   ;;  %v15666_v17 = vld [vmem:[#allocation8 + $0x6d0] ss:$48 sps:$4 sm:$0xff]  }
 0x1b1   : > { %3115 = vmatpush2.bf16.msra.mxu0 %v15585_v18  ;;  %3158 = vmatpush2.bf16.msra.mxu1 %v15588_v19  ;;  %v15671_v18 = vld [vmem:[#allocation8 + $0x74] ss:$48 sps:$4 sm:$0xff]   ;;  %v15669_v19 = vld [vmem:[#allocation8 + $0x70] ss:$48 sps:$4 sm:$0xff]  }
 0x1b2   : > { %3116 = vmatprep.subr.bf16.mxu0 %v15593_v20  ;;  %3159 = vmatprep.subr.bf16.mxu1 %v15596_v21  ;;  %v15674_v20 = vld [vmem:[#allocation8 + $0x674] ss:$48 sps:$4 sm:$0xff]   ;;  %v15672_v21 = vld [vmem:[#allocation8 + $0x670] ss:$48 sps:$4 sm:$0xff]  }
 0x1b5   : > { %3117 = vmatpush2.bf16.msra.mxu0 %v15591_v22  ;;  %3160 = vmatpush2.bf16.msra.mxu1 %v15594_v23  ;;  %v15677_v22 = vld [vmem:[#allocation8 + $0x14] ss:$48 sps:$4 sm:$0xff]   ;;  %v15675_v23 = vld [vmem:[#allocation8 + $0x10] ss:$48 sps:$4 sm:$0xff]  }
 0x1b6   : > { %3118 = vmatprep.subr.bf16.mxu0 %v15599_v9  ;;  %3161 = vmatprep.subr.bf16.mxu1 %v15602_v24  ;;  %v15680_v9 = vld [vmem:[#allocation8 + $0x614] ss:$48 sps:$4 sm:$0xff]   ;;  %v15678_v24 = vld [vmem:[#allocation8 + $0x610] ss:$48 sps:$4 sm:$0xff]  }
 0x1b9   : > { %3119 = vmatpush2.bf16.msra.mxu0 %v15597_v11  ;;  %3162 = vmatpush2.bf16.msra.mxu1 %v15600_v25  ;;  %v15683_v11 = vld [vmem:[#allocation8 + $0x5b4] ss:$48 sps:$4 sm:$0xff]   ;;  %v15681_v25 = vld [vmem:[#allocation8 + $0x5b0] ss:$48 sps:$4 sm:$0xff]  }
 0x1ba   : > { %3120 = vmatprep.subr.bf16.mxu0 %v15605_v26  ;;  %3163 = vmatprep.subr.bf16.mxu1 %v15608_v27  ;;  %v15686_v26 = vld [vmem:[#allocation8 + $0xbb4] ss:$48 sps:$4 sm:$0xff]   ;;  %v15684_v27 = vld [vmem:[#allocation8 + $0xbb0] ss:$48 sps:$4 sm:$0xff]  }
 0x1bd   : > { %3121 = vmatpush2.bf16.msra.mxu0 %v15603_v28  ;;  %3164 = vmatpush2.bf16.msra.mxu1 %v15606_v29  ;;  %v15689_v28 = vld [vmem:[#allocation8 + $0x554] ss:$48 sps:$4 sm:$0xff]   ;;  %v15687_v29 = vld [vmem:[#allocation8 + $0x550] ss:$48 sps:$4 sm:$0xff]  }
 0x1be   : > { %3122 = vmatprep.subr.bf16.mxu0 %v15611_v30  ;;  %3165 = vmatprep.subr.bf16.mxu1 %v15614_v31  ;;  %v15692_v30 = vld [vmem:[#allocation8 + $0xb54] ss:$48 sps:$4 sm:$0xff]   ;;  %v15690_v31 = vld [vmem:[#allocation8 + $0xb50] ss:$48 sps:$4 sm:$0xff]  }
 0x1c1   : > { %3123 = vmatpush2.bf16.msra.mxu0 %v15609_v32  ;;  %3166 = vmatpush2.bf16.msra.mxu1 %v15612_v33  ;;  %v15695_v32 = vld [vmem:[#allocation8 + $0x4f4] ss:$48 sps:$4 sm:$0xff]   ;;  %v15693_v33 = vld [vmem:[#allocation8 + $0x4f0] ss:$48 sps:$4 sm:$0xff]  }
 0x1c2   : > { %3124 = vmatprep.subr.bf16.mxu0 %v15617_v34  ;;  %3167 = vmatprep.subr.bf16.mxu1 %v15620_v35  ;;  %v15698_v34 = vld [vmem:[#allocation8 + $0xaf4] ss:$48 sps:$4 sm:$0xff]   ;;  %v15696_v35 = vld [vmem:[#allocation8 + $0xaf0] ss:$48 sps:$4 sm:$0xff]  }
 0x1c5   : > { %3125 = vmatpush2.bf16.msra.mxu0 %v15615_v36  ;;  %3168 = vmatpush2.bf16.msra.mxu1 %v15618_v37  ;;  %v15701_v36 = vld [vmem:[#allocation8 + $0x494] ss:$48 sps:$4 sm:$0xff]   ;;  %v15699_v37 = vld [vmem:[#allocation8 + $0x490] ss:$48 sps:$4 sm:$0xff]  }
 0x1c6   : > { %3126 = vmatprep.subr.bf16.mxu0 %v15623_v38  ;;  %3169 = vmatprep.subr.bf16.mxu1 %v15626_v39  ;;  %v15704_v38 = vld [vmem:[#allocation8 + $0xa94] ss:$48 sps:$4 sm:$0xff]   ;;  %v15702_v39 = vld [vmem:[#allocation8 + $0xa90] ss:$48 sps:$4 sm:$0xff]  }
 0x1c9   : > { %3127 = vmatpush2.bf16.msra.mxu0 %v15621_v42  ;;  %3170 = vmatpush2.bf16.msra.mxu1 %v15624_v45  ;;  %v15707_v42 = vld [vmem:[#allocation8 + $0x434] ss:$48 sps:$4 sm:$0xff]   ;;  %v15705_v45 = vld [vmem:[#allocation8 + $0x430] ss:$48 sps:$4 sm:$0xff]  }
 0x1ca   : > { %3128 = vmatprep.subr.bf16.mxu0 %v15629_v46  ;;  %3171 = vmatprep.subr.bf16.mxu1 %v15632_v47  ;;  %v15710_v46 = vld [vmem:[#allocation8 + $0xa34] ss:$48 sps:$4 sm:$0xff]   ;;  %v15708_v47 = vld [vmem:[#allocation8 + $0xa30] ss:$48 sps:$4 sm:$0xff]  }
 0x1cd   : > { %3129 = vmatpush2.bf16.msra.mxu0 %v15627_v48  ;;  %3172 = vmatpush2.bf16.msra.mxu1 %v15630_v49  ;;  %v15713_v48 = vld [vmem:[#allocation8 + $0x3d4] ss:$48 sps:$4 sm:$0xff]   ;;  %v15711_v49 = vld [vmem:[#allocation8 + $0x3d0] ss:$48 sps:$4 sm:$0xff]  }
 0x1ce   : > { %3184 = vmatprep.subr.bf16.mxu0 %v15635_v52  ;;  %3227 = vmatprep.subr.bf16.mxu1 %v15638_v57  ;;  %v15716_v52 = vld [vmem:[#allocation8 + $0x9d4] ss:$48 sps:$4 sm:$0xff]   ;;  %v15714_v57 = vld [vmem:[#allocation8 + $0x9d0] ss:$48 sps:$4 sm:$0xff]  }
 0x1d0   : > { %3131 = vmatmul.mubr.bf16.vlgmr.msra.gmra.mxu0 %v17875_v43  ;;  %3174 = vmatmul.mubr.bf16.vlgmr.msra.gmra.mxu1 %v17877_v44 }
 0x1d1   : > { %3185 = vmatpush1.bf16.msra.mxu0 %v15633_v58  ;;  %3216 = vmatprep.mubr.bf16.mxu0 %v17871_v40  ;;  %v15719_v58 = vld [vmem:[#allocation8 + $0x374] ss:$48 sps:$4 sm:$0xff]  }
 0x1d2   : > { %3228 = vmatpush1.bf16.msra.mxu1 %v15636_v59  ;;  %3259 = vmatprep.mubr.bf16.mxu1 %v17873_v41  ;;  %v15717_v59 = vld [vmem:[#allocation8 + $0x370] ss:$48 sps:$4 sm:$0xff]  }
 0x1d3   : > { %3186 = vmatprep.subr.bf16.mxu0 %v15641_v60  ;;  %3229 = vmatprep.subr.bf16.mxu1 %v15644_v61  ;;  %v15722_v60 = vld [vmem:[#allocation8 + $0x974] ss:$48 sps:$4 sm:$0xff]   ;;  %v15720_v61 = vld [vmem:[#allocation8 + $0x970] ss:$48 sps:$4 sm:$0xff]  }
 0x1d5   : > { %3187 = vmatpush1.bf16.msra.mxu0 %v15639_v62  ;;  %v15725_v62 = vld [vmem:[#allocation8 + $0x314] ss:$48 sps:$4 sm:$0xff]  }
 0x1d6   : > { %3230 = vmatpush1.bf16.msra.mxu1 %v15642_v63  ;;  %3188 = vmatprep.subr.bf16.mxu0 %v15647_v4  ;;  %v15723_v63 = vld [vmem:[#allocation8 + $0x310] ss:$48 sps:$4 sm:$0xff]   ;;  %v15728_v4 = vld [vmem:[#allocation8 + $0x914] ss:$48 sps:$4 sm:$0xff]  }
 0x1d7   : > { %3231 = vmatprep.subr.bf16.mxu1 %v15650_v6  ;;  %v15731_v6 = vld [vmem:[#allocation8 + $0x2bc] ss:$48 sps:$4 sm:$0xff]  }
 0x1d9   : > { %3189 = vmatpush1.bf16.msra.mxu0 %v15645_v5  ;;  %v15726_v5 = vld [vmem:[#allocation8 + $0x910] ss:$48 sps:$4 sm:$0xff]  }
 0x1da   : > { %3232 = vmatpush1.bf16.msra.mxu1 %v15648_v7  ;;  %3190 = vmatprep.subr.bf16.mxu0 %v15653_v8  ;;  %v15734_v7 = vld [vmem:[#allocation8 + $0x8bc] ss:$48 sps:$4 sm:$0xff]   ;;  %v15729_v8 = vld [vmem:[#allocation8 + $0x2b8] ss:$48 sps:$4 sm:$0xff]  }
 0x1db   : > { %3233 = vmatprep.subr.bf16.mxu1 %v15656_v1  ;;  %v15732_v1 = vld [vmem:[#allocation8 + $0x8b8] ss:$48 sps:$4 sm:$0xff]  }
 0x1dd   : > { %3191 = vmatpush1.bf16.msra.mxu0 %v15651_v3  ;;  %v15737_v3 = vld [vmem:[#allocation8 + $0x25c] ss:$48 sps:$4 sm:$0xff]  }
 0x1de   : > { %3234 = vmatpush1.bf16.msra.mxu1 %v15654_v10  ;;  %3192 = vmatprep.subr.bf16.mxu0 %v15659_v0  ;;  %v15735_v10 = vld [vmem:[#allocation8 + $0x258] ss:$48 sps:$4 sm:$0xff]  }
 0x1df   : > { %3235 = vmatprep.subr.bf16.mxu1 %v15662_v12  ;;  %v15738_v0 = vld [vmem:[#allocation8 + $0x858] ss:$48 sps:$4 sm:$0xff]   ;;  %v15743_v12 = vld [vmem:[#allocation8 + $0x1fc] ss:$48 sps:$4 sm:$0xff]  }
 0x1e1   : > { %3193 = vmatpush1.bf16.msra.mxu0 %v15657_v2  ;;  %v15740_v2 = vld [vmem:[#allocation8 + $0x85c] ss:$48 sps:$4 sm:$0xff]  }
 0x1e2   : > { %3236 = vmatpush1.bf16.msra.mxu1 %v15660_v13  ;;  %3194 = vmatprep.subr.bf16.mxu0 %v15665_v14  ;;  %v15746_v13 = vld [vmem:[#allocation8 + $0x7fc] ss:$48 sps:$4 sm:$0xff]   ;;  %v15741_v14 = vld [vmem:[#allocation8 + $0x1f8] ss:$48 sps:$4 sm:$0xff]  }
 0x1e3   : > { %3237 = vmatprep.subr.bf16.mxu1 %v15668_v16  ;;  %v15749_v16 = vld [vmem:[#allocation8 + $0x19c] ss:$48 sps:$4 sm:$0xff]  }
 0x1e5   : > { %3195 = vmatpush1.bf16.msra.mxu0 %v15663_v15  ;;  %v15744_v15 = vld [vmem:[#allocation8 + $0x7f8] ss:$48 sps:$4 sm:$0xff]  }
 0x1e6   : > { %3238 = vmatpush1.bf16.msra.mxu1 %v15666_v17  ;;  %3196 = vmatprep.subr.bf16.mxu0 %v15671_v18  ;;  %v15752_v17 = vld [vmem:[#allocation8 + $0x79c] ss:$48 sps:$4 sm:$0xff]   ;;  %v15747_v18 = vld [vmem:[#allocation8 + $0x198] ss:$48 sps:$4 sm:$0xff]  }
 0x1e7   : > { %3239 = vmatprep.subr.bf16.mxu1 %v15674_v20  ;;  %v15755_v20 = vld [vmem:[#allocation8 + $0x13c] ss:$48 sps:$4 sm:$0xff]  }
 0x1e9   : > { %3197 = vmatpush1.bf16.msra.mxu0 %v15669_v19  ;;  %v15750_v19 = vld [vmem:[#allocation8 + $0x798] ss:$48 sps:$4 sm:$0xff]  }
 0x1ea   : > { %3240 = vmatpush1.bf16.msra.mxu1 %v15672_v21  ;;  %3198 = vmatprep.subr.bf16.mxu0 %v15677_v22  ;;  %v15753_v21 = vld [vmem:[#allocation8 + $0x138] ss:$48 sps:$4 sm:$0xff]   ;;  %v15758_v22 = vld [vmem:[#allocation8 + $0x73c] ss:$48 sps:$4 sm:$0xff]  }
 0x1eb   : > { %3241 = vmatprep.subr.bf16.mxu1 %v15680_v9  ;;  %v15761_v9 = vld [vmem:[#allocation8 + $0xdc] ss:$48 sps:$4 sm:$0xff]  }
 0x1ed   : > { %3199 = vmatpush1.bf16.msra.mxu0 %v15675_v23  ;;  %v15756_v23 = vld [vmem:[#allocation8 + $0x738] ss:$48 sps:$4 sm:$0xff]  }
 0x1ee   : > { %3242 = vmatpush1.bf16.msra.mxu1 %v15678_v24  ;;  %3200 = vmatprep.subr.bf16.mxu0 %v15683_v11  ;;  %v15759_v24 = vld [vmem:[#allocation8 + $0xd8] ss:$48 sps:$4 sm:$0xff]   ;;  %v15764_v11 = vld [vmem:[#allocation8 + $0x6dc] ss:$48 sps:$4 sm:$0xff]  }
 0x1ef   : > { %3243 = vmatprep.subr.bf16.mxu1 %v15686_v26  ;;  %v15767_v26 = vld [vmem:[#allocation8 + $0x7c] ss:$48 sps:$4 sm:$0xff]  }
 0x1f1   : > { %3201 = vmatpush2.bf16.msra.mxu0 %v15681_v25  ;;  %v15762_v25 = vld [vmem:[#allocation8 + $0x6d8] ss:$48 sps:$4 sm:$0xff]  }
 0x1f2   : > { %3244 = vmatpush2.bf16.msra.mxu1 %v15684_v27  ;;  %3202 = vmatprep.subr.bf16.mxu0 %v15689_v28  ;;  %v15765_v27 = vld [vmem:[#allocation8 + $0x78] ss:$48 sps:$4 sm:$0xff]   ;;  %v15770_v28 = vld [vmem:[#allocation8 + $0x67c] ss:$48 sps:$4 sm:$0xff]  }
 0x1f3   : > { %3245 = vmatprep.subr.bf16.mxu1 %v15692_v30  ;;  %v15773_v30 = vld [vmem:[#allocation8 + $0x1c] ss:$48 sps:$4 sm:$0xff]  }
 0x1f5   : > { %3203 = vmatpush2.bf16.msra.mxu0 %v15687_v29  ;;  %v15768_v29 = vld [vmem:[#allocation8 + $0x678] ss:$48 sps:$4 sm:$0xff]  }
 0x1f6   : > { %3246 = vmatpush2.bf16.msra.mxu1 %v15690_v31  ;;  %3204 = vmatprep.subr.bf16.mxu0 %v15695_v32  ;;  %v15771_v31 = vld [vmem:[#allocation8 + $0x18] ss:$48 sps:$4 sm:$0xff]   ;;  %v15776_v32 = vld [vmem:[#allocation8 + $0x61c] ss:$48 sps:$4 sm:$0xff]  }
 0x1f7   : > { %3247 = vmatprep.subr.bf16.mxu1 %v15698_v34  ;;  %v15779_v34 = vld [vmem:[#allocation8 + $0x5bc] ss:$48 sps:$4 sm:$0xff]  }
 0x1f9   : > { %3205 = vmatpush2.bf16.msra.mxu0 %v15693_v33  ;;  %v15774_v33 = vld [vmem:[#allocation8 + $0x618] ss:$48 sps:$4 sm:$0xff]  }
 0x1fa   : > { %3248 = vmatpush2.bf16.msra.mxu1 %v15696_v35  ;;  %3206 = vmatprep.subr.bf16.mxu0 %v15701_v36  ;;  %v15777_v35 = vld [vmem:[#allocation8 + $0x5b8] ss:$48 sps:$4 sm:$0xff]   ;;  %v15782_v36 = vld [vmem:[#allocation8 + $0xbbc] ss:$48 sps:$4 sm:$0xff]  }
 0x1fb   : > { %3249 = vmatprep.subr.bf16.mxu1 %v15704_v38  ;;  %v15785_v38 = vld [vmem:[#allocation8 + $0x55c] ss:$48 sps:$4 sm:$0xff]  }
 0x1fd   : > { %3207 = vmatpush2.bf16.msra.mxu0 %v15699_v37  ;;  %v15780_v37 = vld [vmem:[#allocation8 + $0xbb8] ss:$48 sps:$4 sm:$0xff]  }
 0x1fe   : > { %3250 = vmatpush2.bf16.msra.mxu1 %v15702_v39  ;;  %3208 = vmatprep.subr.bf16.mxu0 %v15707_v42  ;;  %v15783_v39 = vld [vmem:[#allocation8 + $0x558] ss:$48 sps:$4 sm:$0xff]   ;;  %v15788_v42 = vld [vmem:[#allocation8 + $0xb5c] ss:$48 sps:$4 sm:$0xff]  }
 0x1ff   : > { %3251 = vmatprep.subr.bf16.mxu1 %v15710_v46  ;;  %v15791_v46 = vld [vmem:[#allocation8 + $0x4fc] ss:$48 sps:$4 sm:$0xff]  }
 0x201   : > { %3209 = vmatpush2.bf16.msra.mxu0 %v15705_v45  ;;  %v15786_v45 = vld [vmem:[#allocation8 + $0xb58] ss:$48 sps:$4 sm:$0xff]  }
 0x202   : > { %3252 = vmatpush2.bf16.msra.mxu1 %v15708_v47  ;;  %3210 = vmatprep.subr.bf16.mxu0 %v15713_v48  ;;  %v15789_v47 = vld [vmem:[#allocation8 + $0x4f8] ss:$48 sps:$4 sm:$0xff]   ;;  %v15794_v48 = vld [vmem:[#allocation8 + $0xafc] ss:$48 sps:$4 sm:$0xff]  }
 0x203   : > { %3253 = vmatprep.subr.bf16.mxu1 %v15716_v52  ;;  %v15797_v52 = vld [vmem:[#allocation8 + $0x49c] ss:$48 sps:$4 sm:$0xff]  }
 0x205   : > { %3211 = vmatpush2.bf16.msra.mxu0 %v15711_v49  ;;  %v15792_v49 = vld [vmem:[#allocation8 + $0xaf8] ss:$48 sps:$4 sm:$0xff]  }
 0x206   : > { %3254 = vmatpush2.bf16.msra.mxu1 %v15714_v57  ;;  %3212 = vmatprep.subr.bf16.mxu0 %v15719_v58  ;;  %v15795_v57 = vld [vmem:[#allocation8 + $0x498] ss:$48 sps:$4 sm:$0xff]   ;;  %v15800_v58 = vld [vmem:[#allocation8 + $0xa9c] ss:$48 sps:$4 sm:$0xff]  }
 0x207   : > { %3255 = vmatprep.subr.bf16.mxu1 %v15722_v60  ;;  %v15803_v60 = vld [vmem:[#allocation8 + $0x43c] ss:$48 sps:$4 sm:$0xff]  }
 0x209   : > { %3213 = vmatpush2.bf16.msra.mxu0 %v15717_v59  ;;  %v15798_v59 = vld [vmem:[#allocation8 + $0xa98] ss:$48 sps:$4 sm:$0xff]  }
 0x20a   : > { %3256 = vmatpush2.bf16.msra.mxu1 %v15720_v61  ;;  %3214 = vmatprep.subr.bf16.mxu0 %v15725_v62  ;;  %v15801_v61 = vld [vmem:[#allocation8 + $0x438] ss:$48 sps:$4 sm:$0xff]   ;;  %v15806_v62 = vld [vmem:[#allocation8 + $0xa3c] ss:$48 sps:$4 sm:$0xff]  }
 0x20b   : > { %3257 = vmatprep.subr.bf16.mxu1 %v15728_v4  ;;  %v15809_v4 = vld [vmem:[#allocation8 + $0x3dc] ss:$48 sps:$4 sm:$0xff]  }
 0x20d   : > { %3215 = vmatpush2.bf16.msra.mxu0 %v15723_v63  ;;  %v15804_v63 = vld [vmem:[#allocation8 + $0xa38] ss:$48 sps:$4 sm:$0xff]  }
 0x20e   : > { %3258 = vmatpush2.bf16.msra.mxu1 %v15726_v5  ;;  %3270 = vmatprep.subr.bf16.mxu0 %v15731_v6  ;;  %v15807_v5 = vld [vmem:[#allocation8 + $0x3d8] ss:$48 sps:$4 sm:$0xff]   ;;  %v15812_v6 = vld [vmem:[#allocation8 + $0x9dc] ss:$48 sps:$4 sm:$0xff]  }
 0x20f   : > { %3313 = vmatprep.subr.bf16.mxu1 %v15734_v7  ;;  %v15810_v7 = vld [vmem:[#allocation8 + $0x9d8] ss:$48 sps:$4 sm:$0xff]  }
 0x210   : > { %3217 = vmatmul.mubr.bf16.vlgmr.msra.gmra.mxu0 %v17875_v43 }
 0x211   : > { %3260 = vmatmul.mubr.bf16.vlgmr.msra.gmra.mxu1 %v17877_v44  ;;  %3271 = vmatpush1.bf16.msra.mxu0 %v15729_v8  ;;  %v15815_v8 = vld [vmem:[#allocation8 + $0x37c] ss:$48 sps:$4 sm:$0xff]  }
 0x212   : > { %3302 = vmatprep.mubr.bf16.mxu0 %v17871_v40  ;;  %3314 = vmatpush1.bf16.msra.mxu1 %v15732_v1  ;;  %v15813_v1 = vld [vmem:[#allocation8 + $0x378] ss:$48 sps:$4 sm:$0xff]  }
 0x213   : > { %3345 = vmatprep.mubr.bf16.mxu1 %v17873_v41  ;;  %3272 = vmatprep.subr.bf16.mxu0 %v15737_v3  ;;  %v15818_v3 = vld [vmem:[#allocation8 + $0x97c] ss:$48 sps:$4 sm:$0xff]  }
 0x214   : > { %3315 = vmatprep.subr.bf16.mxu1 %v15740_v2  ;;  %v15819_v2 = vld [vmem:[#allocation8 + $0x318] ss:$48 sps:$4 sm:$0xff]  }
 0x215   : > { %3273 = vmatpush1.bf16.msra.mxu0 %v15735_v10  ;;  %v15816_v10 = vld [vmem:[#allocation8 + $0x978] ss:$48 sps:$4 sm:$0xff]  }
 0x216   : > { %3316 = vmatpush1.bf16.msra.mxu1 %v15738_v0  ;;  %3274 = vmatprep.subr.bf16.mxu0 %v15743_v12  ;;  %v15821_v0 = vld [vmem:[#allocation8 + $0x31c] ss:$48 sps:$4 sm:$0xff]  }
 0x217   : > { %3317 = vmatprep.subr.bf16.mxu1 %v15746_v13  ;;  %v15824_v12 = vld [vmem:[#allocation8 + $0x91c] ss:$48 sps:$4 sm:$0xff]   ;;  %v15822_v13 = vld [vmem:[#allocation8 + $0x918] ss:$48 sps:$4 sm:$0xff]  }
 0x219   : > { %3275 = vmatpush1.bf16.msra.mxu0 %v15741_v14  ;;  %v15827_v14 = vld [vmem:[#allocation8 + $0x2c4] ss:$48 sps:$4 sm:$0xff]  }
 0x21a   : > { %3318 = vmatpush1.bf16.msra.mxu1 %v15744_v15  ;;  %3276 = vmatprep.subr.bf16.mxu0 %v15749_v16  ;;  %v15830_v15 = vld [vmem:[#allocation8 + $0x8c4] ss:$48 sps:$4 sm:$0xff]   ;;  %v15825_v16 = vld [vmem:[#allocation8 + $0x2c0] ss:$48 sps:$4 sm:$0xff]  }
 0x21b   : > { %3319 = vmatprep.subr.bf16.mxu1 %v15752_v17  ;;  %v15828_v17 = vld [vmem:[#allocation8 + $0x8c0] ss:$48 sps:$4 sm:$0xff]  }
 0x21d   : > { %3277 = vmatpush1.bf16.msra.mxu0 %v15747_v18  ;;  %v15833_v18 = vld [vmem:[#allocation8 + $0x264] ss:$48 sps:$4 sm:$0xff]  }
 0x21e   : > { %3320 = vmatpush1.bf16.msra.mxu1 %v15750_v19  ;;  %3278 = vmatprep.subr.bf16.mxu0 %v15755_v20  ;;  %v15836_v19 = vld [vmem:[#allocation8 + $0x864] ss:$48 sps:$4 sm:$0xff]   ;;  %v15831_v20 = vld [vmem:[#allocation8 + $0x260] ss:$48 sps:$4 sm:$0xff]  }
 0x21f   : > { %3321 = vmatprep.subr.bf16.mxu1 %v15758_v22 }
 0x221   : > { %3279 = vmatpush1.bf16.msra.mxu0 %v15753_v21 }
 0x222   : > { %3322 = vmatpush1.bf16.msra.mxu1 %v15756_v23  ;;  %3280 = vmatprep.subr.bf16.mxu0 %v15761_v9  ;;  %v15834_v23 = vld [vmem:[#allocation8 + $0x860] ss:$48 sps:$4 sm:$0xff]   ;;  %v15839_v9 = vld [vmem:[#allocation8 + $0x204] ss:$48 sps:$4 sm:$0xff]  }
 0x223   : > { %3323 = vmatprep.subr.bf16.mxu1 %v15764_v11 }
 0x225   : > { %3281 = vmatpush1.bf16.msra.mxu0 %v15759_v24  ;;  %v15842_v24 = vld [vmem:[#allocation8 + $0x804] ss:$48 sps:$4 sm:$0xff]  }
 0x226   : > { %3324 = vmatpush1.bf16.msra.mxu1 %v15762_v25  ;;  %3282 = vmatprep.subr.bf16.mxu0 %v15767_v26 }
 0x227   : > { %3325 = vmatprep.subr.bf16.mxu1 %v15770_v28 }
 0x229   : > { %3283 = vmatpush1.bf16.msra.mxu0 %v15765_v27  ;;  %v15837_v27 = vld [vmem:[#allocation8 + $0x200] ss:$48 sps:$4 sm:$0xff]  }
 0x22a   : > { %3326 = vmatpush1.bf16.msra.mxu1 %v15768_v29  ;;  %3284 = vmatprep.subr.bf16.mxu0 %v15773_v30  ;;  %v15840_v30 = vld [vmem:[#allocation8 + $0x800] ss:$48 sps:$4 sm:$0xff]  }
 0x22b   : > { %3327 = vmatprep.subr.bf16.mxu1 %v15776_v32 }
 0x22d   : > { %3285 = vmatpush1.bf16.msra.mxu0 %v15771_v31  ;;  %v15845_v31 = vld [vmem:[#allocation8 + $0x1a4] ss:$48 sps:$4 sm:$0xff]  }
 0x22e   : > { %3328 = vmatpush1.bf16.msra.mxu1 %v15774_v33  ;;  %3286 = vmatprep.subr.bf16.mxu0 %v15779_v34  ;;  %v15848_v34 = vld [vmem:[#allocation8 + $0x7a4] ss:$48 sps:$4 sm:$0xff]  }
 0x22f   : > { %3329 = vmatprep.subr.bf16.mxu1 %v15782_v36  ;;  %v15843_v36 = vld [vmem:[#allocation8 + $0x1a0] ss:$48 sps:$4 sm:$0xff]  }
 0x231   : > { %3287 = vmatpush2.bf16.msra.mxu0 %v15777_v35 }
 0x232   : > { %3330 = vmatpush2.bf16.msra.mxu1 %v15780_v37  ;;  %3288 = vmatprep.subr.bf16.mxu0 %v15785_v38  ;;  %v15846_v37 = vld [vmem:[#allocation8 + $0x7a0] ss:$48 sps:$4 sm:$0xff]   ;;  %v15851_v38 = vld [vmem:[#allocation8 + $0x144] ss:$48 sps:$4 sm:$0xff]  }
 0x233   : > { %3331 = vmatprep.subr.bf16.mxu1 %v15788_v42  ;;  %v15849_v42 = vld [vmem:[#allocation8 + $0x140] ss:$48 sps:$4 sm:$0xff]  }
 0x235   : > { %3289 = vmatpush2.bf16.msra.mxu0 %v15783_v39  ;;  %v15854_v39 = vld [vmem:[#allocation8 + $0x744] ss:$48 sps:$4 sm:$0xff]  }
 0x236   : > { %3332 = vmatpush2.bf16.msra.mxu1 %v15786_v45  ;;  %3290 = vmatprep.subr.bf16.mxu0 %v15791_v46  ;;  %v15852_v45 = vld [vmem:[#allocation8 + $0x740] ss:$48 sps:$4 sm:$0xff]   ;;  %v15857_v46 = vld [vmem:[#allocation8 + $0xe4] ss:$48 sps:$4 sm:$0xff]  }
 0x237   : > { %3333 = vmatprep.subr.bf16.mxu1 %v15794_v48  ;;  %v15855_v48 = vld [vmem:[#allocation8 + $0xe0] ss:$48 sps:$4 sm:$0xff]  }
 0x239   : > { %3291 = vmatpush2.bf16.msra.mxu0 %v15789_v47  ;;  %v15860_v47 = vld [vmem:[#allocation8 + $0x6e4] ss:$48 sps:$4 sm:$0xff]  }
 0x23a   : > { %3334 = vmatpush2.bf16.msra.mxu1 %v15792_v49  ;;  %3292 = vmatprep.subr.bf16.mxu0 %v15797_v52  ;;  %v15858_v49 = vld [vmem:[#allocation8 + $0x6e0] ss:$48 sps:$4 sm:$0xff]   ;;  %v15863_v52 = vld [vmem:[#allocation8 + $0x84] ss:$48 sps:$4 sm:$0xff]  }
 0x23b   : > { %3335 = vmatprep.subr.bf16.mxu1 %v15800_v58  ;;  %v15861_v58 = vld [vmem:[#allocation8 + $0x80] ss:$48 sps:$4 sm:$0xff]  }
 0x23d   : > { %3293 = vmatpush2.bf16.msra.mxu0 %v15795_v57  ;;  %v15866_v57 = vld [vmem:[#allocation8 + $0x684] ss:$48 sps:$4 sm:$0xff]  }
 0x23e   : > { %3336 = vmatpush2.bf16.msra.mxu1 %v15798_v59  ;;  %3294 = vmatprep.subr.bf16.mxu0 %v15803_v60  ;;  %v15864_v59 = vld [vmem:[#allocation8 + $0x680] ss:$48 sps:$4 sm:$0xff]   ;;  %v15869_v60 = vld [vmem:[#allocation8 + $0x24] ss:$48 sps:$4 sm:$0xff]  }
 0x23f   : > { %3337 = vmatprep.subr.bf16.mxu1 %v15806_v62  ;;  %v15867_v62 = vld [vmem:[#allocation8 + $0x20] ss:$48 sps:$4 sm:$0xff]  }
 0x241   : > { %3295 = vmatpush2.bf16.msra.mxu0 %v15801_v61  ;;  %v15872_v61 = vld [vmem:[#allocation8 + $0x624] ss:$48 sps:$4 sm:$0xff]  }
 0x242   : > { %3338 = vmatpush2.bf16.msra.mxu1 %v15804_v63  ;;  %3296 = vmatprep.subr.bf16.mxu0 %v15809_v4  ;;  %v15870_v63 = vld [vmem:[#allocation8 + $0x620] ss:$48 sps:$4 sm:$0xff]   ;;  %v15875_v4 = vld [vmem:[#allocation8 + $0x5c4] ss:$48 sps:$4 sm:$0xff]  }
 0x243   : > { %3339 = vmatprep.subr.bf16.mxu1 %v15812_v6  ;;  %v15873_v6 = vld [vmem:[#allocation8 + $0x5c0] ss:$48 sps:$4 sm:$0xff]  }
 0x245   : > { %3297 = vmatpush2.bf16.msra.mxu0 %v15807_v5  ;;  %v15878_v5 = vld [vmem:[#allocation8 + $0xbc4] ss:$48 sps:$4 sm:$0xff]  }
 0x246   : > { %3340 = vmatpush2.bf16.msra.mxu1 %v15810_v7  ;;  %3298 = vmatprep.subr.bf16.mxu0 %v15815_v8  ;;  %v15876_v7 = vld [vmem:[#allocation8 + $0xbc0] ss:$48 sps:$4 sm:$0xff]   ;;  %v15881_v8 = vld [vmem:[#allocation8 + $0x564] ss:$48 sps:$4 sm:$0xff]  }
 0x247   : > { %3341 = vmatprep.subr.bf16.mxu1 %v15818_v3  ;;  %v15879_v3 = vld [vmem:[#allocation8 + $0x560] ss:$48 sps:$4 sm:$0xff]  }
 0x249   : > { %3299 = vmatpush2.bf16.msra.mxu0 %v15813_v1  ;;  %v15884_v1 = vld [vmem:[#allocation8 + $0xb64] ss:$48 sps:$4 sm:$0xff]  }
 0x24a   : > { %3342 = vmatpush2.bf16.msra.mxu1 %v15816_v10  ;;  %3300 = vmatprep.subr.bf16.mxu0 %v15821_v0  ;;  %v15882_v10 = vld [vmem:[#allocation8 + $0xb60] ss:$48 sps:$4 sm:$0xff]   ;;  %v15887_v0 = vld [vmem:[#allocation8 + $0x504] ss:$48 sps:$4 sm:$0xff]  }
 0x24b   : > { %3343 = vmatprep.subr.bf16.mxu1 %v15824_v12  ;;  %v15885_v12 = vld [vmem:[#allocation8 + $0x500] ss:$48 sps:$4 sm:$0xff]  }
 0x24d   : > { %3301 = vmatpush2.bf16.msra.mxu0 %v15819_v2  ;;  %v15890_v2 = vld [vmem:[#allocation8 + $0xb04] ss:$48 sps:$4 sm:$0xff]  }
 0x24e   : > { %3344 = vmatpush2.bf16.msra.mxu1 %v15822_v13  ;;  %3356 = vmatprep.subr.bf16.mxu0 %v15827_v14  ;;  %v15888_v13 = vld [vmem:[#allocation8 + $0xb00] ss:$48 sps:$4 sm:$0xff]   ;;  %v15893_v14 = vld [vmem:[#allocation8 + $0x4a4] ss:$48 sps:$4 sm:$0xff]  }
 0x24f   : > { %3399 = vmatprep.subr.bf16.mxu1 %v15830_v15  ;;  %v15896_v15 = vld [vmem:[#allocation8 + $0xaa4] ss:$48 sps:$4 sm:$0xff]  }
 0x250   : > { %3303 = vmatmul.mubr.bf16.vlgmr.msra.gmra.mxu0 %v17875_v43  ;;  %v3046_v21 = vpop.f32.mrf.mxu0  ;;  %v3089_v22 = vpop.f32.mrf.mxu1 }
 0x251   : > { %3346 = vmatmul.mubr.bf16.vlgmr.msra.gmra.mxu1 %v17877_v44  ;;  %3357 = vmatpush1.bf16.msra.mxu0 %v15825_v16  ;;  %v3090_v32 = vadd.f32 %v3089_v22, %v3046_v21  ;;  %v15891_v16 = vld [vmem:[#allocation8 + $0x4a0] ss:$48 sps:$4 sm:$0xff]   ;;  %v15905_v22 = vld [vmem:[#allocation8 + $0x3e4] ss:$48 sps:$4 sm:$0xff]  }
 0x252   : > { %3388 = vmatprep.mubr.bf16.mxu0 %v17871_v40  ;;  %3400 = vmatpush1.bf16.msra.mxu1 %v15828_v17  ;;  %v3048_v11 = vpop.f32.mrf.mxu0  ;;  %v3091_v25 = vpop.f32.mrf.mxu1  ;;  %v15894_v17 = vld [vmem:[#allocation8 + $0xaa0] ss:$48 sps:$4 sm:$0xff]  }
 0x253   : > { %3431 = vmatprep.mubr.bf16.mxu1 %v17873_v41  ;;  %v17897_v26 = vadd.f32 %v3091_v25, %v3048_v11  ;;  %3358 = vmatprep.subr.bf16.mxu0 %v15833_v18  ;;  %v15899_v18 = vld [vmem:[#allocation8 + $0x444] ss:$48 sps:$4 sm:$0xff]   ;;  %v15900_v21 = vld [vmem:[#allocation8 + $0xa40] ss:$48 sps:$4 sm:$0xff]  }
 0x254   : > { %3401 = vmatprep.subr.bf16.mxu1 %v15836_v19  ;;  %v3050_v28 = vpop.f32.mrf.mxu0  ;;  %v3093_v29 = vpop.f32.mrf.mxu1  ;;  %v15902_v19 = vld [vmem:[#allocation8 + $0xa44] ss:$48 sps:$4 sm:$0xff]  }
 0x255   : > { %v3094_v33 = vadd.f32 %v3093_v29, %v3050_v28  ;;  %3359 = vmatpush1.bf16.msra.mxu0 %v15831_v20  ;;  %v15897_v20 = vld [vmem:[#allocation8 + $0x440] ss:$48 sps:$4 sm:$0xff]   ;;  %v15911_v11 = vld [vmem:[#allocation8 + $0x384] ss:$48 sps:$4 sm:$0xff]  }
 0x256   : > { %3402 = vmatpush1.bf16.msra.mxu1 %v15834_v23  ;;  %3360 = vmatprep.subr.bf16.mxu0 %v15839_v9  ;;  %v15908_v23 = vld [vmem:[#allocation8 + $0x9e4] ss:$48 sps:$4 sm:$0xff]   ;;  %v15903_v9 = vld [vmem:[#allocation8 + $0x3e0] ss:$48 sps:$4 sm:$0xff]  }
 0x257   : > { %v17899_v35 = vpack.c.bf16 %v3094_v33, %v3090_v32  ;;  %3403 = vmatprep.subr.bf16.mxu1 %v15842_v24  ;;  %v15906_v24 = vld [vmem:[#allocation8 + $0x9e0] ss:$48 sps:$4 sm:$0xff]   ;;  %v15914_v25 = vld [vmem:[#allocation8 + $0x984] ss:$48 sps:$4 sm:$0xff]   ;;  %v15923_v33 = vld [vmem:[#allocation8 + $0x2cc] ss:$48 sps:$4 sm:$0xff]  }
 0x258   : > { %v15912_v28 = vld [vmem:[#allocation8 + $0x980] ss:$48 sps:$4 sm:$0xff]   ;;  %v15917_v29 = vld [vmem:[#allocation8 + $0x324] ss:$48 sps:$4 sm:$0xff]  }
 0x259   : > { %3361 = vmatpush1.bf16.msra.mxu0 %v15837_v27  ;;  %3666 = vrot.lane.b32.xlu1 %v17899_v35, %s17485_s2  ;;  %v15909_v27 = vld [vmem:[#allocation8 + $0x380] ss:$48 sps:$4 sm:$0xff]  }
 0x25a   : > { %3404 = vmatpush1.bf16.msra.mxu1 %v15840_v30  ;;  %3362 = vmatprep.subr.bf16.mxu0 %v15845_v31  ;;  %v15920_v30 = vld [vmem:[#allocation8 + $0x924] ss:$48 sps:$4 sm:$0xff]   ;;  %v15915_v31 = vld [vmem:[#allocation8 + $0x320] ss:$48 sps:$4 sm:$0xff]  }
 0x25b   : > { %3405 = vmatprep.subr.bf16.mxu1 %v15848_v34  ;;  %v15918_v32 = vld [vmem:[#allocation8 + $0x920] ss:$48 sps:$4 sm:$0xff]   ;;  %v15926_v34 = vld [vmem:[#allocation8 + $0x8cc] ss:$48 sps:$4 sm:$0xff]  }
 0x25d   : > { %3363 = vmatpush1.bf16.msra.mxu0 %v15843_v36  ;;  %v15921_v36 = vld [vmem:[#allocation8 + $0x2c8] ss:$48 sps:$4 sm:$0xff]  }
 0x25e   : > { %3406 = vmatpush1.bf16.msra.mxu1 %v15846_v37  ;;  %3364 = vmatprep.subr.bf16.mxu0 %v15851_v38  ;;  %v15924_v37 = vld [vmem:[#allocation8 + $0x8c8] ss:$48 sps:$4 sm:$0xff]   ;;  %v15929_v38 = vld [vmem:[#allocation8 + $0x26c] ss:$48 sps:$4 sm:$0xff]  }
 0x25f   : > { %3407 = vmatprep.subr.bf16.mxu1 %v15854_v39  ;;  %v15932_v39 = vld [vmem:[#allocation8 + $0x86c] ss:$48 sps:$4 sm:$0xff]  }
 0x261   : > { %3365 = vmatpush1.bf16.msra.mxu0 %v15849_v42  ;;  %v15927_v42 = vld [vmem:[#allocation8 + $0x268] ss:$48 sps:$4 sm:$0xff]  }
 0x262   : > { %3408 = vmatpush1.bf16.msra.mxu1 %v15852_v45  ;;  %3366 = vmatprep.subr.bf16.mxu0 %v15857_v46  ;;  %v15930_v45 = vld [vmem:[#allocation8 + $0x868] ss:$48 sps:$4 sm:$0xff]   ;;  %v15935_v46 = vld [vmem:[#allocation8 + $0x20c] ss:$48 sps:$4 sm:$0xff]  }
 0x263   : > { %3409 = vmatprep.subr.bf16.mxu1 %v15860_v47  ;;  %v15938_v47 = vld [vmem:[#allocation8 + $0x80c] ss:$48 sps:$4 sm:$0xff]  }
 0x265   : > { %3367 = vmatpush1.bf16.msra.mxu0 %v15855_v48  ;;  %v15933_v48 = vld [vmem:[#allocation8 + $0x208] ss:$48 sps:$4 sm:$0xff]  }
 0x266   : > { %3410 = vmatpush1.bf16.msra.mxu1 %v15858_v49  ;;  %3368 = vmatprep.subr.bf16.mxu0 %v15863_v52  ;;  %v15936_v49 = vld [vmem:[#allocation8 + $0x808] ss:$48 sps:$4 sm:$0xff]   ;;  %v15941_v52 = vld [vmem:[#allocation8 + $0x1ac] ss:$48 sps:$4 sm:$0xff]  }
 0x267   : > { %3411 = vmatprep.subr.bf16.mxu1 %v15866_v57  ;;  %v15944_v57 = vld [vmem:[#allocation8 + $0x7ac] ss:$48 sps:$4 sm:$0xff]  }
 0x269   : > { %3369 = vmatpush1.bf16.msra.mxu0 %v15861_v58  ;;  %v15939_v58 = vld [vmem:[#allocation8 + $0x1a8] ss:$48 sps:$4 sm:$0xff]  }
 0x26a   : > { %3412 = vmatpush1.bf16.msra.mxu1 %v15864_v59  ;;  %3370 = vmatprep.subr.bf16.mxu0 %v15869_v60  ;;  %v15942_v59 = vld [vmem:[#allocation8 + $0x7a8] ss:$48 sps:$4 sm:$0xff]   ;;  %v15947_v60 = vld [vmem:[#allocation8 + $0x14c] ss:$48 sps:$4 sm:$0xff]  }
 0x26b   : > { %3413 = vmatprep.subr.bf16.mxu1 %v15872_v61  ;;  %v15950_v61 = vld [vmem:[#allocation8 + $0x74c] ss:$48 sps:$4 sm:$0xff]  }
 0x26d   : > { %3371 = vmatpush1.bf16.msra.mxu0 %v15867_v62  ;;  %v15953_v62 = vld [vmem:[#allocation8 + $0xec] ss:$48 sps:$4 sm:$0xff]  }
 0x26e   : > { %3414 = vmatpush1.bf16.msra.mxu1 %v15870_v63  ;;  %3372 = vmatprep.subr.bf16.mxu0 %v15875_v4  ;;  %v15956_v63 = vld [vmem:[#allocation8 + $0x6ec] ss:$48 sps:$4 sm:$0xff]   ;;  %v15951_v4 = vld [vmem:[#allocation8 + $0xe8] ss:$48 sps:$4 sm:$0xff]  }
 0x26f   : > { %3415 = vmatprep.subr.bf16.mxu1 %v15878_v5  ;;  %v15954_v5 = vld [vmem:[#allocation8 + $0x6e8] ss:$48 sps:$4 sm:$0xff]  }
 0x271   : > { %3373 = vmatpush2.bf16.msra.mxu0 %v15873_v6  ;;  %v15959_v6 = vld [vmem:[#allocation8 + $0x8c] ss:$48 sps:$4 sm:$0xff]  }
 0x272   : > { %3416 = vmatpush2.bf16.msra.mxu1 %v15876_v7  ;;  %3374 = vmatprep.subr.bf16.mxu0 %v15881_v8  ;;  %v15962_v7 = vld [vmem:[#allocation8 + $0x68c] ss:$48 sps:$4 sm:$0xff]   ;;  %v15957_v8 = vld [vmem:[#allocation8 + $0x88] ss:$48 sps:$4 sm:$0xff]  }
 0x273   : > { %3417 = vmatprep.subr.bf16.mxu1 %v15884_v1  ;;  %v15960_v1 = vld [vmem:[#allocation8 + $0x688] ss:$48 sps:$4 sm:$0xff]  }
 0x275   : > { %3375 = vmatpush2.bf16.msra.mxu0 %v15879_v3  ;;  %v15965_v3 = vld [vmem:[#allocation8 + $0x2c] ss:$48 sps:$4 sm:$0xff]  }
 0x276   : > { %3418 = vmatpush2.bf16.msra.mxu1 %v15882_v10  ;;  %3376 = vmatprep.subr.bf16.mxu0 %v15887_v0  ;;  %v15968_v10 = vld [vmem:[#allocation8 + $0x62c] ss:$48 sps:$4 sm:$0xff]   ;;  %v15963_v0 = vld [vmem:[#allocation8 + $0x28] ss:$48 sps:$4 sm:$0xff]  }
 0x277   : > { %3419 = vmatprep.subr.bf16.mxu1 %v15890_v2  ;;  %v15966_v2 = vld [vmem:[#allocation8 + $0x628] ss:$48 sps:$4 sm:$0xff]  }
 0x279   : > { %3377 = vmatpush2.bf16.msra.mxu0 %v15885_v12  ;;  %v15971_v12 = vld [vmem:[#allocation8 + $0x5cc] ss:$48 sps:$4 sm:$0xff]  }
 0x27a   : > { %3420 = vmatpush2.bf16.msra.mxu1 %v15888_v13  ;;  %3378 = vmatprep.subr.bf16.mxu0 %v15893_v14  ;;  %v15974_v13 = vld [vmem:[#allocation8 + $0xbcc] ss:$48 sps:$4 sm:$0xff]   ;;  %v15969_v14 = vld [vmem:[#allocation8 + $0x5c8] ss:$48 sps:$4 sm:$0xff]  }
 0x27b   : > { %3421 = vmatprep.subr.bf16.mxu1 %v15896_v15  ;;  %v15972_v15 = vld [vmem:[#allocation8 + $0xbc8] ss:$48 sps:$4 sm:$0xff]  }
 0x27d   : > { %3379 = vmatpush2.bf16.msra.mxu0 %v15891_v16  ;;  %v15977_v16 = vld [vmem:[#allocation8 + $0x56c] ss:$48 sps:$4 sm:$0xff]  }
 0x27e   : > { %3422 = vmatpush2.bf16.msra.mxu1 %v15894_v17  ;;  %3380 = vmatprep.subr.bf16.mxu0 %v15899_v18  ;;  %v15980_v17 = vld [vmem:[#allocation8 + $0xb6c] ss:$48 sps:$4 sm:$0xff]   ;;  %v15975_v18 = vld [vmem:[#allocation8 + $0x568] ss:$48 sps:$4 sm:$0xff]  }
 0x27f   : > { %3423 = vmatprep.subr.bf16.mxu1 %v15902_v19  ;;  %v15978_v19 = vld [vmem:[#allocation8 + $0xb68] ss:$48 sps:$4 sm:$0xff]  }
 0x281   : > { %3381 = vmatpush2.bf16.msra.mxu0 %v15897_v20  ;;  %v15983_v20 = vld [vmem:[#allocation8 + $0x50c] ss:$48 sps:$4 sm:$0xff]  }
 0x282   : > { %3424 = vmatpush2.bf16.msra.mxu1 %v15900_v21  ;;  %3382 = vmatprep.subr.bf16.mxu0 %v15905_v22  ;;  %v15986_v21 = vld [vmem:[#allocation8 + $0xb0c] ss:$48 sps:$4 sm:$0xff]   ;;  %v15981_v22 = vld [vmem:[#allocation8 + $0x508] ss:$48 sps:$4 sm:$0xff]  }
 0x283   : > { %3425 = vmatprep.subr.bf16.mxu1 %v15908_v23  ;;  %v15984_v23 = vld [vmem:[#allocation8 + $0xb08] ss:$48 sps:$4 sm:$0xff]  }
 0x285   : > { %3383 = vmatpush2.bf16.msra.mxu0 %v15903_v9  ;;  %v15989_v9 = vld [vmem:[#allocation8 + $0x4ac] ss:$48 sps:$4 sm:$0xff]  }
 0x286   : > { %3426 = vmatpush2.bf16.msra.mxu1 %v15906_v24  ;;  %3384 = vmatprep.subr.bf16.mxu0 %v15911_v11  ;;  %v15992_v24 = vld [vmem:[#allocation8 + $0xaac] ss:$48 sps:$4 sm:$0xff]   ;;  %v15987_v11 = vld [vmem:[#allocation8 + $0x4a8] ss:$48 sps:$4 sm:$0xff]  }
 0x287   : > { %3427 = vmatprep.subr.bf16.mxu1 %v15914_v25  ;;  %v15990_v25 = vld [vmem:[#allocation8 + $0xaa8] ss:$48 sps:$4 sm:$0xff]  }
 0x289   : > { %3385 = vmatpush2.bf16.msra.mxu0 %v15909_v27  ;;  %v15995_v27 = vld [vmem:[#allocation8 + $0x44c] ss:$48 sps:$4 sm:$0xff]  }
 0x28a   : > { %3428 = vmatpush2.bf16.msra.mxu1 %v15912_v28  ;;  %3386 = vmatprep.subr.bf16.mxu0 %v15917_v29  ;;  %v15998_v28 = vld [vmem:[#allocation8 + $0xa4c] ss:$48 sps:$4 sm:$0xff]   ;;  %v15993_v29 = vld [vmem:[#allocation8 + $0x448] ss:$48 sps:$4 sm:$0xff]  }
 0x28b   : > { %3429 = vmatprep.subr.bf16.mxu1 %v15920_v30  ;;  %v15996_v30 = vld [vmem:[#allocation8 + $0xa48] ss:$48 sps:$4 sm:$0xff]  }
 0x28d   : > { %3387 = vmatpush2.bf16.msra.mxu0 %v15915_v31  ;;  %v16001_v31 = vld [vmem:[#allocation8 + $0x3ec] ss:$48 sps:$4 sm:$0xff]  }
 0x28e   : > { %3430 = vmatpush2.bf16.msra.mxu1 %v15918_v32  ;;  %3442 = vmatprep.subr.bf16.mxu0 %v15923_v33  ;;  %v16004_v32 = vld [vmem:[#allocation8 + $0x9ec] ss:$48 sps:$4 sm:$0xff]   ;;  %v3052_v33 = vpop.f32.mrf.mxu0 }
 0x28f   : > { %3485 = vmatprep.subr.bf16.mxu1 %v15926_v34  ;;  %v3095_v34 = vpop.f32.mrf.mxu1 }
 0x290   : > { %3389 = vmatmul.mubr.bf16.vlgmr.msra.gmra.mxu0 %v17875_v43 }
 0x291   : > { %3432 = vmatmul.mubr.bf16.vlgmr.msra.gmra.mxu1 %v17877_v44  ;;  %3443 = vmatpush1.bf16.msra.mxu0 %v15921_v36  ;;  %v15999_v36 = vld [vmem:[#allocation8 + $0x3e8] ss:$48 sps:$4 sm:$0xff]  }
 0x292   : > { %3474 = vmatprep.mubr.bf16.mxu0 %v17871_v40  ;;  %3486 = vmatpush1.bf16.msra.mxu1 %v15924_v37  ;;  %v15945_v40 = vld [vmem:[#allocation8 + $0x148] ss:$48 sps:$4 sm:$0xff]   ;;  %v3132_v37 = vpop.f32.mrf.mxu0 }
 0x293   : > { %3517 = vmatprep.mubr.bf16.mxu1 %v17873_v41  ;;  %3444 = vmatprep.subr.bf16.mxu0 %v15929_v38  ;;  %v15948_v41 = vld [vmem:[#allocation8 + $0x748] ss:$48 sps:$4 sm:$0xff]  }
 0x294   : > { %3487 = vmatprep.subr.bf16.mxu1 %v15932_v39  ;;  %v16002_v38 = vld [vmem:[#allocation8 + $0x9e8] ss:$48 sps:$4 sm:$0xff]   ;;  %v16007_v39 = vld [vmem:[#allocation8 + $0x38c] ss:$48 sps:$4 sm:$0xff]  }
 0x295   : > { %3445 = vmatpush1.bf16.msra.mxu0 %v15927_v42  ;;  %v3175_v42 = vpop.f32.mrf.mxu1 }
 0x296   : > { %3488 = vmatpush1.bf16.msra.mxu1 %v15930_v45  ;;  %3446 = vmatprep.subr.bf16.mxu0 %v15935_v46  ;;  %v16010_v45 = vld [vmem:[#allocation8 + $0x98c] ss:$48 sps:$4 sm:$0xff]   ;;  %v16005_v46 = vld [vmem:[#allocation8 + $0x388] ss:$48 sps:$4 sm:$0xff]  }
 0x297   : > { %3489 = vmatprep.subr.bf16.mxu1 %v15938_v47  ;;  %v3134_v47 = vpop.f32.mrf.mxu0 }
 0x299   : > { %3447 = vmatpush1.bf16.msra.mxu0 %v15933_v48  ;;  %v16008_v48 = vld [vmem:[#allocation8 + $0x988] ss:$48 sps:$4 sm:$0xff]  }
 0x29a   : > { %3490 = vmatpush1.bf16.msra.mxu1 %v15936_v49  ;;  %3448 = vmatprep.subr.bf16.mxu0 %v15941_v52  ;;  %v16013_v49 = vld [vmem:[#allocation8 + $0x32c] ss:$48 sps:$4 sm:$0xff]   ;;  %v3177_v52 = vpop.f32.mrf.mxu1 }
 0x29b   : > { %3491 = vmatprep.subr.bf16.mxu1 %v15944_v57  ;;  %v16016_v57 = vld [vmem:[#allocation8 + $0x92c] ss:$48 sps:$4 sm:$0xff]  }
 0x29d   : > { %3449 = vmatpush1.bf16.msra.mxu0 %v15939_v58  ;;  %v16011_v58 = vld [vmem:[#allocation8 + $0x328] ss:$48 sps:$4 sm:$0xff]  }
 0x29e   : > { %3492 = vmatpush1.bf16.msra.mxu1 %v15942_v59  ;;  %3450 = vmatprep.subr.bf16.mxu0 %v15947_v60  ;;  %v3136_v59 = vpop.f32.mrf.mxu0  ;;  %v16014_v60 = vld [vmem:[#allocation8 + $0x928] ss:$48 sps:$4 sm:$0xff]  }
 0x29f   : > { %3493 = vmatprep.subr.bf16.mxu1 %v15950_v61  ;;  %v3179_v61 = vpop.f32.mrf.mxu1 }
 0x2a1   : > { %3451 = vmatpush1.bf16.msra.mxu0 %v15945_v40  ;;  %v3138_v40 = vpop.f32.mrf.mxu0 }
 0x2a2   : > { %3494 = vmatpush1.bf16.msra.mxu1 %v15948_v41  ;;  %3452 = vmatprep.subr.bf16.mxu0 %v15953_v62  ;;  %v17486_v41 = vmov 0.0   ;;  %v3181_v62 = vpop.f32.mrf.mxu1 }
 0x2a3   : > { %3495 = vmatprep.subr.bf16.mxu1 %v15956_v63 }
 0x2a5   : > { %3453 = vmatpush1.bf16.msra.mxu0 %v15951_v4 }
 0x2a6   : > { %3496 = vmatpush1.bf16.msra.mxu1 %v15954_v5  ;;  %3454 = vmatprep.subr.bf16.mxu0 %v15959_v6 }
 0x2a7   : > { %3497 = vmatprep.subr.bf16.mxu1 %v15962_v7 }
 0x2a9   : > { %3455 = vmatpush1.bf16.msra.mxu0 %v15957_v8 }
 0x2aa   : > { %3498 = vmatpush1.bf16.msra.mxu1 %v15960_v1  ;;  %3456 = vmatprep.subr.bf16.mxu0 %v15965_v3 }
 0x2ab   : > { %3499 = vmatprep.subr.bf16.mxu1 %v15968_v10 }
 0x2ad   : > { %3457 = vmatpush1.bf16.msra.mxu0 %v15963_v0 }
 0x2ae   : > { %3500 = vmatpush1.bf16.msra.mxu1 %v15966_v2  ;;  %3458 = vmatprep.subr.bf16.mxu0 %v15971_v12 }
 0x2af   : > { %3501 = vmatprep.subr.bf16.mxu1 %v15974_v13 }
 0x2b1   : > { %3459 = vmatpush2.bf16.msra.mxu0 %v15969_v14 }
 0x2b2   : > { %3502 = vmatpush2.bf16.msra.mxu1 %v15972_v15  ;;  %3460 = vmatprep.subr.bf16.mxu0 %v15977_v16  ;;  %v3180_v16 = vadd.f32 %v3179_v61, %v3136_v59 }
 0x2b3   : > { %3503 = vmatprep.subr.bf16.mxu1 %v15980_v17  ;;  %v3176_v17 = vadd.f32 %v3175_v42, %v3132_v37 }
 0x2b5   : > { %3461 = vmatpush2.bf16.msra.mxu0 %v15975_v18  ;;  %v3530_v18 = vpack.c.bf16 %v3180_v16, %v3176_v17 }
 0x2b6   : > { %3504 = vmatpush2.bf16.msra.mxu1 %v15978_v19  ;;  %3462 = vmatprep.subr.bf16.mxu0 %v15983_v20  ;;  %v3182_v19 = vadd.f32 %v3181_v62, %v3138_v40  ;;  %v3178_v20 = vadd.f32 %v3177_v52, %v3134_v47 }
 0x2b7   : > { %3505 = vmatprep.subr.bf16.mxu1 %v15986_v21 }
 0x2b8   : > { %v17926_v21 = vpack.c.bf16 %v3182_v19, %v3178_v20  ;;  %v3544_v20 = vand.u32 127, %v647_v50 }
 0x2b9   : > { %3463 = vmatpush2.bf16.msra.mxu0 %v15981_v22 }
 0x2ba   : > { %3506 = vmatpush2.bf16.msra.mxu1 %v15984_v23  ;;  %3464 = vmatprep.subr.bf16.mxu0 %v15989_v9  ;;  %vm17976_vm2 = vcmp.ge.s32.totalorder %v17841_v51, %v3544_v20 }
 0x2bb   : > { %3507 = vmatprep.subr.bf16.mxu1 %v15992_v24 }
 0x2bd   : > { %3465 = vmatpush2.bf16.msra.mxu0 %v15987_v11 }
 0x2be   : > { %3508 = vmatpush2.bf16.msra.mxu1 %v15990_v25  ;;  %3466 = vmatprep.subr.bf16.mxu0 %v15995_v27 }
 0x2bf   : > { %3509 = vmatprep.subr.bf16.mxu1 %v15998_v28 }
 0x2c1   : > { %3467 = vmatpush2.bf16.msra.mxu0 %v15993_v29 }
 0x2c2   : > { %3510 = vmatpush2.bf16.msra.mxu1 %v15996_v30  ;;  %3468 = vmatprep.subr.bf16.mxu0 %v16001_v31 }
 0x2c3   : > { %3511 = vmatprep.subr.bf16.mxu1 %v16004_v32 }
 0x2c5   : > { %3469 = vmatpush2.bf16.msra.mxu0 %v15999_v36 }
 0x2c6   : > { %3512 = vmatpush2.bf16.msra.mxu1 %v16002_v38  ;;  %3470 = vmatprep.subr.bf16.mxu0 %v16007_v39 }
 0x2c7   : > { %3513 = vmatprep.subr.bf16.mxu1 %v16010_v45 }
 0x2c9   : > { %3471 = vmatpush2.bf16.msra.mxu0 %v16005_v46 }
 0x2ca   : > { %3514 = vmatpush2.bf16.msra.mxu1 %v16008_v48  ;;  %3472 = vmatprep.subr.bf16.mxu0 %v16013_v49 }
 0x2cb   : > { %3515 = vmatprep.subr.bf16.mxu1 %v16016_v57  ;;  %v3667_v42 = vpop.permute.xlu1 %3666 }
 0x2cd   : > { %3473 = vmatpush2.bf16.msra.mxu0 %v16011_v58 }
 0x2ce   : > { %3516 = vmatpush2.bf16.msra.mxu1 %v16014_v60  ;;  %15155 = vmatprep.subr.bf16.mxu0 %v17486_v41 }
 0x2cf   : > { %15161 = vmatprep.subr.bf16.mxu1 %v17486_v41 }
 0x2d0   : > { %v3218_v63 = vpop.f32.mrf.mxu0  ;;  %3475 = vmatmul.mubr.bf16.vlgmr.msra.gmra.mxu0 %v17875_v43 }
 0x2d1   : > { %v3261_v4 = vpop.f32.mrf.mxu1  ;;  %3518 = vmatmul.mubr.bf16.vlgmr.msra.gmra.mxu1 %v17877_v44  ;;  %15157 = vmatprep.mubr.msk.bf16.mxu0 %vm17487_vm0, %v17486_v41  ;;  %v3096_v44 = vadd.f32 %v3095_v34, %v3052_v33 }
 0x2d2   : > { %v3220_v5 = vpop.f32.mrf.mxu0  ;;  %15163 = vmatprep.mubr.msk.bf16.mxu1 %vm17487_vm0, %v17486_v41  ;;  %v3262_v1 = vadd.f32 %v3261_v4, %v3218_v63 }
 0x2d3   : > { %v3263_v6 = vpop.f32.mrf.mxu1  ;;  %v3529_v15 = vpack.c.bf16 %v3096_v44, %v17897_v26 }
 0x2d4   : > { %v3222_v7 = vpop.f32.mrf.mxu0  ;;  %v3264_v43 = vadd.f32 %v3263_v6, %v3220_v5 }
 0x2d5   : > { %v3265_v8 = vpop.f32.mrf.mxu1 }
 0x2d6   : > { %v3266_v3 = vadd.f32 %v3265_v8, %v3222_v7  ;;  %v3224_v10 = vpop.f32.mrf.mxu0 }
 0x2d7   : > { %v3267_v0 = vpop.f32.mrf.mxu1 }
 0x2d8   : > { %v3532_v2 = vpack.c.bf16 %v3266_v3, %v3262_v1  ;;  %v3268_v12 = vadd.f32 %v3267_v0, %v3224_v10 }
 0x2da   : > { %v3533_v13 = vpack.c.bf16 %v3268_v12, %v3264_v43  ;;  %3669 = vrot.lane.b32.xlu0 %v3532_v2, %s17485_s2  ;;  %v3552_v14 = vsel %vm3547_vm1, %v3532_v2, 0 }
 0x2db   : > { %15156 = vmatpush3.bf16.xpose.msra.mxu0 %v3552_v14 }
 0x2dc   : > { %3911 = vrot.lane.b32.xlu1 %v3533_v13, %s17485_s2  ;;  %15167 = vmatprep.subr.bf16.mxu0 %v17486_v41  ;;  %v3795_v48 = vsel %vm3547_vm1, %v3533_v13, 0 }
 0x2e0   : > { %3908 = vrot.lane.b32.xlu1 %v3529_v15, %s17485_s2 }
 0x2e2   : > { %15158 = vmatmul.mubr.msk.bf16.vlgmr.msra.gmra.mxu0 %vm3547_vm1, %v17899_v35 }
 0x2e3   : > { %15169 = vmatprep.mubr.msk.bf16.mxu0 %vm17487_vm0, %v17486_v41 }
 0x2e4   : > { %4150 = vrot.lane.b32.xlu1 %v3530_v18, %s17485_s2 }
 0x2e8   : > { %4392 = vrot.lane.b32.xlu1 %v17926_v21, %s17485_s2 }
 0x310   : > { %v3304_v26 = vpop.f32.mrf.mxu0 }
 0x311   : > { %v3347_v22 = vpop.f32.mrf.mxu1 }
 0x312   : > { %v3306_v23 = vpop.f32.mrf.mxu0  ;;  %v3348_v25 = vadd.f32 %v3347_v22, %v3304_v26 }
 0x313   : > { %v3349_v9 = vpop.f32.mrf.mxu1 }
 0x314   : > { %v3308_v24 = vpop.f32.mrf.mxu0  ;;  %v3350_v31 = vadd.f32 %v3349_v9, %v3306_v23  ;;  %v3542_v23 = vadd.s32 8, %v17841_v51 }
 0x315   : > { %v3351_v11 = vpop.f32.mrf.mxu1 }
 0x316   : > { %v3352_v27 = vadd.f32 %v3351_v11, %v3308_v24  ;;  %v3310_v35 = vpop.f32.mrf.mxu0  ;;  %vm17984_vm4 = vcmp.ge.s32.totalorder %v3542_v23, %v3544_v20 }
 0x317   : > { %v3353_v28 = vpop.f32.mrf.mxu1 }
 0x318   : > { %v3534_v29 = vpack.c.bf16 %v3352_v27, %v3348_v25  ;;  %v3354_v30 = vadd.f32 %v3353_v28, %v3310_v35 }
 0x31a   : > { %4153 = vrot.lane.b32.xlu0 %v3534_v29, %s17485_s2  ;;  %v3535_v32 = vpack.c.bf16 %v3354_v30, %v3350_v31  ;;  %v4037_v4 = vsel %vm3547_vm1, %v3534_v29, 0 }
 0x31c   : > { %v4279_v2 = vsel %vm3547_vm1, %v3535_v32, 0 }
 0x31e   : > { %4395 = vrot.lane.b32.xlu0 %v3535_v32, %s17485_s2 }
 0x34c   : > { %v3670_v33 = vpop.permute.xlu0 %3669 }
 0x34d   : > { %v3675_v34 = vsel %vm3547_vm1, %v3670_v33, 0 }
 0x34e   : > { %15168 = vmatpush3.bf16.xpose.msra.mxu0 %v3675_v34  ;;  %v3912_v61 = vpop.permute.xlu1 %3911 }
 0x34f   : > { %15179 = vmatprep.subr.bf16.mxu0 %v17486_v41  ;;  %v3917_v62 = vsel %vm3547_vm1, %v3912_v61, 0 }
 0x350   : > { %v3390_v36 = vpop.f32.mrf.mxu0 }
 0x351   : > { %v3433_v37 = vpop.f32.mrf.mxu1 }
 0x352   : > { %v3392_v38 = vpop.f32.mrf.mxu0  ;;  %v3434_v49 = vadd.f32 %v3433_v37, %v3390_v36  ;;  %v3909_v63 = vpop.permute.xlu1 %3908 }
 0x353   : > { %v3435_v39 = vpop.f32.mrf.mxu1 }
 0x354   : > { %v3436_v45 = vadd.f32 %v3435_v39, %v3392_v38  ;;  %v3394_v46 = vpop.f32.mrf.mxu0 }
 0x355   : > { %v3437_v47 = vpop.f32.mrf.mxu1  ;;  %15170 = vmatmul.mubr.msk.bf16.vlgmr.msra.gmra.mxu0 %vm3547_vm1, %v3667_v42 }
 0x356   : > { %v3438_v52 = vadd.f32 %v3437_v47, %v3394_v46  ;;  %15180 = vmatpush3.bf16.xpose.msra.mxu0 %v3795_v48  ;;  %v3396_v57 = vpop.f32.mrf.mxu0  ;;  %15181 = vmatprep.mubr.msk.bf16.mxu0 %vm17487_vm0, %v17486_v41  ;;  %v4151_v10 = vpop.permute.xlu1 %4150 }
 0x357   : > { %v3439_v58 = vpop.f32.mrf.mxu1  ;;  %15191 = vmatprep.subr.bf16.mxu0 %v17486_v41 }
 0x358   : > { %v17939_v59 = vpack.c.bf16 %v3438_v52, %v3434_v49  ;;  %v3440_v60 = vadd.f32 %v3439_v58, %v3396_v57 }
 0x35a   : > { %v17941_v40 = vpack.c.bf16 %v3440_v60, %v3436_v45  ;;  %15162 = vmatpush3.bf16.msra.mxu1 %v17939_v59  ;;  %v4393_v24 = vpop.permute.xlu1 %4392 }
 0x35b   : > { %15173 = vmatprep.subr.bf16.mxu1 %v17486_v41 }
 0x35d   : > { %15182 = vmatmul.mubr.msk.bf16.vlgmr.msra.gmra.mxu0 %vm3547_vm1, %v3529_v15 }
 0x35e   : > { %15192 = vmatpush3.bf16.xpose.msra.mxu0 %v3917_v62  ;;  %15193 = vmatprep.mubr.msk.bf16.mxu0 %vm17487_vm0, %v17486_v41 }
 0x35f   : > { %15203 = vmatprep.subr.bf16.mxu0 %v17486_v41 }
 0x365   : > { %15194 = vmatmul.mubr.msk.bf16.vlgmr.msra.gmra.mxu0 %vm3547_vm1, %v3909_v63 }
 0x366   : > { %15204 = vmatpush3.bf16.xpose.msra.mxu0 %v4037_v4  ;;  %15205 = vmatprep.mubr.msk.bf16.mxu0 %vm17487_vm0, %v17486_v41 }
 0x367   : > { %15215 = vmatprep.subr.bf16.mxu0 %v17486_v41 }
 0x36d   : > { %15206 = vmatmul.mubr.msk.bf16.vlgmr.msra.gmra.mxu0 %vm3547_vm1, %v3530_v18 }
 0x36e   : > { %15217 = vmatprep.mubr.msk.bf16.mxu0 %vm17487_vm0, %v17486_v41 }
 0x38c   : > { %v4154_v5 = vpop.permute.xlu0 %4153 }
 0x38d   : > { %v4159_v6 = vsel %vm3547_vm1, %v4154_v5, 0 }
 0x38e   : > { %15216 = vmatpush3.bf16.xpose.msra.mxu0 %v4159_v6 }
 0x38f   : > { %15227 = vmatprep.subr.bf16.mxu0 %v17486_v41 }
 0x390   : > { %v3476_v7 = vpop.f32.mrf.mxu0  ;;  %v4396_v18 = vpop.permute.xlu0 %4395 }
 0x391   : > { %v3519_v8 = vpop.f32.mrf.mxu1  ;;  %v4401_v26 = vsel %vm3547_vm1, %v4396_v18, 0 }
 0x392   : > { %v3478_v1 = vpop.f32.mrf.mxu0  ;;  %v3520_v12 = vadd.f32 %v3519_v8, %v3476_v7 }
 0x393   : > { %v3521_v3 = vpop.f32.mrf.mxu1 }
 0x394   : > { %v3480_v0 = vpop.f32.mrf.mxu0  ;;  %v3522_v15 = vadd.f32 %v3521_v3, %v3478_v1 }
 0x395   : > { %v3523_v43 = vpop.f32.mrf.mxu1  ;;  %15218 = vmatmul.mubr.msk.bf16.vlgmr.msra.gmra.mxu0 %vm3547_vm1, %v4151_v10 }
 0x396   : > { %v3524_v44 = vadd.f32 %v3523_v43, %v3480_v0  ;;  %15228 = vmatpush3.bf16.xpose.msra.mxu0 %v4279_v2  ;;  %v3482_v13 = vpop.f32.mrf.mxu0  ;;  %15229 = vmatprep.mubr.msk.bf16.mxu0 %vm17487_vm0, %v17486_v41 }
 0x397   : > { %v3525_v14 = vpop.f32.mrf.mxu1  ;;  %15239 = vmatprep.subr.bf16.mxu0 %v17486_v41 }
 0x398   : > { %v17965_v16 = vpack.c.bf16 %v3524_v44, %v3520_v12  ;;  %v3526_v17 = vadd.f32 %v3525_v14, %v3482_v13 }
 0x39a   : > { %v17967_v19 = vpack.c.bf16 %v3526_v17, %v3522_v15 }
 0x39d   : > { %15230 = vmatmul.mubr.msk.bf16.vlgmr.msra.gmra.mxu0 %vm3547_vm1, %v17926_v21 }
 0x39e   : > { %15240 = vmatpush3.bf16.xpose.msra.mxu0 %v4401_v26  ;;  %15241 = vmatprep.mubr.msk.bf16.mxu0 %vm17487_vm0, %v17486_v41 }
 0x3a2   : > { %v3588_v9 = vpop.f32.mrf.mxu0 }
 0x3a3   : > { %v3595_v50 = vsel %vm17976_vm2, %v3588_v9, -inf }
 0x3a4   : > { %v15159_v11 = vpop.f32.mrf.mxu0  ;;  %v3598_v21 = vsel %vm3597_vm3, %v3595_v50, -inf }
 0x3a5   : > { %3599 = vmax.xlane.f32.xlu0 %v3598_v21  ;;  %15242 = vmatmul.mubr.msk.bf16.vlgmr.msra.gmra.mxu0 %vm3547_vm1, %v4393_v24 }
 0x3a6   : > { %v3591_v27 = vpop.f32.mrf.mxu0 }
 0x3a7   : > { %v3596_v35 = vsel %vm17984_vm4, %v3591_v27, -inf }
 0x3a8   : > { %v15160_v28 = vpop.f32.mrf.mxu0  ;;  %v3601_v29 = vsel %vm3597_vm3, %v3596_v35, -inf }
 0x3a9   : > { %3602 = vmax.xlane.f32.xlu1 %v3601_v29 }
 0x415   : > { %v3711_v30 = vpop.f32.mrf.mxu0 }
 0x416   : > { %v17994_v31 = vsel %vm17976_vm2, %v3711_v30, -inf }
 0x417   : > { %v15171_v32 = vpop.f32.mrf.mxu0  ;;  %v3720_v33 = vsel %vm3597_vm3, %v17994_v31, -inf }
 0x418   : > { %3721 = vmax.xlane.f32.xlu0 %v3720_v33 }
 0x419   : > { %v3714_v34 = vpop.f32.mrf.mxu0 }
 0x41a   : > { %v18000_v36 = vsel %vm17984_vm4, %v3714_v34, -inf }
 0x41b   : > { %v15172_v37 = vpop.f32.mrf.mxu0  ;;  %v3723_v38 = vsel %vm3597_vm3, %v18000_v36, -inf }
 0x41c   : > { %3724 = vmax.xlane.f32.xlu0 %v3723_v38 }
 0x41d   : > { %v3831_v39 = vpop.f32.mrf.mxu0 }
 0x41e   : > { %v18006_v42 = vsel %vm17976_vm2, %v3831_v39, -inf }
 0x41f   : > { %v15183_v45 = vpop.f32.mrf.mxu0  ;;  %v3840_v46 = vsel %vm3597_vm3, %v18006_v42, -inf }
 0x420   : > { %3841 = vmax.xlane.f32.xlu0 %v3840_v46 }
 0x421   : > { %v3834_v47 = vpop.f32.mrf.mxu0 }
 0x422   : > { %v18012_v48 = vsel %vm17984_vm4, %v3834_v47, -inf }
 0x423   : > { %v15184_v49 = vpop.f32.mrf.mxu0  ;;  %v3843_v52 = vsel %vm3597_vm3, %v18012_v48, -inf }
 0x424   : > { %3844 = vmax.xlane.f32.xlu1 %v3843_v52 }
 0x425   : > { %v3953_v57 = vpop.f32.mrf.mxu0 }
 0x426   : > { %v18018_v58 = vsel %vm17976_vm2, %v3953_v57, -inf }
 0x427   : > { %v15195_v60 = vpop.f32.mrf.mxu0  ;;  %v3962_v61 = vsel %vm3597_vm3, %v18018_v58, -inf }
 0x428   : > { %3963 = vmax.xlane.f32.xlu0 %v3962_v61 }
 0x429   : > { %v3956_v62 = vpop.f32.mrf.mxu0 }
 0x42a   : > { %v18024_v63 = vsel %vm17984_vm4, %v3956_v62, -inf }
 0x42b   : > { %v15196_v4 = vpop.f32.mrf.mxu0  ;;  %v3965_v5 = vsel %vm3597_vm3, %v18024_v63, -inf }
 0x42c   : > { %3966 = vmax.xlane.f32.xlu1 %v3965_v5 }
 0x42d   : > { %v4073_v6 = vpop.f32.mrf.mxu0 }
 0x42e   : > { %v18030_v7 = vsel %vm17976_vm2, %v4073_v6, -inf  ;;  %v3600_v44 = vpop.xlane.xlu0 %3599 }
 0x42f   : > { %v15207_v8 = vpop.f32.mrf.mxu0  ;;  %v4082_v1 = vsel %vm3597_vm3, %v18030_v7, -inf  ;;  %v3604_v13 = vsub.f32 %v3595_v50, %v3600_v44 }
 0x430   : > { %4083 = vmax.xlane.f32.xlu0 %v4082_v1 }
 0x431   : > { %v4076_v3 = vpop.f32.mrf.mxu0  ;;  %v3606_v15 = vmul.f32 1.442695, %v3604_v13 }
 0x432   : > { %v18036_v10 = vsel %vm17984_vm4, %v4076_v3, -inf  ;;  %v3603_v2 = vpop.xlane.xlu1 %3602 }
 0x433   : > { %v15208_v0 = vpop.f32.mrf.mxu0  ;;  %v4085_v43 = vsel %vm3597_vm3, %v18036_v10, -inf  ;;  %v3605_v12 = vsub.f32 %v3596_v35, %v3603_v2 }
 0x434   : > { %4086 = vmax.xlane.f32.xlu1 %v4085_v43 }
 0x435   : > { %v3608_v14 = vmul.f32 1.442695, %v3605_v12 }
 0x437   : > { %16981 = vpow2.f32 %v3608_v14 }
 0x438   : > { %16983 = vpow2.f32 %v3606_v15 }
 0x444   : > { %v18052_v11 = vpop.eup %16981 }
 0x445   : > { %v3613_v28 = vsel %vm3597_vm3, %v18052_v11, 0.0  ;;  %v18062_v30 = vpop.eup %16983 }
 0x446   : > { %v3610_v37 = vsel %vm3597_vm3, %v18062_v30, 0.0 }
 0x455   : > { %v4195_v17 = vpop.f32.mrf.mxu0 }
 0x456   : > { %v18042_v18 = vsel %vm17976_vm2, %v4195_v17, -inf }
 0x457   : > { %v15219_v20 = vpop.f32.mrf.mxu0  ;;  %v4204_v26 = vsel %vm3597_vm3, %v18042_v18, -inf }
 0x458   : > { %4205 = vmax.xlane.f32.xlu0 %v4204_v26 }
 0x459   : > { %v4198_v23 = vpop.f32.mrf.mxu0 }
 0x45a   : > { %v18048_v9 = vsel %vm17984_vm4, %v4198_v23, -inf }
 0x45b   : > { %v15220_v50 = vpop.f32.mrf.mxu0  ;;  %v4207_v24 = vsel %vm3597_vm3, %v18048_v9, -inf }
 0x45c   : > { %4208 = vmax.xlane.f32.xlu1 %v4207_v24 }
 0x45d   : > { %v4315_v21 = vpop.f32.mrf.mxu0 }
 0x45e   : > { %v18056_v27 = vsel %vm17976_vm2, %v4315_v21, -inf }
 0x45f   : > { %v15231_v35 = vpop.f32.mrf.mxu0  ;;  %v4324_v29 = vsel %vm3597_vm3, %v18056_v27, -inf }
 0x460   : > { %3614 = vadd.xlane.f32.xlu1 %v3613_v28  ;;  %4325 = vmax.xlane.f32.xlu0 %v4324_v29 }
 0x461   : > { %v4318_v32 = vpop.f32.mrf.mxu0 }
 0x462   : > { %v18066_v33 = vsel %vm17984_vm4, %v4318_v32, -inf }
 0x463   : > { %v15232_v34 = vpop.f32.mrf.mxu0  ;;  %v4327_v38 = vsel %vm3597_vm3, %v18066_v33, -inf }
 0x464   : > { %3611 = vadd.xlane.f32.xlu0 %v3610_v37  ;;  %4328 = vmax.xlane.f32.xlu1 %v4327_v38 }
 0x465   : > { %v4437_v39 = vpop.f32.mrf.mxu0 }
 0x466   : > { %v18074_v45 = vsel %vm17976_vm2, %v4437_v39, -inf }
 0x467   : > { %v15243_v46 = vpop.f32.mrf.mxu0  ;;  %v4446_v47 = vsel %vm3597_vm3, %v18074_v45, -inf }
 0x468   : > { %4447 = vmax.xlane.f32.xlu0 %v4446_v47 }
 0x469   : > { %v4440_v49 = vpop.f32.mrf.mxu0 }
 0x46a   : > { %v18080_v52 = vsel %vm17984_vm4, %v4440_v49, -inf }
 0x46b   : > { %v15244_v57 = vpop.f32.mrf.mxu0  ;;  %v4449_v60 = vsel %vm3597_vm3, %v18080_v52, -inf }
 0x46c   : > { %4450 = vmax.xlane.f32.xlu1 %v4449_v60 }
 0x4a1   : > { %v3722_v61 = vpop.xlane.xlu0 %3721 }
 0x4a2   : > { %v3726_v22 = vsub.f32 %v17994_v31, %v3722_v61 }
 0x4a4   : > { %v3728_v62 = vmul.f32 1.442695, %v3726_v22 }
 0x4a5   : > { %v3725_v4 = vpop.xlane.xlu0 %3724 }
 0x4a6   : > { %16985 = vpow2.f32 %v3728_v62  ;;  %v3727_v5 = vsub.f32 %v18000_v36, %v3725_v4 }
 0x4a8   : > { %v3730_v6 = vmul.f32 1.442695, %v3727_v5 }
 0x4a9   : > { %v3842_v8 = vpop.xlane.xlu0 %3841 }
 0x4aa   : > { %16987 = vpow2.f32 %v3730_v6  ;;  %v3846_v25 = vsub.f32 %v18006_v42, %v3842_v8 }
 0x4ac   : > { %v3848_v1 = vmul.f32 1.442695, %v3846_v25 }
 0x4ad   : > { %v3845_v3 = vpop.xlane.xlu1 %3844 }
 0x4ae   : > { %16989 = vpow2.f32 %v3848_v1  ;;  %v3847_v0 = vsub.f32 %v18012_v48, %v3845_v3 }
 0x4b0   : > { %v3850_v43 = vmul.f32 1.442695, %v3847_v0 }
 0x4b1   : > { %v3964_v2 = vpop.xlane.xlu0 %3963 }
 0x4b2   : > { %16991 = vpow2.f32 %v3850_v43  ;;  %v3968_v31 = vsub.f32 %v18018_v58, %v3964_v2 }
 0x4b3   : > { %v18089_v12 = vpop.eup %16985 }
 0x4b4   : > { %v3970_v44 = vmul.f32 1.442695, %v3968_v31  ;;  %v3732_v36 = vsel %vm3597_vm3, %v18089_v12, 0.0 }
 0x4b5   : > { %3733 = vadd.xlane.f32.xlu0 %v3732_v36  ;;  %v3967_v26 = vpop.xlane.xlu1 %3966 }
 0x4b6   : > { %16993 = vpow2.f32 %v3970_v44  ;;  %v3969_v23 = vsub.f32 %v18024_v63, %v3967_v26 }
 0x4b7   : > { %v18093_v13 = vpop.eup %16987 }
 0x4b8   : > { %v3735_v42 = vsel %vm3597_vm3, %v18093_v13, 0.0  ;;  %v3972_v35 = vmul.f32 1.442695, %v3969_v23 }
 0x4b9   : > { %3736 = vadd.xlane.f32.xlu1 %v3735_v42  ;;  %v4084_v50 = vpop.xlane.xlu0 %4083 }
 0x4ba   : > { %v4088_v21 = vsub.f32 %v18030_v7, %v4084_v50  ;;  %16995 = vpow2.f32 %v3972_v35 }
 0x4bb   : > { %v18097_v48 = vpop.eup %16989 }
 0x4bc   : > { %v3852_v14 = vsel %vm3597_vm3, %v18097_v48, 0.0  ;;  %v4090_v32 = vmul.f32 1.442695, %v4088_v21 }
 0x4bd   : > { %3853 = vadd.xlane.f32.xlu0 %v3852_v14  ;;  %v4087_v24 = vpop.xlane.xlu1 %4086 }
 0x4be   : > { %v4089_v28 = vsub.f32 %v18036_v10, %v4087_v24  ;;  %16997 = vpow2.f32 %v4090_v32 }
 0x4bf   : > { %v18101_v58 = vpop.eup %16991 }
 0x4c0   : > { %v3855_v15 = vsel %vm3597_vm3, %v18101_v58, 0.0  ;;  %v4092_v37 = vmul.f32 1.442695, %v4089_v28 }
 0x4c1   : > { %3856 = vadd.xlane.f32.xlu1 %v3855_v15 }
 0x4c2   : > { %16999 = vpow2.f32 %v4092_v37 }
 0x4c3   : > { %v18105_v17 = vpop.eup %16993 }
 0x4c4   : > { %v3974_v20 = vsel %vm3597_vm3, %v18105_v17, 0.0 }
 0x4c5   : > { %3975 = vadd.xlane.f32.xlu0 %v3974_v20 }
 0x4c7   : > { %v18120_v61 = vpop.eup %16995 }
 0x4cb   : > { %v18123_v62 = vpop.eup %16997 }
 0x4cf   : > { %v18127_v6 = vpop.eup %16999 }
 0x4d0   : > { %v4097_v1 = vsel %vm3597_vm3, %v18127_v6, 0.0 }
 0x4d2   : > { %3986 = vrot.lane.b32.xlu1 %v17941_v40, %s17485_s2 }
 0x4db   : > { %3744 = vrot.lane.b32.xlu0 %v17939_v59, %s17485_s2 }
 0x4e1   : > { %v4206_v29 = vpop.xlane.xlu0 %4205 }
 0x4e2   : > { %v4210_v34 = vsub.f32 %v18042_v18, %v4206_v29 }
 0x4e4   : > { %v4212_v39 = vmul.f32 1.442695, %v4210_v34 }
 0x4e5   : > { %v4209_v38 = vpop.xlane.xlu1 %4208 }
 0x4e6   : > { %v4211_v59 = vsub.f32 %v18048_v9, %v4209_v38  ;;  %17001 = vpow2.f32 %v4212_v39 }
 0x4e8   : > { %v4214_v47 = vmul.f32 1.442695, %v4211_v59 }
 0x4e9   : > { %v3615_v63 = vpop.xlane.xlu1 %3614  ;;  %v4326_v46 = vpop.xlane.xlu0 %4325 }
 0x4ea   : > { %17003 = vrcp.f32 %v3615_v63  ;;  %v4330_v7 = vsub.f32 %v18056_v27, %v4326_v46  ;;  %v3977_v27 = vsel %vm3597_vm3, %v18120_v61, 0.0 }
 0x4ec   : > { %v4332_v18 = vmul.f32 1.442695, %v4330_v7 }
 0x4ed   : > { %v3612_v10 = vpop.xlane.xlu0 %3611  ;;  %v4329_v49 = vpop.xlane.xlu1 %4328 }
 0x4ee   : > { %17005 = vrcp.f32 %v3612_v10  ;;  %v4331_v57 = vsub.f32 %v18066_v33, %v4329_v49 }
 0x4ef   : > { %17007 = vpow2.f32 %v4214_v47 }
 0x4f0   : > { %17009 = vpow2.f32 %v4332_v18  ;;  %v4334_v4 = vmul.f32 1.442695, %v4331_v57 }
 0x4f1   : > { %v4448_v60 = vpop.xlane.xlu0 %4447 }
 0x4f2   : > { %v4452_v22 = vsub.f32 %v18074_v45, %v4448_v60  ;;  %v4094_v45 = vsel %vm3597_vm3, %v18123_v62, 0.0 }
 0x4f3   : > { %v18130_v33 = vpop.eup %17001 }
 0x4f4   : > { %v4454_v9 = vmul.f32 1.442695, %v4452_v22  ;;  %v4216_v43 = vsel %vm3597_vm3, %v18130_v33, 0.0 }
 0x4f5   : > { %v4451_v5 = vpop.xlane.xlu1 %4450 }
 0x4f6   : > { %17011 = vpow2.f32 %v4454_v9  ;;  %v4453_v8 = vsub.f32 %v18080_v52, %v4451_v5  ;;  %3978 = vadd.xlane.f32.xlu1 %v3977_v27 }
 0x4f7   : > { %17013 = vpow2.f32 %v4334_v4  ;;  %v17004_v3 = vpop.eup %17003 }
 0x4f8   : > { %v4456_v25 = vmul.f32 1.442695, %v4453_v8  ;;  %v3619_v2 = vmul.f32 %v17004_v3, %v18052_v11 }
 0x4fa   : > { %4095 = vadd.xlane.f32.xlu0 %v4094_v45  ;;  %4098 = vadd.xlane.f32.xlu1 %v4097_v1  ;;  %17015 = vpow2.f32 %v4456_v25 }
 0x4fb   : > { %v17006_v0 = vpop.eup %17005 }
 0x4fc   : > { %v3618_v52 = vmul.f32 %v17006_v0, %v18062_v30  ;;  %v18140_v31 = vpop.eup %17007 }
 0x4fd   : > { %v4219_v36 = vsel %vm3597_vm3, %v18140_v31, 0.0  ;;  %v18145_v42 = vpop.eup %17009 }
 0x4fe   : > { %4217 = vadd.xlane.f32.xlu1 %v4216_v43  ;;  %v3620_v44 = vpack.c.bf16 %v3619_v2, %v3618_v52  ;;  %v4336_v30 = vsel %vm3597_vm3, %v18145_v42, 0.0 }
 0x500   : > { %15164 = vmatmul.mubr.msk.bf16.vlgmr.msra.gmra.mxu1 %vm3597_vm3, %v3620_v44 }
 0x501   : > { %15175 = vmatprep.mubr.msk.bf16.mxu1 %vm17487_vm0, %v17486_v41 }
 0x502   : > { %4220 = vadd.xlane.f32.xlu1 %v4219_v36 }
 0x503   : > { %v18149_v14 = vpop.eup %17011 }
 0x504   : > { %v4458_v11 = vsel %vm3597_vm3, %v18149_v14, 0.0  ;;  %v18155_v15 = vpop.eup %17013 }
 0x505   : > { %4459 = vadd.xlane.f32.xlu0 %v4458_v11  ;;  %v4339_v20 = vsel %vm3597_vm3, %v18155_v15, 0.0 }
 0x506   : > { %4337 = vadd.xlane.f32.xlu1 %v4336_v30 }
 0x507   : > { %v18159_v26 = vpop.eup %17015 }
 0x508   : > { %v4461_v23 = vsel %vm3597_vm3, %v18159_v26, 0.0 }
 0x50a   : > { %4340 = vadd.xlane.f32.xlu1 %v4339_v20 }
 0x50e   : > { %4462 = vadd.xlane.f32.xlu1 %v4461_v23 }
 0x51b   : > { %4228 = vrot.lane.b32.xlu0 %v17965_v16, %s17485_s2 }
 0x51f   : > { %4470 = vrot.lane.b32.xlu1 %v17967_v19, %s17485_s2 }
 0x53e   : > { %v3734_v50 = vpop.xlane.xlu0 %3733 }
 0x53f   : > { %17017 = vrcp.f32 %v3734_v50 }
 0x542   : > { %v3737_v24 = vpop.xlane.xlu1 %3736 }
 0x543   : > { %17019 = vrcp.f32 %v3737_v24  ;;  %v16019_v24 = vld [vmem:[#allocation10 + $0xe4] ss:$16 sps:$4 sm:$0xff]  }
 0x544   : > { %5351 = vmatprep.subr.bf16.mxu0 %v16019_v24  ;;  %v16091_v24 = vld [vmem:[#allocation10 + $0x3e4] ss:$16 sps:$4 sm:$0xff]  }
 0x546   : > { %v3854_v21 = vpop.xlane.xlu0 %3853 }
 0x547   : > { %17021 = vrcp.f32 %v3854_v21  ;;  %v16017_v21 = vld [vmem:[#allocation10 + $0xe0] ss:$16 sps:$4 sm:$0xff]  }
 0x548   : > { %5352 = vmatpush1.bf16.msra.mxu0 %v16017_v21  ;;  %v16094_v21 = vld [vmem:[#allocation10 + $0xec] ss:$16 sps:$4 sm:$0xff]  }
 0x54a   : > { %v3857_v35 = vpop.xlane.xlu1 %3856 }
 0x54b   : > { %17023 = vrcp.f32 %v3857_v35  ;;  %v16020_v35 = vld [vmem:[#allocation10 + $0xc0] ss:$16 sps:$4 sm:$0xff]  }
 0x54c   : > { %v17018_v28 = vpop.eup %17017 }
 0x54d   : > { %v3740_v34 = vmul.f32 %v17018_v28, %v18089_v12  ;;  %v16022_v28 = vld [vmem:[#allocation10 + $0xc4] ss:$16 sps:$4 sm:$0xff]  }
 0x54e   : > { %v3976_v29 = vpop.xlane.xlu0 %3975  ;;  %v3987_v47 = vpop.permute.xlu1 %3986  ;;  %5353 = vmatprep.subr.bf16.mxu0 %v16022_v28 }
 0x54f   : > { %17025 = vrcp.f32 %v3976_v29  ;;  %5354 = vmatpush1.bf16.msra.mxu0 %v16020_v35  ;;  %v16089_v35 = vld [vmem:[#allocation10 + $0x3e0] ss:$16 sps:$4 sm:$0xff]  }
 0x550   : > { %v17020_v32 = vpop.eup %17019 }
 0x551   : > { %v3741_v37 = vmul.f32 %v17020_v32, %v18093_v13  ;;  %v16028_v32 = vld [vmem:[#allocation10 + $0x84] ss:$16 sps:$4 sm:$0xff]  }
 0x552   : > { %v3745_v38 = vpop.permute.xlu0 %3744 }
 0x553   : > { %15174 = vmatpush3.bf16.msra.mxu1 %v3745_v38  ;;  %v3742_v39 = vpack.c.bf16 %v3741_v37, %v3740_v34  ;;  %v16044_v34 = vld [vmem:[#allocation10 + $0x2e0] ss:$16 sps:$4 sm:$0xff]   ;;  %v16046_v37 = vld [vmem:[#allocation10 + $0x2e4] ss:$16 sps:$4 sm:$0xff]  }
 0x554   : > { %15185 = vmatprep.subr.bf16.mxu1 %v17486_v41  ;;  %v17022_v59 = vpop.eup %17021 }
 0x555   : > { %v3860_v12 = vmul.f32 %v17022_v59, %v18097_v48 }
 0x556   : > { %15176 = vmatmul.mubr.msk.bf16.vlgmr.msra.gmra.mxu1 %vm3597_vm3, %v3742_v39  ;;  %v16052_v39 = vld [vmem:[#allocation10 + $0x2c4] ss:$16 sps:$4 sm:$0xff]  }
 0x557   : > { %15186 = vmatpush3.bf16.msra.mxu1 %v17941_v40  ;;  %15187 = vmatprep.mubr.msk.bf16.mxu1 %vm17487_vm0, %v17486_v41 }
 0x558   : > { %v17024_v63 = vpop.eup %17023  ;;  %15197 = vmatprep.subr.bf16.mxu1 %v17486_v41 }
 0x559   : > { %v3861_v13 = vmul.f32 %v17024_v63, %v18101_v58  ;;  %v16026_v63 = vld [vmem:[#allocation10 + $0x80] ss:$16 sps:$4 sm:$0xff]  }
 0x55b   : > { %v3862_v46 = vpack.c.bf16 %v3861_v13, %v3860_v12  ;;  %v16050_v12 = vld [vmem:[#allocation10 + $0x2c0] ss:$16 sps:$4 sm:$0xff]  }
 0x55c   : > { %v17026_v49 = vpop.eup %17025 }
 0x55d   : > { %v3982_v57 = vmul.f32 %v17026_v49, %v18105_v17  ;;  %v16034_v49 = vld [vmem:[#allocation10 + $0x44] ss:$16 sps:$4 sm:$0xff]  }
 0x55e   : > { %15188 = vmatmul.mubr.msk.bf16.vlgmr.msra.gmra.mxu1 %vm3597_vm3, %v3862_v46  ;;  %v16031_v46 = vld [vmem:[#allocation10 + $0x64] ss:$16 sps:$4 sm:$0xff]  }
 0x55f   : > { %15198 = vmatpush3.bf16.msra.mxu1 %v3987_v47  ;;  %15199 = vmatprep.mubr.msk.bf16.mxu1 %vm17487_vm0, %v17486_v41  ;;  %v16058_v47 = vld [vmem:[#allocation10 + $0x2a4] ss:$16 sps:$4 sm:$0xff]  }
 0x560   : > { %15209 = vmatprep.subr.bf16.mxu1 %v17486_v41 }
 0x57f   : > { %v3979_v40 = vpop.xlane.xlu1 %3978 }
 0x580   : > { %17027 = vrcp.f32 %v3979_v40 }
 0x583   : > { %v4096_v7 = vpop.xlane.xlu0 %4095  ;;  %v4099_v10 = vpop.xlane.xlu1 %4098 }
 0x584   : > { %17029 = vrcp.f32 %v4096_v7  ;;  %v16029_v7 = vld [vmem:[#allocation10 + $0x60] ss:$16 sps:$4 sm:$0xff]  }
 0x585   : > { %17031 = vrcp.f32 %v4099_v10  ;;  %v16056_v10 = vld [vmem:[#allocation10 + $0x2a0] ss:$16 sps:$4 sm:$0xff]  }
 0x587   : > { %v4218_v48 = vpop.xlane.xlu1 %4217 }
 0x58b   : > { %v4221_v58 = vpop.xlane.xlu1 %4220 }
 0x58c   : > { %17033 = vrcp.f32 %v4221_v58  ;;  %v16064_v58 = vld [vmem:[#allocation10 + $0x284] ss:$16 sps:$4 sm:$0xff]  }
 0x58d   : > { %v17028_v18 = vpop.eup %17027  ;;  %17035 = vrcp.f32 %v4218_v48 }
 0x58e   : > { %v3983_v60 = vmul.f32 %v17028_v18, %v18120_v61  ;;  %v4460_v8 = vpop.xlane.xlu0 %4459 }
 0x58f   : > { %v4338_v22 = vpop.xlane.xlu1 %4337 }
 0x590   : > { %v3984_v9 = vpack.c.bf16 %v3983_v60, %v3982_v57  ;;  %v16032_v57 = vld [vmem:[#allocation10 + $0x40] ss:$16 sps:$4 sm:$0xff]  }
 0x591   : > { %v17030_v4 = vpop.eup %17029  ;;  %v16062_v60 = vld [vmem:[#allocation10 + $0x280] ss:$16 sps:$4 sm:$0xff]  }
 0x592   : > { %v17032_v5 = vpop.eup %17031  ;;  %15200 = vmatmul.mubr.msk.bf16.vlgmr.msra.gmra.mxu1 %vm3597_vm3, %v3984_v9  ;;  %v4102_v17 = vmul.f32 %v17030_v4, %v18123_v62  ;;  %v4229_v3 = vpop.permute.xlu0 %4228  ;;  %v16037_v9 = vld [vmem:[#allocation10 + $0x24] ss:$16 sps:$4 sm:$0xff]  }
 0x593   : > { %15210 = vmatpush3.bf16.msra.mxu1 %v17965_v16  ;;  %v4341_v27 = vpop.xlane.xlu1 %4340  ;;  %15211 = vmatprep.mubr.msk.bf16.mxu1 %vm17487_vm0, %v17486_v41  ;;  %v4103_v61 = vmul.f32 %v17032_v5, %v18127_v6  ;;  %v16070_v4 = vld [vmem:[#allocation10 + $0x264] ss:$16 sps:$4 sm:$0xff]   ;;  %v16035_v5 = vld [vmem:[#allocation10 + $0x20] ss:$16 sps:$4 sm:$0xff]  }
 0x594   : > { %17037 = vrcp.f32 %v4341_v27  ;;  %15221 = vmatprep.subr.bf16.mxu1 %v17486_v41  ;;  %v16068_v27 = vld [vmem:[#allocation10 + $0x260] ss:$16 sps:$4 sm:$0xff]  }
 0x595   : > { %17039 = vrcp.f32 %v4338_v22  ;;  %v4104_v25 = vpack.c.bf16 %v4103_v61, %v4102_v17  ;;  %v16076_v17 = vld [vmem:[#allocation10 + $0x244] ss:$16 sps:$4 sm:$0xff]   ;;  %v16038_v61 = vld [vmem:[#allocation10] ss:$16 sps:$4 sm:$0xff]  }
 0x597   : > { %v4463_v1 = vpop.xlane.xlu1 %4462 }
 0x598   : > { %17041 = vrcp.f32 %v4463_v1  ;;  %v16082_v1 = vld [vmem:[#allocation10 + $0x224] ss:$16 sps:$4 sm:$0xff]  }
 0x599   : > { %v17034_v45 = vpop.eup %17033  ;;  %17043 = vrcp.f32 %v4460_v8  ;;  %v16040_v8 = vld [vmem:[#allocation10 + $0x4] ss:$16 sps:$4 sm:$0xff]  }
 0x59a   : > { %15212 = vmatmul.mubr.msk.bf16.vlgmr.msra.gmra.mxu1 %vm3597_vm3, %v4104_v25  ;;  %v17036_v16 = vpop.eup %17035  ;;  %v4225_v0 = vmul.f32 %v17034_v45, %v18140_v31  ;;  %v16074_v25 = vld [vmem:[#allocation10 + $0x240] ss:$16 sps:$4 sm:$0xff]   ;;  %v16043_v45 = vld [vmem:[#allocation10 + $0x1e4] ss:$16 sps:$4 sm:$0xff]  }
 0x59b   : > { %15222 = vmatpush3.bf16.msra.mxu1 %v4229_v3  ;;  %15223 = vmatprep.mubr.msk.bf16.mxu1 %vm17487_vm0, %v17486_v41  ;;  %v4224_v62 = vmul.f32 %v17036_v16, %v18130_v33  ;;  %v4471_v11 = vpop.permute.xlu1 %4470  ;;  %v16041_v3 = vld [vmem:[#allocation10 + $0x1e0] ss:$16 sps:$4 sm:$0xff]  }
 0x59c   : > { %15233 = vmatprep.subr.bf16.mxu1 %v17486_v41  ;;  %v16080_v16 = vld [vmem:[#allocation10 + $0x220] ss:$16 sps:$4 sm:$0xff]  }
 0x59d   : > { %v4226_v6 = vpack.c.bf16 %v4225_v0, %v4224_v62  ;;  %v16049_v0 = vld [vmem:[#allocation10 + $0x1c4] ss:$16 sps:$4 sm:$0xff]   ;;  %v16047_v62 = vld [vmem:[#allocation10 + $0x1c0] ss:$16 sps:$4 sm:$0xff]  }
 0x5a1   : > { %v17038_v43 = vpop.eup %17037 }
 0x5a2   : > { %15224 = vmatmul.mubr.msk.bf16.vlgmr.msra.gmra.mxu1 %vm3597_vm3, %v4226_v6  ;;  %v17040_v52 = vpop.eup %17039  ;;  %v4345_v2 = vmul.f32 %v17038_v43, %v18155_v15  ;;  %v16055_v6 = vld [vmem:[#allocation10 + $0x1a4] ss:$16 sps:$4 sm:$0xff]   ;;  %v16053_v43 = vld [vmem:[#allocation10 + $0x1a0] ss:$16 sps:$4 sm:$0xff]  }
 0x5a3   : > { %15234 = vmatpush3.bf16.msra.mxu1 %v17967_v19  ;;  %15235 = vmatprep.mubr.msk.bf16.mxu1 %vm17487_vm0, %v17486_v41  ;;  %v4344_v44 = vmul.f32 %v17040_v52, %v18145_v42  ;;  %v16061_v52 = vld [vmem:[#allocation10 + $0x184] ss:$16 sps:$4 sm:$0xff]  }
 0x5a4   : > { %15245 = vmatprep.subr.bf16.mxu1 %v17486_v41 }
 0x5a5   : > { %v4346_v31 = vpack.c.bf16 %v4345_v2, %v4344_v44  ;;  %v17042_v36 = vpop.eup %17041  ;;  %v16059_v2 = vld [vmem:[#allocation10 + $0x180] ss:$16 sps:$4 sm:$0xff]   ;;  %v16067_v44 = vld [vmem:[#allocation10 + $0x164] ss:$16 sps:$4 sm:$0xff]  }
 0x5a6   : > { %v17044_v33 = vpop.eup %17043  ;;  %v4467_v19 = vmul.f32 %v17042_v36, %v18159_v26  ;;  %v16073_v36 = vld [vmem:[#allocation10 + $0x144] ss:$16 sps:$4 sm:$0xff]  }
 0x5a7   : > { %v4466_v30 = vmul.f32 %v17044_v33, %v18149_v14  ;;  %v16023_v14 = vld [vmem:[#allocation10 + $0xa0] ss:$16 sps:$4 sm:$0xff]   ;;  %v16079_v33 = vld [vmem:[#allocation10 + $0x124] ss:$16 sps:$4 sm:$0xff]  }
 0x5a9   : > { %v4468_v20 = vpack.c.bf16 %v4467_v19, %v4466_v30  ;;  %v16077_v19 = vld [vmem:[#allocation10 + $0x120] ss:$16 sps:$4 sm:$0xff]  }
 0x5aa   : > { %15236 = vmatmul.mubr.msk.bf16.vlgmr.msra.gmra.mxu1 %vm3597_vm3, %v4346_v31  ;;  %v16065_v31 = vld [vmem:[#allocation10 + $0x160] ss:$16 sps:$4 sm:$0xff]  }
 0x5ab   : > { %15246 = vmatpush3.bf16.msra.mxu1 %v4471_v11  ;;  %15247 = vmatprep.mubr.msk.bf16.mxu1 %vm17487_vm0, %v17486_v41  ;;  %v16025_v41 = vld [vmem:[#allocation10 + $0xa4] ss:$16 sps:$4 sm:$0xff]   ;;  %v16071_v11 = vld [vmem:[#allocation10 + $0x140] ss:$16 sps:$4 sm:$0xff]  }
 0x5ac   : > { %5355 = vmatprep.subr.bf16.mxu0 %v16025_v41  ;;  %5394 = vmatprep.subr.bf16.mxu1 %v16046_v37  ;;  %v16083_v30 = vld [vmem:[#allocation10 + $0x100] ss:$16 sps:$4 sm:$0xff]   ;;  %v16097_v41 = vld [vmem:[#allocation10 + $0x3c4] ss:$16 sps:$4 sm:$0xff]  }
 0x5ad   : > { %5356 = vmatpush1.bf16.msra.mxu0 %v16023_v14  ;;  %v16095_v14 = vld [vmem:[#allocation10 + $0x3c0] ss:$16 sps:$4 sm:$0xff]  }
 0x5ae   : > { %5357 = vmatprep.subr.bf16.mxu0 %v16028_v32 }
 0x5b1   : > { %5358 = vmatpush1.bf16.msra.mxu0 %v16026_v63  ;;  %v16109_v63 = vld [vmem:[#allocation10 + $0x384] ss:$16 sps:$4 sm:$0xff]  }
 0x5b2   : > { %15248 = vmatmul.mubr.msk.bf16.vlgmr.msra.gmra.mxu1 %vm3597_vm3, %v4468_v20  ;;  %5359 = vmatprep.subr.bf16.mxu0 %v16031_v46  ;;  %v16085_v20 = vld [vmem:[#allocation10 + $0x104] ss:$16 sps:$4 sm:$0xff]  }
 0x5b3   : > { %5395 = vmatpush1.bf16.msra.mxu1 %v16044_v34  ;;  %v16103_v34 = vld [vmem:[#allocation10 + $0x3a4] ss:$16 sps:$4 sm:$0xff]  }
 0x5b4   : > { %5396 = vmatprep.subr.bf16.mxu1 %v16052_v39  ;;  %v16115_v46 = vld [vmem:[#allocation10 + $0x364] ss:$16 sps:$4 sm:$0xff]  }
 0x5b5   : > { %5360 = vmatpush1.bf16.msra.mxu0 %v16029_v7  ;;  %v16113_v7 = vld [vmem:[#allocation10 + $0x360] ss:$16 sps:$4 sm:$0xff]  }
 0x5b6   : > { %5361 = vmatprep.subr.bf16.mxu0 %v16034_v49 }
 0x5b7   : > { %5397 = vmatpush1.bf16.msra.mxu1 %v16050_v12  ;;  %v16107_v12 = vld [vmem:[#allocation10 + $0x380] ss:$16 sps:$4 sm:$0xff]  }
 0x5b8   : > { %5398 = vmatprep.subr.bf16.mxu1 %v16058_v47 }
 0x5b9   : > { %5362 = vmatpush1.bf16.msra.mxu0 %v16032_v57 }
 0x5ba   : > { %5363 = vmatprep.subr.bf16.mxu0 %v16037_v9 }
 0x5bb   : > { %5399 = vmatpush1.bf16.msra.mxu1 %v16056_v10 }
 0x5bc   : > { %5400 = vmatprep.subr.bf16.mxu1 %v16064_v58  ;;  %v16119_v58 = vld [vmem:[#allocation10 + $0x340] ss:$16 sps:$4 sm:$0xff]  }
 0x5bd   : > { %5364 = vmatpush1.bf16.msra.mxu0 %v16035_v5 }
 0x5be   : > { %5365 = vmatprep.subr.bf16.mxu0 %v16040_v8  ;;  %v16131_v8 = vld [vmem:[#allocation10 + $0x300] ss:$16 sps:$4 sm:$0xff]  }
 0x5bf   : > { %5401 = vmatpush1.bf16.msra.mxu1 %v16062_v60 }
 0x5c0   : > { %v18209_v15 = vpop.f32.mrf.mxu1  ;;  %5402 = vmatprep.subr.bf16.mxu1 %v16070_v4  ;;  %v16125_v4 = vld [vmem:[#allocation10 + $0x320] ss:$16 sps:$4 sm:$0xff]  }
 0x5c1   : > { %5366 = vmatpush1.bf16.msra.mxu0 %v16038_v61 }
 0x5c2   : > { %v15165_v42 = vpop.f32.mrf.mxu1  ;;  %5367 = vmatprep.subr.bf16.mxu0 %v16043_v45  ;;  %v16142_v45 = vld [vmem:[#allocation10 + $0x2ec] ss:$16 sps:$4 sm:$0xff]  }
 0x5c3   : > { %5403 = vmatpush1.bf16.msra.mxu1 %v16068_v27  ;;  %v16086_v42 = vld [vmem:[#allocation10 + $0x200] ss:$16 sps:$4 sm:$0xff]  }
 0x5c4   : > { %v18211_v23 = vpop.f32.mrf.mxu1  ;;  %5404 = vmatprep.subr.bf16.mxu1 %v16076_v17  ;;  %v16133_v17 = vld [vmem:[#allocation10 + $0x304] ss:$16 sps:$4 sm:$0xff]  }
 0x5c5   : > { %5368 = vmatpush2.bf16.msra.mxu0 %v16041_v3 }
 0x5c6   : > { %v15166_v50 = vpop.f32.mrf.mxu1  ;;  %5369 = vmatprep.subr.bf16.mxu0 %v16049_v0 }
 0x5c7   : > { %5405 = vmatpush1.bf16.msra.mxu1 %v16074_v25  ;;  %v16088_v50 = vld [vmem:[#allocation10 + $0x204] ss:$16 sps:$4 sm:$0xff]  }
 0x5c8   : > { %5406 = vmatprep.subr.bf16.mxu1 %v16082_v1 }
 0x5c9   : > { %5370 = vmatpush2.bf16.msra.mxu0 %v16047_v62 }
 0x5ca   : > { %5371 = vmatprep.subr.bf16.mxu0 %v16055_v6 }
 0x5cb   : > { %5407 = vmatpush1.bf16.msra.mxu1 %v16080_v16 }
 0x5cc   : > { %5408 = vmatprep.subr.bf16.mxu1 %v16088_v50  ;;  %v16100_v50 = vld [vmem:[#allocation10 + $0xcc] ss:$16 sps:$4 sm:$0xff]  }
 0x5cd   : > { %5372 = vmatpush2.bf16.msra.mxu0 %v16053_v43 }
 0x5ce   : > { %5373 = vmatprep.subr.bf16.mxu0 %v16061_v52 }
 0x5cf   : > { %5409 = vmatpush1.bf16.msra.mxu1 %v16086_v42 }
 0x5d0   : > { %5410 = vmatprep.subr.bf16.mxu1 %v16091_v24  ;;  %v16106_v24 = vld [vmem:[#allocation10 + $0xac] ss:$16 sps:$4 sm:$0xff]  }
 0x5d1   : > { %5374 = vmatpush2.bf16.msra.mxu0 %v16059_v2 }
 0x5d2   : > { %5375 = vmatprep.subr.bf16.mxu0 %v16067_v44 }
 0x5d3   : > { %5411 = vmatpush2.bf16.msra.mxu1 %v16089_v35  ;;  %v16116_v35 = vld [vmem:[#allocation10 + $0x68] ss:$16 sps:$4 sm:$0xff]  }
 0x5d4   : > { %5412 = vmatprep.subr.bf16.mxu1 %v16097_v41  ;;  %v16122_v41 = vld [vmem:[#allocation10 + $0x48] ss:$16 sps:$4 sm:$0xff]  }
 0x5d5   : > { %5376 = vmatpush2.bf16.msra.mxu0 %v16065_v31 }
 0x5d6   : > { %5377 = vmatprep.subr.bf16.mxu0 %v16073_v36 }
 0x5d7   : > { %5413 = vmatpush2.bf16.msra.mxu1 %v16095_v14 }
 0x5d8   : > { %5414 = vmatprep.subr.bf16.mxu1 %v16103_v34 }
 0x5d9   : > { %5378 = vmatpush2.bf16.msra.mxu0 %v16071_v11 }
 0x5da   : > { %5379 = vmatprep.subr.bf16.mxu0 %v16079_v33 }
 0x5dd   : > { %5380 = vmatpush2.bf16.msra.mxu0 %v16077_v19 }
 0x5de   : > { %5381 = vmatprep.subr.bf16.mxu0 %v16085_v20  ;;  %v16092_v20 = vld [vmem:[#allocation10 + $0xe8] ss:$16 sps:$4 sm:$0xff]  }
 0x5e1   : > { %5382 = vmatpush2.bf16.msra.mxu0 %v16083_v30 }
 0x5e2   : > { %5437 = vmatprep.subr.bf16.mxu0 %v16094_v21  ;;  %v16110_v21 = vld [vmem:[#allocation10 + $0x88] ss:$16 sps:$4 sm:$0xff]  }
 0x616   : > { %v3784_v26 = vpop.f32.mrf.mxu1 }
 0x618   : > { %v15177_v29 = vpop.f32.mrf.mxu1 }
 0x61a   : > { %v3787_v38 = vpop.f32.mrf.mxu1 }
 0x61b   : > { %v15421_v59 = vpack.i.bf16 %v3787_v38, %v3784_v26  ;;  %v16101_v38 = vld [vmem:[#allocation10 + $0x3a0] ss:$16 sps:$4 sm:$0xff]  }
 0x61c   : > { %v15178_v13 = vpop.f32.mrf.mxu1  ;;  %5415 = vmatpush2.bf16.msra.mxu1 %v16101_v38 }
 0x61d   : > { %15422 = vrot.lane.b32.xlu0 %v15421_v59, %s17485_s2  ;;  %5416 = vmatprep.subr.bf16.mxu1 %v16109_v63 }
 0x61e   : > { %v18214_v40 = vpop.f32.mrf.mxu1 }
 0x620   : > { %v15189_v48 = vpop.f32.mrf.mxu1  ;;  %5417 = vmatpush2.bf16.msra.mxu1 %v16107_v12 }
 0x621   : > { %5418 = vmatprep.subr.bf16.mxu1 %v16115_v46  ;;  %v16121_v48 = vld [vmem:[#allocation10 + $0x344] ss:$16 sps:$4 sm:$0xff]   ;;  %v16139_v46 = vld [vmem:[#allocation10 + $0x1ec] ss:$16 sps:$4 sm:$0xff]  }
 0x622   : > { %v18216_v18 = vpop.f32.mrf.mxu1 }
 0x624   : > { %v15190_v22 = vpop.f32.mrf.mxu1  ;;  %5419 = vmatpush2.bf16.msra.mxu1 %v16113_v7 }
 0x625   : > { %5420 = vmatprep.subr.bf16.mxu1 %v16121_v48  ;;  %v16127_v22 = vld [vmem:[#allocation10 + $0x324] ss:$16 sps:$4 sm:$0xff]  }
 0x628   : > { %5421 = vmatpush2.bf16.msra.mxu1 %v16119_v58  ;;  %v16137_v58 = vld [vmem:[#allocation10 + $0x1e8] ss:$16 sps:$4 sm:$0xff]  }
 0x629   : > { %5422 = vmatprep.subr.bf16.mxu1 %v16127_v22  ;;  %v16145_v22 = vld [vmem:[#allocation10 + $0x1cc] ss:$16 sps:$4 sm:$0xff]  }
 0x62c   : > { %5423 = vmatpush2.bf16.msra.mxu1 %v16125_v4  ;;  %v16151_v4 = vld [vmem:[#allocation10 + $0x1ac] ss:$16 sps:$4 sm:$0xff]  }
 0x62d   : > { %5424 = vmatprep.subr.bf16.mxu1 %v16133_v17  ;;  %v16157_v17 = vld [vmem:[#allocation10 + $0x18c] ss:$16 sps:$4 sm:$0xff]  }
 0x630   : > { %5425 = vmatpush2.bf16.msra.mxu1 %v16131_v8  ;;  %v16152_v8 = vld [vmem:[#allocation10 + $0x2a8] ss:$16 sps:$4 sm:$0xff]  }
 0x631   : > { %5480 = vmatprep.subr.bf16.mxu1 %v16142_v45  ;;  %v16158_v45 = vld [vmem:[#allocation10 + $0x288] ss:$16 sps:$4 sm:$0xff]  }
 0x652   : > { %v4026_v28 = vpop.f32.mrf.mxu1 }
 0x654   : > { %v15201_v26 = vpop.f32.mrf.mxu1 }
 0x655   : > { %v16130_v26 = vld [vmem:[#allocation10 + $0x2c] ss:$16 sps:$4 sm:$0xff]  }
 0x656   : > { %v4029_v29 = vpop.f32.mrf.mxu1 }
 0x657   : > { %v15426_v32 = vpack.i.bf16 %v4029_v29, %v4026_v28  ;;  %v16124_v28 = vld [vmem:[#allocation10 + $0x4c] ss:$16 sps:$4 sm:$0xff]   ;;  %v16128_v29 = vld [vmem:[#allocation10 + $0x28] ss:$16 sps:$4 sm:$0xff]  }
 0x658   : > { %v15202_v37 = vpop.f32.mrf.mxu1 }
 0x659   : > { %15427 = vrot.lane.b32.xlu0 %v15426_v32, %s17485_s2  ;;  %v16136_v32 = vld [vmem:[#allocation10 + $0xc] ss:$16 sps:$4 sm:$0xff]  }
 0x65a   : > { %v18219_v39 = vpop.f32.mrf.mxu1 }
 0x65c   : > { %v15213_v59 = vpop.f32.mrf.mxu1 }
 0x65d   : > { %v16134_v59 = vld [vmem:[#allocation10 + $0x8] ss:$16 sps:$4 sm:$0xff]  }
 0x65e   : > { %v18221_v13 = vpop.f32.mrf.mxu1 }
 0x660   : > { %v15214_v47 = vpop.f32.mrf.mxu1 }
 0x662   : > { %v4268_v10 = vpop.f32.mrf.mxu1 }
 0x664   : > { %v15225_v49 = vpop.f32.mrf.mxu1 }
 0x666   : > { %v4271_v57 = vpop.f32.mrf.mxu1 }
 0x667   : > { %v15436_v60 = vpack.i.bf16 %v4271_v57, %v4268_v10  ;;  %v16140_v57 = vld [vmem:[#allocation10 + $0x2e8] ss:$16 sps:$4 sm:$0xff]  }
 0x668   : > { %v15226_v9 = vpop.f32.mrf.mxu1 }
 0x669   : > { %15437 = vrot.lane.b32.xlu1 %v15436_v60, %s17485_s2  ;;  %v16148_v9 = vld [vmem:[#allocation10 + $0x2cc] ss:$16 sps:$4 sm:$0xff]  }
 0x66a   : > { %v18224_v5 = vpop.f32.mrf.mxu1 }
 0x66c   : > { %v15237_v27 = vpop.f32.mrf.mxu1 }
 0x66d   : > { %v16149_v27 = vld [vmem:[#allocation10 + $0x1a8] ss:$16 sps:$4 sm:$0xff]  }
 0x66e   : > { %v18226_v61 = vpop.f32.mrf.mxu1 }
 0x670   : > { %v15238_v25 = vpop.f32.mrf.mxu1 }
 0x671   : > { %v16155_v25 = vld [vmem:[#allocation10 + $0x188] ss:$16 sps:$4 sm:$0xff]  }
 0x672   : > { %v4510_v1 = vpop.f32.mrf.mxu1 }
 0x674   : > { %v15249_v3 = vpop.f32.mrf.mxu1 }
 0x675   : > { %v16166_v3 = vld [vmem:[#allocation10 + $0x26c] ss:$16 sps:$4 sm:$0xff]  }
 0x676   : > { %v4513_v16 = vpop.f32.mrf.mxu1 }
 0x677   : > { %v15431_v0 = vpack.i.bf16 %v4513_v16, %v4510_v1  ;;  %v16163_v1 = vld [vmem:[#allocation10 + $0x16c] ss:$16 sps:$4 sm:$0xff]   ;;  %v16161_v16 = vld [vmem:[#allocation10 + $0x168] ss:$16 sps:$4 sm:$0xff]  }
 0x678   : > { %v15250_v62 = vpop.f32.mrf.mxu1 }
 0x679   : > { %15432 = vrot.lane.b32.xlu0 %v15431_v0, %s17485_s2  ;;  %v16164_v0 = vld [vmem:[#allocation10 + $0x268] ss:$16 sps:$4 sm:$0xff]   ;;  %v16169_v62 = vld [vmem:[#allocation10 + $0x14c] ss:$16 sps:$4 sm:$0xff]  }
 0x68f   : > { %v15423_v6 = vpop.permute.xlu0 %15422 }
 0x690   : > { %v15425_v43 = vunpack.i.h.bf16 %v15423_v6  ;;  %v15424_v52 = vunpack.i.l.bf16 %v15423_v6  ;;  %v16172_v6 = vld [vmem:[#allocation10 + $0x24c] ss:$16 sps:$4 sm:$0xff]  }
 0x692   : > { %v4550_v36 = vsel %vm3547_vm1, %v18211_v23, %v15425_v43  ;;  %v4549_v11 = vsel %vm3547_vm1, %v18209_v15, %v15424_v52  ;;  %v16098_v23 = vld [vmem:[#allocation10 + $0xc8] ss:$16 sps:$4 sm:$0xff]  }
 0x693   : > { %v18237_v42 = vpack.c.bf16 %v4550_v36, %v4549_v11  ;;  %v16104_v15 = vld [vmem:[#allocation10 + $0xa8] ss:$16 sps:$4 sm:$0xff]   ;;  %v16181_v11 = vld [vmem:[#allocation10 + $0x10c] ss:$16 sps:$4 sm:$0xff]  }
 0x694   : > { %v16167_v43 = vld [vmem:[#allocation10 + $0x148] ss:$16 sps:$4 sm:$0xff]  }
 0x695   : > { %v16170_v52 = vld [vmem:[#allocation10 + $0x248] ss:$16 sps:$4 sm:$0xff]  }
 0x696   : > { %v16176_v36 = vld [vmem:[#allocation10 + $0x228] ss:$16 sps:$4 sm:$0xff]  }
 0x6cb   : > { %v15428_v2 = vpop.permute.xlu0 %15427 }
 0x6cc   : > { %v15430_v44 = vunpack.i.h.bf16 %v15428_v2  ;;  %v15429_v31 = vunpack.i.l.bf16 %v15428_v2  ;;  %v16175_v2 = vld [vmem:[#allocation10 + $0x12c] ss:$16 sps:$4 sm:$0xff]  }
 0x6ce   : > { %v4551_v33 = vsel %vm3547_vm1, %v18214_v40, %v15429_v31  ;;  %v4552_v19 = vsel %vm3547_vm1, %v18216_v18, %v15430_v44  ;;  %v16112_v40 = vld [vmem:[#allocation10 + $0x8c] ss:$16 sps:$4 sm:$0xff]   ;;  %v16173_v31 = vld [vmem:[#allocation10 + $0x128] ss:$16 sps:$4 sm:$0xff]  }
 0x6cf   : > { %v4558_v30 = vpack.c.bf16 %v4552_v19, %v4551_v33  ;;  %v16118_v18 = vld [vmem:[#allocation10 + $0x6c] ss:$16 sps:$4 sm:$0xff]   ;;  %v16179_v19 = vld [vmem:[#allocation10 + $0x108] ss:$16 sps:$4 sm:$0xff]  }
 0x6d0   : > { %v16178_v44 = vld [vmem:[#allocation10 + $0x22c] ss:$16 sps:$4 sm:$0xff]  }
 0x6d1   : > { %5383 = vmatprep.mubr.bf16.mxu0 %v4558_v30  ;;  %v16184_v33 = vld [vmem:[#allocation10 + $0x20c] ss:$16 sps:$4 sm:$0xff]  }
 0x6d2   : > { %5384 = vmatmul.mubr.bf16.vlgmr.msra.gmra.mxu0 %v18237_v42 }
 0x6d3   : > { %5438 = vmatpush1.bf16.msra.mxu0 %v16092_v20  ;;  %5469 = vmatprep.mubr.bf16.mxu0 %v4558_v30  ;;  %v16182_v30 = vld [vmem:[#allocation10 + $0x208] ss:$16 sps:$4 sm:$0xff]   ;;  %v16187_v20 = vld [vmem:[#allocation10 + $0x3ec] ss:$16 sps:$4 sm:$0xff]  }
 0x6d4   : > { %5439 = vmatprep.subr.bf16.mxu0 %v16100_v50  ;;  %v16185_v50 = vld [vmem:[#allocation10 + $0x3e8] ss:$16 sps:$4 sm:$0xff]  }
 0x6d7   : > { %5440 = vmatpush1.bf16.msra.mxu0 %v16098_v23  ;;  %v16190_v23 = vld [vmem:[#allocation10 + $0x3cc] ss:$16 sps:$4 sm:$0xff]  }
 0x6d8   : > { %5441 = vmatprep.subr.bf16.mxu0 %v16106_v24  ;;  %v16188_v24 = vld [vmem:[#allocation10 + $0x3c8] ss:$16 sps:$4 sm:$0xff]  }
 0x6db   : > { %5442 = vmatpush1.bf16.msra.mxu0 %v16104_v15  ;;  %v15438_v14 = vpop.permute.xlu1 %15437  ;;  %v16193_v15 = vld [vmem:[#allocation10 + $0x3ac] ss:$16 sps:$4 sm:$0xff]  }
 0x6dc   : > { %5443 = vmatprep.subr.bf16.mxu0 %v16112_v40  ;;  %v15440_v34 = vunpack.i.h.bf16 %v15438_v14  ;;  %v15439_v37 = vunpack.i.l.bf16 %v15438_v14  ;;  %v16191_v40 = vld [vmem:[#allocation10 + $0x3a8] ss:$16 sps:$4 sm:$0xff]  }
 0x6dd   : > { %v16203_v14 = vld [vmem:[#allocation10 + $0x328] ss:$16 sps:$4 sm:$0xff]  }
 0x6de   : > { %v4554_v47 = vsel %vm3547_vm1, %v18221_v13, %v15440_v34  ;;  %v4553_v7 = vsel %vm3547_vm1, %v18219_v39, %v15439_v37  ;;  %v16143_v39 = vld [vmem:[#allocation10 + $0x1c8] ss:$16 sps:$4 sm:$0xff]   ;;  %v5763_v34 = vld [vmem:[#allocation16 + $0x380] sm:$0xff] }
 0x6df   : > { %5444 = vmatpush1.bf16.msra.mxu0 %v16110_v21  ;;  %v18248_v60 = vpack.c.bf16 %v4554_v47, %v4553_v7  ;;  %v16146_v13 = vld [vmem:[#allocation10 + $0x2c8] ss:$16 sps:$4 sm:$0xff]   ;;  %v16196_v21 = vld [vmem:[#allocation10 + $0x38c] ss:$16 sps:$4 sm:$0xff]  }
 0x6e0   : > { %5445 = vmatprep.subr.bf16.mxu0 %v16118_v18  ;;  %v16194_v18 = vld [vmem:[#allocation10 + $0x388] ss:$16 sps:$4 sm:$0xff]   ;;  %v5771_v37 = vld [vmem:[#allocation16 + $0x3c0] sm:$0xff] }
 0x6e1   : > { %v5755_v47 = vld [vmem:[#allocation16 + $0x340] sm:$0xff] }
 0x6e3   : > { %5446 = vmatpush1.bf16.msra.mxu0 %v16116_v35  ;;  %v16199_v35 = vld [vmem:[#allocation10 + $0x36c] ss:$16 sps:$4 sm:$0xff]  }
 0x6e4   : > { %5447 = vmatprep.subr.bf16.mxu0 %v16124_v28  ;;  %v16197_v28 = vld [vmem:[#allocation10 + $0x368] ss:$16 sps:$4 sm:$0xff]  }
 0x6e7   : > { %5448 = vmatpush1.bf16.msra.mxu0 %v16122_v41  ;;  %v16202_v41 = vld [vmem:[#allocation10 + $0x34c] ss:$16 sps:$4 sm:$0xff]  }
 0x6e8   : > { %5449 = vmatprep.subr.bf16.mxu0 %v16130_v26  ;;  %v16200_v26 = vld [vmem:[#allocation10 + $0x348] ss:$16 sps:$4 sm:$0xff]  }
 0x6eb   : > { %5450 = vmatpush1.bf16.msra.mxu0 %v16128_v29  ;;  %v15433_v38 = vpop.permute.xlu0 %15432  ;;  %v16208_v29 = vld [vmem:[#allocation10 + $0x30c] ss:$16 sps:$4 sm:$0xff]  }
 0x6ec   : > { %v15435_v63 = vunpack.i.h.bf16 %v15433_v38  ;;  %v15434_v12 = vunpack.i.l.bf16 %v15433_v38  ;;  %5451 = vmatprep.subr.bf16.mxu0 %v16136_v32  ;;  %v16206_v32 = vld [vmem:[#allocation10 + $0x308] ss:$16 sps:$4 sm:$0xff]   ;;  %v6019_v38 = vld [vmem:[#allocation16 + $0xb80] sm:$0xff] }
 0x6ee   : > { %v4555_v10 = vsel %vm3547_vm1, %v18224_v5, %v15434_v12  ;;  %v4556_v48 = vsel %vm3547_vm1, %v18226_v61, %v15435_v63  ;;  %v16154_v5 = vld [vmem:[#allocation10 + $0x2ac] ss:$16 sps:$4 sm:$0xff]   ;;  %v14205_v63 = vcombine.high %v5763_v34, %v5771_v37 }
 0x6ef   : > { %5452 = vmatpush1.bf16.msra.mxu0 %v16134_v59  ;;  %v4560_v49 = vpack.c.bf16 %v4556_v48, %v4555_v10  ;;  %v16160_v61 = vld [vmem:[#allocation10 + $0x28c] ss:$16 sps:$4 sm:$0xff]   ;;  %v14204_v59 = vcombine.low %v5763_v34, %v5771_v37 }
 0x6f0   : > { %5453 = vmatprep.subr.bf16.mxu0 %v16139_v46  ;;  %v6027_v12 = vld [vmem:[#allocation16 + $0xbc0] sm:$0xff] }
 0x6f1   : > { %5426 = vmatprep.mubr.bf16.mxu1 %v4560_v49  ;;  %v5747_v46 = vld [vmem:[#allocation16 + $0x300] sm:$0xff]  ;;  %v14460_v7 = vcombine.low %v6019_v38, %v6027_v12  ;;  %v14461_v10 = vcombine.high %v6019_v38, %v6027_v12  ;;  %v4689_v38 = vld [vmem:[#allocation11] sm:$0xf] }
 0x6f2   : > { %5427 = vmatmul.mubr.bf16.vlgmr.msra.gmra.mxu1 %v18248_v60  ;;  %v14189_v48 = vcombine.high %v5747_v46, %v5755_v47 }
 0x6f3   : > { %5454 = vmatpush2.bf16.msra.mxu0 %v16137_v58  ;;  %5481 = vmatpush1.bf16.msra.mxu1 %v16140_v57  ;;  %v6011_v58 = vld [vmem:[#allocation16 + $0xb40] sm:$0xff] }
 0x6f4   : > { %5512 = vmatprep.mubr.bf16.mxu1 %v4560_v49  ;;  %5455 = vmatprep.subr.bf16.mxu0 %v16145_v22  ;;  %v6003_v49 = vld [vmem:[#allocation16 + $0xb00] sm:$0xff] }
 0x6f5   : > { %5482 = vmatprep.subr.bf16.mxu1 %v16148_v9  ;;  %v5731_v57 = vld [vmem:[#allocation16 + $0x280] sm:$0xff]  ;;  %v14445_v22 = vcombine.high %v6003_v49, %v6011_v58 }
 0x6f6   : > { %v5739_v9 = vld [vmem:[#allocation16 + $0x2c0] sm:$0xff] }
 0x6f7   : > { %5456 = vmatpush2.bf16.msra.mxu0 %v16143_v39  ;;  %5483 = vmatpush1.bf16.msra.mxu1 %v16146_v13  ;;  %v5987_v39 = vld [vmem:[#allocation16 + $0xa80] sm:$0xff] }
 0x6f8   : > { %5457 = vmatprep.subr.bf16.mxu0 %v16151_v4  ;;  %5484 = vmatprep.subr.bf16.mxu1 %v16154_v5  ;;  %v5995_v13 = vld [vmem:[#allocation16 + $0xac0] sm:$0xff]  ;;  %v14444_v4 = vcombine.low %v6003_v49, %v6011_v58  ;;  %v14173_v5 = vcombine.high %v5731_v57, %v5739_v9 }
 0x6fb   : > { %5458 = vmatpush2.bf16.msra.mxu0 %v16149_v27  ;;  %5485 = vmatpush1.bf16.msra.mxu1 %v16152_v8  ;;  %v14429_v27 = vcombine.high %v5987_v39, %v5995_v13  ;;  %v5715_v8 = vld [vmem:[#allocation16 + $0x200] sm:$0xff] }
 0x6fc   : > { %5459 = vmatprep.subr.bf16.mxu0 %v16157_v17  ;;  %5486 = vmatprep.subr.bf16.mxu1 %v16160_v61  ;;  %v5723_v17 = vld [vmem:[#allocation16 + $0x240] sm:$0xff] }
 0x6fd   : > { %v5971_v61 = vld [vmem:[#allocation16 + $0xa00] sm:$0xff] }
 0x6ff   : > { %5460 = vmatpush2.bf16.msra.mxu0 %v16155_v25  ;;  %5487 = vmatpush1.bf16.msra.mxu1 %v16158_v45  ;;  %v5979_v25 = vld [vmem:[#allocation16 + $0xa40] sm:$0xff]  ;;  %v14172_v45 = vcombine.low %v5731_v57, %v5739_v9 }
 0x700   : > { %5461 = vmatprep.subr.bf16.mxu0 %v16163_v1  ;;  %5488 = vmatprep.subr.bf16.mxu1 %v16166_v3  ;;  %v14428_v1 = vcombine.low %v5987_v39, %v5995_v13  ;;  %v14157_v3 = vcombine.high %v5715_v8, %v5723_v17 }
 0x703   : > { %5462 = vmatpush2.bf16.msra.mxu0 %v16161_v16  ;;  %5489 = vmatpush1.bf16.msra.mxu1 %v16164_v0  ;;  %v14413_v16 = vcombine.high %v5971_v61, %v5979_v25  ;;  %v5699_v0 = vld [vmem:[#allocation16 + $0x180] sm:$0xff] }
 0x704   : > { %5463 = vmatprep.subr.bf16.mxu0 %v16169_v62  ;;  %5490 = vmatprep.subr.bf16.mxu1 %v16172_v6  ;;  %v5707_v62 = vld [vmem:[#allocation16 + $0x1c0] sm:$0xff] }
 0x705   : > { %v5955_v6 = vld [vmem:[#allocation16 + $0x980] sm:$0xff] }
 0x707   : > { %5464 = vmatpush2.bf16.msra.mxu0 %v16167_v43  ;;  %5491 = vmatpush1.bf16.msra.mxu1 %v16170_v52  ;;  %v5963_v43 = vld [vmem:[#allocation16 + $0x9c0] sm:$0xff]  ;;  %v14156_v52 = vcombine.low %v5715_v8, %v5723_v17 }
 0x708   : > { %5465 = vmatprep.subr.bf16.mxu0 %v16175_v2  ;;  %5492 = vmatprep.subr.bf16.mxu1 %v16178_v44  ;;  %v14412_v2 = vcombine.low %v5971_v61, %v5979_v25  ;;  %v14141_v44 = vcombine.high %v5699_v0, %v5707_v62  ;;  %v17052_v61 = vld [vmem:[%s17772_s1] sm:$0xff] }
 0x70b   : > { %5466 = vmatpush2.bf16.msra.mxu0 %v16173_v31  ;;  %5493 = vmatpush1.bf16.msra.mxu1 %v16176_v36  ;;  %v14397_v31 = vcombine.high %v5955_v6, %v5963_v43  ;;  %v5683_v36 = vld [vmem:[#allocation16 + $0x100] sm:$0xff] }
 0x70c   : > { %5467 = vmatprep.subr.bf16.mxu0 %v16181_v11  ;;  %5494 = vmatprep.subr.bf16.mxu1 %v16184_v33  ;;  %v5691_v11 = vld [vmem:[#allocation16 + $0x140] sm:$0xff] }
 0x70d   : > { %v5939_v33 = vld [vmem:[#allocation16 + $0x900] sm:$0xff] }
 0x70f   : > { %5468 = vmatpush2.bf16.msra.mxu0 %v16179_v19  ;;  %5495 = vmatpush1.bf16.msra.mxu1 %v16182_v30  ;;  %v5947_v19 = vld [vmem:[#allocation16 + $0x940] sm:$0xff]  ;;  %v14140_v30 = vcombine.low %v5699_v0, %v5707_v62 }
 0x710   : > { %5496 = vmatprep.subr.bf16.mxu1 %v16187_v20  ;;  %8807 = vmatprep.subr.bf16.mxu0 %v14205_v63  ;;  %v14396_v20 = vcombine.low %v5955_v6, %v5963_v43  ;;  %v4698_v63 = vrot.slane %v4689_v38, %v17844_v53  ;;  %v17054_v6 = vld [vmem:[%s17772_s1 + $0x20] sm:$0xff] }
 0x712   : > { %5470 = vmatmul.mubr.bf16.vlgmr.msra.gmra.mxu0 %v18237_v42  ;;  %v16205_v42 = vld [vmem:[#allocation10 + $0x32c] ss:$16 sps:$4 sm:$0xff]  }
 0x713   : > { %5497 = vmatpush2.bf16.msra.mxu1 %v16185_v50  ;;  %8808 = vmatpush1.bf16.msra.mxu0 %v14204_v59  ;;  %v14125_v50 = vcombine.high %v5683_v36, %v5691_v11 }
 0x714   : > { %5498 = vmatprep.subr.bf16.mxu1 %v16190_v23  ;;  %8809 = vmatprep.subr.bf16.mxu0 %v14189_v48  ;;  %v14381_v23 = vcombine.high %v5939_v33, %v5947_v19 }
 0x717   : > { %5499 = vmatpush2.bf16.msra.mxu1 %v16188_v24  ;;  %v5667_v24 = vld [vmem:[#allocation16 + $0x80] sm:$0xff] }
 0x718   : > { %5500 = vmatprep.subr.bf16.mxu1 %v16193_v15  ;;  %v5675_v15 = vld [vmem:[#allocation16 + $0xc0] sm:$0xff] }
 0x71b   : > { %5501 = vmatpush2.bf16.msra.mxu1 %v16191_v40  ;;  %v5923_v40 = vld [vmem:[#allocation16 + $0x880] sm:$0xff] }
 0x71c   : > { %5502 = vmatprep.subr.bf16.mxu1 %v16196_v21  ;;  %v5931_v21 = vld [vmem:[#allocation16 + $0x8c0] sm:$0xff] }
 0x71f   : > { %5503 = vmatpush2.bf16.msra.mxu1 %v16194_v18  ;;  %v14124_v18 = vcombine.low %v5683_v36, %v5691_v11 }
 0x720   : > { %5504 = vmatprep.subr.bf16.mxu1 %v16199_v35  ;;  %v14380_v35 = vcombine.low %v5939_v33, %v5947_v19 }
 0x723   : > { %5505 = vmatpush2.bf16.msra.mxu1 %v16197_v28  ;;  %v14109_v28 = vcombine.high %v5667_v24, %v5675_v15 }
 0x724   : > { %5506 = vmatprep.subr.bf16.mxu1 %v16202_v41  ;;  %v14365_v41 = vcombine.high %v5923_v40, %v5931_v21 }
 0x727   : > { %5507 = vmatpush2.bf16.msra.mxu1 %v16200_v26  ;;  %v14108_v26 = vcombine.low %v5667_v24, %v5675_v15 }
 0x728   : > { %5508 = vmatprep.subr.bf16.mxu1 %v16205_v42  ;;  %v14364_v42 = vcombine.low %v5923_v40, %v5931_v21 }
 0x72b   : > { %5509 = vmatpush2.bf16.msra.mxu1 %v16203_v14 }
 0x72c   : > { %5510 = vmatprep.subr.bf16.mxu1 %v16208_v29 }
 0x72f   : > { %5511 = vmatpush2.bf16.msra.mxu1 %v16206_v32 }
 0x730   : > { %8850 = vmatprep.subr.bf16.mxu1 %v14461_v10 }
 0x732   : > { %5513 = vmatmul.mubr.bf16.vlgmr.msra.gmra.mxu1 %v18248_v60  ;;  %v14188_v60 = vcombine.low %v5747_v46, %v5755_v47  ;;  %v4694_v47 = vrot.slane %v4689_v38, %v17850_v55 }
 0x733   : > { %8851 = vmatpush1.bf16.msra.mxu1 %v14460_v7 }
 0x734   : > { %8852 = vmatprep.subr.bf16.mxu1 %v14445_v22  ;;  %8810 = vmatpush1.bf16.msra.mxu0 %v14188_v60  ;;  %v4702_v22 = vrot.slane %v4689_v38, %v17853_v56  ;;  %v4706_v60 = vrot.slane %v4689_v38, %v17847_v54 }
 0x735   : > { %8811 = vmatprep.subr.bf16.mxu0 %v14173_v5  ;;  %v17051_v5 = vld [vmem:[%s17772_s1 + $0x8] sm:$0xff] }
 0x737   : > { %8853 = vmatpush1.bf16.msra.mxu1 %v14444_v4 }
 0x738   : > { %8854 = vmatprep.subr.bf16.mxu1 %v14429_v27  ;;  %8812 = vmatpush1.bf16.msra.mxu0 %v14172_v45  ;;  %v17053_v45 = vld [vmem:[%s17772_s1 + $0x28] sm:$0xff] }
 0x739   : > { %8813 = vmatprep.subr.bf16.mxu0 %v14157_v3 }
 0x73b   : > { %8855 = vmatpush1.bf16.msra.mxu1 %v14428_v1 }
 0x73c   : > { %8856 = vmatprep.subr.bf16.mxu1 %v14413_v16  ;;  %8814 = vmatpush1.bf16.msra.mxu0 %v14156_v52 }
 0x73d   : > { %8815 = vmatprep.subr.bf16.mxu0 %v14141_v44 }
 0x73f   : > { %8857 = vmatpush1.bf16.msra.mxu1 %v14412_v2 }
 0x740   : > { %8858 = vmatprep.subr.bf16.mxu1 %v14397_v31  ;;  %8816 = vmatpush1.bf16.msra.mxu0 %v14140_v30  ;;  %v17055_v31 = vld [vmem:[%s17772_s1 + $0x10] sm:$0xff] }
 0x741   : > { %8817 = vmatprep.subr.bf16.mxu0 %v14125_v50 }
 0x743   : > { %8859 = vmatpush1.bf16.msra.mxu1 %v14396_v20 }
 0x744   : > { %8860 = vmatprep.subr.bf16.mxu1 %v14381_v23  ;;  %8818 = vmatpush1.bf16.msra.mxu0 %v14124_v18  ;;  %v17056_v23 = vld [vmem:[%s17772_s1 + $0x18] sm:$0xff] }
 0x745   : > { %8819 = vmatprep.subr.bf16.mxu0 %v14109_v28 }
 0x747   : > { %8861 = vmatpush1.bf16.msra.mxu1 %v14380_v35 }
 0x748   : > { %8862 = vmatprep.subr.bf16.mxu1 %v14365_v41  ;;  %8820 = vmatpush1.bf16.msra.mxu0 %v14108_v26  ;;  %v17057_v26 = vld [vmem:[%s17772_s1 + $0x30] sm:$0xff] }
 0x74b   : > { %8863 = vmatpush1.bf16.msra.mxu1 %v14364_v42 }
 0x792   : > { %v5385_v14 = vpop.f32.mrf.mxu0 }
 0x793   : > { %v5386_v49 = vadd.f32 %v5385_v14, %v4694_v47 }
 0x794   : > { %v5387_v29 = vpop.f32.mrf.mxu0 }
 0x795   : > { %v5388_v7 = vadd.f32 %v5387_v29, %v4698_v63 }
 0x796   : > { %v5389_v34 = vpop.f32.mrf.mxu0 }
 0x797   : > { %v5390_v9 = vadd.f32 %v5389_v34, %v4694_v47 }
 0x798   : > { %v5391_v59 = vpop.f32.mrf.mxu0 }
 0x799   : > { %v5392_v58 = vadd.f32 %v5391_v59, %v4698_v63 }
 0x7b2   : > { %v5428_v32 = vpop.f32.mrf.mxu1 }
 0x7b3   : > { %v5429_v39 = vadd.f32 %v5428_v32, %v5386_v49  ;;  %v5651_v49 = vld [vmem:[#allocation16] sm:$0xff] }
 0x7b4   : > { %v5430_v37 = vpop.f32.mrf.mxu1 }
 0x7b5   : > { %v5431_v57 = vadd.f32 %v5430_v37, %v5388_v7  ;;  %v18261_v25 = vadd.f32 %v17052_v61, %v5429_v39  ;;  %v17058_v37 = vld [vmem:[%s17772_s1 + $0x38] sm:$0xff] }
 0x7b6   : > { %v5432_v12 = vpop.f32.mrf.mxu1  ;;  %v6155_v61 = vld [vmem:[#allocation16 + $0xfc0] sm:$0xff] }
 0x7b7   : > { %v18258_v27 = vadd.f32 %v17051_v5, %v5431_v57  ;;  %v5433_v8 = vadd.f32 %v5432_v12, %v5390_v9  ;;  %v5545_v20 = vmul.f32 %v18261_v25, %v18261_v25  ;;  %v5907_v57 = vld [vmem:[#allocation16 + $0x800] sm:$0xff] }
 0x7b8   : > { %v5434_v10 = vpop.f32.mrf.mxu1  ;;  %v5915_v9 = vld [vmem:[#allocation16 + $0x840] sm:$0xff] }
 0x7b9   : > { %v5435_v13 = vadd.f32 %v5434_v10, %v5392_v58  ;;  %v18267_v43 = vadd.f32 %v17054_v6, %v5433_v8  ;;  %v5546_v2 = vmul.f32 %v18258_v27, %v18258_v27  ;;  %v5533_v33 = vadd.f32 %v18258_v27, %v18261_v25  ;;  %v5659_v58 = vld [vmem:[#allocation16 + $0x40] sm:$0xff] }
 0x7ba   : > { %v14092_v39 = vcombine.low %v5651_v49, %v5659_v58  ;;  %v5899_v5 = vld [vmem:[#allocation16 + $0x7c0] sm:$0xff] }
 0x7bb   : > { %v18264_v1 = vadd.f32 %v17053_v45, %v5435_v13  ;;  %v5553_v28 = vadd.f32 %v5546_v2, %v5545_v20  ;;  %v5549_v41 = vmul.f32 %v18267_v43, %v18267_v43  ;;  %v14348_v13 = vcombine.low %v5907_v57, %v5915_v9  ;;  %v6147_v8 = vld [vmem:[#allocation16 + $0xf80] sm:$0xff] }
 0x7bc   : > { %v6131_v6 = vld [vmem:[#allocation16 + $0xf00] sm:$0xff] }
 0x7bd   : > { %v5550_v50 = vmul.f32 %v18264_v1, %v18264_v1  ;;  %v5538_v35 = vadd.f32 %v18264_v1, %v18267_v43  ;;  %v6139_v2 = vld [vmem:[#allocation16 + $0xf40] sm:$0xff] }
 0x7bf   : > { %v5558_v12 = vadd.f32 %v5550_v50, %v5549_v41  ;;  %v6123_v50 = vld [vmem:[#allocation16 + $0xec0] sm:$0xff] }
 0x7d2   : > { %v5471_v46 = vpop.f32.mrf.mxu0 }
 0x7d3   : > { %v5472_v17 = vadd.f32 %v5471_v46, %v4702_v22 }
 0x7d4   : > { %v5473_v48 = vpop.f32.mrf.mxu0 }
 0x7d5   : > { %v5474_v16 = vadd.f32 %v5473_v48, %v4706_v60 }
 0x7d6   : > { %v5475_v4 = vpop.f32.mrf.mxu0 }
 0x7d7   : > { %v5476_v44 = vadd.f32 %v5475_v4, %v4702_v22  ;;  %v14093_v22 = vcombine.high %v5651_v49, %v5659_v58  ;;  %v5891_v4 = vld [vmem:[#allocation16 + $0x780] sm:$0xff] }
 0x7d8   : > { %v5477_v0 = vpop.f32.mrf.mxu0  ;;  %v14332_v45 = vcombine.low %v5891_v4, %v5899_v5 }
 0x7d9   : > { %v5478_v19 = vadd.f32 %v5477_v0, %v4706_v60  ;;  %v14349_v60 = vcombine.high %v5907_v57, %v5915_v9  ;;  %8821 = vmatprep.subr.bf16.mxu0 %v14093_v22  ;;  %v5875_v0 = vld [vmem:[#allocation16 + $0x700] sm:$0xff] }
 0x7da   : > { %8822 = vmatpush1.bf16.msra.mxu0 %v14092_v39  ;;  %v5795_v22 = vld [vmem:[#allocation16 + $0x480] sm:$0xff] }
 0x7db   : > { %8864 = vmatprep.subr.bf16.mxu1 %v14349_v60  ;;  %v5803_v9 = vld [vmem:[#allocation16 + $0x4c0] sm:$0xff] }
 0x7dc   : > { %8865 = vmatpush1.bf16.msra.mxu1 %v14348_v13  ;;  %v6051_v39 = vld [vmem:[#allocation16 + $0xc80] sm:$0xff] }
 0x7dd   : > { %v6059_v13 = vld [vmem:[#allocation16 + $0xcc0] sm:$0xff] }
 0x7f2   : > { %v5514_v3 = vpop.f32.mrf.mxu1 }
 0x7f3   : > { %v5515_v62 = vadd.f32 %v5514_v3, %v5472_v17  ;;  %v14333_v17 = vcombine.high %v5891_v4, %v5899_v5  ;;  %v14588_v3 = vcombine.low %v6147_v8, %v6155_v61  ;;  %v14237_v5 = vcombine.high %v5795_v22, %v5803_v9 }
 0x7f4   : > { %v5516_v52 = vpop.f32.mrf.mxu1 }
 0x7f5   : > { %v18272_v36 = vadd.f32 %v17055_v31, %v5515_v62  ;;  %v5517_v11 = vadd.f32 %v5516_v52, %v5474_v16  ;;  %v14589_v16 = vcombine.high %v6147_v8, %v6155_v61  ;;  %8823 = vmatprep.subr.bf16.mxu0 %v14333_v17  ;;  %v5883_v62 = vld [vmem:[#allocation16 + $0x740] sm:$0xff]  ;;  %v14572_v31 = vcombine.low %v6131_v6, %v6139_v2 }
 0x7f6   : > { %v5518_v30 = vpop.f32.mrf.mxu1  ;;  %8824 = vmatpush2.bf16.msra.mxu0 %v14332_v45  ;;  %v14317_v52 = vcombine.high %v5875_v0, %v5883_v62  ;;  %v14493_v8 = vcombine.high %v6051_v39, %v6059_v13  ;;  %v5779_v17 = vld [vmem:[#allocation16 + $0x400] sm:$0xff] }
 0x7f7   : > { %v18281_v24 = vadd.f32 %v17056_v23, %v5517_v11  ;;  %v5519_v15 = vadd.f32 %v5518_v30, %v5476_v44  ;;  %v5534_v40 = vadd.f32 %v5533_v33, %v18272_v36  ;;  %v5547_v21 = vmul.f32 %v18272_v36, %v18272_v36  ;;  %8866 = vmatprep.subr.bf16.mxu1 %v14589_v16  ;;  %v5859_v33 = vld [vmem:[#allocation16 + $0x680] sm:$0xff] }
 0x7f8   : > { %v5520_v18 = vpop.f32.mrf.mxu1  ;;  %8867 = vmatpush2.bf16.msra.mxu1 %v14588_v3  ;;  %v14316_v44 = vcombine.low %v5875_v0, %v5883_v62  ;;  %v14573_v11 = vcombine.high %v6131_v6, %v6139_v2  ;;  %8825 = vmatprep.subr.bf16.mxu0 %v14317_v52  ;;  %v6115_v30 = vld [vmem:[#allocation16 + $0xe80] sm:$0xff]  ;;  %v14236_v16 = vcombine.low %v5795_v22, %v5803_v9 }
 0x7f9   : > { %v18291_v42 = vadd.f32 %v17057_v26, %v5519_v15  ;;  %v5521_v14 = vadd.f32 %v5520_v18, %v5478_v19  ;;  %v5535_v29 = vadd.f32 %v5534_v40, %v18281_v24  ;;  %v5548_v32 = vmul.f32 %v18281_v24, %v18281_v24  ;;  %v5867_v19 = vld [vmem:[#allocation16 + $0x6c0] sm:$0xff] }
 0x7fa   : > { %v5554_v34 = vadd.f32 %v5553_v28, %v5547_v21  ;;  %8868 = vmatprep.subr.bf16.mxu1 %v14573_v11  ;;  %8826 = vmatpush2.bf16.msra.mxu0 %v14316_v44  ;;  %v14301_v20 = vcombine.high %v5859_v33, %v5867_v19  ;;  %v14300_v23 = vcombine.low %v5859_v33, %v5867_v19  ;;  %v5843_v21 = vld [vmem:[#allocation16 + $0x600] sm:$0xff]  ;;  %v18305_v44 = vld [vmem:[#allocation16 + $0x388] sm:$0xff] }
 0x7fb   : > { %v18297_v38 = vadd.f32 %v17058_v37, %v5521_v14  ;;  %5536 = vadd.xlane.f32.xlu0 %v5535_v29  ;;  %v5539_v59 = vadd.f32 %v5538_v35, %v18291_v42  ;;  %v5551_v63 = vmul.f32 %v18291_v42, %v18291_v42  ;;  %v14556_v15 = vcombine.low %v6115_v30, %v6123_v50  ;;  %v5851_v18 = vld [vmem:[#allocation16 + $0x640] sm:$0xff]  ;;  %v18309_v11 = vld [vmem:[#allocation16 + $0xb88] sm:$0xff] }
 0x7fc   : > { %v5555_v47 = vadd.f32 %v5554_v34, %v5548_v32  ;;  %8869 = vmatpush2.bf16.msra.mxu1 %v14572_v31  ;;  %v14557_v40 = vcombine.high %v6115_v30, %v6123_v50  ;;  %8827 = vmatprep.subr.bf16.mxu0 %v14301_v20  ;;  %v6099_v35 = vld [vmem:[#allocation16 + $0xe00] sm:$0xff]  ;;  %v14284_v28 = vcombine.low %v5843_v21, %v5851_v18  ;;  %v18307_v31 = vld [vmem:[#allocation16 + $0x3c8] sm:$0xff] }
 0x7fd   : > { %v5540_v46 = vadd.f32 %v5539_v59, %v18297_v38  ;;  %v5552_v7 = vmul.f32 %v18297_v38, %v18297_v38  ;;  %v5559_v10 = vadd.f32 %v5558_v12, %v5551_v63  ;;  %v14285_v41 = vcombine.high %v5843_v21, %v5851_v18  ;;  %v6107_v26 = vld [vmem:[#allocation16 + $0xe40] sm:$0xff]  ;;  %v18313_v19 = vld [vmem:[#allocation16 + $0xbc8] sm:$0xff] }
 0x7fe   : > { %8870 = vmatprep.subr.bf16.mxu1 %v14557_v40  ;;  %8828 = vmatpush2.bf16.msra.mxu0 %v14300_v23  ;;  %v5827_v14 = vld [vmem:[#allocation16 + $0x580] sm:$0xff]  ;;  %v14540_v32 = vcombine.low %v6099_v35, %v6107_v26  ;;  %v14541_v34 = vcombine.high %v6099_v35, %v6107_v26  ;;  %v14492_v0 = vcombine.low %v6051_v39, %v6059_v13 }
 0x7ff   : > { %5541 = vadd.xlane.f32.xlu1 %v5540_v46  ;;  %5556 = vadd.xlane.f32.xlu0 %v5555_v47  ;;  %v5560_v48 = vadd.f32 %v5559_v10, %v5552_v7  ;;  %v5835_v29 = vld [vmem:[#allocation16 + $0x5c0] sm:$0xff]  ;;  %v14207_v33 = vcombine.high %v18305_v44, %v18307_v31  ;;  %v14206_v30 = vcombine.low %v18305_v44, %v18307_v31 }
 0x800   : > { %8871 = vmatpush2.bf16.msra.mxu1 %v14556_v15  ;;  %v14269_v37 = vcombine.high %v5827_v14, %v5835_v29  ;;  %v6083_v59 = vld [vmem:[#allocation16 + $0xd80] sm:$0xff]  ;;  %8829 = vmatprep.subr.bf16.mxu0 %v14285_v41  ;;  %v14462_v20 = vcombine.low %v18309_v11, %v18313_v19  ;;  %v14463_v50 = vcombine.high %v18309_v11, %v18313_v19 }
 0x801   : > { %v6091_v63 = vld [vmem:[#allocation16 + $0xdc0] sm:$0xff]  ;;  %8872 = vmatprep.subr.bf16.mxu1 %v14541_v34 }
 0x802   : > { %v5811_v12 = vld [vmem:[#allocation16 + $0x500] sm:$0xff]  ;;  %v14525_v46 = vcombine.high %v6083_v59, %v6091_v63  ;;  %8830 = vmatpush2.bf16.msra.mxu0 %v14284_v28  ;;  %v14524_v49 = vcombine.low %v6083_v59, %v6091_v63  ;;  %v5531_v59 = vld [vmem:[#allocation13] sm:$0xf]  ;;  %v5532_v63 = vld [vmem:[#allocation14] sm:$0xf] }
 0x803   : > { %5561 = vadd.xlane.f32.xlu0 %v5560_v48  ;;  %v5819_v47 = vld [vmem:[#allocation16 + $0x540] sm:$0xff]  ;;  %v14268_v48 = vcombine.low %v5827_v14, %v5835_v29  ;;  %8831 = vmatprep.subr.bf16.mxu0 %v14269_v37  ;;  %v5626_v22 = vrot.slane %v5532_v63, %v17844_v53  ;;  %v5634_v9 = vrot.slane %v5532_v63, %v17847_v54 }
 0x804   : > { %v6067_v7 = vld [vmem:[#allocation16 + $0xd00] sm:$0xff]  ;;  %8873 = vmatpush2.bf16.msra.mxu1 %v14540_v32  ;;  %v14253_v58 = vcombine.high %v5811_v12, %v5819_v47  ;;  %v14252_v60 = vcombine.low %v5811_v12, %v5819_v47  ;;  %v5597_v12 = vrot.slane %v5531_v59, %v17844_v53  ;;  %v5593_v47 = vrot.slane %v5531_v59, %v17850_v55 }
 0x805   : > { %v6075_v10 = vld [vmem:[#allocation16 + $0xd40] sm:$0xff]  ;;  %8874 = vmatprep.subr.bf16.mxu1 %v14525_v46  ;;  %v5605_v46 = vrot.slane %v5531_v59, %v17847_v54  ;;  %v5622_v39 = vrot.slane %v5532_v63, %v17850_v55  ;;  %v5630_v13 = vrot.slane %v5532_v63, %v17853_v56  ;;  %v6004_v63 = vld [vmem:[#allocation16 + $0xb08] sm:$0xff] }
 0x806   : > { %v14509_v57 = vcombine.high %v6067_v7, %v6075_v10  ;;  %8832 = vmatpush2.bf16.msra.mxu0 %v14268_v48  ;;  %v14508_v4 = vcombine.low %v6067_v7, %v6075_v10  ;;  %v5787_v61 = vld [vmem:[#allocation16 + $0x440] sm:$0xff]  ;;  %v5601_v7 = vrot.slane %v5531_v59, %v17853_v56  ;;  %v5756_v59 = vld [vmem:[#allocation16 + $0x348] sm:$0xff] }
 0x807   : > { %8833 = vmatprep.subr.bf16.mxu0 %v14253_v58  ;;  %v6035_v45 = vld [vmem:[#allocation16 + $0xc00] sm:$0xff]  ;;  %v14221_v62 = vcombine.high %v5779_v17, %v5787_v61  ;;  %v14220_v52 = vcombine.low %v5779_v17, %v5787_v61 }
 0x808   : > { %8875 = vmatpush2.bf16.msra.mxu1 %v14524_v49  ;;  %v6043_v3 = vld [vmem:[#allocation16 + $0xc40] sm:$0xff] }
 0x809   : > { %8876 = vmatprep.subr.bf16.mxu1 %v14509_v57  ;;  %v14477_v6 = vcombine.high %v6035_v45, %v6043_v3  ;;  %v14476_v2 = vcombine.low %v6035_v45, %v6043_v3 }
 0x80a   : > { %8834 = vmatpush2.bf16.msra.mxu0 %v14252_v60 }
 0x80b   : > { %8835 = vmatprep.subr.bf16.mxu0 %v14237_v5 }
 0x80c   : > { %8877 = vmatpush2.bf16.msra.mxu1 %v14508_v4 }
 0x80d   : > { %8878 = vmatprep.subr.bf16.mxu1 %v14493_v8 }
 0x80e   : > { %8836 = vmatpush2.bf16.msra.mxu0 %v14236_v16 }
 0x80f   : > { %8837 = vmatprep.subr.bf16.mxu0 %v14221_v62 }
 0x810   : > { %8879 = vmatpush2.bf16.msra.mxu1 %v14492_v0 }
 0x811   : > { %8880 = vmatprep.subr.bf16.mxu1 %v14477_v6 }
 0x812   : > { %8838 = vmatpush2.bf16.msra.mxu0 %v14220_v52 }
 0x813   : > { %8893 = vmatprep.subr.bf16.mxu0 %v14207_v33 }
 0x814   : > { %8881 = vmatpush2.bf16.msra.mxu1 %v14476_v2 }
 0x815   : > { %8936 = vmatprep.subr.bf16.mxu1 %v14463_v50 }
 0x884   : > { %v5537_v23 = vpop.xlane.xlu0 %5536 }
 0x885   : > { %v5543_v15 = vmul.f32 0.001953125, %v5537_v23 }
 0x887   : > { %v5565_v28 = vmul.f32 %v5543_v15, %v5543_v15  ;;  %v5569_v10 = vsub.f32 %v18261_v25, %v5543_v15  ;;  %v5570_v48 = vsub.f32 %v18258_v27, %v5543_v15  ;;  %v5571_v49 = vsub.f32 %v18272_v36, %v5543_v15 }
 0x888   : > { %v5542_v40 = vpop.xlane.xlu1 %5541  ;;  %v5557_v21 = vpop.xlane.xlu0 %5556  ;;  %v5572_v58 = vsub.f32 %v18281_v24, %v5543_v15 }
 0x889   : > { %v5544_v18 = vmul.f32 0.001953125, %v5542_v40  ;;  %v5563_v35 = vmul.f32 0.001953125, %v5557_v21 }
 0x88b   : > { %v5567_v41 = vsub.f32 %v5563_v35, %v5565_v28  ;;  %v5566_v14 = vmul.f32 %v5544_v18, %v5544_v18  ;;  %v5573_v17 = vsub.f32 %v18267_v43, %v5544_v18  ;;  %v5574_v61 = vsub.f32 %v18264_v1, %v5544_v18 }
 0x88c   : > { %v5562_v26 = vpop.xlane.xlu0 %5561  ;;  %v5575_v45 = vsub.f32 %v18291_v42, %v5544_v18  ;;  %v5576_v3 = vsub.f32 %v18297_v38, %v5544_v18 }
 0x88d   : > { %v5564_v29 = vmul.f32 0.001953125, %v5562_v26  ;;  %v5577_v32 = vadd.f32 1e-05, %v5567_v41 }
 0x88f   : > { %v5568_v34 = vsub.f32 %v5564_v29, %v5566_v14  ;;  %17045 = vrsqrt.f32 %v5577_v32 }
 0x891   : > { %v5578_v37 = vadd.f32 1e-05, %v5568_v34 }
 0x893   : > { %17047 = vrsqrt.f32 %v5578_v37  ;;  %v5748_v37 = vld [vmem:[#allocation16 + $0x308] sm:$0xff] }
 0x89c   : > { %v17046_v57 = vpop.eup %17045 }
 0x89d   : > { %v5582_v60 = vmul.f32 %v17046_v57, %v5570_v48  ;;  %v5584_v4 = vmul.f32 %v17046_v57, %v5572_v58  ;;  %v5581_v5 = vmul.f32 %v17046_v57, %v5569_v10  ;;  %v5583_v8 = vmul.f32 %v17046_v57, %v5571_v49  ;;  %v6012_v10 = vld [vmem:[#allocation16 + $0xb48] sm:$0xff] }
 0x89e   : > { %v14447_v58 = vcombine.high %v6004_v63, %v6012_v10  ;;  %v5740_v57 = vld [vmem:[#allocation16 + $0x2c8] sm:$0xff] }
 0x89f   : > { %v5611_v0 = vmul.f32 %v5597_v12, %v5582_v60  ;;  %v5613_v62 = vmul.f32 %v5605_v46, %v5584_v4  ;;  %v5610_v6 = vmul.f32 %v5593_v47, %v5581_v5  ;;  %v5612_v52 = vmul.f32 %v5601_v7, %v5583_v8  ;;  %v5716_v5 = vld [vmem:[#allocation16 + $0x208] sm:$0xff] }
 0x8a0   : > { %v17048_v16 = vpop.eup %17047  ;;  %v5724_v8 = vld [vmem:[#allocation16 + $0x248] sm:$0xff] }
 0x8a1   : > { %v5586_v2 = vmul.f32 %v17048_v16, %v5574_v61  ;;  %v5588_v33 = vmul.f32 %v17048_v16, %v5576_v3  ;;  %v5585_v50 = vmul.f32 %v17048_v16, %v5573_v17  ;;  %v5587_v23 = vmul.f32 %v17048_v16, %v5575_v45  ;;  %v5972_v17 = vld [vmem:[#allocation16 + $0xa08] sm:$0xff] }
 0x8a2   : > { %v5640_v28 = vadd.f32 %v5626_v22, %v5611_v0  ;;  %v5642_v41 = vadd.f32 %v5634_v9, %v5613_v62  ;;  %v5639_v26 = vadd.f32 %v5622_v39, %v5610_v6  ;;  %v5641_v14 = vadd.f32 %v5630_v13, %v5612_v52  ;;  %v5980_v61 = vld [vmem:[#allocation16 + $0xa48] sm:$0xff] }
 0x8a3   : > { %v5615_v15 = vmul.f32 %v5597_v12, %v5586_v2  ;;  %v5617_v40 = vmul.f32 %v5605_v46, %v5588_v33  ;;  %v5614_v21 = vmul.f32 %v5593_v47, %v5585_v50  ;;  %v5616_v35 = vmul.f32 %v5601_v7, %v5587_v23  ;;  %v5732_v47 = vld [vmem:[#allocation16 + $0x288] sm:$0xff] }
 0x8a4   : > { %v14191_v7 = vcombine.high %v5748_v37, %v5756_v59  ;;  %v14175_v60 = vcombine.high %v5732_v47, %v5740_v57  ;;  %v14174_v44 = vcombine.low %v5732_v47, %v5740_v57  ;;  %v14159_v11 = vcombine.high %v5716_v5, %v5724_v8  ;;  %v5956_v45 = vld [vmem:[#allocation16 + $0x988] sm:$0xff] }
 0x8a5   : > { %v5644_v29 = vadd.f32 %v5626_v22, %v5615_v15  ;;  %v5646_v32 = vadd.f32 %v5634_v9, %v5617_v40  ;;  %v5643_v18 = vadd.f32 %v5622_v39, %v5614_v21  ;;  %v5645_v34 = vadd.f32 %v5630_v13, %v5616_v35  ;;  %v5988_v22 = vld [vmem:[#allocation16 + $0xa88] sm:$0xff] }
 0x8a6   : > { %v5996_v9 = vld [vmem:[#allocation16 + $0xac8] sm:$0xff]  ;;  %v14190_v39 = vcombine.low %v5748_v37, %v5756_v59  ;;  %v14446_v13 = vcombine.low %v6004_v63, %v6012_v10  ;;  %v14415_v19 = vcombine.high %v5972_v17, %v5980_v61  ;;  %v14158_v16 = vcombine.low %v5716_v5, %v5724_v8 }
 0x8a7   : > { %v18337_v48 = vpack.c.bf16 %v5644_v29, %v5640_v28  ;;  %v18339_v49 = vpack.c.bf16 %v5646_v32, %v5642_v41  ;;  %v18341_v12 = vpack.c.bf16 %v5643_v18, %v5639_v26  ;;  %v18343_v46 = vpack.c.bf16 %v5645_v34, %v5641_v14  ;;  %v5964_v3 = vld [vmem:[#allocation16 + $0x9c8] sm:$0xff] }
 0x8a8   : > { %v14431_v4 = vcombine.high %v5988_v22, %v5996_v9  ;;  %v14430_v31 = vcombine.low %v5988_v22, %v5996_v9  ;;  %v14414_v0 = vcombine.low %v5972_v17, %v5980_v61  ;;  %v14399_v6 = vcombine.high %v5956_v45, %v5964_v3  ;;  %v5684_v52 = vld [vmem:[#allocation16 + $0x108] sm:$0xff] }
 0x8a9   : > { %8839 = vmatprep.mubr.bf16.mxu0 %v18337_v48  ;;  %8882 = vmatprep.mubr.bf16.mxu1 %v18339_v49  ;;  %v5692_v2 = vld [vmem:[#allocation16 + $0x148] sm:$0xff]  ;;  %v14398_v15 = vcombine.low %v5956_v45, %v5964_v3 }
 0x8aa   : > { %8840 = vmatmul.mubr.bf16.vlgmr.msra.gmra.mxu0 %v18341_v12  ;;  %8883 = vmatmul.mubr.bf16.vlgmr.msra.gmra.mxu1 %v18343_v46  ;;  %v5940_v33 = vld [vmem:[#allocation16 + $0x908] sm:$0xff]  ;;  %v14127_v40 = vcombine.high %v5684_v52, %v5692_v2  ;;  %v14126_v14 = vcombine.low %v5684_v52, %v5692_v2 }
 0x8ab   : > { %8894 = vmatpush1.bf16.msra.mxu0 %v14206_v30  ;;  %8937 = vmatpush1.bf16.msra.mxu1 %v14462_v20  ;;  %v5700_v30 = vld [vmem:[#allocation16 + $0x188] sm:$0xff] }
 0x8ac   : > { %8925 = vmatprep.mubr.bf16.mxu0 %v18337_v48  ;;  %8968 = vmatprep.mubr.bf16.mxu1 %v18339_v49  ;;  %v5708_v20 = vld [vmem:[#allocation16 + $0x1c8] sm:$0xff] }
 0x8ad   : > { %8895 = vmatprep.subr.bf16.mxu0 %v14191_v7  ;;  %8938 = vmatprep.subr.bf16.mxu1 %v14447_v58  ;;  %v14143_v62 = vcombine.high %v5700_v30, %v5708_v20  ;;  %v5948_v50 = vld [vmem:[#allocation16 + $0x948] sm:$0xff]  ;;  %v14142_v23 = vcombine.low %v5700_v30, %v5708_v20 }
 0x8ae   : > { %v14383_v21 = vcombine.high %v5940_v33, %v5948_v50  ;;  %v5668_v35 = vld [vmem:[#allocation16 + $0x88] sm:$0xff]  ;;  %v14382_v29 = vcombine.low %v5940_v33, %v5948_v50 }
 0x8af   : > { %8896 = vmatpush1.bf16.msra.mxu0 %v14190_v39  ;;  %8939 = vmatpush1.bf16.msra.mxu1 %v14446_v13  ;;  %v5676_v28 = vld [vmem:[#allocation16 + $0xc8] sm:$0xff] }
 0x8b0   : > { %8897 = vmatprep.subr.bf16.mxu0 %v14175_v60  ;;  %8940 = vmatprep.subr.bf16.mxu1 %v14431_v4  ;;  %v5924_v41 = vld [vmem:[#allocation16 + $0x888] sm:$0xff]  ;;  %v14111_v32 = vcombine.high %v5668_v35, %v5676_v28  ;;  %v14110_v10 = vcombine.low %v5668_v35, %v5676_v28 }
 0x8b1   : > { %v5932_v26 = vld [vmem:[#allocation16 + $0x8c8] sm:$0xff] }
 0x8b2   : > { %v14367_v18 = vcombine.high %v5924_v41, %v5932_v26  ;;  %v5652_v34 = vld [vmem:[#allocation16 + $0x8] sm:$0xff]  ;;  %v14366_v47 = vcombine.low %v5924_v41, %v5932_v26 }
 0x8b3   : > { %8898 = vmatpush1.bf16.msra.mxu0 %v14174_v44  ;;  %8941 = vmatpush1.bf16.msra.mxu1 %v14430_v31  ;;  %v5660_v37 = vld [vmem:[#allocation16 + $0x48] sm:$0xff] }
 0x8b4   : > { %8899 = vmatprep.subr.bf16.mxu0 %v14159_v11  ;;  %8942 = vmatprep.subr.bf16.mxu1 %v14415_v19  ;;  %v5908_v59 = vld [vmem:[#allocation16 + $0x808] sm:$0xff]  ;;  %v14095_v7 = vcombine.high %v5652_v34, %v5660_v37  ;;  %v14094_v13 = vcombine.low %v5652_v34, %v5660_v37 }
 0x8b5   : > { %v5916_v63 = vld [vmem:[#allocation16 + $0x848] sm:$0xff] }
 0x8b6   : > { %v14351_v58 = vcombine.high %v5908_v59, %v5916_v63  ;;  %v5892_v57 = vld [vmem:[#allocation16 + $0x788] sm:$0xff]  ;;  %v14350_v60 = vcombine.low %v5908_v59, %v5916_v63 }
 0x8b7   : > { %8900 = vmatpush1.bf16.msra.mxu0 %v14158_v16  ;;  %8943 = vmatpush1.bf16.msra.mxu1 %v14414_v0  ;;  %v5900_v22 = vld [vmem:[#allocation16 + $0x7c8] sm:$0xff] }
 0x8b8   : > { %8901 = vmatprep.subr.bf16.mxu0 %v14143_v62  ;;  %8944 = vmatprep.subr.bf16.mxu1 %v14399_v6  ;;  %v6148_v9 = vld [vmem:[#allocation16 + $0xf88] sm:$0xff]  ;;  %v14335_v4 = vcombine.high %v5892_v57, %v5900_v22  ;;  %v14334_v31 = vcombine.low %v5892_v57, %v5900_v22 }
 0x8b9   : > { %v6156_v39 = vld [vmem:[#allocation16 + $0xfc8] sm:$0xff] }
 0x8ba   : > { %v14591_v5 = vcombine.high %v6148_v9, %v6156_v39  ;;  %v5876_v8 = vld [vmem:[#allocation16 + $0x708] sm:$0xff]  ;;  %v14590_v11 = vcombine.low %v6148_v9, %v6156_v39 }
 0x8bb   : > { %8902 = vmatpush1.bf16.msra.mxu0 %v14142_v23  ;;  %8945 = vmatpush1.bf16.msra.mxu1 %v14398_v15  ;;  %v5884_v17 = vld [vmem:[#allocation16 + $0x748] sm:$0xff] }
 0x8bc   : > { %8903 = vmatprep.subr.bf16.mxu0 %v14127_v40  ;;  %8946 = vmatprep.subr.bf16.mxu1 %v14383_v21  ;;  %v6132_v61 = vld [vmem:[#allocation16 + $0xf08] sm:$0xff]  ;;  %v14319_v19 = vcombine.high %v5876_v8, %v5884_v17  ;;  %v14318_v0 = vcombine.low %v5876_v8, %v5884_v17 }
 0x8bd   : > { %v6140_v44 = vld [vmem:[#allocation16 + $0xf48] sm:$0xff] }
 0x8be   : > { %v14575_v30 = vcombine.high %v6132_v61, %v6140_v44  ;;  %v5860_v20 = vld [vmem:[#allocation16 + $0x688] sm:$0xff]  ;;  %v14574_v62 = vcombine.low %v6132_v61, %v6140_v44 }
 0x8bf   : > { %8904 = vmatpush1.bf16.msra.mxu0 %v14126_v14  ;;  %8947 = vmatpush1.bf16.msra.mxu1 %v14382_v29  ;;  %v5868_v45 = vld [vmem:[#allocation16 + $0x6c8] sm:$0xff] }
 0x8c0   : > { %8905 = vmatprep.subr.bf16.mxu0 %v14111_v32  ;;  %8948 = vmatprep.subr.bf16.mxu1 %v14367_v18  ;;  %v6116_v3 = vld [vmem:[#allocation16 + $0xe88] sm:$0xff]  ;;  %v14303_v6 = vcombine.high %v5860_v20, %v5868_v45  ;;  %v14302_v15 = vcombine.low %v5860_v20, %v5868_v45  ;;  %v5765_v45 = vld [vmem:[#allocation16 + $0x390] sm:$0xff] }
 0x8c1   : > { %v6124_v16 = vld [vmem:[#allocation16 + $0xec8] sm:$0xff] }
 0x8c2   : > { %v14559_v52 = vcombine.high %v6116_v3, %v6124_v16  ;;  %v5844_v2 = vld [vmem:[#allocation16 + $0x608] sm:$0xff]  ;;  %v14558_v40 = vcombine.low %v6116_v3, %v6124_v16  ;;  %v5773_v3 = vld [vmem:[#allocation16 + $0x3d0] sm:$0xff] }
 0x8c3   : > { %8906 = vmatpush1.bf16.msra.mxu0 %v14110_v10  ;;  %8949 = vmatpush1.bf16.msra.mxu1 %v14366_v47  ;;  %v5852_v33 = vld [vmem:[#allocation16 + $0x648] sm:$0xff]  ;;  %v6021_v16 = vld [vmem:[#allocation16 + $0xb90] sm:$0xff] }
 0x8c4   : > { %8907 = vmatprep.subr.bf16.mxu0 %v14095_v7  ;;  %8950 = vmatprep.subr.bf16.mxu1 %v14351_v58  ;;  %v6100_v50 = vld [vmem:[#allocation16 + $0xe08] sm:$0xff]  ;;  %v14287_v21 = vcombine.high %v5844_v2, %v5852_v33  ;;  %v14286_v29 = vcombine.low %v5844_v2, %v5852_v33  ;;  %v5749_v33 = vld [vmem:[#allocation16 + $0x310] sm:$0xff] }
 0x8c5   : > { %v6108_v23 = vld [vmem:[#allocation16 + $0xe48] sm:$0xff] }
 0x8c6   : > { %v14543_v35 = vcombine.high %v6100_v50, %v6108_v23  ;;  %v5828_v28 = vld [vmem:[#allocation16 + $0x588] sm:$0xff]  ;;  %v14542_v32 = vcombine.low %v6100_v50, %v6108_v23  ;;  %v5757_v50 = vld [vmem:[#allocation16 + $0x350] sm:$0xff] }
 0x8c7   : > { %8908 = vmatpush1.bf16.msra.mxu0 %v14094_v13  ;;  %8951 = vmatpush1.bf16.msra.mxu1 %v14350_v60  ;;  %v5836_v41 = vld [vmem:[#allocation16 + $0x5c8] sm:$0xff]  ;;  %v6005_v23 = vld [vmem:[#allocation16 + $0xb10] sm:$0xff] }
 0x8c8   : > { %8909 = vmatprep.subr.bf16.mxu0 %v14335_v4  ;;  %8952 = vmatprep.subr.bf16.mxu1 %v14591_v5  ;;  %v6084_v26 = vld [vmem:[#allocation16 + $0xd88] sm:$0xff]  ;;  %v14271_v18 = vcombine.high %v5828_v28, %v5836_v41  ;;  %v14270_v47 = vcombine.low %v5828_v28, %v5836_v41  ;;  %v5733_v41 = vld [vmem:[#allocation16 + $0x290] sm:$0xff] }
 0x8c9   : > { %v6092_v14 = vld [vmem:[#allocation16 + $0xdc8] sm:$0xff] }
 0x8ca   : > { %v14527_v34 = vcombine.high %v6084_v26, %v6092_v14  ;;  %v5812_v37 = vld [vmem:[#allocation16 + $0x508] sm:$0xff]  ;;  %v14526_v7 = vcombine.low %v6084_v26, %v6092_v14  ;;  %v5741_v26 = vld [vmem:[#allocation16 + $0x2d0] sm:$0xff] }
 0x8cb   : > { %8910 = vmatpush2.bf16.msra.mxu0 %v14334_v31  ;;  %8953 = vmatpush2.bf16.msra.mxu1 %v14590_v11  ;;  %v5820_v59 = vld [vmem:[#allocation16 + $0x548] sm:$0xff]  ;;  %v5989_v14 = vld [vmem:[#allocation16 + $0xa90] sm:$0xff] }
 0x8cc   : > { %8911 = vmatprep.subr.bf16.mxu0 %v14319_v19  ;;  %8954 = vmatprep.subr.bf16.mxu1 %v14575_v30  ;;  %v6068_v63 = vld [vmem:[#allocation16 + $0xd08] sm:$0xff]  ;;  %v14255_v58 = vcombine.high %v5812_v37, %v5820_v59  ;;  %v14254_v60 = vcombine.low %v5812_v37, %v5820_v59  ;;  %v5717_v59 = vld [vmem:[#allocation16 + $0x210] sm:$0xff] }
 0x8cd   : > { %v6076_v10 = vld [vmem:[#allocation16 + $0xd48] sm:$0xff] }
 0x8ce   : > { %v14511_v57 = vcombine.high %v6068_v63, %v6076_v10  ;;  %v5796_v22 = vld [vmem:[#allocation16 + $0x488] sm:$0xff]  ;;  %v14510_v4 = vcombine.low %v6068_v63, %v6076_v10  ;;  %v5725_v63 = vld [vmem:[#allocation16 + $0x250] sm:$0xff] }
 0x8cf   : > { %8912 = vmatpush2.bf16.msra.mxu0 %v14318_v0  ;;  %8955 = vmatpush2.bf16.msra.mxu1 %v14574_v62  ;;  %v5804_v9 = vld [vmem:[#allocation16 + $0x4c8] sm:$0xff]  ;;  %v6029_v0 = vld [vmem:[#allocation16 + $0xbd0] sm:$0xff] }
 0x8d0   : > { %8913 = vmatprep.subr.bf16.mxu0 %v14303_v6  ;;  %8956 = vmatprep.subr.bf16.mxu1 %v14559_v52  ;;  %v6052_v39 = vld [vmem:[#allocation16 + $0xc88] sm:$0xff]  ;;  %v14239_v5 = vcombine.high %v5796_v22, %v5804_v9  ;;  %v14238_v11 = vcombine.low %v5796_v22, %v5804_v9  ;;  %v14209_v52 = vcombine.high %v5765_v45, %v5773_v3  ;;  %v5973_v10 = vld [vmem:[#allocation16 + $0xa10] sm:$0xff] }
 0x8d1   : > { %v6060_v13 = vld [vmem:[#allocation16 + $0xcc8] sm:$0xff]  ;;  %v14465_v2 = vcombine.high %v6021_v16, %v6029_v0  ;;  %v5701_v9 = vld [vmem:[#allocation16 + $0x190] sm:$0xff] }
 0x8d2   : > { %v14495_v8 = vcombine.high %v6052_v39, %v6060_v13  ;;  %v5780_v17 = vld [vmem:[#allocation16 + $0x408] sm:$0xff]  ;;  %v14494_v19 = vcombine.low %v6052_v39, %v6060_v13  ;;  %v5709_v39 = vld [vmem:[#allocation16 + $0x1d0] sm:$0xff] }
 0x8d3   : > { %8914 = vmatpush2.bf16.msra.mxu0 %v14302_v15  ;;  %8957 = vmatpush2.bf16.msra.mxu1 %v14558_v40  ;;  %v5788_v61 = vld [vmem:[#allocation16 + $0x448] sm:$0xff]  ;;  %v6013_v15 = vld [vmem:[#allocation16 + $0xb50] sm:$0xff]  ;;  %v14208_v40 = vcombine.low %v5765_v45, %v5773_v3 }
 0x8d4   : > { %8915 = vmatprep.subr.bf16.mxu0 %v14287_v21  ;;  %8958 = vmatprep.subr.bf16.mxu1 %v14543_v35  ;;  %v6036_v44 = vld [vmem:[#allocation16 + $0xc08] sm:$0xff]  ;;  %v14223_v30 = vcombine.high %v5780_v17, %v5788_v61  ;;  %v14222_v62 = vcombine.low %v5780_v17, %v5788_v61  ;;  %v14464_v21 = vcombine.low %v6021_v16, %v6029_v0  ;;  %v5957_v13 = vld [vmem:[#allocation16 + $0x990] sm:$0xff] }
 0x8d5   : > { %v6044_v31 = vld [vmem:[#allocation16 + $0xc48] sm:$0xff]  ;;  %v14193_v35 = vcombine.high %v5749_v33, %v5757_v50  ;;  %v14449_v28 = vcombine.high %v6005_v23, %v6013_v15  ;;  %v5685_v61 = vld [vmem:[#allocation16 + $0x110] sm:$0xff] }
 0x8d6   : > { %v14479_v20 = vcombine.high %v6036_v44, %v6044_v31  ;;  %v14478_v6 = vcombine.low %v6036_v44, %v6044_v31  ;;  %v5693_v44 = vld [vmem:[#allocation16 + $0x150] sm:$0xff] }
 0x8d7   : > { %8916 = vmatpush2.bf16.msra.mxu0 %v14286_v29  ;;  %8959 = vmatpush2.bf16.msra.mxu1 %v14542_v32  ;;  %v5997_v29 = vld [vmem:[#allocation16 + $0xad0] sm:$0xff]  ;;  %v14192_v32 = vcombine.low %v5749_v33, %v5757_v50 }
 0x8d8   : > { %8917 = vmatprep.subr.bf16.mxu0 %v14271_v18  ;;  %8960 = vmatprep.subr.bf16.mxu1 %v14527_v34  ;;  %v14448_v18 = vcombine.low %v6005_v23, %v6013_v15  ;;  %v14177_v34 = vcombine.high %v5733_v41, %v5741_v26  ;;  %v14433_v37 = vcombine.high %v5989_v14, %v5997_v29  ;;  %v5941_v31 = vld [vmem:[#allocation16 + $0x910] sm:$0xff] }
 0x8d9   : > { %v5669_v3 = vld [vmem:[#allocation16 + $0x90] sm:$0xff] }
 0x8da   : > { %v5677_v16 = vld [vmem:[#allocation16 + $0xd0] sm:$0xff] }
 0x8db   : > { %8918 = vmatpush2.bf16.msra.mxu0 %v14270_v47  ;;  %8961 = vmatpush2.bf16.msra.mxu1 %v14526_v7  ;;  %v5981_v47 = vld [vmem:[#allocation16 + $0xa50] sm:$0xff]  ;;  %v14176_v7 = vcombine.low %v5733_v41, %v5741_v26 }
 0x8dc   : > { %8919 = vmatprep.subr.bf16.mxu0 %v14255_v58  ;;  %8962 = vmatprep.subr.bf16.mxu1 %v14511_v57  ;;  %v14432_v58 = vcombine.low %v5989_v14, %v5997_v29  ;;  %v14161_v57 = vcombine.high %v5717_v59, %v5725_v63  ;;  %v14417_v22 = vcombine.high %v5973_v10, %v5981_v47  ;;  %v5925_v0 = vld [vmem:[#allocation16 + $0x890] sm:$0xff] }
 0x8dd   : > { %v5653_v50 = vld [vmem:[#allocation16 + $0x10] sm:$0xff] }
 0x8de   : > { %v5661_v23 = vld [vmem:[#allocation16 + $0x50] sm:$0xff] }
 0x8df   : > { %8920 = vmatpush2.bf16.msra.mxu0 %v14254_v60  ;;  %8963 = vmatpush2.bf16.msra.mxu1 %v14510_v4  ;;  %v5965_v60 = vld [vmem:[#allocation16 + $0x9d0] sm:$0xff]  ;;  %v14160_v4 = vcombine.low %v5717_v59, %v5725_v63 }
 0x8e0   : > { %8921 = vmatprep.subr.bf16.mxu0 %v14239_v5  ;;  %8964 = vmatprep.subr.bf16.mxu1 %v14495_v8  ;;  %v14416_v5 = vcombine.low %v5973_v10, %v5981_v47  ;;  %v14145_v8 = vcombine.high %v5701_v9, %v5709_v39  ;;  %v14401_v17 = vcombine.high %v5957_v13, %v5965_v60  ;;  %v5909_v15 = vld [vmem:[#allocation16 + $0x810] sm:$0xff] }
 0x8e1   : > { %v5893_v26 = vld [vmem:[#allocation16 + $0x790] sm:$0xff] }
 0x8e2   : > { %v5901_v14 = vld [vmem:[#allocation16 + $0x7d0] sm:$0xff] }
 0x8e3   : > { %8922 = vmatpush2.bf16.msra.mxu0 %v14238_v11  ;;  %8965 = vmatpush2.bf16.msra.mxu1 %v14494_v19  ;;  %v5949_v11 = vld [vmem:[#allocation16 + $0x950] sm:$0xff]  ;;  %v14144_v19 = vcombine.low %v5701_v9, %v5709_v39 }
 0x8e4   : > { %8923 = vmatprep.subr.bf16.mxu0 %v14223_v30  ;;  %8966 = vmatprep.subr.bf16.mxu1 %v14479_v20  ;;  %v14400_v30 = vcombine.low %v5957_v13, %v5965_v60  ;;  %v14129_v20 = vcombine.high %v5685_v61, %v5693_v44  ;;  %v14385_v45 = vcombine.high %v5941_v31, %v5949_v11  ;;  %v6149_v29 = vld [vmem:[#allocation16 + $0xf90] sm:$0xff] }
 0x8e5   : > { %v5877_v63 = vld [vmem:[#allocation16 + $0x710] sm:$0xff] }
 0x8e6   : > { %v5885_v10 = vld [vmem:[#allocation16 + $0x750] sm:$0xff] }
 0x8e7   : > { %8924 = vmatpush2.bf16.msra.mxu0 %v14222_v62  ;;  %8967 = vmatpush2.bf16.msra.mxu1 %v14478_v6  ;;  %v5933_v62 = vld [vmem:[#allocation16 + $0x8d0] sm:$0xff]  ;;  %v14128_v6 = vcombine.low %v5685_v61, %v5693_v44 }
 0x8e8   : > { %8979 = vmatprep.subr.bf16.mxu0 %v14209_v52  ;;  %9022 = vmatprep.subr.bf16.mxu1 %v14465_v2  ;;  %v14384_v52 = vcombine.low %v5941_v31, %v5949_v11  ;;  %v14113_v2 = vcombine.high %v5669_v3, %v5677_v16  ;;  %v14369_v33 = vcombine.high %v5925_v0, %v5933_v62  ;;  %v6133_v47 = vld [vmem:[#allocation16 + $0xf10] sm:$0xff] }
 0x8e9   : > { %v5861_v39 = vld [vmem:[#allocation16 + $0x690] sm:$0xff] }
 0x8ea   : > { %8926 = vmatmul.mubr.bf16.vlgmr.msra.gmra.mxu0 %v18341_v12  ;;  %8969 = vmatmul.mubr.bf16.vlgmr.msra.gmra.mxu1 %v18343_v46  ;;  %v5869_v13 = vld [vmem:[#allocation16 + $0x6d0] sm:$0xff] }
 0x8eb   : > { %8980 = vmatpush1.bf16.msra.mxu0 %v14208_v40  ;;  %9011 = vmatprep.mubr.bf16.mxu0 %v18337_v48  ;;  %v5917_v40 = vld [vmem:[#allocation16 + $0x850] sm:$0xff] }
 0x8ec   : > { %9023 = vmatpush1.bf16.msra.mxu1 %v14464_v21  ;;  %9054 = vmatprep.mubr.bf16.mxu1 %v18339_v49  ;;  %v14112_v21 = vcombine.low %v5669_v3, %v5677_v16  ;;  %v14353_v41 = vcombine.high %v5909_v15, %v5917_v40  ;;  %v6117_v60 = vld [vmem:[#allocation16 + $0xe90] sm:$0xff] }
 0x8ed   : > { %8981 = vmatprep.subr.bf16.mxu0 %v14193_v35  ;;  %9024 = vmatprep.subr.bf16.mxu1 %v14449_v28  ;;  %v14368_v35 = vcombine.low %v5925_v0, %v5933_v62  ;;  %v14097_v28 = vcombine.high %v5653_v50, %v5661_v23  ;;  %v5845_v44 = vld [vmem:[#allocation16 + $0x610] sm:$0xff] }
 0x8ee   : > { %v5853_v31 = vld [vmem:[#allocation16 + $0x650] sm:$0xff] }
 0x8ef   : > { %8982 = vmatpush1.bf16.msra.mxu0 %v14192_v32  ;;  %v6157_v32 = vld [vmem:[#allocation16 + $0xfd0] sm:$0xff] }
 0x8f0   : > { %9025 = vmatpush1.bf16.msra.mxu1 %v14448_v18  ;;  %8983 = vmatprep.subr.bf16.mxu0 %v14177_v34  ;;  %v14096_v18 = vcombine.low %v5653_v50, %v5661_v23  ;;  %v14352_v34 = vcombine.low %v5909_v15, %v5917_v40  ;;  %v14593_v59 = vcombine.high %v6149_v29, %v6157_v32  ;;  %v6101_v11 = vld [vmem:[#allocation16 + $0xe10] sm:$0xff] }
 0x8f1   : > { %9026 = vmatprep.subr.bf16.mxu1 %v14433_v37  ;;  %v14337_v37 = vcombine.high %v5893_v26, %v5901_v14  ;;  %v5829_v16 = vld [vmem:[#allocation16 + $0x590] sm:$0xff] }
 0x8f2   : > { %v5837_v0 = vld [vmem:[#allocation16 + $0x5d0] sm:$0xff] }
 0x8f3   : > { %8984 = vmatpush1.bf16.msra.mxu0 %v14176_v7  ;;  %v6141_v7 = vld [vmem:[#allocation16 + $0xf50] sm:$0xff] }
 0x8f4   : > { %9027 = vmatpush1.bf16.msra.mxu1 %v14432_v58  ;;  %8985 = vmatprep.subr.bf16.mxu0 %v14161_v57  ;;  %v14336_v58 = vcombine.low %v5893_v26, %v5901_v14  ;;  %v14592_v57 = vcombine.low %v6149_v29, %v6157_v32  ;;  %v14577_v9 = vcombine.high %v6133_v47, %v6141_v7  ;;  %v6085_v62 = vld [vmem:[#allocation16 + $0xd90] sm:$0xff] }
 0x8f5   : > { %9028 = vmatprep.subr.bf16.mxu1 %v14417_v22  ;;  %v14321_v22 = vcombine.high %v5877_v63, %v5885_v10  ;;  %v5813_v23 = vld [vmem:[#allocation16 + $0x510] sm:$0xff] }
 0x8f6   : > { %v5821_v15 = vld [vmem:[#allocation16 + $0x550] sm:$0xff] }
 0x8f7   : > { %8986 = vmatpush1.bf16.msra.mxu0 %v14160_v4  ;;  %v6125_v4 = vld [vmem:[#allocation16 + $0xed0] sm:$0xff] }
 0x8f8   : > { %9029 = vmatpush1.bf16.msra.mxu1 %v14416_v5  ;;  %8987 = vmatprep.subr.bf16.mxu0 %v14145_v8  ;;  %v14320_v5 = vcombine.low %v5877_v63, %v5885_v10  ;;  %v14576_v8 = vcombine.low %v6133_v47, %v6141_v7  ;;  %v14561_v61 = vcombine.high %v6117_v60, %v6125_v4  ;;  %v6069_v40 = vld [vmem:[#allocation16 + $0xd10] sm:$0xff] }
 0x8f9   : > { %9030 = vmatprep.subr.bf16.mxu1 %v14401_v17  ;;  %v14305_v17 = vcombine.high %v5861_v39, %v5869_v13  ;;  %v5797_v14 = vld [vmem:[#allocation16 + $0x490] sm:$0xff] }
 0x8fa   : > { %v5805_v29 = vld [vmem:[#allocation16 + $0x4d0] sm:$0xff] }
 0x8fb   : > { %8988 = vmatpush1.bf16.msra.mxu0 %v14144_v19  ;;  %v6109_v19 = vld [vmem:[#allocation16 + $0xe50] sm:$0xff] }
 0x8fc   : > { %9031 = vmatpush1.bf16.msra.mxu1 %v14400_v30  ;;  %8989 = vmatprep.subr.bf16.mxu0 %v14129_v20  ;;  %v14304_v30 = vcombine.low %v5861_v39, %v5869_v13  ;;  %v14560_v20 = vcombine.low %v6117_v60, %v6125_v4  ;;  %v14545_v3 = vcombine.high %v6101_v11, %v6109_v19  ;;  %v6053_v32 = vld [vmem:[#allocation16 + $0xc90] sm:$0xff]  ;;  %v5766_v13 = vld [vmem:[#allocation16 + $0x398] sm:$0xff] }
 0x8fd   : > { %9032 = vmatprep.subr.bf16.mxu1 %v14385_v45  ;;  %v14289_v45 = vcombine.high %v5845_v44, %v5853_v31  ;;  %v5781_v10 = vld [vmem:[#allocation16 + $0x410] sm:$0xff]  ;;  %v5774_v60 = vld [vmem:[#allocation16 + $0x3d8] sm:$0xff] }
 0x8fe   : > { %v5789_v47 = vld [vmem:[#allocation16 + $0x450] sm:$0xff]  ;;  %v6022_v4 = vld [vmem:[#allocation16 + $0xb98] sm:$0xff] }
 0x8ff   : > { %8990 = vmatpush1.bf16.msra.mxu0 %v14128_v6  ;;  %v6093_v6 = vld [vmem:[#allocation16 + $0xdd0] sm:$0xff] }
 0x900   : > { %9033 = vmatpush1.bf16.msra.mxu1 %v14384_v52  ;;  %8991 = vmatprep.subr.bf16.mxu0 %v14113_v2  ;;  %v14288_v52 = vcombine.low %v5845_v44, %v5853_v31  ;;  %v14544_v2 = vcombine.low %v6101_v11, %v6109_v19  ;;  %v14529_v50 = vcombine.high %v6085_v62, %v6093_v6  ;;  %v6037_v7 = vld [vmem:[#allocation16 + $0xc10] sm:$0xff]  ;;  %v5750_v31 = vld [vmem:[#allocation16 + $0x318] sm:$0xff] }
 0x901   : > { %9034 = vmatprep.subr.bf16.mxu1 %v14369_v33  ;;  %v14273_v33 = vcombine.high %v5829_v16, %v5837_v0  ;;  %v5758_v11 = vld [vmem:[#allocation16 + $0x358] sm:$0xff]  ;;  %v14210_v19 = vcombine.low %v5766_v13, %v5774_v60 }
 0x903   : > { %8992 = vmatpush1.bf16.msra.mxu0 %v14112_v21  ;;  %v6077_v21 = vld [vmem:[#allocation16 + $0xd50] sm:$0xff] }
 0x904   : > { %9035 = vmatpush1.bf16.msra.mxu1 %v14368_v35  ;;  %8993 = vmatprep.subr.bf16.mxu0 %v14097_v28  ;;  %v14272_v35 = vcombine.low %v5829_v16, %v5837_v0  ;;  %v14528_v28 = vcombine.low %v6085_v62, %v6093_v6  ;;  %v14513_v26 = vcombine.high %v6069_v40, %v6077_v21  ;;  %v5734_v16 = vld [vmem:[#allocation16 + $0x298] sm:$0xff] }
 0x905   : > { %9036 = vmatprep.subr.bf16.mxu1 %v14353_v41  ;;  %v14257_v41 = vcombine.high %v5813_v23, %v5821_v15  ;;  %v5742_v0 = vld [vmem:[#allocation16 + $0x2d8] sm:$0xff] }
 0x906   : > { %v5990_v6 = vld [vmem:[#allocation16 + $0xa98] sm:$0xff] }
 0x907   : > { %8994 = vmatpush1.bf16.msra.mxu0 %v14096_v18  ;;  %v6061_v18 = vld [vmem:[#allocation16 + $0xcd0] sm:$0xff] }
 0x908   : > { %9037 = vmatpush1.bf16.msra.mxu1 %v14352_v34  ;;  %8995 = vmatprep.subr.bf16.mxu0 %v14337_v37  ;;  %v14256_v34 = vcombine.low %v5813_v23, %v5821_v15  ;;  %v14512_v37 = vcombine.low %v6069_v40, %v6077_v21  ;;  %v14497_v63 = vcombine.high %v6053_v32, %v6061_v18  ;;  %v5718_v15 = vld [vmem:[#allocation16 + $0x218] sm:$0xff] }
 0x909   : > { %9038 = vmatprep.subr.bf16.mxu1 %v14593_v59  ;;  %v14241_v59 = vcombine.high %v5797_v14, %v5805_v29  ;;  %v5726_v40 = vld [vmem:[#allocation16 + $0x258] sm:$0xff] }
 0x90a   : > { %v5974_v21 = vld [vmem:[#allocation16 + $0xa18] sm:$0xff] }
 0x90b   : > { %8996 = vmatpush2.bf16.msra.mxu0 %v14336_v58  ;;  %v6045_v58 = vld [vmem:[#allocation16 + $0xc50] sm:$0xff] }
 0x90c   : > { %9039 = vmatpush2.bf16.msra.mxu1 %v14592_v57  ;;  %8997 = vmatprep.subr.bf16.mxu0 %v14321_v22  ;;  %v14240_v57 = vcombine.low %v5797_v14, %v5805_v29  ;;  %v14496_v22 = vcombine.low %v6053_v32, %v6061_v18  ;;  %v14481_v39 = vcombine.high %v6037_v7, %v6045_v58  ;;  %v5702_v29 = vld [vmem:[#allocation16 + $0x198] sm:$0xff] }
 0x90d   : > { %9040 = vmatprep.subr.bf16.mxu1 %v14577_v9  ;;  %v14225_v9 = vcombine.high %v5781_v10, %v5789_v47  ;;  %v5710_v32 = vld [vmem:[#allocation16 + $0x1d8] sm:$0xff] }
 0x90e   : > { %v5958_v18 = vld [vmem:[#allocation16 + $0x998] sm:$0xff] }
 0x90f   : > { %8998 = vmatpush2.bf16.msra.mxu0 %v14320_v5  ;;  %v6030_v5 = vld [vmem:[#allocation16 + $0xbd8] sm:$0xff] }
 0x910   : > { %9041 = vmatpush2.bf16.msra.mxu1 %v14576_v8  ;;  %8999 = vmatprep.subr.bf16.mxu0 %v14305_v17  ;;  %v14224_v8 = vcombine.low %v5781_v10, %v5789_v47  ;;  %v14480_v17 = vcombine.low %v6037_v7, %v6045_v58  ;;  %v14467_v44 = vcombine.high %v6022_v4, %v6030_v5  ;;  %v5686_v47 = vld [vmem:[#allocation16 + $0x118] sm:$0xff] }
 0x911   : > { %9042 = vmatprep.subr.bf16.mxu1 %v14561_v61  ;;  %v14211_v61 = vcombine.high %v5766_v13, %v5774_v60  ;;  %v5694_v7 = vld [vmem:[#allocation16 + $0x158] sm:$0xff] }
 0x912   : > { %v5942_v58 = vld [vmem:[#allocation16 + $0x918] sm:$0xff] }
 0x913   : > { %9000 = vmatpush2.bf16.msra.mxu0 %v14304_v30  ;;  %v6006_v30 = vld [vmem:[#allocation16 + $0xb18] sm:$0xff] }
 0x914   : > { %9043 = vmatpush2.bf16.msra.mxu1 %v14560_v20  ;;  %9001 = vmatprep.subr.bf16.mxu0 %v14289_v45  ;;  %v6014_v20 = vld [vmem:[#allocation16 + $0xb58] sm:$0xff]  ;;  %v14466_v45 = vcombine.low %v6022_v4, %v6030_v5 }
 0x915   : > { %9044 = vmatprep.subr.bf16.mxu1 %v14545_v3  ;;  %v14195_v3 = vcombine.high %v5750_v31, %v5758_v11  ;;  %v14451_v62 = vcombine.high %v6006_v30, %v6014_v20  ;;  %v5670_v60 = vld [vmem:[#allocation16 + $0x98] sm:$0xff] }
 0x916   : > { %v5678_v4 = vld [vmem:[#allocation16 + $0xd8] sm:$0xff] }
 0x917   : > { %9002 = vmatpush2.bf16.msra.mxu0 %v14288_v52  ;;  %v5998_v52 = vld [vmem:[#allocation16 + $0xad8] sm:$0xff] }
 0x918   : > { %9045 = vmatpush2.bf16.msra.mxu1 %v14544_v2  ;;  %9003 = vmatprep.subr.bf16.mxu0 %v14273_v33  ;;  %v14194_v2 = vcombine.low %v5750_v31, %v5758_v11  ;;  %v14450_v33 = vcombine.low %v6006_v30, %v6014_v20  ;;  %v14435_v23 = vcombine.high %v5990_v6, %v5998_v52  ;;  %v5926_v5 = vld [vmem:[#allocation16 + $0x898] sm:$0xff] }
 0x919   : > { %9046 = vmatprep.subr.bf16.mxu1 %v14529_v50  ;;  %v14179_v50 = vcombine.high %v5734_v16, %v5742_v0  ;;  %v5654_v11 = vld [vmem:[#allocation16 + $0x18] sm:$0xff] }
 0x91a   : > { %v5910_v30 = vld [vmem:[#allocation16 + $0x818] sm:$0xff] }
 0x91b   : > { %9004 = vmatpush2.bf16.msra.mxu0 %v14272_v35  ;;  %v5982_v35 = vld [vmem:[#allocation16 + $0xa58] sm:$0xff] }
 0x91c   : > { %9047 = vmatpush2.bf16.msra.mxu1 %v14528_v28  ;;  %9005 = vmatprep.subr.bf16.mxu0 %v14257_v41  ;;  %v14178_v28 = vcombine.low %v5734_v16, %v5742_v0  ;;  %v14434_v41 = vcombine.low %v5990_v6, %v5998_v52  ;;  %v14419_v14 = vcombine.high %v5974_v21, %v5982_v35  ;;  %v5918_v20 = vld [vmem:[#allocation16 + $0x858] sm:$0xff] }
 0x91d   : > { %9048 = vmatprep.subr.bf16.mxu1 %v14513_v26  ;;  %v14163_v26 = vcombine.high %v5718_v15, %v5726_v40  ;;  %v14355_v0 = vcombine.high %v5910_v30, %v5918_v20  ;;  %v5902_v6 = vld [vmem:[#allocation16 + $0x7d8] sm:$0xff] }
 0x91e   : > { %v6150_v52 = vld [vmem:[#allocation16 + $0xf98] sm:$0xff] }
 0x91f   : > { %9006 = vmatpush2.bf16.msra.mxu0 %v14256_v34  ;;  %v5966_v34 = vld [vmem:[#allocation16 + $0x9d8] sm:$0xff] }
 0x920   : > { %9049 = vmatpush2.bf16.msra.mxu1 %v14512_v37  ;;  %9007 = vmatprep.subr.bf16.mxu0 %v14241_v59  ;;  %v14162_v37 = vcombine.low %v5718_v15, %v5726_v40  ;;  %v14418_v59 = vcombine.low %v5974_v21, %v5982_v35  ;;  %v14403_v10 = vcombine.high %v5958_v18, %v5966_v34  ;;  %v5878_v40 = vld [vmem:[#allocation16 + $0x718] sm:$0xff] }
 0x921   : > { %9050 = vmatprep.subr.bf16.mxu1 %v14497_v63  ;;  %v14147_v63 = vcombine.high %v5702_v29, %v5710_v32  ;;  %v5886_v21 = vld [vmem:[#allocation16 + $0x758] sm:$0xff] }
 0x922   : > { %v6134_v35 = vld [vmem:[#allocation16 + $0xf18] sm:$0xff] }
 0x923   : > { %9008 = vmatpush2.bf16.msra.mxu0 %v14240_v57  ;;  %v5950_v57 = vld [vmem:[#allocation16 + $0x958] sm:$0xff] }
 0x924   : > { %9051 = vmatpush2.bf16.msra.mxu1 %v14496_v22  ;;  %9009 = vmatprep.subr.bf16.mxu0 %v14225_v9  ;;  %v14146_v22 = vcombine.low %v5702_v29, %v5710_v32  ;;  %v14402_v9 = vcombine.low %v5958_v18, %v5966_v34  ;;  %v14387_v13 = vcombine.high %v5942_v58, %v5950_v57  ;;  %v5862_v32 = vld [vmem:[#allocation16 + $0x698] sm:$0xff] }
 0x925   : > { %9052 = vmatprep.subr.bf16.mxu1 %v14481_v39  ;;  %v14131_v39 = vcombine.high %v5686_v47, %v5694_v7  ;;  %v5870_v18 = vld [vmem:[#allocation16 + $0x6d8] sm:$0xff] }
 0x926   : > { %v6118_v34 = vld [vmem:[#allocation16 + $0xe98] sm:$0xff] }
 0x927   : > { %9010 = vmatpush2.bf16.msra.mxu0 %v14224_v8  ;;  %v5934_v8 = vld [vmem:[#allocation16 + $0x8d8] sm:$0xff] }
 0x928   : > { %9053 = vmatpush2.bf16.msra.mxu1 %v14480_v17  ;;  %9065 = vmatprep.subr.bf16.mxu0 %v14211_v61  ;;  %v14130_v17 = vcombine.low %v5686_v47, %v5694_v7  ;;  %v14386_v61 = vcombine.low %v5942_v58, %v5950_v57  ;;  %v14371_v31 = vcombine.high %v5926_v5, %v5934_v8  ;;  %v5846_v7 = vld [vmem:[#allocation16 + $0x618] sm:$0xff] }
 0x929   : > { %9108 = vmatprep.subr.bf16.mxu1 %v14467_v44  ;;  %v14115_v44 = vcombine.high %v5670_v60, %v5678_v4  ;;  %v5854_v58 = vld [vmem:[#allocation16 + $0x658] sm:$0xff] }
 0x92a   : > { %9012 = vmatmul.mubr.bf16.vlgmr.msra.gmra.mxu0 %v18341_v12  ;;  %v6102_v57 = vld [vmem:[#allocation16 + $0xe18] sm:$0xff] }
 0x92b   : > { %9055 = vmatmul.mubr.bf16.vlgmr.msra.gmra.mxu1 %v18343_v46  ;;  %9066 = vmatpush1.bf16.msra.mxu0 %v14210_v19  ;;  %v5662_v19 = vld [vmem:[#allocation16 + $0x58] sm:$0xff] }
 0x92c   : > { %9097 = vmatprep.mubr.bf16.mxu0 %v18337_v48  ;;  %9109 = vmatpush1.bf16.msra.mxu1 %v14466_v45  ;;  %v14114_v45 = vcombine.low %v5670_v60, %v5678_v4  ;;  %v14099_v16 = vcombine.high %v5654_v11, %v5662_v19  ;;  %v5830_v4 = vld [vmem:[#allocation16 + $0x598] sm:$0xff] }
 0x92d   : > { %9140 = vmatprep.mubr.bf16.mxu1 %v18339_v49  ;;  %9067 = vmatprep.subr.bf16.mxu0 %v14195_v3  ;;  %v14370_v3 = vcombine.low %v5926_v5, %v5934_v8  ;;  %v5838_v5 = vld [vmem:[#allocation16 + $0x5d8] sm:$0xff] }
 0x92e   : > { %9110 = vmatprep.subr.bf16.mxu1 %v14451_v62  ;;  %v5894_v62 = vld [vmem:[#allocation16 + $0x798] sm:$0xff] }
 0x92f   : > { %9068 = vmatpush1.bf16.msra.mxu0 %v14194_v2  ;;  %v6158_v2 = vld [vmem:[#allocation16 + $0xfd8] sm:$0xff] }
 0x930   : > { %9111 = vmatpush1.bf16.msra.mxu1 %v14450_v33  ;;  %9069 = vmatprep.subr.bf16.mxu0 %v14179_v50  ;;  %v14098_v33 = vcombine.low %v5654_v11, %v5662_v19  ;;  %v14354_v50 = vcombine.low %v5910_v30, %v5918_v20  ;;  %v14595_v15 = vcombine.high %v6150_v52, %v6158_v2  ;;  %v6086_v8 = vld [vmem:[#allocation16 + $0xd98] sm:$0xff] }
 0x931   : > { %9112 = vmatprep.subr.bf16.mxu1 %v14435_v23  ;;  %v14339_v23 = vcombine.high %v5894_v62, %v5902_v6  ;;  %v5814_v19 = vld [vmem:[#allocation16 + $0x518] sm:$0xff] }
 0x932   : > { %v5822_v30 = vld [vmem:[#allocation16 + $0x558] sm:$0xff] }
 0x933   : > { %9070 = vmatpush1.bf16.msra.mxu0 %v14178_v28  ;;  %v6142_v28 = vld [vmem:[#allocation16 + $0xf58] sm:$0xff] }
 0x934   : > { %9113 = vmatpush1.bf16.msra.mxu1 %v14434_v41  ;;  %9071 = vmatprep.subr.bf16.mxu0 %v14163_v26  ;;  %v14338_v41 = vcombine.low %v5894_v62, %v5902_v6  ;;  %v14594_v26 = vcombine.low %v6150_v52, %v6158_v2  ;;  %v14579_v29 = vcombine.high %v6134_v35, %v6142_v28  ;;  %v6070_v20 = vld [vmem:[#allocation16 + $0xd18] sm:$0xff] }
 0x935   : > { %9114 = vmatprep.subr.bf16.mxu1 %v14419_v14  ;;  %v14323_v14 = vcombine.high %v5878_v40, %v5886_v21  ;;  %v5798_v6 = vld [vmem:[#allocation16 + $0x498] sm:$0xff] }
 0x936   : > { %v5806_v52 = vld [vmem:[#allocation16 + $0x4d8] sm:$0xff] }
 0x937   : > { %9072 = vmatpush1.bf16.msra.mxu0 %v14162_v37  ;;  %v6126_v37 = vld [vmem:[#allocation16 + $0xed8] sm:$0xff] }
 0x938   : > { %9115 = vmatpush1.bf16.msra.mxu1 %v14418_v59  ;;  %9073 = vmatprep.subr.bf16.mxu0 %v14147_v63  ;;  %v14322_v59 = vcombine.low %v5878_v40, %v5886_v21  ;;  %v14578_v63 = vcombine.low %v6134_v35, %v6142_v28  ;;  %v14563_v47 = vcombine.high %v6118_v34, %v6126_v37  ;;  %v6054_v2 = vld [vmem:[#allocation16 + $0xc98] sm:$0xff] }
 0x939   : > { %9116 = vmatprep.subr.bf16.mxu1 %v14403_v10  ;;  %v14307_v10 = vcombine.high %v5862_v32, %v5870_v18  ;;  %v5782_v21 = vld [vmem:[#allocation16 + $0x418] sm:$0xff] }
 0x93a   : > { %v5790_v35 = vld [vmem:[#allocation16 + $0x458] sm:$0xff] }
 0x93b   : > { %9074 = vmatpush1.bf16.msra.mxu0 %v14146_v22  ;;  %v6110_v22 = vld [vmem:[#allocation16 + $0xe58] sm:$0xff] }
 0x93c   : > { %9117 = vmatpush1.bf16.msra.mxu1 %v14402_v9  ;;  %9075 = vmatprep.subr.bf16.mxu0 %v14131_v39  ;;  %v14306_v9 = vcombine.low %v5862_v32, %v5870_v18  ;;  %v14562_v39 = vcombine.low %v6118_v34, %v6126_v37  ;;  %v14547_v60 = vcombine.high %v6102_v57, %v6110_v22  ;;  %v6038_v28 = vld [vmem:[#allocation16 + $0xc18] sm:$0xff]  ;;  %v5767_v18 = vld [vmem:[#allocation16 + $0x3a0] sm:$0xff] }
 0x93d   : > { %9118 = vmatprep.subr.bf16.mxu1 %v14387_v13  ;;  %v14291_v13 = vcombine.high %v5846_v7, %v5854_v58  ;;  %v5775_v34 = vld [vmem:[#allocation16 + $0x3e0] sm:$0xff] }
 0x93e   : > { %v6023_v37 = vld [vmem:[#allocation16 + $0xba0] sm:$0xff] }
 0x93f   : > { %9076 = vmatpush1.bf16.msra.mxu0 %v14130_v17  ;;  %v6094_v17 = vld [vmem:[#allocation16 + $0xdd8] sm:$0xff] }
 0x940   : > { %9119 = vmatpush1.bf16.msra.mxu1 %v14386_v61  ;;  %9077 = vmatprep.subr.bf16.mxu0 %v14115_v44  ;;  %v14290_v61 = vcombine.low %v5846_v7, %v5854_v58  ;;  %v14546_v44 = vcombine.low %v6102_v57, %v6110_v22  ;;  %v14531_v11 = vcombine.high %v6086_v8, %v6094_v17  ;;  %v18365_v7 = vld [vmem:[#allocation17] sm:$0xff] }
 0x941   : > { %9120 = vmatprep.subr.bf16.mxu1 %v14371_v31  ;;  %v14275_v31 = vcombine.high %v5830_v4, %v5838_v5  ;;  %v5751_v57 = vld [vmem:[#allocation16 + $0x320] sm:$0xff] }
 0x942   : > { %v5759_v22 = vld [vmem:[#allocation16 + $0x360] sm:$0xff] }
 0x943   : > { %9078 = vmatpush1.bf16.msra.mxu0 %v14114_v45  ;;  %v6078_v45 = vld [vmem:[#allocation16 + $0xd58] sm:$0xff] }
 0x944   : > { %9121 = vmatpush1.bf16.msra.mxu1 %v14370_v3  ;;  %9079 = vmatprep.subr.bf16.mxu0 %v14099_v16  ;;  %v14274_v3 = vcombine.low %v5830_v4, %v5838_v5  ;;  %v14530_v16 = vcombine.low %v6086_v8, %v6094_v17  ;;  %v14515_v62 = vcombine.high %v6070_v20, %v6078_v45  ;;  %v5735_v8 = vld [vmem:[#allocation16 + $0x2a0] sm:$0xff] }
 0x945   : > { %9122 = vmatprep.subr.bf16.mxu1 %v14355_v0  ;;  %v14259_v0 = vcombine.high %v5814_v19, %v5822_v30  ;;  %v14197_v5 = vcombine.high %v5751_v57, %v5759_v22  ;;  %v5743_v17 = vld [vmem:[#allocation16 + $0x2e0] sm:$0xff] }
 0x947   : > { %9080 = vmatpush1.bf16.msra.mxu0 %v14098_v33  ;;  %v6062_v33 = vld [vmem:[#allocation16 + $0xcd8] sm:$0xff] }
 0x948   : > { %9123 = vmatpush1.bf16.msra.mxu1 %v14354_v50  ;;  %9081 = vmatprep.subr.bf16.mxu0 %v14339_v23  ;;  %v14258_v50 = vcombine.low %v5814_v19, %v5822_v30  ;;  %v14514_v23 = vcombine.low %v6070_v20, %v6078_v45  ;;  %v14499_v40 = vcombine.high %v6054_v2, %v6062_v33  ;;  %v5999_v19 = vld [vmem:[#allocation16 + $0xae0] sm:$0xff] }
 0x949   : > { %9124 = vmatprep.subr.bf16.mxu1 %v14595_v15  ;;  %v14243_v15 = vcombine.high %v5798_v6, %v5806_v52  ;;  %v14196_v20 = vcombine.low %v5751_v57, %v5759_v22  ;;  %v5687_v57 = vld [vmem:[#allocation16 + $0x120] sm:$0xff] }
 0x94a   : > { %v5695_v22 = vld [vmem:[#allocation16 + $0x160] sm:$0xff] }
 0x94b   : > { %9082 = vmatpush2.bf16.msra.mxu0 %v14338_v41  ;;  %v6046_v41 = vld [vmem:[#allocation16 + $0xc58] sm:$0xff] }
 0x94c   : > { %9125 = vmatpush2.bf16.msra.mxu1 %v14594_v26  ;;  %9083 = vmatprep.subr.bf16.mxu0 %v14323_v14  ;;  %v14242_v26 = vcombine.low %v5798_v6, %v5806_v52  ;;  %v14498_v14 = vcombine.low %v6054_v2, %v6062_v33  ;;  %v14483_v32 = vcombine.high %v6038_v28, %v6046_v41  ;;  %v5719_v52 = vld [vmem:[#allocation16 + $0x220] sm:$0xff] }
 0x94d   : > { %9126 = vmatprep.subr.bf16.mxu1 %v14579_v29  ;;  %v14227_v29 = vcombine.high %v5782_v21, %v5790_v35  ;;  %v5727_v2 = vld [vmem:[#allocation16 + $0x260] sm:$0xff] }
 0x94f   : > { %9084 = vmatpush2.bf16.msra.mxu0 %v14322_v59  ;;  %v6031_v59 = vld [vmem:[#allocation16 + $0xbe0] sm:$0xff] }
 0x950   : > { %9127 = vmatpush2.bf16.msra.mxu1 %v14578_v63  ;;  %9085 = vmatprep.subr.bf16.mxu0 %v14307_v10  ;;  %v14226_v63 = vcombine.low %v5782_v21, %v5790_v35  ;;  %v14482_v10 = vcombine.low %v6038_v28, %v6046_v41  ;;  %v14469_v58 = vcombine.high %v6023_v37, %v6031_v59 }
 0x951   : > { %9128 = vmatprep.subr.bf16.mxu1 %v14563_v47  ;;  %v14213_v47 = vcombine.high %v5767_v18, %v5775_v34  ;;  %v14468_v4 = vcombine.low %v6023_v37, %v6031_v59  ;;  %v14165_v28 = vcombine.high %v5719_v52, %v5727_v2  ;;  %v14164_v59 = vcombine.low %v5719_v52, %v5727_v2 }
 0x953   : > { %9086 = vmatpush2.bf16.msra.mxu0 %v14306_v9  ;;  %v14212_v9 = vcombine.low %v5767_v18, %v5775_v34  ;;  %v5967_v18 = vld [vmem:[#allocation16 + $0x9e0] sm:$0xff] }
 0x954   : > { %9129 = vmatpush2.bf16.msra.mxu1 %v14562_v39  ;;  %9087 = vmatprep.subr.bf16.mxu0 %v14291_v13  ;;  %v6170_v39 = vrot.slane %v18365_v7, %v17850_v55  ;;  %v6007_v13 = vld [vmem:[#allocation16 + $0xb20] sm:$0xff] }
 0x955   : > { %9130 = vmatprep.subr.bf16.mxu1 %v14547_v60  ;;  %v6015_v60 = vld [vmem:[#allocation16 + $0xb60] sm:$0xff] }
 0x957   : > { %9088 = vmatpush2.bf16.msra.mxu0 %v14290_v61 }
 0x958   : > { %9131 = vmatpush2.bf16.msra.mxu1 %v14546_v44  ;;  %9089 = vmatprep.subr.bf16.mxu0 %v14275_v31  ;;  %v14453_v31 = vcombine.high %v6007_v13, %v6015_v60 }
 0x959   : > { %9132 = vmatprep.subr.bf16.mxu1 %v14531_v11  ;;  %v5991_v11 = vld [vmem:[#allocation16 + $0xaa0] sm:$0xff] }
 0x95a   : > { %v14437_v6 = vcombine.high %v5991_v11, %v5999_v19  ;;  %v14436_v35 = vcombine.low %v5991_v11, %v5999_v19 }
 0x95b   : > { %9090 = vmatpush2.bf16.msra.mxu0 %v14274_v3 }
 0x95c   : > { %9133 = vmatpush2.bf16.msra.mxu1 %v14530_v16  ;;  %9091 = vmatprep.subr.bf16.mxu0 %v14259_v0  ;;  %v14452_v16 = vcombine.low %v6007_v13, %v6015_v60  ;;  %v14181_v0 = vcombine.high %v5735_v8, %v5743_v17 }
 0x95d   : > { %9134 = vmatprep.subr.bf16.mxu1 %v14515_v62 }
 0x95f   : > { %9092 = vmatpush2.bf16.msra.mxu0 %v14258_v50  ;;  %v5975_v50 = vld [vmem:[#allocation16 + $0xa20] sm:$0xff] }
 0x960   : > { %9135 = vmatpush2.bf16.msra.mxu1 %v14514_v23  ;;  %9093 = vmatprep.subr.bf16.mxu0 %v14243_v15  ;;  %v5983_v23 = vld [vmem:[#allocation16 + $0xa60] sm:$0xff] }
 0x961   : > { %9136 = vmatprep.subr.bf16.mxu1 %v14499_v40  ;;  %v14180_v40 = vcombine.low %v5735_v8, %v5743_v17  ;;  %v5671_v8 = vld [vmem:[#allocation16 + $0xa0] sm:$0xff] }
 0x962   : > { %v5679_v17 = vld [vmem:[#allocation16 + $0xe0] sm:$0xff] }
 0x963   : > { %9094 = vmatpush2.bf16.msra.mxu0 %v14242_v26  ;;  %v14421_v26 = vcombine.high %v5975_v50, %v5983_v23  ;;  %v14117_v19 = vcombine.high %v5671_v8, %v5679_v17 }
 0x964   : > { %9137 = vmatpush2.bf16.msra.mxu1 %v14498_v14  ;;  %9095 = vmatprep.subr.bf16.mxu0 %v14227_v29  ;;  %v5703_v14 = vld [vmem:[#allocation16 + $0x1a0] sm:$0xff] }
 0x965   : > { %9138 = vmatprep.subr.bf16.mxu1 %v14483_v32  ;;  %v5711_v29 = vld [vmem:[#allocation16 + $0x1e0] sm:$0xff] }
 0x966   : > { %v5959_v32 = vld [vmem:[#allocation16 + $0x9a0] sm:$0xff]  ;;  %v14148_v13 = vcombine.low %v5703_v14, %v5711_v29 }
 0x967   : > { %9096 = vmatpush2.bf16.msra.mxu0 %v14226_v63  ;;  %v14420_v63 = vcombine.low %v5975_v50, %v5983_v23  ;;  %v14404_v60 = vcombine.low %v5959_v32, %v5967_v18  ;;  %v5895_v50 = vld [vmem:[#allocation16 + $0x7a0] sm:$0xff] }
 0x968   : > { %9139 = vmatpush2.bf16.msra.mxu1 %v14482_v10  ;;  %9151 = vmatprep.subr.bf16.mxu0 %v14213_v47  ;;  %v14149_v10 = vcombine.high %v5703_v14, %v5711_v29  ;;  %v5903_v23 = vld [vmem:[#allocation16 + $0x7e0] sm:$0xff] }
 0x969   : > { %9194 = vmatprep.subr.bf16.mxu1 %v14469_v58  ;;  %v14405_v58 = vcombine.high %v5959_v32, %v5967_v18  ;;  %v5887_v14 = vld [vmem:[#allocation16 + $0x760] sm:$0xff]  ;;  %v14340_v18 = vcombine.low %v5895_v50, %v5903_v23 }
 0x96a   : > { %9098 = vmatmul.mubr.bf16.vlgmr.msra.gmra.mxu0 %v18341_v12  ;;  %v8841_v61 = vpop.f32.mrf.mxu0  ;;  %v8884_v44 = vpop.f32.mrf.mxu1  ;;  %v6135_v29 = vld [vmem:[#allocation16 + $0xf20] sm:$0xff] }
 0x96b   : > { %9141 = vmatmul.mubr.bf16.vlgmr.msra.gmra.mxu1 %v18343_v46  ;;  %v8842_v30 = vadd.f32 %v8841_v61, %v6170_v39  ;;  %9152 = vmatpush1.bf16.msra.mxu0 %v14212_v9  ;;  %v5943_v9 = vld [vmem:[#allocation16 + $0x920] sm:$0xff] }
 0x96c   : > { %9183 = vmatprep.mubr.bf16.mxu0 %v18337_v48  ;;  %9195 = vmatpush1.bf16.msra.mxu1 %v14468_v4  ;;  %v18372_v45 = vpop.f32.mrf.mxu0  ;;  %v18374_v3 = vpop.f32.mrf.mxu1  ;;  %v14133_v4 = vcombine.high %v5687_v57, %v5695_v22  ;;  %v5927_v61 = vld [vmem:[#allocation16 + $0x8a0] sm:$0xff] }
 0x96d   : > { %v8885_v62 = vadd.f32 %v8884_v44, %v8842_v30  ;;  %9226 = vmatprep.mubr.bf16.mxu1 %v18339_v49  ;;  %9153 = vmatprep.subr.bf16.mxu0 %v14197_v5  ;;  %v5935_v44 = vld [vmem:[#allocation16 + $0x8e0] sm:$0xff] }
 0x96e   : > { %9196 = vmatprep.subr.bf16.mxu1 %v14453_v31  ;;  %v8845_v33 = vpop.f32.mrf.mxu0  ;;  %v8888_v21 = vpop.f32.mrf.mxu1  ;;  %v14132_v31 = vcombine.low %v5687_v57, %v5695_v22  ;;  %v14373_v30 = vcombine.high %v5927_v61, %v5935_v44  ;;  %v14372_v52 = vcombine.low %v5927_v61, %v5935_v44  ;;  %v6143_v32 = vld [vmem:[#allocation16 + $0xf60] sm:$0xff] }
 0x96f   : > { %v8846_v15 = vadd.f32 %v8845_v33, %v6170_v39  ;;  %9154 = vmatpush1.bf16.msra.mxu0 %v14196_v20  ;;  %v9495_v34 = vmax.f32 %v8885_v62, 0.0  ;;  %v5951_v39 = vld [vmem:[#allocation16 + $0x960] sm:$0xff] }
 0x970   : > { %9197 = vmatpush1.bf16.msra.mxu1 %v14452_v16  ;;  %9155 = vmatprep.subr.bf16.mxu0 %v14181_v0  ;;  %v14389_v5 = vcombine.high %v5943_v9, %v5951_v39  ;;  %v14388_v11 = vcombine.low %v5943_v9, %v5951_v39  ;;  %v5655_v20 = vld [vmem:[#allocation16 + $0x20] sm:$0xff]  ;;  %v14580_v9 = vcombine.low %v6135_v29, %v6143_v32 }
 0x971   : > { %v8889_v41 = vadd.f32 %v8888_v21, %v8846_v15  ;;  %9198 = vmatprep.subr.bf16.mxu1 %v14437_v6  ;;  %v5663_v16 = vld [vmem:[#allocation16 + $0x60] sm:$0xff]  ;;  %v14116_v6 = vcombine.low %v5671_v8, %v5679_v17 }
 0x972   : > { %v5911_v0 = vld [vmem:[#allocation16 + $0x820] sm:$0xff]  ;;  %v14101_v2 = vcombine.high %v5655_v20, %v5663_v16  ;;  %v14100_v21 = vcombine.low %v5655_v20, %v5663_v16 }
 0x973   : > { %v9511_v37 = vmax.f32 %v8889_v41, 0.0  ;;  %9156 = vmatpush1.bf16.msra.mxu0 %v14180_v40  ;;  %v5919_v62 = vld [vmem:[#allocation16 + $0x860] sm:$0xff] }
 0x974   : > { %9199 = vmatpush1.bf16.msra.mxu1 %v14436_v35  ;;  %9157 = vmatprep.subr.bf16.mxu0 %v14165_v28  ;;  %v14357_v33 = vcombine.high %v5911_v0, %v5919_v62  ;;  %v6151_v15 = vld [vmem:[#allocation16 + $0xfa0] sm:$0xff]  ;;  %v14356_v35 = vcombine.low %v5911_v0, %v5919_v62  ;;  %v14341_v28 = vcombine.high %v5895_v50, %v5903_v23 }
 0x975   : > { %v18377_v47 = vpack.c.bf16 %v9511_v37, %v9495_v34  ;;  %9200 = vmatprep.subr.bf16.mxu1 %v14421_v26  ;;  %v6159_v40 = vld [vmem:[#allocation16 + $0xfe0] sm:$0xff] }
 0x976   : > { %v14597_v41 = vcombine.high %v6151_v15, %v6159_v40  ;;  %v5879_v26 = vld [vmem:[#allocation16 + $0x720] sm:$0xff]  ;;  %v14596_v34 = vcombine.low %v6151_v15, %v6159_v40 }
 0x977   : > { %9158 = vmatpush1.bf16.msra.mxu0 %v14164_v59  ;;  %v14325_v37 = vcombine.high %v5879_v26, %v5887_v14  ;;  %v14581_v59 = vcombine.high %v6135_v29, %v6143_v32  ;;  %v6127_v57 = vld [vmem:[#allocation16 + $0xee0] sm:$0xff]  ;;  %v14324_v22 = vcombine.low %v5879_v26, %v5887_v14 }
 0x978   : > { %9201 = vmatpush1.bf16.msra.mxu1 %v14420_v63  ;;  %9159 = vmatprep.subr.bf16.mxu0 %v14149_v10  ;;  %v5863_v63 = vld [vmem:[#allocation16 + $0x6a0] sm:$0xff] }
 0x979   : > { %9202 = vmatprep.subr.bf16.mxu1 %v14405_v58  ;;  %v5871_v10 = vld [vmem:[#allocation16 + $0x6e0] sm:$0xff] }
 0x97a   : > { %v6119_v58 = vld [vmem:[#allocation16 + $0xea0] sm:$0xff]  ;;  %v14309_v39 = vcombine.high %v5863_v63, %v5871_v10  ;;  %v14308_v17 = vcombine.low %v5863_v63, %v5871_v10 }
 0x97b   : > { %9160 = vmatpush1.bf16.msra.mxu0 %v14148_v13  ;;  %v14565_v13 = vcombine.high %v6119_v58, %v6127_v57  ;;  %v6111_v8 = vld [vmem:[#allocation16 + $0xe60] sm:$0xff]  ;;  %v14564_v61 = vcombine.low %v6119_v58, %v6127_v57 }
 0x97c   : > { %9203 = vmatpush1.bf16.msra.mxu1 %v14404_v60  ;;  %9161 = vmatprep.subr.bf16.mxu0 %v14133_v4  ;;  %v5847_v60 = vld [vmem:[#allocation16 + $0x620] sm:$0xff] }
 0x97d   : > { %9204 = vmatprep.subr.bf16.mxu1 %v14389_v5  ;;  %v5855_v4 = vld [vmem:[#allocation16 + $0x660] sm:$0xff] }
 0x97e   : > { %v6103_v5 = vld [vmem:[#allocation16 + $0xe20] sm:$0xff]  ;;  %v14293_v44 = vcombine.high %v5847_v60, %v5855_v4  ;;  %v14292_v16 = vcombine.low %v5847_v60, %v5855_v4  ;;  %v6032_v60 = vld [vmem:[#allocation16 + $0xbe8] sm:$0xff] }
 0x97f   : > { %9162 = vmatpush1.bf16.msra.mxu0 %v14132_v31  ;;  %v14549_v31 = vcombine.high %v6103_v5, %v6111_v8  ;;  %v6095_v20 = vld [vmem:[#allocation16 + $0xde0] sm:$0xff]  ;;  %v14548_v0 = vcombine.low %v6103_v5, %v6111_v8 }
 0x980   : > { %9205 = vmatpush1.bf16.msra.mxu1 %v14388_v11  ;;  %9163 = vmatprep.subr.bf16.mxu0 %v14117_v19  ;;  %v5831_v11 = vld [vmem:[#allocation16 + $0x5a0] sm:$0xff] }
 0x981   : > { %9206 = vmatprep.subr.bf16.mxu1 %v14373_v30  ;;  %v5839_v19 = vld [vmem:[#allocation16 + $0x5e0] sm:$0xff] }
 0x982   : > { %v6087_v30 = vld [vmem:[#allocation16 + $0xda0] sm:$0xff]  ;;  %v14277_v62 = vcombine.high %v5831_v11, %v5839_v19  ;;  %v14276_v23 = vcombine.low %v5831_v11, %v5839_v19  ;;  %v6008_v19 = vld [vmem:[#allocation16 + $0xb28] sm:$0xff] }
 0x983   : > { %9164 = vmatpush1.bf16.msra.mxu0 %v14116_v6  ;;  %v14533_v6 = vcombine.high %v6087_v30, %v6095_v20  ;;  %v6079_v50 = vld [vmem:[#allocation16 + $0xd60] sm:$0xff]  ;;  %v14532_v15 = vcombine.low %v6087_v30, %v6095_v20  ;;  %v6016_v30 = vld [vmem:[#allocation16 + $0xb68] sm:$0xff]  ;;  %v18381_v20 = vpop.f32.mrf.mxu0 }
 0x984   : > { %9207 = vmatpush1.bf16.msra.mxu1 %v14372_v52  ;;  %9165 = vmatprep.subr.bf16.mxu0 %v14101_v2  ;;  %v5815_v52 = vld [vmem:[#allocation16 + $0x520] sm:$0xff] }
 0x985   : > { %9208 = vmatprep.subr.bf16.mxu1 %v14357_v33  ;;  %v5823_v2 = vld [vmem:[#allocation16 + $0x560] sm:$0xff] }
 0x986   : > { %v6071_v33 = vld [vmem:[#allocation16 + $0xd20] sm:$0xff]  ;;  %v14261_v40 = vcombine.high %v5815_v52, %v5823_v2  ;;  %v14260_v14 = vcombine.low %v5815_v52, %v5823_v2  ;;  %v5744_v52 = vld [vmem:[#allocation16 + $0x2e8] sm:$0xff] }
 0x987   : > { %9166 = vmatpush1.bf16.msra.mxu0 %v14100_v21  ;;  %v14517_v21 = vcombine.high %v6071_v33, %v6079_v50  ;;  %v6063_v26 = vld [vmem:[#allocation16 + $0xce0] sm:$0xff]  ;;  %v14516_v29 = vcombine.low %v6071_v33, %v6079_v50  ;;  %v14455_v50 = vcombine.high %v6008_v19, %v6016_v30 }
 0x988   : > { %9209 = vmatpush1.bf16.msra.mxu1 %v14356_v35  ;;  %9167 = vmatprep.subr.bf16.mxu0 %v14341_v28  ;;  %v5799_v35 = vld [vmem:[#allocation16 + $0x4a0] sm:$0xff] }
 0x989   : > { %9210 = vmatprep.subr.bf16.mxu1 %v14597_v41  ;;  %v5807_v28 = vld [vmem:[#allocation16 + $0x4e0] sm:$0xff] }
 0x98a   : > { %v6055_v41 = vld [vmem:[#allocation16 + $0xca0] sm:$0xff]  ;;  %v14245_v32 = vcombine.high %v5799_v35, %v5807_v28  ;;  %v14244_v10 = vcombine.low %v5799_v35, %v5807_v28 }
 0x98b   : > { %9168 = vmatpush2.bf16.msra.mxu0 %v14340_v18  ;;  %v14501_v18 = vcombine.high %v6055_v41, %v6063_v26  ;;  %v6047_v63 = vld [vmem:[#allocation16 + $0xc60] sm:$0xff]  ;;  %v14500_v58 = vcombine.low %v6055_v41, %v6063_v26  ;;  %v14454_v41 = vcombine.low %v6008_v19, %v6016_v30  ;;  %v5688_v30 = vld [vmem:[#allocation16 + $0x128] sm:$0xff] }
 0x98c   : > { %9211 = vmatpush2.bf16.msra.mxu1 %v14596_v34  ;;  %9169 = vmatprep.subr.bf16.mxu0 %v14325_v37  ;;  %v5783_v34 = vld [vmem:[#allocation16 + $0x420] sm:$0xff] }
 0x98d   : > { %9212 = vmatprep.subr.bf16.mxu1 %v14581_v59  ;;  %v5791_v37 = vld [vmem:[#allocation16 + $0x460] sm:$0xff] }
 0x98e   : > { %v6039_v59 = vld [vmem:[#allocation16 + $0xc20] sm:$0xff]  ;;  %v14229_v57 = vcombine.high %v5783_v34, %v5791_v37  ;;  %v14228_v4 = vcombine.low %v5783_v34, %v5791_v37  ;;  %v5976_v37 = vld [vmem:[#allocation16 + $0xa28] sm:$0xff] }
 0x98f   : > { %9170 = vmatpush2.bf16.msra.mxu0 %v14324_v22  ;;  %v14485_v22 = vcombine.high %v6039_v59, %v6047_v63  ;;  %v14484_v5 = vcombine.low %v6039_v59, %v6047_v63  ;;  %v5984_v59 = vld [vmem:[#allocation16 + $0xa68] sm:$0xff] }
 0x990   : > { %9213 = vmatpush2.bf16.msra.mxu1 %v14580_v9  ;;  %9171 = vmatprep.subr.bf16.mxu0 %v14309_v39  ;;  %v5768_v9 = vld [vmem:[#allocation16 + $0x3a8] sm:$0xff] }
 0x991   : > { %9214 = vmatprep.subr.bf16.mxu1 %v14565_v13  ;;  %v5776_v39 = vld [vmem:[#allocation16 + $0x3e8] sm:$0xff] }
 0x992   : > { %v6024_v13 = vld [vmem:[#allocation16 + $0xba8] sm:$0xff]  ;;  %v14215_v8 = vcombine.high %v5768_v9, %v5776_v39  ;;  %v14214_v11 = vcombine.low %v5768_v9, %v5776_v39  ;;  %v14423_v39 = vcombine.high %v5976_v37, %v5984_v59 }
 0x993   : > { %9172 = vmatpush2.bf16.msra.mxu0 %v14308_v17  ;;  %v14471_v17 = vcombine.high %v6024_v13, %v6032_v60 }
 0x994   : > { %9215 = vmatpush2.bf16.msra.mxu1 %v14564_v61  ;;  %9173 = vmatprep.subr.bf16.mxu0 %v14293_v44  ;;  %v5752_v61 = vld [vmem:[#allocation16 + $0x328] sm:$0xff] }
 0x995   : > { %9216 = vmatprep.subr.bf16.mxu1 %v14549_v31  ;;  %v5760_v44 = vld [vmem:[#allocation16 + $0x368] sm:$0xff]  ;;  %v6178_v31 = vrot.slane %v18365_v7, %v17853_v56 }
 0x997   : > { %9174 = vmatpush2.bf16.msra.mxu0 %v14292_v16  ;;  %v18383_v16 = vpop.f32.mrf.mxu1 }
 0x998   : > { %9217 = vmatpush2.bf16.msra.mxu1 %v14548_v0  ;;  %9175 = vmatprep.subr.bf16.mxu0 %v14277_v62  ;;  %v14470_v0 = vcombine.low %v6024_v13, %v6032_v60  ;;  %v14199_v62 = vcombine.high %v5752_v61, %v5760_v44  ;;  %v5704_v13 = vld [vmem:[#allocation16 + $0x1a8] sm:$0xff] }
 0x999   : > { %9218 = vmatprep.subr.bf16.mxu1 %v14533_v6  ;;  %v5736_v6 = vld [vmem:[#allocation16 + $0x2a8] sm:$0xff] }
 0x99a   : > { %v14183_v26 = vcombine.high %v5736_v6, %v5744_v52  ;;  %v5712_v60 = vld [vmem:[#allocation16 + $0x1e8] sm:$0xff] }
 0x99b   : > { %9176 = vmatpush2.bf16.msra.mxu0 %v14276_v23  ;;  %v5992_v23 = vld [vmem:[#allocation16 + $0xaa8] sm:$0xff] }
 0x99c   : > { %9219 = vmatpush2.bf16.msra.mxu1 %v14532_v15  ;;  %9177 = vmatprep.subr.bf16.mxu0 %v14261_v40  ;;  %v6000_v15 = vld [vmem:[#allocation16 + $0xae8] sm:$0xff] }
 0x99d   : > { %9220 = vmatprep.subr.bf16.mxu1 %v14517_v21  ;;  %v14198_v21 = vcombine.low %v5752_v61, %v5760_v44  ;;  %v14422_v44 = vcombine.low %v5976_v37, %v5984_v59  ;;  %v5920_v37 = vld [vmem:[#allocation16 + $0x868] sm:$0xff] }
 0x99f   : > { %9178 = vmatpush2.bf16.msra.mxu0 %v14260_v14 }
 0x9a0   : > { %9221 = vmatpush2.bf16.msra.mxu1 %v14516_v29  ;;  %9179 = vmatprep.subr.bf16.mxu0 %v14245_v32  ;;  %v14439_v29 = vcombine.high %v5992_v23, %v6000_v15  ;;  %v5720_v32 = vld [vmem:[#allocation16 + $0x228] sm:$0xff] }
 0x9a1   : > { %9222 = vmatprep.subr.bf16.mxu1 %v14501_v18  ;;  %v5728_v18 = vld [vmem:[#allocation16 + $0x268] sm:$0xff] }
 0x9a2   : > { %v14166_v61 = vcombine.low %v5720_v32, %v5728_v18 }
 0x9a3   : > { %9180 = vmatpush2.bf16.msra.mxu0 %v14244_v10  ;;  %v14182_v10 = vcombine.low %v5736_v6, %v5744_v52  ;;  %v5952_v6 = vld [vmem:[#allocation16 + $0x968] sm:$0xff]  ;;  %v14150_v52 = vcombine.low %v5704_v13, %v5712_v60 }
 0x9a4   : > { %9223 = vmatpush2.bf16.msra.mxu1 %v14500_v58  ;;  %9181 = vmatprep.subr.bf16.mxu0 %v14229_v57  ;;  %v14438_v57 = vcombine.low %v5992_v23, %v6000_v15  ;;  %v5672_v23 = vld [vmem:[#allocation16 + $0xa8] sm:$0xff] }
 0x9a5   : > { %9224 = vmatprep.subr.bf16.mxu1 %v14485_v22  ;;  %v14167_v22 = vcombine.high %v5720_v32, %v5728_v18  ;;  %v5680_v15 = vld [vmem:[#allocation16 + $0xe8] sm:$0xff] }
 0x9a6   : > { %v5656_v32 = vld [vmem:[#allocation16 + $0x28] sm:$0xff]  ;;  %v14118_v59 = vcombine.low %v5672_v23, %v5680_v15 }
 0x9a7   : > { %9182 = vmatpush2.bf16.msra.mxu0 %v14228_v4  ;;  %v5960_v4 = vld [vmem:[#allocation16 + $0x9a8] sm:$0xff] }
 0x9a8   : > { %9225 = vmatpush2.bf16.msra.mxu1 %v14484_v5  ;;  %9237 = vmatprep.subr.bf16.mxu0 %v14215_v8  ;;  %v5968_v5 = vld [vmem:[#allocation16 + $0x9e8] sm:$0xff] }
 0x9a9   : > { %9280 = vmatprep.subr.bf16.mxu1 %v14471_v17  ;;  %v14407_v19 = vcombine.high %v5960_v4, %v5968_v5  ;;  %v5664_v18 = vld [vmem:[#allocation16 + $0x68] sm:$0xff] }
 0x9aa   : > { %v8927_v2 = vpop.f32.mrf.mxu0  ;;  %v8970_v33 = vpop.f32.mrf.mxu1  ;;  %9184 = vmatmul.mubr.bf16.vlgmr.msra.gmra.mxu0 %v18341_v12 }
 0x9ab   : > { %v8928_v40 = vadd.f32 %v8927_v2, %v6178_v31  ;;  %9227 = vmatmul.mubr.bf16.vlgmr.msra.gmra.mxu1 %v18343_v46  ;;  %9238 = vmatpush1.bf16.msra.mxu0 %v14214_v11  ;;  %v14406_v2 = vcombine.low %v5960_v4, %v5968_v5 }
 0x9ac   : > { %9269 = vmatprep.mubr.bf16.mxu0 %v18337_v48  ;;  %9281 = vmatpush1.bf16.msra.mxu1 %v14470_v0  ;;  %v18388_v35 = vpop.f32.mrf.mxu0  ;;  %v18390_v28 = vpop.f32.mrf.mxu1  ;;  %v5696_v0 = vld [vmem:[#allocation16 + $0x168] sm:$0xff] }
 0x9ad   : > { %v8971_v14 = vadd.f32 %v8970_v33, %v8928_v40  ;;  %9312 = vmatprep.mubr.bf16.mxu1 %v18339_v49  ;;  %9239 = vmatprep.subr.bf16.mxu0 %v14199_v62  ;;  %v5944_v62 = vld [vmem:[#allocation16 + $0x928] sm:$0xff]  ;;  %v14135_v33 = vcombine.high %v5688_v30, %v5696_v0 }
 0x9ae   : > { %v8931_v34 = vpop.f32.mrf.mxu0  ;;  %9282 = vmatprep.subr.bf16.mxu1 %v14455_v50  ;;  %v8974_v58 = vpop.f32.mrf.mxu1  ;;  %v14391_v50 = vcombine.high %v5944_v62, %v5952_v6  ;;  %v5928_v40 = vld [vmem:[#allocation16 + $0x8a8] sm:$0xff] }
 0x9af   : > { %v8932_v63 = vadd.f32 %v8931_v34, %v6178_v31  ;;  %9240 = vmatpush1.bf16.msra.mxu0 %v14198_v21  ;;  %v9497_v8 = vmax.f32 %v8971_v14, 0.0  ;;  %v14151_v31 = vcombine.high %v5704_v13, %v5712_v60  ;;  %v5936_v21 = vld [vmem:[#allocation16 + $0x8e8] sm:$0xff]  ;;  %v14119_v14 = vcombine.high %v5672_v23, %v5680_v15 }
 0x9b0   : > { %9283 = vmatpush1.bf16.msra.mxu1 %v14454_v41  ;;  %9241 = vmatprep.subr.bf16.mxu0 %v14183_v26  ;;  %v14134_v41 = vcombine.low %v5688_v30, %v5696_v0  ;;  %v14390_v26 = vcombine.low %v5944_v62, %v5952_v6  ;;  %v5912_v34 = vld [vmem:[#allocation16 + $0x828] sm:$0xff]  ;;  %v14102_v13 = vcombine.low %v5656_v32, %v5664_v18 }
 0x9b1   : > { %v8975_v9 = vadd.f32 %v8974_v58, %v8932_v63  ;;  %9284 = vmatprep.subr.bf16.mxu1 %v14439_v29  ;;  %v14375_v29 = vcombine.high %v5928_v40, %v5936_v21  ;;  %v14374_v63 = vcombine.low %v5928_v40, %v5936_v21  ;;  %v14359_v58 = vcombine.high %v5912_v34, %v5920_v37  ;;  %v5864_v62 = vld [vmem:[#allocation16 + $0x6a8] sm:$0xff] }
 0x9b2   : > { %v14358_v60 = vcombine.low %v5912_v34, %v5920_v37  ;;  %v5872_v6 = vld [vmem:[#allocation16 + $0x6e8] sm:$0xff] }
 0x9b3   : > { %v9513_v17 = vmax.f32 %v8975_v9, 0.0  ;;  %9242 = vmatpush1.bf16.msra.mxu0 %v14182_v10  ;;  %v14103_v10 = vcombine.high %v5656_v32, %v5664_v18  ;;  %v6152_v9 = vld [vmem:[#allocation16 + $0xfa8] sm:$0xff]  ;;  %v14311_v23 = vcombine.high %v5864_v62, %v5872_v6 }
 0x9b4   : > { %9285 = vmatpush1.bf16.msra.mxu1 %v14438_v57  ;;  %9243 = vmatprep.subr.bf16.mxu0 %v14167_v22  ;;  %v5896_v57 = vld [vmem:[#allocation16 + $0x7a8] sm:$0xff] }
 0x9b5   : > { %v18393_v11 = vpack.c.bf16 %v9513_v17, %v9497_v8  ;;  %9286 = vmatprep.subr.bf16.mxu1 %v14423_v39  ;;  %v5904_v22 = vld [vmem:[#allocation16 + $0x7e8] sm:$0xff] }
 0x9b6   : > { %v6160_v39 = vld [vmem:[#allocation16 + $0xfe8] sm:$0xff]  ;;  %v14343_v4 = vcombine.high %v5896_v57, %v5904_v22 }
 0x9b7   : > { %9244 = vmatpush1.bf16.msra.mxu0 %v14166_v61  ;;  %v14599_v5 = vcombine.high %v6152_v9, %v6160_v39  ;;  %v5880_v8 = vld [vmem:[#allocation16 + $0x728] sm:$0xff] }
 0x9b8   : > { %9287 = vmatpush1.bf16.msra.mxu1 %v14422_v44  ;;  %9245 = vmatprep.subr.bf16.mxu0 %v14151_v31  ;;  %v5888_v17 = vld [vmem:[#allocation16 + $0x768] sm:$0xff]  ;;  %v14342_v31 = vcombine.low %v5896_v57, %v5904_v22 }
 0x9b9   : > { %9288 = vmatprep.subr.bf16.mxu1 %v14407_v19  ;;  %v6136_v61 = vld [vmem:[#allocation16 + $0xf28] sm:$0xff]  ;;  %v14598_v19 = vcombine.low %v6152_v9, %v6160_v39  ;;  %v14327_v30 = vcombine.high %v5880_v8, %v5888_v17 }
 0x9ba   : > { %v6144_v44 = vld [vmem:[#allocation16 + $0xf68] sm:$0xff] }
 0x9bb   : > { %9246 = vmatpush1.bf16.msra.mxu0 %v14150_v52  ;;  %v14583_v0 = vcombine.high %v6136_v61, %v6144_v44  ;;  %v6120_v52 = vld [vmem:[#allocation16 + $0xea8] sm:$0xff] }
 0x9bc   : > { %9289 = vmatpush1.bf16.msra.mxu1 %v14406_v2  ;;  %9247 = vmatprep.subr.bf16.mxu0 %v14135_v33  ;;  %v6128_v2 = vld [vmem:[#allocation16 + $0xee8] sm:$0xff]  ;;  %v14326_v33 = vcombine.low %v5880_v8, %v5888_v17 }
 0x9bd   : > { %9290 = vmatprep.subr.bf16.mxu1 %v14391_v50  ;;  %v14582_v50 = vcombine.low %v6136_v61, %v6144_v44  ;;  %v14567_v15 = vcombine.high %v6120_v52, %v6128_v2  ;;  %v5848_v40 = vld [vmem:[#allocation16 + $0x628] sm:$0xff] }
 0x9be   : > { %v5856_v21 = vld [vmem:[#allocation16 + $0x668] sm:$0xff] }
 0x9bf   : > { %9248 = vmatpush1.bf16.msra.mxu0 %v14134_v41  ;;  %v6104_v41 = vld [vmem:[#allocation16 + $0xe28] sm:$0xff]  ;;  %v14295_v32 = vcombine.high %v5848_v40, %v5856_v21 }
 0x9c0   : > { %9291 = vmatpush1.bf16.msra.mxu1 %v14390_v26  ;;  %9249 = vmatprep.subr.bf16.mxu0 %v14119_v14  ;;  %v6112_v26 = vld [vmem:[#allocation16 + $0xe68] sm:$0xff]  ;;  %v14310_v14 = vcombine.low %v5864_v62, %v5872_v6 }
 0x9c1   : > { %9292 = vmatprep.subr.bf16.mxu1 %v14375_v29  ;;  %v14566_v29 = vcombine.low %v6120_v52, %v6128_v2  ;;  %v14551_v18 = vcombine.high %v6104_v41, %v6112_v26  ;;  %v5832_v34 = vld [vmem:[#allocation16 + $0x5a8] sm:$0xff] }
 0x9c2   : > { %v5840_v37 = vld [vmem:[#allocation16 + $0x5e8] sm:$0xff] }
 0x9c3   : > { %9250 = vmatpush1.bf16.msra.mxu0 %v14118_v59  ;;  %v6088_v59 = vld [vmem:[#allocation16 + $0xda8] sm:$0xff]  ;;  %v14279_v57 = vcombine.high %v5832_v34, %v5840_v37 }
 0x9c4   : > { %9293 = vmatpush1.bf16.msra.mxu1 %v14374_v63  ;;  %9251 = vmatprep.subr.bf16.mxu0 %v14103_v10  ;;  %v6096_v63 = vld [vmem:[#allocation16 + $0xde8] sm:$0xff]  ;;  %v14294_v10 = vcombine.low %v5848_v40, %v5856_v21 }
 0x9c5   : > { %9294 = vmatprep.subr.bf16.mxu1 %v14359_v58  ;;  %v14550_v58 = vcombine.low %v6104_v41, %v6112_v26  ;;  %v14535_v22 = vcombine.high %v6088_v59, %v6096_v63  ;;  %v5816_v9 = vld [vmem:[#allocation16 + $0x528] sm:$0xff]  ;;  %v5769_v41 = vld [vmem:[#allocation16 + $0x3b0] sm:$0xff] }
 0x9c6   : > { %v5824_v39 = vld [vmem:[#allocation16 + $0x568] sm:$0xff]  ;;  %v5777_v26 = vld [vmem:[#allocation16 + $0x3f0] sm:$0xff] }
 0x9c7   : > { %9252 = vmatpush1.bf16.msra.mxu0 %v14102_v13  ;;  %v6072_v13 = vld [vmem:[#allocation16 + $0xd28] sm:$0xff]  ;;  %v14263_v8 = vcombine.high %v5816_v9, %v5824_v39 }
 0x9c8   : > { %9295 = vmatpush1.bf16.msra.mxu1 %v14358_v60  ;;  %9253 = vmatprep.subr.bf16.mxu0 %v14343_v4  ;;  %v6080_v60 = vld [vmem:[#allocation16 + $0xd68] sm:$0xff]  ;;  %v14278_v4 = vcombine.low %v5832_v34, %v5840_v37  ;;  %v14217_v37 = vcombine.high %v5769_v41, %v5777_v26 }
 0x9c9   : > { %9296 = vmatprep.subr.bf16.mxu1 %v14599_v5  ;;  %v14534_v5 = vcombine.low %v6088_v59, %v6096_v63  ;;  %v14519_v17 = vcombine.high %v6072_v13, %v6080_v60  ;;  %v5800_v61 = vld [vmem:[#allocation16 + $0x4a8] sm:$0xff]  ;;  %v5753_v63 = vld [vmem:[#allocation16 + $0x330] sm:$0xff] }
 0x9ca   : > { %v5808_v44 = vld [vmem:[#allocation16 + $0x4e8] sm:$0xff] }
 0x9cb   : > { %9254 = vmatpush2.bf16.msra.mxu0 %v14342_v31  ;;  %v6056_v31 = vld [vmem:[#allocation16 + $0xca8] sm:$0xff]  ;;  %v14247_v62 = vcombine.high %v5800_v61, %v5808_v44 }
 0x9cc   : > { %9297 = vmatpush2.bf16.msra.mxu1 %v14598_v19  ;;  %9255 = vmatprep.subr.bf16.mxu0 %v14327_v30  ;;  %v6064_v19 = vld [vmem:[#allocation16 + $0xce8] sm:$0xff]  ;;  %v14262_v30 = vcombine.low %v5816_v9, %v5824_v39  ;;  %v6017_v9 = vld [vmem:[#allocation16 + $0xb70] sm:$0xff]  ;;  %v18399_v39 = vpop.f32.mrf.mxu0 }
 0x9cd   : > { %9298 = vmatprep.subr.bf16.mxu1 %v14583_v0  ;;  %v14518_v0 = vcombine.low %v6072_v13, %v6080_v60  ;;  %v14503_v6 = vcombine.high %v6056_v31, %v6064_v19  ;;  %v5784_v52 = vld [vmem:[#allocation16 + $0x428] sm:$0xff]  ;;  %v18401_v60 = vpop.f32.mrf.mxu1 }
 0x9ce   : > { %v5792_v2 = vld [vmem:[#allocation16 + $0x468] sm:$0xff] }
 0x9cf   : > { %9256 = vmatpush2.bf16.msra.mxu0 %v14326_v33  ;;  %v6040_v33 = vld [vmem:[#allocation16 + $0xc28] sm:$0xff]  ;;  %v14231_v40 = vcombine.high %v5784_v52, %v5792_v2 }
 0x9d0   : > { %9299 = vmatpush2.bf16.msra.mxu1 %v14582_v50  ;;  %9257 = vmatprep.subr.bf16.mxu0 %v14311_v23  ;;  %v6048_v50 = vld [vmem:[#allocation16 + $0xc68] sm:$0xff]  ;;  %v14246_v23 = vcombine.low %v5800_v61, %v5808_v44  ;;  %v5993_v44 = vld [vmem:[#allocation16 + $0xab0] sm:$0xff] }
 0x9d1   : > { %9300 = vmatprep.subr.bf16.mxu1 %v14567_v15  ;;  %v14502_v15 = vcombine.low %v6056_v31, %v6064_v19  ;;  %v14487_v21 = vcombine.high %v6040_v33, %v6048_v50  ;;  %v14486_v34 = vcombine.low %v6040_v33, %v6048_v50  ;;  %v5721_v50 = vld [vmem:[#allocation16 + $0x230] sm:$0xff] }
 0x9d3   : > { %9258 = vmatpush2.bf16.msra.mxu0 %v14310_v14  ;;  %v6025_v14 = vld [vmem:[#allocation16 + $0xbb0] sm:$0xff] }
 0x9d4   : > { %9301 = vmatpush2.bf16.msra.mxu1 %v14566_v29  ;;  %9259 = vmatprep.subr.bf16.mxu0 %v14295_v32  ;;  %v6033_v29 = vld [vmem:[#allocation16 + $0xbf0] sm:$0xff]  ;;  %v14230_v32 = vcombine.low %v5784_v52, %v5792_v2 }
 0x9d5   : > { %9302 = vmatprep.subr.bf16.mxu1 %v14551_v18  ;;  %v6185_v18 = vsub.s32 4, %v17841_v51  ;;  %v14473_v59 = vcombine.high %v6025_v14, %v6033_v29  ;;  %v14472_v13 = vcombine.low %v6025_v14, %v6033_v29 }
 0x9d7   : > { %9260 = vmatpush2.bf16.msra.mxu0 %v14294_v10  ;;  %v5761_v10 = vld [vmem:[#allocation16 + $0x370] sm:$0xff] }
 0x9d8   : > { %9303 = vmatpush2.bf16.msra.mxu1 %v14550_v58  ;;  %9261 = vmatprep.subr.bf16.mxu0 %v14279_v57  ;;  %v6186_v58 = vrot.slane %v18365_v7, %v6185_v18  ;;  %v14216_v57 = vcombine.low %v5769_v41, %v5777_v26  ;;  %v6001_v7 = vld [vmem:[#allocation16 + $0xaf0] sm:$0xff] }
 0x9d9   : > { %9304 = vmatprep.subr.bf16.mxu1 %v14535_v22  ;;  %v6009_v22 = vld [vmem:[#allocation16 + $0xb30] sm:$0xff]  ;;  %v14441_v33 = vcombine.high %v5993_v44, %v6001_v7  ;;  %v14440_v29 = vcombine.low %v5993_v44, %v6001_v7 }
 0x9da   : > { %v14457_v61 = vcombine.high %v6009_v22, %v6017_v9  ;;  %v5945_v44 = vld [vmem:[#allocation16 + $0x930] sm:$0xff] }
 0x9db   : > { %9262 = vmatpush2.bf16.msra.mxu0 %v14278_v4  ;;  %v14201_v4 = vcombine.high %v5753_v63, %v5761_v10  ;;  %v5953_v7 = vld [vmem:[#allocation16 + $0x970] sm:$0xff] }
 0x9dc   : > { %9305 = vmatpush2.bf16.msra.mxu1 %v14534_v5  ;;  %9263 = vmatprep.subr.bf16.mxu0 %v14263_v8  ;;  %v5737_v5 = vld [vmem:[#allocation16 + $0x2b0] sm:$0xff] }
 0x9dd   : > { %9306 = vmatprep.subr.bf16.mxu1 %v14519_v17  ;;  %v5745_v8 = vld [vmem:[#allocation16 + $0x2f0] sm:$0xff] }
 0x9de   : > { %v14184_v26 = vcombine.low %v5737_v5, %v5745_v8 }
 0x9df   : > { %9264 = vmatpush2.bf16.msra.mxu0 %v14262_v30  ;;  %v14200_v30 = vcombine.low %v5753_v63, %v5761_v10  ;;  %v5713_v63 = vld [vmem:[#allocation16 + $0x1f0] sm:$0xff] }
 0x9e0   : > { %9307 = vmatpush2.bf16.msra.mxu1 %v14518_v0  ;;  %9265 = vmatprep.subr.bf16.mxu0 %v14247_v62  ;;  %v14456_v62 = vcombine.low %v6009_v22, %v6017_v9  ;;  %v5961_v10 = vld [vmem:[#allocation16 + $0x9b0] sm:$0xff] }
 0x9e1   : > { %9308 = vmatprep.subr.bf16.mxu1 %v14503_v6  ;;  %v14185_v6 = vcombine.high %v5737_v5, %v5745_v8 }
 0x9e3   : > { %9266 = vmatpush2.bf16.msra.mxu0 %v14246_v23  ;;  %v5729_v23 = vld [vmem:[#allocation16 + $0x270] sm:$0xff] }
 0x9e4   : > { %9309 = vmatpush2.bf16.msra.mxu1 %v14502_v15  ;;  %9267 = vmatprep.subr.bf16.mxu0 %v14231_v40  ;;  %v5977_v40 = vld [vmem:[#allocation16 + $0xa30] sm:$0xff] }
 0x9e5   : > { %9310 = vmatprep.subr.bf16.mxu1 %v14487_v21  ;;  %v5985_v21 = vld [vmem:[#allocation16 + $0xa70] sm:$0xff] }
 0x9e7   : > { %9268 = vmatpush2.bf16.msra.mxu0 %v14230_v32  ;;  %v14169_v32 = vcombine.high %v5721_v50, %v5729_v23 }
 0x9e8   : > { %9311 = vmatpush2.bf16.msra.mxu1 %v14486_v34  ;;  %9323 = vmatprep.subr.bf16.mxu0 %v14217_v37  ;;  %v14425_v37 = vcombine.high %v5977_v40, %v5985_v21 }
 0x9e9   : > { %9366 = vmatprep.subr.bf16.mxu1 %v14473_v59  ;;  %v5705_v59 = vld [vmem:[#allocation16 + $0x1b0] sm:$0xff] }
 0x9ea   : > { %v9013_v17 = vpop.f32.mrf.mxu0  ;;  %9270 = vmatmul.mubr.bf16.vlgmr.msra.gmra.mxu0 %v18341_v12 }
 0x9eb   : > { %v9014_v31 = vadd.f32 %v9013_v17, %v6186_v58  ;;  %v9056_v19 = vpop.f32.mrf.mxu1  ;;  %9313 = vmatmul.mubr.bf16.vlgmr.msra.gmra.mxu1 %v18343_v46  ;;  %9324 = vmatpush1.bf16.msra.mxu0 %v14216_v57  ;;  %v5969_v57 = vld [vmem:[#allocation16 + $0x9f0] sm:$0xff] }
 0x9ec   : > { %9355 = vmatprep.mubr.bf16.mxu0 %v18337_v48  ;;  %9367 = vmatpush1.bf16.msra.mxu1 %v14472_v13  ;;  %v18406_v0 = vpop.f32.mrf.mxu0  ;;  %v14168_v13 = vcombine.low %v5721_v50, %v5729_v23  ;;  %v14409_v8 = vcombine.high %v5961_v10, %v5969_v57  ;;  %v5689_v17 = vld [vmem:[#allocation16 + $0x130] sm:$0xff] }
 0x9ed   : > { %v9057_v52 = vadd.f32 %v9056_v19, %v9014_v31  ;;  %9398 = vmatprep.mubr.bf16.mxu1 %v18339_v49  ;;  %v18409_v2 = vpop.f32.mrf.mxu1  ;;  %9325 = vmatprep.subr.bf16.mxu0 %v14201_v4  ;;  %v14153_v4 = vcombine.high %v5705_v59, %v5713_v63  ;;  %v14152_v31 = vcombine.low %v5705_v59, %v5713_v63  ;;  %v5937_v50 = vld [vmem:[#allocation16 + $0x8f0] sm:$0xff] }
 0x9ee   : > { %v9017_v15 = vpop.f32.mrf.mxu0  ;;  %9368 = vmatprep.subr.bf16.mxu1 %v14457_v61  ;;  %v5697_v61 = vld [vmem:[#allocation16 + $0x170] sm:$0xff]  ;;  %v14408_v19 = vcombine.low %v5961_v10, %v5969_v57 }
 0x9ef   : > { %v9018_v41 = vadd.f32 %v9017_v15, %v6186_v58  ;;  %9326 = vmatpush1.bf16.msra.mxu0 %v14200_v30  ;;  %v9060_v14 = vpop.f32.mrf.mxu1  ;;  %v9499_v22 = vmax.f32 %v9057_v52, 0.0  ;;  %v14424_v58 = vcombine.low %v5977_v40, %v5985_v21  ;;  %v14137_v30 = vcombine.high %v5689_v17, %v5697_v61  ;;  %v5681_v52 = vld [vmem:[#allocation16 + $0xf0] sm:$0xff] }
 0x9f0   : > { %9369 = vmatpush1.bf16.msra.mxu1 %v14456_v62  ;;  %9327 = vmatprep.subr.bf16.mxu0 %v14185_v6  ;;  %v14393_v62 = vcombine.high %v5945_v44, %v5953_v7  ;;  %v5673_v6 = vld [vmem:[#allocation16 + $0xb0] sm:$0xff]  ;;  %v14136_v23 = vcombine.low %v5689_v17, %v5697_v61  ;;  %v14392_v15 = vcombine.low %v5945_v44, %v5953_v7 }
 0x9f1   : > { %v9061_v34 = vadd.f32 %v9060_v14, %v9018_v41  ;;  %9370 = vmatprep.subr.bf16.mxu1 %v14441_v33  ;;  %v5929_v33 = vld [vmem:[#allocation16 + $0x8b0] sm:$0xff]  ;;  %v14121_v40 = vcombine.high %v5673_v6, %v5681_v52 }
 0x9f2   : > { %v14377_v21 = vcombine.high %v5929_v33, %v5937_v50  ;;  %v5657_v41 = vld [vmem:[#allocation16 + $0x30] sm:$0xff] }
 0x9f3   : > { %v9515_v9 = vmax.f32 %v9061_v34, 0.0  ;;  %9328 = vmatpush1.bf16.msra.mxu0 %v14184_v26  ;;  %v5665_v26 = vld [vmem:[#allocation16 + $0x70] sm:$0xff]  ;;  %v14376_v34 = vcombine.low %v5929_v33, %v5937_v50 }
 0x9f4   : > { %9371 = vmatpush1.bf16.msra.mxu1 %v14440_v29  ;;  %9329 = vmatprep.subr.bf16.mxu0 %v14169_v32  ;;  %v5913_v14 = vld [vmem:[#allocation16 + $0x830] sm:$0xff]  ;;  %v14120_v32 = vcombine.low %v5673_v6, %v5681_v52 }
 0x9f5   : > { %v18411_v5 = vpack.c.bf16 %v9515_v9, %v9499_v22  ;;  %9372 = vmatprep.subr.bf16.mxu1 %v14425_v37  ;;  %v5921_v29 = vld [vmem:[#allocation16 + $0x870] sm:$0xff]  ;;  %v14105_v37 = vcombine.high %v5657_v41, %v5665_v26  ;;  %v14104_v9 = vcombine.low %v5657_v41, %v5665_v26 }
 0x9f6   : > { %v14361_v59 = vcombine.high %v5913_v14, %v5921_v29  ;;  %v5897_v63 = vld [vmem:[#allocation16 + $0x7b0] sm:$0xff] }
 0x9f7   : > { %9330 = vmatpush1.bf16.msra.mxu0 %v14168_v13  ;;  %v5905_v10 = vld [vmem:[#allocation16 + $0x7f0] sm:$0xff]  ;;  %v14360_v13 = vcombine.low %v5913_v14, %v5921_v29 }
 0x9f8   : > { %9373 = vmatpush1.bf16.msra.mxu1 %v14424_v58  ;;  %9331 = vmatprep.subr.bf16.mxu0 %v14153_v4  ;;  %v6153_v57 = vld [vmem:[#allocation16 + $0xfb0] sm:$0xff]  ;;  %v14345_v58 = vcombine.high %v5897_v63, %v5905_v10  ;;  %v14344_v7 = vcombine.low %v5897_v63, %v5905_v10 }
 0x9f9   : > { %9374 = vmatprep.subr.bf16.mxu1 %v14409_v8  ;;  %v6161_v22 = vld [vmem:[#allocation16 + $0xff0] sm:$0xff] }
 0x9fa   : > { %v14601_v4 = vcombine.high %v6153_v57, %v6161_v22  ;;  %v5881_v8 = vld [vmem:[#allocation16 + $0x730] sm:$0xff] }
 0x9fb   : > { %9332 = vmatpush1.bf16.msra.mxu0 %v14152_v31  ;;  %v5889_v17 = vld [vmem:[#allocation16 + $0x770] sm:$0xff]  ;;  %v14600_v31 = vcombine.low %v6153_v57, %v6161_v22 }
 0x9fc   : > { %9375 = vmatpush1.bf16.msra.mxu1 %v14408_v19  ;;  %9333 = vmatprep.subr.bf16.mxu0 %v14137_v30  ;;  %v6137_v61 = vld [vmem:[#allocation16 + $0xf30] sm:$0xff]  ;;  %v14329_v19 = vcombine.high %v5881_v8, %v5889_v17  ;;  %v14328_v50 = vcombine.low %v5881_v8, %v5889_v17 }
 0x9fd   : > { %9376 = vmatprep.subr.bf16.mxu1 %v14393_v62  ;;  %v6145_v44 = vld [vmem:[#allocation16 + $0xf70] sm:$0xff] }
 0x9fe   : > { %v14585_v30 = vcombine.high %v6137_v61, %v6145_v44  ;;  %v5865_v62 = vld [vmem:[#allocation16 + $0x6b0] sm:$0xff] }
 0x9ff   : > { %9334 = vmatpush1.bf16.msra.mxu0 %v14136_v23  ;;  %v5873_v6 = vld [vmem:[#allocation16 + $0x6f0] sm:$0xff]  ;;  %v14584_v23 = vcombine.low %v6137_v61, %v6145_v44 }
 0xa00   : > { %9377 = vmatpush1.bf16.msra.mxu1 %v14392_v15  ;;  %9335 = vmatprep.subr.bf16.mxu0 %v14121_v40  ;;  %v6121_v52 = vld [vmem:[#allocation16 + $0xeb0] sm:$0xff]  ;;  %v14313_v15 = vcombine.high %v5865_v62, %v5873_v6  ;;  %v14312_v29 = vcombine.low %v5865_v62, %v5873_v6 }
 0xa01   : > { %9378 = vmatprep.subr.bf16.mxu1 %v14377_v21  ;;  %v6129_v33 = vld [vmem:[#allocation16 + $0xef0] sm:$0xff] }
 0xa02   : > { %v14569_v40 = vcombine.high %v6121_v52, %v6129_v33  ;;  %v5849_v21 = vld [vmem:[#allocation16 + $0x630] sm:$0xff] }
 0xa03   : > { %9336 = vmatpush1.bf16.msra.mxu0 %v14120_v32  ;;  %v5857_v41 = vld [vmem:[#allocation16 + $0x670] sm:$0xff]  ;;  %v14568_v32 = vcombine.low %v6121_v52, %v6129_v33 }
 0xa04   : > { %9379 = vmatpush1.bf16.msra.mxu1 %v14376_v34  ;;  %9337 = vmatprep.subr.bf16.mxu0 %v14105_v37  ;;  %v6105_v26 = vld [vmem:[#allocation16 + $0xe30] sm:$0xff]  ;;  %v14297_v34 = vcombine.high %v5849_v21, %v5857_v41  ;;  %v14296_v22 = vcombine.low %v5849_v21, %v5857_v41 }
 0xa05   : > { %9380 = vmatprep.subr.bf16.mxu1 %v14361_v59  ;;  %v6113_v14 = vld [vmem:[#allocation16 + $0xe70] sm:$0xff] }
 0xa06   : > { %v14553_v37 = vcombine.high %v6105_v26, %v6113_v14  ;;  %v5833_v59 = vld [vmem:[#allocation16 + $0x5b0] sm:$0xff] }
 0xa07   : > { %9338 = vmatpush1.bf16.msra.mxu0 %v14104_v9  ;;  %v5841_v63 = vld [vmem:[#allocation16 + $0x5f0] sm:$0xff]  ;;  %v14552_v9 = vcombine.low %v6105_v26, %v6113_v14 }
 0xa08   : > { %9381 = vmatpush1.bf16.msra.mxu1 %v14360_v13  ;;  %9339 = vmatprep.subr.bf16.mxu0 %v14345_v58  ;;  %v6089_v10 = vld [vmem:[#allocation16 + $0xdb0] sm:$0xff]  ;;  %v14281_v13 = vcombine.high %v5833_v59, %v5841_v63  ;;  %v14280_v44 = vcombine.low %v5833_v59, %v5841_v63  ;;  %v5778_v59 = vld [vmem:[#allocation16 + $0x3f8] sm:$0xff] }
 0xa09   : > { %9382 = vmatprep.subr.bf16.mxu1 %v14601_v4  ;;  %v6097_v57 = vld [vmem:[#allocation16 + $0xdf0] sm:$0xff]  ;;  %v6026_v63 = vld [vmem:[#allocation16 + $0xbb8] sm:$0xff] }
 0xa0a   : > { %v14537_v58 = vcombine.high %v6089_v10, %v6097_v57  ;;  %v5817_v4 = vld [vmem:[#allocation16 + $0x530] sm:$0xff] }
 0xa0b   : > { %9340 = vmatpush2.bf16.msra.mxu0 %v14344_v7  ;;  %v5825_v8 = vld [vmem:[#allocation16 + $0x570] sm:$0xff]  ;;  %v14536_v7 = vcombine.low %v6089_v10, %v6097_v57  ;;  %v6034_v10 = vld [vmem:[#allocation16 + $0xbf8] sm:$0xff] }
 0xa0c   : > { %9383 = vmatpush2.bf16.msra.mxu1 %v14600_v31  ;;  %9341 = vmatprep.subr.bf16.mxu0 %v14329_v19  ;;  %v6073_v17 = vld [vmem:[#allocation16 + $0xd30] sm:$0xff]  ;;  %v14265_v31 = vcombine.high %v5817_v4, %v5825_v8  ;;  %v14264_v33 = vcombine.low %v5817_v4, %v5825_v8  ;;  %v5754_v4 = vld [vmem:[#allocation16 + $0x338] sm:$0xff] }
 0xa0d   : > { %9384 = vmatprep.subr.bf16.mxu1 %v14585_v30  ;;  %v6081_v61 = vld [vmem:[#allocation16 + $0xd70] sm:$0xff]  ;;  %v5762_v8 = vld [vmem:[#allocation16 + $0x378] sm:$0xff] }
 0xa0e   : > { %v14521_v19 = vcombine.high %v6073_v17, %v6081_v61  ;;  %v5801_v30 = vld [vmem:[#allocation16 + $0x4b0] sm:$0xff] }
 0xa0f   : > { %9342 = vmatpush2.bf16.msra.mxu0 %v14328_v50  ;;  %v5809_v62 = vld [vmem:[#allocation16 + $0x4f0] sm:$0xff]  ;;  %v14520_v50 = vcombine.low %v6073_v17, %v6081_v61  ;;  %v18414_v17 = vld [vmem:[#allocation17] sm:$0xff] }
 0xa10   : > { %9385 = vmatpush2.bf16.msra.mxu1 %v14584_v23  ;;  %9343 = vmatprep.subr.bf16.mxu0 %v14313_v15  ;;  %v6057_v6 = vld [vmem:[#allocation16 + $0xcb0] sm:$0xff]  ;;  %v14249_v23 = vcombine.high %v5801_v30, %v5809_v62  ;;  %v14248_v14 = vcombine.low %v5801_v30, %v5809_v62  ;;  %v14474_v30 = vcombine.low %v6026_v63, %v6034_v10  ;;  %v18421_v62 = vpop.f32.mrf.mxu1 }
 0xa11   : > { %9386 = vmatprep.subr.bf16.mxu1 %v14569_v40  ;;  %v6065_v52 = vld [vmem:[#allocation16 + $0xcf0] sm:$0xff] }
 0xa12   : > { %v14505_v15 = vcombine.high %v6057_v6, %v6065_v52  ;;  %v5785_v40 = vld [vmem:[#allocation16 + $0x430] sm:$0xff] }
 0xa13   : > { %9344 = vmatpush2.bf16.msra.mxu0 %v14312_v29  ;;  %v5793_v21 = vld [vmem:[#allocation16 + $0x470] sm:$0xff]  ;;  %v14504_v29 = vcombine.low %v6057_v6, %v6065_v52  ;;  %v14203_v6 = vcombine.high %v5754_v4, %v5762_v8  ;;  %v5738_v52 = vld [vmem:[#allocation16 + $0x2b8] sm:$0xff] }
 0xa14   : > { %9387 = vmatpush2.bf16.msra.mxu1 %v14568_v32  ;;  %9345 = vmatprep.subr.bf16.mxu0 %v14297_v34  ;;  %v6041_v41 = vld [vmem:[#allocation16 + $0xc30] sm:$0xff]  ;;  %v14233_v32 = vcombine.high %v5785_v40, %v5793_v21  ;;  %v14232_v57 = vcombine.low %v5785_v40, %v5793_v21  ;;  %v6002_v40 = vld [vmem:[#allocation16 + $0xaf8] sm:$0xff] }
 0xa15   : > { %9388 = vmatprep.subr.bf16.mxu1 %v14553_v37  ;;  %v6049_v26 = vld [vmem:[#allocation16 + $0xc70] sm:$0xff]  ;;  %v5770_v37 = vld [vmem:[#allocation16 + $0x3b8] sm:$0xff] }
 0xa16   : > { %v14489_v34 = vcombine.high %v6041_v41, %v6049_v26 }
 0xa17   : > { %9346 = vmatpush2.bf16.msra.mxu0 %v14296_v22  ;;  %v6193_v22 = vsub.s32 6, %v17841_v51 }
 0xa18   : > { %9389 = vmatpush2.bf16.msra.mxu1 %v14552_v9  ;;  %9347 = vmatprep.subr.bf16.mxu0 %v14281_v13  ;;  %v14488_v9 = vcombine.low %v6041_v41, %v6049_v26  ;;  %v14219_v13 = vcombine.high %v5770_v37, %v5778_v59  ;;  %v14202_v26 = vcombine.low %v5754_v4, %v5762_v8 }
 0xa19   : > { %9390 = vmatprep.subr.bf16.mxu1 %v14537_v58  ;;  %v14475_v58 = vcombine.high %v6026_v63, %v6034_v10  ;;  %v6194_v61 = vrot.slane %v18414_v17, %v6193_v22  ;;  %v5722_v63 = vld [vmem:[#allocation16 + $0x238] sm:$0xff] }
 0xa1a   : > { %v5730_v10 = vld [vmem:[#allocation16 + $0x278] sm:$0xff] }
 0xa1b   : > { %9348 = vmatpush2.bf16.msra.mxu0 %v14280_v44  ;;  %v14218_v44 = vcombine.low %v5770_v37, %v5778_v59 }
 0xa1c   : > { %9391 = vmatpush2.bf16.msra.mxu1 %v14536_v7  ;;  %9349 = vmatprep.subr.bf16.mxu0 %v14265_v31  ;;  %v6010_v7 = vld [vmem:[#allocation16 + $0xb38] sm:$0xff] }
 0xa1d   : > { %9392 = vmatprep.subr.bf16.mxu1 %v14521_v19  ;;  %v6018_v31 = vld [vmem:[#allocation16 + $0xb78] sm:$0xff]  ;;  %v18419_v19 = vpop.f32.mrf.mxu0 }
 0xa1f   : > { %9350 = vmatpush2.bf16.msra.mxu0 %v14264_v33  ;;  %v5746_v33 = vld [vmem:[#allocation16 + $0x2f8] sm:$0xff] }
 0xa20   : > { %9393 = vmatpush2.bf16.msra.mxu1 %v14520_v50  ;;  %9351 = vmatprep.subr.bf16.mxu0 %v14249_v23  ;;  %v14459_v23 = vcombine.high %v6010_v7, %v6018_v31 }
 0xa21   : > { %9394 = vmatprep.subr.bf16.mxu1 %v14505_v15  ;;  %v5994_v15 = vld [vmem:[#allocation16 + $0xab8] sm:$0xff] }
 0xa22   : > { %v14443_v59 = vcombine.high %v5994_v15, %v6002_v40  ;;  %v14442_v8 = vcombine.low %v5994_v15, %v6002_v40  ;;  %v5690_v40 = vld [vmem:[#allocation16 + $0x138] sm:$0xff] }
 0xa23   : > { %9352 = vmatpush2.bf16.msra.mxu0 %v14248_v14 }
 0xa24   : > { %9395 = vmatpush2.bf16.msra.mxu1 %v14504_v29  ;;  %9353 = vmatprep.subr.bf16.mxu0 %v14233_v32  ;;  %v14458_v29 = vcombine.low %v6010_v7, %v6018_v31  ;;  %v14187_v32 = vcombine.high %v5738_v52, %v5746_v33  ;;  %v5706_v31 = vld [vmem:[#allocation16 + $0x1b8] sm:$0xff] }
 0xa25   : > { %9396 = vmatprep.subr.bf16.mxu1 %v14489_v34 }
 0xa27   : > { %9354 = vmatpush2.bf16.msra.mxu0 %v14232_v57 }
 0xa28   : > { %9397 = vmatpush2.bf16.msra.mxu1 %v14488_v9  ;;  %9409 = vmatprep.subr.bf16.mxu0 %v14219_v13  ;;  %v5978_v9 = vld [vmem:[#allocation16 + $0xa38] sm:$0xff] }
 0xa29   : > { %9452 = vmatprep.subr.bf16.mxu1 %v14475_v58  ;;  %v5986_v13 = vld [vmem:[#allocation16 + $0xa78] sm:$0xff] }
 0xa2a   : > { %v9099_v50 = vpop.f32.mrf.mxu0  ;;  %9356 = vmatmul.mubr.bf16.vlgmr.msra.gmra.mxu0 %v18341_v12 }
 0xa2b   : > { %v9100_v21 = vadd.f32 %v9099_v50, %v6194_v61  ;;  %v9142_v41 = vpop.f32.mrf.mxu1  ;;  %9399 = vmatmul.mubr.bf16.vlgmr.msra.gmra.mxu1 %v18343_v46  ;;  %9410 = vmatpush1.bf16.msra.mxu0 %v14218_v44  ;;  %v14171_v44 = vcombine.high %v5722_v63, %v5730_v10  ;;  %v5970_v50 = vld [vmem:[#allocation16 + $0x9f8] sm:$0xff] }
 0xa2c   : > { %9441 = vmatprep.mubr.bf16.mxu0 %v18337_v48  ;;  %9453 = vmatpush1.bf16.msra.mxu1 %v14474_v30  ;;  %v18426_v14 = vpop.f32.mrf.mxu0  ;;  %v14186_v48 = vcombine.low %v5738_v52, %v5746_v33  ;;  %v5714_v30 = vld [vmem:[#allocation16 + $0x1f8] sm:$0xff] }
 0xa2d   : > { %v9143_v34 = vadd.f32 %v9142_v41, %v9100_v21  ;;  %9484 = vmatprep.mubr.bf16.mxu1 %v18339_v49  ;;  %v18429_v37 = vpop.f32.mrf.mxu1  ;;  %9411 = vmatprep.subr.bf16.mxu0 %v14203_v6  ;;  %v14427_v49 = vcombine.high %v5978_v9, %v5986_v13  ;;  %v5962_v6 = vld [vmem:[#allocation16 + $0x9b8] sm:$0xff]  ;;  %v14155_v52 = vcombine.high %v5706_v31, %v5714_v30 }
 0xa2e   : > { %v9103_v57 = vpop.f32.mrf.mxu0  ;;  %9454 = vmatprep.subr.bf16.mxu1 %v14459_v23  ;;  %v14170_v23 = vcombine.low %v5722_v63, %v5730_v10  ;;  %v14411_v15 = vcombine.high %v5962_v6, %v5970_v50  ;;  %v5674_v10 = vld [vmem:[#allocation16 + $0xb8] sm:$0xff] }
 0xa2f   : > { %v9104_v58 = vadd.f32 %v9103_v57, %v6194_v61  ;;  %9412 = vmatpush1.bf16.msra.mxu0 %v14202_v26  ;;  %v9146_v4 = vpop.f32.mrf.mxu1  ;;  %v9501_v21 = vmax.f32 %v9143_v34, 0.0  ;;  %v14426_v61 = vcombine.low %v5978_v9, %v5986_v13  ;;  %v5698_v26 = vld [vmem:[#allocation16 + $0x178] sm:$0xff]  ;;  %v14410_v34 = vcombine.low %v5962_v6, %v5970_v50 }
 0xa30   : > { %9455 = vmatpush1.bf16.msra.mxu1 %v14458_v29  ;;  %9413 = vmatprep.subr.bf16.mxu0 %v14187_v32  ;;  %v5946_v29 = vld [vmem:[#allocation16 + $0x938] sm:$0xff]  ;;  %v14139_v57 = vcombine.high %v5690_v40, %v5698_v26 }
 0xa31   : > { %v9147_v7 = vadd.f32 %v9146_v4, %v9104_v58  ;;  %9456 = vmatprep.subr.bf16.mxu1 %v14443_v59  ;;  %v5954_v32 = vld [vmem:[#allocation16 + $0x978] sm:$0xff]  ;;  %v14154_v59 = vcombine.low %v5706_v31, %v5714_v30 }
 0xa32   : > { %v14395_v63 = vcombine.high %v5946_v29, %v5954_v32  ;;  %v5682_v58 = vld [vmem:[#allocation16 + $0xf8] sm:$0xff]  ;;  %v14394_v4 = vcombine.low %v5946_v29, %v5954_v32 }
 0xa33   : > { %v9517_v41 = vmax.f32 %v9147_v7, 0.0  ;;  %9414 = vmatpush1.bf16.msra.mxu0 %v14186_v48  ;;  %v5930_v9 = vld [vmem:[#allocation16 + $0x8b8] sm:$0xff]  ;;  %v14138_v48 = vcombine.low %v5690_v40, %v5698_v26  ;;  %v14122_v6 = vcombine.low %v5674_v10, %v5682_v58 }
 0xa34   : > { %9457 = vmatpush1.bf16.msra.mxu1 %v14442_v8  ;;  %9415 = vmatprep.subr.bf16.mxu0 %v14171_v44  ;;  %v5938_v13 = vld [vmem:[#allocation16 + $0x8f8] sm:$0xff]  ;;  %v14123_v8 = vcombine.high %v5674_v10, %v5682_v58 }
 0xa35   : > { %v18431_v33 = vpack.c.bf16 %v9517_v41, %v9501_v21  ;;  %9458 = vmatprep.subr.bf16.mxu1 %v14427_v49  ;;  %v14379_v44 = vcombine.high %v5930_v9, %v5938_v13  ;;  %v5658_v7 = vld [vmem:[#allocation16 + $0x38] sm:$0xff]  ;;  %v14378_v50 = vcombine.low %v5930_v9, %v5938_v13 }
 0xa36   : > { %v5666_v49 = vld [vmem:[#allocation16 + $0x78] sm:$0xff] }
 0xa37   : > { %9416 = vmatpush1.bf16.msra.mxu0 %v14170_v23  ;;  %v5914_v31 = vld [vmem:[#allocation16 + $0x838] sm:$0xff]  ;;  %v14107_v21 = vcombine.high %v5658_v7, %v5666_v49  ;;  %v14106_v40 = vcombine.low %v5658_v7, %v5666_v49 }
 0xa38   : > { %9459 = vmatpush1.bf16.msra.mxu1 %v14426_v61  ;;  %9417 = vmatprep.subr.bf16.mxu0 %v14155_v52  ;;  %v5922_v30 = vld [vmem:[#allocation16 + $0x878] sm:$0xff] }
 0xa39   : > { %9460 = vmatprep.subr.bf16.mxu1 %v14411_v15  ;;  %v14363_v41 = vcombine.high %v5914_v31, %v5922_v30  ;;  %v5898_v23 = vld [vmem:[#allocation16 + $0x7b8] sm:$0xff]  ;;  %v14362_v26 = vcombine.low %v5914_v31, %v5922_v30 }
 0xa3a   : > { %v5906_v61 = vld [vmem:[#allocation16 + $0x7f8] sm:$0xff] }
 0xa3b   : > { %9418 = vmatpush1.bf16.msra.mxu0 %v14154_v59  ;;  %v6154_v52 = vld [vmem:[#allocation16 + $0xfb8] sm:$0xff]  ;;  %v14347_v29 = vcombine.high %v5898_v23, %v5906_v61  ;;  %v14346_v10 = vcombine.low %v5898_v23, %v5906_v61 }
 0xa3c   : > { %9461 = vmatpush1.bf16.msra.mxu1 %v14410_v34  ;;  %9419 = vmatprep.subr.bf16.mxu0 %v14139_v57  ;;  %v6162_v15 = vld [vmem:[#allocation16 + $0xff8] sm:$0xff] }
 0xa3d   : > { %9462 = vmatprep.subr.bf16.mxu1 %v14395_v63  ;;  %v14603_v32 = vcombine.high %v6154_v52, %v6162_v15  ;;  %v5882_v59 = vld [vmem:[#allocation16 + $0x738] sm:$0xff]  ;;  %v14602_v58 = vcombine.low %v6154_v52, %v6162_v15 }
 0xa3e   : > { %v5890_v34 = vld [vmem:[#allocation16 + $0x778] sm:$0xff] }
 0xa3f   : > { %9420 = vmatpush1.bf16.msra.mxu0 %v14138_v48  ;;  %v6138_v57 = vld [vmem:[#allocation16 + $0xf38] sm:$0xff]  ;;  %v14331_v9 = vcombine.high %v5882_v59, %v5890_v34  ;;  %v14330_v7 = vcombine.low %v5882_v59, %v5890_v34 }
 0xa40   : > { %9463 = vmatpush1.bf16.msra.mxu1 %v14394_v4  ;;  %9421 = vmatprep.subr.bf16.mxu0 %v14123_v8  ;;  %v6146_v63 = vld [vmem:[#allocation16 + $0xf78] sm:$0xff] }
 0xa41   : > { %9464 = vmatprep.subr.bf16.mxu1 %v14379_v44  ;;  %v14587_v13 = vcombine.high %v6138_v57, %v6146_v63  ;;  %v5866_v48 = vld [vmem:[#allocation16 + $0x6b8] sm:$0xff]  ;;  %v14586_v49 = vcombine.low %v6138_v57, %v6146_v63 }
 0xa42   : > { %v5874_v4 = vld [vmem:[#allocation16 + $0x6f8] sm:$0xff] }
 0xa43   : > { %9422 = vmatpush1.bf16.msra.mxu0 %v14122_v6  ;;  %v6122_v8 = vld [vmem:[#allocation16 + $0xeb8] sm:$0xff]  ;;  %v14315_v31 = vcombine.high %v5866_v48, %v5874_v4  ;;  %v14314_v23 = vcombine.low %v5866_v48, %v5874_v4 }
 0xa44   : > { %9465 = vmatpush1.bf16.msra.mxu1 %v14378_v50  ;;  %9423 = vmatprep.subr.bf16.mxu0 %v14107_v21  ;;  %v6130_v44 = vld [vmem:[#allocation16 + $0xef8] sm:$0xff] }
 0xa45   : > { %9466 = vmatprep.subr.bf16.mxu1 %v14363_v41  ;;  %v14571_v30 = vcombine.high %v6122_v8, %v6130_v44  ;;  %v5850_v6 = vld [vmem:[#allocation16 + $0x638] sm:$0xff]  ;;  %v14570_v61 = vcombine.low %v6122_v8, %v6130_v44 }
 0xa46   : > { %v5858_v50 = vld [vmem:[#allocation16 + $0x678] sm:$0xff] }
 0xa47   : > { %9424 = vmatpush1.bf16.msra.mxu0 %v14106_v40  ;;  %v6106_v21 = vld [vmem:[#allocation16 + $0xe38] sm:$0xff]  ;;  %v14299_v52 = vcombine.high %v5850_v6, %v5858_v50  ;;  %v14298_v59 = vcombine.low %v5850_v6, %v5858_v50  ;;  %v6174_v50 = vrot.slane %v18414_v17, %v17844_v53 }
 0xa48   : > { %9467 = vmatpush1.bf16.msra.mxu1 %v14362_v26  ;;  %9425 = vmatprep.subr.bf16.mxu0 %v14347_v29  ;;  %v6114_v41 = vld [vmem:[#allocation16 + $0xe78] sm:$0xff] }
 0xa49   : > { %9468 = vmatprep.subr.bf16.mxu1 %v14603_v32  ;;  %v14555_v15 = vcombine.high %v6106_v21, %v6114_v41  ;;  %v5834_v40 = vld [vmem:[#allocation16 + $0x5b8] sm:$0xff]  ;;  %v14554_v34 = vcombine.low %v6106_v21, %v6114_v41 }
 0xa4a   : > { %v5842_v26 = vld [vmem:[#allocation16 + $0x5f8] sm:$0xff] }
 0xa4b   : > { %9426 = vmatpush2.bf16.msra.mxu0 %v14346_v10  ;;  %v6090_v29 = vld [vmem:[#allocation16 + $0xdb8] sm:$0xff]  ;;  %v14283_v57 = vcombine.high %v5834_v40, %v5842_v26  ;;  %v14282_v48 = vcombine.low %v5834_v40, %v5842_v26  ;;  %v8848_v40 = vadd.f32 %v18381_v20, %v6174_v50 }
 0xa4c   : > { %9469 = vmatpush2.bf16.msra.mxu1 %v14602_v58  ;;  %9427 = vmatprep.subr.bf16.mxu0 %v14331_v9  ;;  %v6098_v32 = vld [vmem:[#allocation16 + $0xdf8] sm:$0xff] }
 0xa4d   : > { %9470 = vmatprep.subr.bf16.mxu1 %v14587_v13  ;;  %v14539_v63 = vcombine.high %v6090_v29, %v6098_v32  ;;  %v5818_v10 = vld [vmem:[#allocation16 + $0x538] sm:$0xff]  ;;  %v14538_v4 = vcombine.low %v6090_v29, %v6098_v32 }
 0xa4e   : > { %v5826_v58 = vld [vmem:[#allocation16 + $0x578] sm:$0xff] }
 0xa4f   : > { %9428 = vmatpush2.bf16.msra.mxu0 %v14330_v7  ;;  %v6074_v9 = vld [vmem:[#allocation16 + $0xd38] sm:$0xff]  ;;  %v14267_v8 = vcombine.high %v5818_v10, %v5826_v58  ;;  %v14266_v6 = vcombine.low %v5818_v10, %v5826_v58 }
 0xa50   : > { %9471 = vmatpush2.bf16.msra.mxu1 %v14586_v49  ;;  %9429 = vmatprep.subr.bf16.mxu0 %v14315_v31  ;;  %v6082_v13 = vld [vmem:[#allocation16 + $0xd78] sm:$0xff] }
 0xa51   : > { %9472 = vmatprep.subr.bf16.mxu1 %v14571_v30  ;;  %v14523_v44 = vcombine.high %v6074_v9, %v6082_v13  ;;  %v5802_v7 = vld [vmem:[#allocation16 + $0x4b8] sm:$0xff]  ;;  %v14522_v21 = vcombine.low %v6074_v9, %v6082_v13  ;;  %v8891_v9 = vadd.f32 %v18383_v16, %v8848_v40 }
 0xa52   : > { %v5810_v49 = vld [vmem:[#allocation16 + $0x4f8] sm:$0xff] }
 0xa53   : > { %9430 = vmatpush2.bf16.msra.mxu0 %v14314_v23  ;;  %v6058_v31 = vld [vmem:[#allocation16 + $0xcb8] sm:$0xff]  ;;  %v14251_v41 = vcombine.high %v5802_v7, %v5810_v49  ;;  %v6182_v23 = vrot.slane %v18414_v17, %v17847_v54 }
 0xa54   : > { %9473 = vmatpush2.bf16.msra.mxu1 %v14570_v61  ;;  %9431 = vmatprep.subr.bf16.mxu0 %v14299_v52  ;;  %v6066_v30 = vld [vmem:[#allocation16 + $0xcf8] sm:$0xff] }
 0xa55   : > { %9474 = vmatprep.subr.bf16.mxu1 %v14555_v15  ;;  %v14507_v61 = vcombine.high %v6058_v31, %v6066_v30  ;;  %v5786_v52 = vld [vmem:[#allocation16 + $0x438] sm:$0xff]  ;;  %v8934_v32 = vadd.f32 %v18399_v39, %v6182_v23  ;;  %v8930_v10 = vadd.f32 %v18388_v35, %v6182_v23  ;;  %v16214_v35 = vld [vmem:[#allocation19 + $0x2e4] ss:$16 sps:$4 sm:$0xff]  }
 0xa56   : > { %v5794_v15 = vld [vmem:[#allocation16 + $0x478] sm:$0xff] }
 0xa57   : > { %9432 = vmatpush2.bf16.msra.mxu0 %v14298_v59  ;;  %v6042_v26 = vld [vmem:[#allocation16 + $0xc38] sm:$0xff]  ;;  %v14250_v59 = vcombine.low %v5802_v7, %v5810_v49  ;;  %v8977_v20 = vadd.f32 %v18401_v60, %v8934_v32  ;;  %v14234_v13 = vcombine.low %v5786_v52, %v5794_v15  ;;  %v16209_v60 = vld [vmem:[#allocation19 + $0xe0] ss:$16 sps:$4 sm:$0xff]  }
 0xa58   : > { %9475 = vmatpush2.bf16.msra.mxu1 %v14554_v34  ;;  %9433 = vmatprep.subr.bf16.mxu0 %v14283_v57  ;;  %v6050_v29 = vld [vmem:[#allocation16 + $0xc78] sm:$0xff]  ;;  %v8844_v34 = vadd.f32 %v18372_v45, %v6174_v50  ;;  %v14506_v57 = vcombine.low %v6058_v31, %v6066_v30  ;;  %v18444_v45 = vld [vmem:[#allocation17 + $0x8] sm:$0xff]  ;;  %v18449_v31 = vpop.f32.mrf.mxu0 }
 0xa59   : > { %9476 = vmatprep.subr.bf16.mxu1 %v14539_v63  ;;  %v14235_v63 = vcombine.high %v5786_v52, %v5794_v15  ;;  %v14491_v58 = vcombine.high %v6042_v26, %v6050_v29  ;;  %v9514_v7 = vmax.f32 %v8977_v20, 0.0  ;;  %v6202_v16 = vrot.slane %v18444_v45, %v17850_v55  ;;  %v16215_v15 = vld [vmem:[#allocation19 + $0xc0] ss:$16 sps:$4 sm:$0xff]   ;;  %v16232_v20 = vld [vmem:[#allocation19 + $0x284] ss:$16 sps:$4 sm:$0xff]  }
 0xa5a   : > { %v8887_v39 = vadd.f32 %v18374_v3, %v8844_v34  ;;  %v16212_v3 = vld [vmem:[#allocation19 + $0x2e0] ss:$16 sps:$4 sm:$0xff]  }
 0xa5b   : > { %9434 = vmatpush2.bf16.msra.mxu0 %v14282_v48  ;;  %v14490_v48 = vcombine.low %v6042_v26, %v6050_v29  ;;  %v16218_v26 = vld [vmem:[#allocation19 + $0x2c0] ss:$16 sps:$4 sm:$0xff]   ;;  %v16223_v29 = vld [vmem:[#allocation19 + $0xa4] ss:$16 sps:$4 sm:$0xff]  }
 0xa5c   : > { %9477 = vmatpush2.bf16.msra.mxu1 %v14538_v4  ;;  %9435 = vmatprep.subr.bf16.mxu0 %v14267_v8  ;;  %v16211_v4 = vld [vmem:[#allocation19 + $0xe4] ss:$16 sps:$4 sm:$0xff]   ;;  %v8973_v8 = vadd.f32 %v18390_v28, %v8930_v10  ;;  %v9496_v49 = vmax.f32 %v8887_v39, 0.0  ;;  %v16224_v10 = vld [vmem:[#allocation19 + $0x2a0] ss:$16 sps:$4 sm:$0xff]  }
 0xa5d   : > { %9478 = vmatprep.subr.bf16.mxu1 %v14523_v44  ;;  %v9512_v44 = vmax.f32 %v8891_v9, 0.0  ;;  %v16217_v28 = vld [vmem:[#allocation19 + $0xc4] ss:$16 sps:$4 sm:$0xff]  }
 0xa5e   : > { %v9498_v30 = vmax.f32 %v8973_v8, 0.0  ;;  %v16235_v8 = vld [vmem:[#allocation19 + $0x64] ss:$16 sps:$4 sm:$0xff]  }
 0xa5f   : > { %9436 = vmatpush2.bf16.msra.mxu0 %v14266_v6  ;;  %v18451_v6 = vpop.f32.mrf.mxu1  ;;  %v18453_v50 = vpack.c.bf16 %v9512_v44, %v9496_v49  ;;  %v16238_v44 = vld [vmem:[#allocation19 + $0x264] ss:$16 sps:$4 sm:$0xff]  }
 0xa60   : > { %9479 = vmatpush2.bf16.msra.mxu1 %v14522_v21  ;;  %9437 = vmatprep.subr.bf16.mxu0 %v14251_v41  ;;  %v16220_v41 = vld [vmem:[#allocation19 + $0x2c4] ss:$16 sps:$4 sm:$0xff]   ;;  %v18456_v23 = vpack.c.bf16 %v9514_v7, %v9498_v30  ;;  %v16233_v7 = vld [vmem:[#allocation19 + $0x60] ss:$16 sps:$4 sm:$0xff]  }
 0xa61   : > { %9480 = vmatprep.subr.bf16.mxu1 %v14507_v61  ;;  %v16244_v49 = vld [vmem:[#allocation19 + $0x244] ss:$16 sps:$4 sm:$0xff]   ;;  %v16242_v30 = vld [vmem:[#allocation19 + $0x240] ss:$16 sps:$4 sm:$0xff]  }
 0xa63   : > { %9438 = vmatpush2.bf16.msra.mxu0 %v14250_v59  ;;  %v16226_v59 = vld [vmem:[#allocation19 + $0x2a4] ss:$16 sps:$4 sm:$0xff]  }
 0xa64   : > { %9481 = vmatpush2.bf16.msra.mxu1 %v14506_v57  ;;  %9439 = vmatprep.subr.bf16.mxu0 %v14235_v63 }
 0xa65   : > { %9482 = vmatprep.subr.bf16.mxu1 %v14491_v58  ;;  %v16229_v58 = vld [vmem:[#allocation19 + $0x84] ss:$16 sps:$4 sm:$0xff]  }
 0xa67   : > { %9440 = vmatpush2.bf16.msra.mxu0 %v14234_v13 }
 0xa68   : > { %9483 = vmatpush2.bf16.msra.mxu1 %v14490_v48  ;;  %12637 = vmatprep.subr.bf16.mxu0 %v16211_v4  ;;  %v16227_v48 = vld [vmem:[#allocation19 + $0x80] ss:$16 sps:$4 sm:$0xff]  }
 0xa69   : > { %12680 = vmatprep.subr.bf16.mxu1 %v16214_v35  ;;  %v16230_v4 = vld [vmem:[#allocation19 + $0x280] ss:$16 sps:$4 sm:$0xff]  }
 0xa6a   : > { %v9185_v21 = vpop.f32.mrf.mxu0  ;;  %9442 = vmatmul.mubr.bf16.vlgmr.msra.gmra.mxu0 %v18341_v12 }
 0xa6b   : > { %v9186_v61 = vadd.f32 %v9185_v21, %v6202_v16  ;;  %v9228_v52 = vpop.f32.mrf.mxu1  ;;  %9485 = vmatmul.mubr.bf16.vlgmr.msra.gmra.mxu1 %v18343_v46  ;;  %12638 = vmatpush1.bf16.msra.mxu0 %v16209_v60  ;;  %v16221_v46 = vld [vmem:[#allocation19 + $0xa0] ss:$16 sps:$4 sm:$0xff]   ;;  %v16241_v60 = vld [vmem:[#allocation19 + $0x44] ss:$16 sps:$4 sm:$0xff]  }
 0xa6c   : > { %12669 = vmatprep.mubr.bf16.mxu0 %v18453_v50  ;;  %12681 = vmatpush1.bf16.msra.mxu1 %v16212_v3  ;;  %v18460_v40 = vpop.f32.mrf.mxu0  ;;  %v16239_v3 = vld [vmem:[#allocation19 + $0x40] ss:$16 sps:$4 sm:$0xff]   ;;  %v16250_v21 = vld [vmem:[#allocation19 + $0x224] ss:$16 sps:$4 sm:$0xff]  }
 0xa6d   : > { %v9229_v32 = vadd.f32 %v9228_v52, %v9186_v61  ;;  %12712 = vmatprep.mubr.bf16.mxu1 %v18456_v23  ;;  %v18463_v12 = vpop.f32.mrf.mxu1  ;;  %12639 = vmatprep.subr.bf16.mxu0 %v16217_v28  ;;  %v16247_v28 = vld [vmem:[#allocation19 + $0x24] ss:$16 sps:$4 sm:$0xff]   ;;  %v16248_v61 = vld [vmem:[#allocation19 + $0x220] ss:$16 sps:$4 sm:$0xff]  }
 0xa6e   : > { %v9189_v34 = vpop.f32.mrf.mxu0  ;;  %12682 = vmatprep.subr.bf16.mxu1 %v16220_v41  ;;  %v16245_v41 = vld [vmem:[#allocation19 + $0x20] ss:$16 sps:$4 sm:$0xff]   ;;  %v16253_v52 = vld [vmem:[#allocation19 + $0x4] ss:$16 sps:$4 sm:$0xff]  }
 0xa6f   : > { %v9190_v57 = vadd.f32 %v9189_v34, %v6202_v16  ;;  %12640 = vmatpush1.bf16.msra.mxu0 %v16215_v15  ;;  %v9232_v63 = vpop.f32.mrf.mxu1  ;;  %v9503_v13 = vmax.f32 %v9229_v32, 0.0  ;;  %v16236_v16 = vld [vmem:[#allocation19 + $0x260] ss:$16 sps:$4 sm:$0xff]   ;;  %v16256_v15 = vld [vmem:[#allocation19 + $0x204] ss:$16 sps:$4 sm:$0xff]  }
 0xa70   : > { %12683 = vmatpush1.bf16.msra.mxu1 %v16218_v26  ;;  %12641 = vmatprep.subr.bf16.mxu0 %v16223_v29  ;;  %v16251_v26 = vld [vmem:[#allocation19] ss:$16 sps:$4 sm:$0xff]   ;;  %v16259_v32 = vld [vmem:[#allocation19 + $0x1e4] ss:$16 sps:$4 sm:$0xff]  }
 0xa71   : > { %v9233_v9 = vadd.f32 %v9232_v63, %v9190_v57  ;;  %12684 = vmatprep.subr.bf16.mxu1 %v16226_v59  ;;  %v16254_v29 = vld [vmem:[#allocation19 + $0x200] ss:$16 sps:$4 sm:$0xff]   ;;  %v16262_v59 = vld [vmem:[#allocation19 + $0x3e4] ss:$16 sps:$4 sm:$0xff]  }
 0xa72   : > { %v16257_v34 = vld [vmem:[#allocation19 + $0x1e0] ss:$16 sps:$4 sm:$0xff]   ;;  %v16268_v63 = vld [vmem:[#allocation19 + $0x3c4] ss:$16 sps:$4 sm:$0xff]  }
 0xa73   : > { %v9519_v39 = vmax.f32 %v9233_v9, 0.0  ;;  %12642 = vmatpush1.bf16.msra.mxu0 %v16221_v46  ;;  %v16260_v57 = vld [vmem:[#allocation19 + $0x3e0] ss:$16 sps:$4 sm:$0xff]   ;;  %v16265_v46 = vld [vmem:[#allocation19 + $0x1c4] ss:$16 sps:$4 sm:$0xff]  }
 0xa74   : > { %12685 = vmatpush1.bf16.msra.mxu1 %v16224_v10  ;;  %12643 = vmatprep.subr.bf16.mxu0 %v16229_v58  ;;  %v16263_v10 = vld [vmem:[#allocation19 + $0x1c0] ss:$16 sps:$4 sm:$0xff]   ;;  %v16271_v9 = vld [vmem:[#allocation19 + $0x1a4] ss:$16 sps:$4 sm:$0xff]  }
 0xa75   : > { %v18465_v35 = vpack.c.bf16 %v9519_v39, %v9503_v13  ;;  %12686 = vmatprep.subr.bf16.mxu1 %v16232_v20  ;;  %v16266_v58 = vld [vmem:[#allocation19 + $0x3c0] ss:$16 sps:$4 sm:$0xff]   ;;  %v16274_v20 = vld [vmem:[#allocation19 + $0x3a4] ss:$16 sps:$4 sm:$0xff]  }
 0xa76   : > { %v16269_v13 = vld [vmem:[#allocation19 + $0x1a0] ss:$16 sps:$4 sm:$0xff]  }
 0xa77   : > { %12644 = vmatpush1.bf16.msra.mxu0 %v16227_v48  ;;  %v16272_v39 = vld [vmem:[#allocation19 + $0x3a0] ss:$16 sps:$4 sm:$0xff]   ;;  %v16277_v48 = vld [vmem:[#allocation19 + $0x184] ss:$16 sps:$4 sm:$0xff]  }
 0xa78   : > { %12687 = vmatpush1.bf16.msra.mxu1 %v16230_v4  ;;  %12645 = vmatprep.subr.bf16.mxu0 %v16235_v8  ;;  %v16280_v4 = vld [vmem:[#allocation19 + $0x384] ss:$16 sps:$4 sm:$0xff]   ;;  %v16275_v8 = vld [vmem:[#allocation19 + $0x180] ss:$16 sps:$4 sm:$0xff]  }
 0xa79   : > { %12688 = vmatprep.subr.bf16.mxu1 %v16238_v44  ;;  %v16278_v44 = vld [vmem:[#allocation19 + $0x380] ss:$16 sps:$4 sm:$0xff]  }
 0xa7b   : > { %12646 = vmatpush1.bf16.msra.mxu0 %v16233_v7  ;;  %v16283_v7 = vld [vmem:[#allocation19 + $0x164] ss:$16 sps:$4 sm:$0xff]  }
 0xa7c   : > { %12689 = vmatpush1.bf16.msra.mxu1 %v16236_v16  ;;  %12647 = vmatprep.subr.bf16.mxu0 %v16241_v60  ;;  %v16286_v16 = vld [vmem:[#allocation19 + $0x364] ss:$16 sps:$4 sm:$0xff]   ;;  %v16281_v60 = vld [vmem:[#allocation19 + $0x160] ss:$16 sps:$4 sm:$0xff]  }
 0xa7d   : > { %12690 = vmatprep.subr.bf16.mxu1 %v16244_v49  ;;  %v6189_v49 = vsub.s32 5, %v17841_v51 }
 0xa7f   : > { %12648 = vmatpush1.bf16.msra.mxu0 %v16239_v3  ;;  %v16284_v3 = vld [vmem:[#allocation19 + $0x360] ss:$16 sps:$4 sm:$0xff]  }
 0xa80   : > { %12691 = vmatpush1.bf16.msra.mxu1 %v16242_v30  ;;  %12649 = vmatprep.subr.bf16.mxu0 %v16247_v28  ;;  %v16289_v30 = vld [vmem:[#allocation19 + $0x144] ss:$16 sps:$4 sm:$0xff]   ;;  %v6197_v28 = vsub.s32 7, %v17841_v51 }
 0xa81   : > { %12692 = vmatprep.subr.bf16.mxu1 %v16250_v21  ;;  %v16292_v21 = vld [vmem:[#allocation19 + $0x344] ss:$16 sps:$4 sm:$0xff]  }
 0xa83   : > { %12650 = vmatpush1.bf16.msra.mxu0 %v16245_v41  ;;  %v16287_v41 = vld [vmem:[#allocation19 + $0x140] ss:$16 sps:$4 sm:$0xff]  }
 0xa84   : > { %12693 = vmatpush1.bf16.msra.mxu1 %v16248_v61  ;;  %12651 = vmatprep.subr.bf16.mxu0 %v16253_v52  ;;  %v6190_v61 = vrot.slane %v18414_v17, %v6189_v49  ;;  %v16290_v52 = vld [vmem:[#allocation19 + $0x340] ss:$16 sps:$4 sm:$0xff]  }
 0xa85   : > { %12694 = vmatprep.subr.bf16.mxu1 %v16256_v15  ;;  %v16295_v15 = vld [vmem:[#allocation19 + $0x124] ss:$16 sps:$4 sm:$0xff]  }
 0xa87   : > { %12652 = vmatpush1.bf16.msra.mxu0 %v16251_v26  ;;  %v6198_v26 = vrot.slane %v18414_v17, %v6197_v28 }
 0xa88   : > { %12695 = vmatpush1.bf16.msra.mxu1 %v16254_v29  ;;  %12653 = vmatprep.subr.bf16.mxu0 %v16259_v32  ;;  %v16298_v29 = vld [vmem:[#allocation19 + $0x324] ss:$16 sps:$4 sm:$0xff]   ;;  %v9020_v32 = vadd.f32 %v18419_v19, %v6190_v61  ;;  %v16299_v19 = vld [vmem:[#allocation19 + $0x100] ss:$16 sps:$4 sm:$0xff]  }
 0xa89   : > { %12696 = vmatprep.subr.bf16.mxu1 %v16262_v59  ;;  %v9106_v59 = vadd.f32 %v18449_v31, %v6198_v26 }
 0xa8a   : > { %v9063_v17 = vadd.f32 %v18421_v62, %v9020_v32  ;;  %v6210_v62 = vrot.slane %v18444_v45, %v17853_v56 }
 0xa8b   : > { %12654 = vmatpush2.bf16.msra.mxu0 %v16257_v34  ;;  %v16293_v34 = vld [vmem:[#allocation19 + $0x120] ss:$16 sps:$4 sm:$0xff]  }
 0xa8c   : > { %12697 = vmatpush2.bf16.msra.mxu1 %v16260_v57  ;;  %12655 = vmatprep.subr.bf16.mxu0 %v16265_v46  ;;  %v9016_v57 = vadd.f32 %v18406_v0, %v6190_v61  ;;  %v16296_v46 = vld [vmem:[#allocation19 + $0x320] ss:$16 sps:$4 sm:$0xff]   ;;  %v16307_v0 = vld [vmem:[#allocation19 + $0x4e4] ss:$16 sps:$4 sm:$0xff]  }
 0xa8d   : > { %12698 = vmatprep.subr.bf16.mxu1 %v16268_v63  ;;  %v16301_v63 = vld [vmem:[#allocation19 + $0x104] ss:$16 sps:$4 sm:$0xff]   ;;  %v16311_v61 = vld [vmem:[#allocation19 + $0x4c0] ss:$16 sps:$4 sm:$0xff]  }
 0xa8e   : > { %v9059_v31 = vadd.f32 %v18409_v2, %v9016_v57  ;;  %v16308_v2 = vld [vmem:[#allocation19 + $0x6e0] ss:$16 sps:$4 sm:$0xff]  }
 0xa8f   : > { %12656 = vmatpush2.bf16.msra.mxu0 %v16263_v10  ;;  %v9102_v10 = vadd.f32 %v18426_v14, %v6198_v26  ;;  %v16319_v26 = vld [vmem:[#allocation19 + $0x4a4] ss:$16 sps:$4 sm:$0xff]  }
 0xa90   : > { %12699 = vmatpush2.bf16.msra.mxu1 %v16266_v58  ;;  %12657 = vmatprep.subr.bf16.mxu0 %v16271_v9  ;;  %v16304_v58 = vld [vmem:[#allocation19 + $0x304] ss:$16 sps:$4 sm:$0xff]   ;;  %v9149_v9 = vadd.f32 %v18451_v6, %v9106_v59  ;;  %v9500_v6 = vmax.f32 %v9059_v31, 0.0 }
 0xa91   : > { %12700 = vmatprep.subr.bf16.mxu1 %v16274_v20  ;;  %v16302_v20 = vld [vmem:[#allocation19 + $0x300] ss:$16 sps:$4 sm:$0xff]   ;;  %v16322_v59 = vld [vmem:[#allocation19 + $0x6a4] ss:$16 sps:$4 sm:$0xff]  }
 0xa92   : > { %v9518_v14 = vmax.f32 %v9149_v9, 0.0  ;;  %v16328_v9 = vld [vmem:[#allocation19 + $0x684] ss:$16 sps:$4 sm:$0xff]  }
 0xa93   : > { %12658 = vmatpush2.bf16.msra.mxu0 %v16269_v13  ;;  %v9145_v13 = vadd.f32 %v18429_v37, %v9102_v10  ;;  %v16313_v37 = vld [vmem:[#allocation19 + $0x4c4] ss:$16 sps:$4 sm:$0xff]   ;;  %v16320_v10 = vld [vmem:[#allocation19 + $0x6a0] ss:$16 sps:$4 sm:$0xff]  }
 0xa94   : > { %12701 = vmatpush2.bf16.msra.mxu1 %v16272_v39  ;;  %12659 = vmatprep.subr.bf16.mxu0 %v16277_v48  ;;  %v16310_v39 = vld [vmem:[#allocation19 + $0x6e4] ss:$16 sps:$4 sm:$0xff]   ;;  %v9516_v48 = vmax.f32 %v9063_v17, 0.0 }
 0xa95   : > { %12702 = vmatprep.subr.bf16.mxu1 %v16280_v4  ;;  %v16305_v4 = vld [vmem:[#allocation19 + $0x4e0] ss:$16 sps:$4 sm:$0xff]  }
 0xa97   : > { %12660 = vmatpush2.bf16.msra.mxu0 %v16275_v8  ;;  %v18485_v8 = vpop.f32.mrf.mxu0 }
 0xa98   : > { %12703 = vmatpush2.bf16.msra.mxu1 %v16278_v44  ;;  %12661 = vmatprep.subr.bf16.mxu0 %v16283_v7  ;;  %v9502_v44 = vmax.f32 %v9145_v13, 0.0  ;;  %v18487_v7 = vpop.f32.mrf.mxu1  ;;  %v16331_v13 = vld [vmem:[#allocation19 + $0x464] ss:$16 sps:$4 sm:$0xff]  }
 0xa99   : > { %12704 = vmatprep.subr.bf16.mxu1 %v16286_v16  ;;  %v18489_v16 = vpack.c.bf16 %v9516_v48, %v9500_v6  ;;  %v16334_v48 = vld [vmem:[#allocation19 + $0x664] ss:$16 sps:$4 sm:$0xff]  }
 0xa9a   : > { %v16340_v6 = vld [vmem:[#allocation19 + $0x644] ss:$16 sps:$4 sm:$0xff]  }
 0xa9b   : > { %12662 = vmatpush2.bf16.msra.mxu0 %v16281_v60 }
 0xa9c   : > { %12705 = vmatpush2.bf16.msra.mxu1 %v16284_v3  ;;  %12663 = vmatprep.subr.bf16.mxu0 %v16289_v30  ;;  %v16316_v3 = vld [vmem:[#allocation19 + $0x6c4] ss:$16 sps:$4 sm:$0xff]   ;;  %v18492_v30 = vpack.c.bf16 %v9518_v14, %v9502_v44  ;;  %v16329_v14 = vld [vmem:[#allocation19 + $0x460] ss:$16 sps:$4 sm:$0xff]  }
 0xa9d   : > { %12706 = vmatprep.subr.bf16.mxu1 %v16292_v21  ;;  %v16338_v44 = vld [vmem:[#allocation19 + $0x640] ss:$16 sps:$4 sm:$0xff]  }
 0xa9f   : > { %12664 = vmatpush2.bf16.msra.mxu0 %v16287_v41 }
 0xaa0   : > { %12707 = vmatpush2.bf16.msra.mxu1 %v16290_v52  ;;  %12665 = vmatprep.subr.bf16.mxu0 %v16295_v15  ;;  %v16314_v15 = vld [vmem:[#allocation19 + $0x6c0] ss:$16 sps:$4 sm:$0xff]  }
 0xaa1   : > { %12708 = vmatprep.subr.bf16.mxu1 %v16298_v29 }
 0xaa3   : > { %12666 = vmatpush2.bf16.msra.mxu0 %v16293_v34 }
 0xaa4   : > { %12709 = vmatpush2.bf16.msra.mxu1 %v16296_v46  ;;  %12667 = vmatprep.subr.bf16.mxu0 %v16301_v63  ;;  %v16317_v46 = vld [vmem:[#allocation19 + $0x4a0] ss:$16 sps:$4 sm:$0xff]  }
 0xaa5   : > { %12710 = vmatprep.subr.bf16.mxu1 %v16304_v58  ;;  %v16325_v58 = vld [vmem:[#allocation19 + $0x484] ss:$16 sps:$4 sm:$0xff]  }
 0xaa7   : > { %12668 = vmatpush2.bf16.msra.mxu0 %v16299_v19 }
 0xaa8   : > { %12711 = vmatpush2.bf16.msra.mxu1 %v16302_v20  ;;  %12723 = vmatprep.subr.bf16.mxu0 %v16307_v0  ;;  %v16323_v20 = vld [vmem:[#allocation19 + $0x480] ss:$16 sps:$4 sm:$0xff]  }
 0xaa9   : > { %12766 = vmatprep.subr.bf16.mxu1 %v16310_v39  ;;  %v16326_v0 = vld [vmem:[#allocation19 + $0x680] ss:$16 sps:$4 sm:$0xff]  }
 0xaaa   : > { %v9271_v60 = vpop.f32.mrf.mxu0  ;;  %12670 = vmatmul.mubr.bf16.vlgmr.msra.gmra.mxu0 %v18377_v47 }
 0xaab   : > { %v9272_v21 = vadd.f32 %v9271_v60, %v6210_v62  ;;  %v9314_v41 = vpop.f32.mrf.mxu1  ;;  %12713 = vmatmul.mubr.bf16.vlgmr.msra.gmra.mxu1 %v18393_v11  ;;  %12724 = vmatpush1.bf16.msra.mxu0 %v16305_v4  ;;  %v16337_v4 = vld [vmem:[#allocation19 + $0x444] ss:$16 sps:$4 sm:$0xff]  }
 0xaac   : > { %12755 = vmatprep.mubr.bf16.mxu0 %v18489_v16  ;;  %12767 = vmatpush1.bf16.msra.mxu1 %v16308_v2  ;;  %v18496_v52 = vpop.f32.mrf.mxu0  ;;  %v16335_v2 = vld [vmem:[#allocation19 + $0x440] ss:$16 sps:$4 sm:$0xff]   ;;  %v16346_v60 = vld [vmem:[#allocation19 + $0x624] ss:$16 sps:$4 sm:$0xff]  }
 0xaad   : > { %v9315_v29 = vadd.f32 %v9314_v41, %v9272_v21  ;;  %12798 = vmatprep.mubr.bf16.mxu1 %v18492_v30  ;;  %v18499_v32 = vpop.f32.mrf.mxu1  ;;  %12725 = vmatprep.subr.bf16.mxu0 %v16313_v37  ;;  %v16343_v37 = vld [vmem:[#allocation19 + $0x424] ss:$16 sps:$4 sm:$0xff]   ;;  %v16344_v21 = vld [vmem:[#allocation19 + $0x620] ss:$16 sps:$4 sm:$0xff]  }
 0xaae   : > { %v9275_v34 = vpop.f32.mrf.mxu0  ;;  %12768 = vmatprep.subr.bf16.mxu1 %v16316_v3  ;;  %v16341_v3 = vld [vmem:[#allocation19 + $0x420] ss:$16 sps:$4 sm:$0xff]   ;;  %v16349_v41 = vld [vmem:[#allocation19 + $0x404] ss:$16 sps:$4 sm:$0xff]  }
 0xaaf   : > { %v9276_v57 = vadd.f32 %v9275_v34, %v6210_v62  ;;  %12726 = vmatpush1.bf16.msra.mxu0 %v16311_v61  ;;  %v9318_v63 = vpop.f32.mrf.mxu1  ;;  %v9505_v19 = vmax.f32 %v9315_v29, 0.0  ;;  %v16332_v62 = vld [vmem:[#allocation19 + $0x660] ss:$16 sps:$4 sm:$0xff]   ;;  %v16352_v61 = vld [vmem:[#allocation19 + $0x604] ss:$16 sps:$4 sm:$0xff]  }
 0xab0   : > { %12769 = vmatpush1.bf16.msra.mxu1 %v16314_v15  ;;  %12727 = vmatprep.subr.bf16.mxu0 %v16319_v26  ;;  %v16347_v15 = vld [vmem:[#allocation19 + $0x400] ss:$16 sps:$4 sm:$0xff]   ;;  %v16355_v29 = vld [vmem:[#allocation19 + $0x5e4] ss:$16 sps:$4 sm:$0xff]  }
 0xab1   : > { %v9319_v17 = vadd.f32 %v9318_v63, %v9276_v57  ;;  %12770 = vmatprep.subr.bf16.mxu1 %v16322_v59  ;;  %v16350_v26 = vld [vmem:[#allocation19 + $0x600] ss:$16 sps:$4 sm:$0xff]   ;;  %v16358_v59 = vld [vmem:[#allocation19 + $0x7e4] ss:$16 sps:$4 sm:$0xff]  }
 0xab2   : > { %v16353_v34 = vld [vmem:[#allocation19 + $0x5e0] ss:$16 sps:$4 sm:$0xff]   ;;  %v16364_v63 = vld [vmem:[#allocation19 + $0x7c4] ss:$16 sps:$4 sm:$0xff]  }
 0xab3   : > { %v9521_v31 = vmax.f32 %v9319_v17, 0.0  ;;  %12728 = vmatpush1.bf16.msra.mxu0 %v16317_v46  ;;  %v16356_v57 = vld [vmem:[#allocation19 + $0x7e0] ss:$16 sps:$4 sm:$0xff]   ;;  %v16361_v46 = vld [vmem:[#allocation19 + $0x5c4] ss:$16 sps:$4 sm:$0xff]  }
 0xab4   : > { %12771 = vmatpush1.bf16.msra.mxu1 %v16320_v10  ;;  %12729 = vmatprep.subr.bf16.mxu0 %v16325_v58  ;;  %v16359_v10 = vld [vmem:[#allocation19 + $0x5c0] ss:$16 sps:$4 sm:$0xff]   ;;  %v16367_v17 = vld [vmem:[#allocation19 + $0x5a4] ss:$16 sps:$4 sm:$0xff]  }
 0xab5   : > { %v18501_v39 = vpack.c.bf16 %v9521_v31, %v9505_v19  ;;  %12772 = vmatprep.subr.bf16.mxu1 %v16328_v9  ;;  %v16362_v58 = vld [vmem:[#allocation19 + $0x7c0] ss:$16 sps:$4 sm:$0xff]   ;;  %v16370_v9 = vld [vmem:[#allocation19 + $0x7a4] ss:$16 sps:$4 sm:$0xff]  }
 0xab6   : > { %v16365_v19 = vld [vmem:[#allocation19 + $0x5a0] ss:$16 sps:$4 sm:$0xff]  }
 0xab7   : > { %12730 = vmatpush1.bf16.msra.mxu0 %v16323_v20  ;;  %v16368_v31 = vld [vmem:[#allocation19 + $0x7a0] ss:$16 sps:$4 sm:$0xff]   ;;  %v16373_v20 = vld [vmem:[#allocation19 + $0x584] ss:$16 sps:$4 sm:$0xff]  }
 0xab8   : > { %12773 = vmatpush1.bf16.msra.mxu1 %v16326_v0  ;;  %12731 = vmatprep.subr.bf16.mxu0 %v16331_v13  ;;  %v16376_v0 = vld [vmem:[#allocation19 + $0x784] ss:$16 sps:$4 sm:$0xff]   ;;  %v16371_v13 = vld [vmem:[#allocation19 + $0x580] ss:$16 sps:$4 sm:$0xff]  }
 0xab9   : > { %12774 = vmatprep.subr.bf16.mxu1 %v16334_v48  ;;  %v16374_v48 = vld [vmem:[#allocation19 + $0x780] ss:$16 sps:$4 sm:$0xff]  }
 0xabb   : > { %12732 = vmatpush1.bf16.msra.mxu0 %v16329_v14  ;;  %v16379_v14 = vld [vmem:[#allocation19 + $0x564] ss:$16 sps:$4 sm:$0xff]  }
 0xabc   : > { %12775 = vmatpush1.bf16.msra.mxu1 %v16332_v62  ;;  %12733 = vmatprep.subr.bf16.mxu0 %v16337_v4  ;;  %v16382_v62 = vld [vmem:[#allocation19 + $0x764] ss:$16 sps:$4 sm:$0xff]   ;;  %v16377_v4 = vld [vmem:[#allocation19 + $0x560] ss:$16 sps:$4 sm:$0xff]  }
 0xabd   : > { %12776 = vmatprep.subr.bf16.mxu1 %v16340_v6  ;;  %v16380_v6 = vld [vmem:[#allocation19 + $0x760] ss:$16 sps:$4 sm:$0xff]  }
 0xabf   : > { %12734 = vmatpush1.bf16.msra.mxu0 %v16335_v2  ;;  %v16385_v2 = vld [vmem:[#allocation19 + $0x544] ss:$16 sps:$4 sm:$0xff]  }
 0xac0   : > { %12777 = vmatpush1.bf16.msra.mxu1 %v16338_v44  ;;  %12735 = vmatprep.subr.bf16.mxu0 %v16343_v37  ;;  %v16388_v44 = vld [vmem:[#allocation19 + $0x744] ss:$16 sps:$4 sm:$0xff]   ;;  %v16383_v37 = vld [vmem:[#allocation19 + $0x540] ss:$16 sps:$4 sm:$0xff]  }
 0xac1   : > { %12778 = vmatprep.subr.bf16.mxu1 %v16346_v60  ;;  %v6206_v60 = vrot.slane %v18444_v45, %v17844_v53 }
 0xac3   : > { %12736 = vmatpush1.bf16.msra.mxu0 %v16341_v3  ;;  %v9277_v3 = vpop.f32.mrf.mxu0 }
 0xac4   : > { %12779 = vmatpush1.bf16.msra.mxu1 %v16344_v21  ;;  %12737 = vmatprep.subr.bf16.mxu0 %v16349_v41  ;;  %v16386_v21 = vld [vmem:[#allocation19 + $0x740] ss:$16 sps:$4 sm:$0xff]   ;;  %v16391_v41 = vld [vmem:[#allocation19 + $0x524] ss:$16 sps:$4 sm:$0xff]  }
 0xac5   : > { %12780 = vmatprep.subr.bf16.mxu1 %v16352_v61  ;;  %v6214_v61 = vrot.slane %v18444_v45, %v17847_v54 }
 0xac7   : > { %12738 = vmatpush1.bf16.msra.mxu0 %v16347_v15  ;;  %v16394_v15 = vld [vmem:[#allocation19 + $0x724] ss:$16 sps:$4 sm:$0xff]  }
 0xac8   : > { %12781 = vmatpush1.bf16.msra.mxu1 %v16350_v26  ;;  %12739 = vmatprep.subr.bf16.mxu0 %v16355_v29  ;;  %v9192_v26 = vadd.f32 %v18485_v8, %v6206_v60  ;;  %v9278_v29 = vadd.f32 %v9277_v3, %v6214_v61 }
 0xac9   : > { %12782 = vmatprep.subr.bf16.mxu1 %v16358_v59  ;;  %v16389_v59 = vld [vmem:[#allocation19 + $0x520] ss:$16 sps:$4 sm:$0xff]  }
 0xacb   : > { %12740 = vmatpush2.bf16.msra.mxu0 %v16353_v34  ;;  %v9188_v34 = vadd.f32 %v18460_v40, %v6206_v60  ;;  %v16403_v40 = vld [vmem:[#allocation19 + $0x8e4] ss:$16 sps:$4 sm:$0xff]  }
 0xacc   : > { %12783 = vmatpush2.bf16.msra.mxu1 %v16356_v57  ;;  %12741 = vmatprep.subr.bf16.mxu0 %v16361_v46  ;;  %v16392_v57 = vld [vmem:[#allocation19 + $0x720] ss:$16 sps:$4 sm:$0xff]   ;;  %v16397_v46 = vld [vmem:[#allocation19 + $0x504] ss:$16 sps:$4 sm:$0xff]  }
 0xacd   : > { %12784 = vmatprep.subr.bf16.mxu1 %v16364_v63  ;;  %v9274_v63 = vadd.f32 %v18496_v52, %v6214_v61  ;;  %v9231_v8 = vadd.f32 %v18463_v12, %v9188_v34  ;;  %v16404_v12 = vld [vmem:[#allocation19 + $0xae0] ss:$16 sps:$4 sm:$0xff]  }
 0xace   : > { %v16413_v34 = vld [vmem:[#allocation19 + $0x8a0] ss:$16 sps:$4 sm:$0xff]  }
 0xacf   : > { %12742 = vmatpush2.bf16.msra.mxu0 %v16359_v10  ;;  %v16400_v10 = vld [vmem:[#allocation19 + $0x704] ss:$16 sps:$4 sm:$0xff]  }
 0xad0   : > { %12785 = vmatpush2.bf16.msra.mxu1 %v16362_v58  ;;  %12743 = vmatprep.subr.bf16.mxu0 %v16367_v17  ;;  %v9235_v58 = vadd.f32 %v18487_v7, %v9192_v26  ;;  %v9320_v17 = vpop.f32.mrf.mxu1  ;;  %v6218_v7 = vrot.slane %v18444_v45, %v6185_v18  ;;  %v16407_v18 = vld [vmem:[#allocation19 + $0x8c0] ss:$16 sps:$4 sm:$0xff]   ;;  %v16418_v26 = vld [vmem:[#allocation19 + $0xaa4] ss:$16 sps:$4 sm:$0xff]  }
 0xad1   : > { %12786 = vmatprep.subr.bf16.mxu1 %v16370_v9  ;;  %v9321_v9 = vadd.f32 %v9320_v17, %v9278_v29 }
 0xad3   : > { %12744 = vmatpush2.bf16.msra.mxu0 %v16365_v19  ;;  %v16395_v19 = vld [vmem:[#allocation19 + $0x500] ss:$16 sps:$4 sm:$0xff]   ;;  %v9522_v52 = vmax.f32 %v9321_v9, 0.0 }
 0xad4   : > { %12787 = vmatpush2.bf16.msra.mxu1 %v16368_v31  ;;  %12745 = vmatprep.subr.bf16.mxu0 %v16373_v20  ;;  %v16398_v31 = vld [vmem:[#allocation19 + $0x700] ss:$16 sps:$4 sm:$0xff]   ;;  %v9317_v20 = vadd.f32 %v18499_v32, %v9274_v63  ;;  %v16421_v63 = vld [vmem:[#allocation19 + $0x884] ss:$16 sps:$4 sm:$0xff]  }
 0xad5   : > { %12788 = vmatprep.subr.bf16.mxu1 %v16376_v0  ;;  %v16406_v0 = vld [vmem:[#allocation19 + $0xae4] ss:$16 sps:$4 sm:$0xff]  }
 0xad7   : > { %12746 = vmatpush2.bf16.msra.mxu0 %v16371_v13  ;;  %v9520_v13 = vmax.f32 %v9235_v58, 0.0  ;;  %v16424_v58 = vld [vmem:[#allocation19 + $0xa84] ss:$16 sps:$4 sm:$0xff]  }
 0xad8   : > { %12789 = vmatpush2.bf16.msra.mxu1 %v16374_v48  ;;  %12747 = vmatprep.subr.bf16.mxu0 %v16379_v14  ;;  %v16401_v48 = vld [vmem:[#allocation19 + $0x8e0] ss:$16 sps:$4 sm:$0xff]   ;;  %v9504_v14 = vmax.f32 %v9231_v8, 0.0 }
 0xad9   : > { %12790 = vmatprep.subr.bf16.mxu1 %v16382_v62  ;;  %v9506_v62 = vmax.f32 %v9317_v20, 0.0  ;;  %v16422_v8 = vld [vmem:[#allocation19 + $0xa80] ss:$16 sps:$4 sm:$0xff]   ;;  %v16430_v20 = vld [vmem:[#allocation19 + $0xa64] ss:$16 sps:$4 sm:$0xff]  }
 0xadb   : > { %12748 = vmatpush2.bf16.msra.mxu0 %v16377_v4  ;;  %v16409_v4 = vld [vmem:[#allocation19 + $0x8c4] ss:$16 sps:$4 sm:$0xff]  }
 0xadc   : > { %12791 = vmatpush2.bf16.msra.mxu1 %v16380_v6  ;;  %12749 = vmatprep.subr.bf16.mxu0 %v16385_v2  ;;  %v18516_v6 = vpack.c.bf16 %v9520_v13, %v9504_v14  ;;  %v16412_v2 = vld [vmem:[#allocation19 + $0xac4] ss:$16 sps:$4 sm:$0xff]   ;;  %v16428_v13 = vld [vmem:[#allocation19 + $0xa60] ss:$16 sps:$4 sm:$0xff]  }
 0xadd   : > { %12792 = vmatprep.subr.bf16.mxu1 %v16388_v44  ;;  %v18519_v44 = vpack.c.bf16 %v9522_v52, %v9506_v62  ;;  %v16433_v52 = vld [vmem:[#allocation19 + $0x844] ss:$16 sps:$4 sm:$0xff]   ;;  %v16434_v14 = vld [vmem:[#allocation19 + $0xa40] ss:$16 sps:$4 sm:$0xff]  }
 0xade   : > { %v16442_v62 = vld [vmem:[#allocation19 + $0xa24] ss:$16 sps:$4 sm:$0xff]  }
 0xadf   : > { %12750 = vmatpush2.bf16.msra.mxu0 %v16383_v37 }
 0xae0   : > { %12793 = vmatpush2.bf16.msra.mxu1 %v16386_v21  ;;  %12751 = vmatprep.subr.bf16.mxu0 %v16391_v41  ;;  %v16410_v21 = vld [vmem:[#allocation19 + $0xac0] ss:$16 sps:$4 sm:$0xff]   ;;  %v16415_v41 = vld [vmem:[#allocation19 + $0x8a4] ss:$16 sps:$4 sm:$0xff]  }
 0xae1   : > { %12794 = vmatprep.subr.bf16.mxu1 %v16394_v15 }
 0xae3   : > { %12752 = vmatpush2.bf16.msra.mxu0 %v16389_v59 }
 0xae4   : > { %12795 = vmatpush2.bf16.msra.mxu1 %v16392_v57  ;;  %12753 = vmatprep.subr.bf16.mxu0 %v16397_v46  ;;  %v16416_v46 = vld [vmem:[#allocation19 + $0xaa0] ss:$16 sps:$4 sm:$0xff]  }
 0xae5   : > { %12796 = vmatprep.subr.bf16.mxu1 %v16400_v10 }
 0xae7   : > { %12754 = vmatpush2.bf16.msra.mxu0 %v16395_v19  ;;  %v16419_v19 = vld [vmem:[#allocation19 + $0x880] ss:$16 sps:$4 sm:$0xff]  }
 0xae8   : > { %12797 = vmatpush2.bf16.msra.mxu1 %v16398_v31  ;;  %12809 = vmatprep.subr.bf16.mxu0 %v16403_v40  ;;  %v16427_v31 = vld [vmem:[#allocation19 + $0x864] ss:$16 sps:$4 sm:$0xff]  }
 0xae9   : > { %12852 = vmatprep.subr.bf16.mxu1 %v16406_v0  ;;  %v16425_v0 = vld [vmem:[#allocation19 + $0x860] ss:$16 sps:$4 sm:$0xff]  }
 0xaea   : > { %v9357_v32 = vpop.f32.mrf.mxu0  ;;  %12756 = vmatmul.mubr.bf16.vlgmr.msra.gmra.mxu0 %v18411_v5 }
 0xaeb   : > { %v9358_v37 = vadd.f32 %v9357_v32, %v6218_v7  ;;  %v9400_v60 = vpop.f32.mrf.mxu1  ;;  %12799 = vmatmul.mubr.bf16.vlgmr.msra.gmra.mxu1 %v18431_v33  ;;  %12810 = vmatpush1.bf16.msra.mxu0 %v16401_v48  ;;  %v16431_v48 = vld [vmem:[#allocation19 + $0x840] ss:$16 sps:$4 sm:$0xff]  }
 0xaec   : > { %12841 = vmatprep.mubr.bf16.mxu0 %v18516_v6  ;;  %12853 = vmatpush1.bf16.msra.mxu1 %v16404_v12  ;;  %v18523_v3 = vpop.f32.mrf.mxu0  ;;  %v16439_v12 = vld [vmem:[#allocation19 + $0x824] ss:$16 sps:$4 sm:$0xff]   ;;  %v16440_v32 = vld [vmem:[#allocation19 + $0xa20] ss:$16 sps:$4 sm:$0xff]  }
 0xaed   : > { %v9401_v61 = vadd.f32 %v9400_v60, %v9358_v37  ;;  %12884 = vmatprep.mubr.bf16.mxu1 %v18519_v44  ;;  %v18526_v15 = vpop.f32.mrf.mxu1  ;;  %12811 = vmatprep.subr.bf16.mxu0 %v16409_v4  ;;  %v16437_v4 = vld [vmem:[#allocation19 + $0x820] ss:$16 sps:$4 sm:$0xff]   ;;  %v16448_v37 = vld [vmem:[#allocation19 + $0xa04] ss:$16 sps:$4 sm:$0xff]  }
 0xaee   : > { %v9361_v29 = vpop.f32.mrf.mxu0  ;;  %12854 = vmatprep.subr.bf16.mxu1 %v16412_v2  ;;  %v16445_v2 = vld [vmem:[#allocation19 + $0x804] ss:$16 sps:$4 sm:$0xff]   ;;  %v16443_v60 = vld [vmem:[#allocation19 + $0x800] ss:$16 sps:$4 sm:$0xff]  }
 0xaef   : > { %v9362_v59 = vadd.f32 %v9361_v29, %v6218_v7  ;;  %12812 = vmatpush1.bf16.msra.mxu0 %v16407_v18  ;;  %v9404_v57 = vpop.f32.mrf.mxu1  ;;  %v9507_v17 = vmax.f32 %v9401_v61, 0.0  ;;  %v16436_v7 = vld [vmem:[#allocation19 + $0xa44] ss:$16 sps:$4 sm:$0xff]   ;;  %v16446_v18 = vld [vmem:[#allocation19 + $0xa00] ss:$16 sps:$4 sm:$0xff]  }
 0xaf0   : > { %12855 = vmatpush1.bf16.msra.mxu1 %v16410_v21  ;;  %12813 = vmatprep.subr.bf16.mxu0 %v16415_v41  ;;  %v16451_v21 = vld [vmem:[#allocation19 + $0x9e4] ss:$16 sps:$4 sm:$0xff]   ;;  %v16449_v61 = vld [vmem:[#allocation19 + $0x9e0] ss:$16 sps:$4 sm:$0xff]  }
 0xaf1   : > { %v9405_v10 = vadd.f32 %v9404_v57, %v9362_v59  ;;  %12856 = vmatprep.subr.bf16.mxu1 %v16418_v26  ;;  %v16454_v41 = vld [vmem:[#allocation19 + $0xbe4] ss:$16 sps:$4 sm:$0xff]   ;;  %v16452_v26 = vld [vmem:[#allocation19 + $0xbe0] ss:$16 sps:$4 sm:$0xff]  }
 0xaf2   : > { %v16457_v29 = vld [vmem:[#allocation19 + $0x9c4] ss:$16 sps:$4 sm:$0xff]   ;;  %v16458_v57 = vld [vmem:[#allocation19 + $0xbc0] ss:$16 sps:$4 sm:$0xff]  }
 0xaf3   : > { %v9523_v9 = vmax.f32 %v9405_v10, 0.0  ;;  %12814 = vmatpush1.bf16.msra.mxu0 %v16413_v34  ;;  %v16460_v59 = vld [vmem:[#allocation19 + $0xbc4] ss:$16 sps:$4 sm:$0xff]   ;;  %v16455_v34 = vld [vmem:[#allocation19 + $0x9c0] ss:$16 sps:$4 sm:$0xff]  }
 0xaf4   : > { %12857 = vmatpush1.bf16.msra.mxu1 %v16416_v46  ;;  %12815 = vmatprep.subr.bf16.mxu0 %v16421_v63  ;;  %v16463_v46 = vld [vmem:[#allocation19 + $0x9a4] ss:$16 sps:$4 sm:$0xff]   ;;  %v16461_v10 = vld [vmem:[#allocation19 + $0x9a0] ss:$16 sps:$4 sm:$0xff]  }
 0xaf5   : > { %v18528_v40 = vpack.c.bf16 %v9523_v9, %v9507_v17  ;;  %12858 = vmatprep.subr.bf16.mxu1 %v16424_v58  ;;  %v16466_v63 = vld [vmem:[#allocation19 + $0xba4] ss:$16 sps:$4 sm:$0xff]   ;;  %v16464_v58 = vld [vmem:[#allocation19 + $0xba0] ss:$16 sps:$4 sm:$0xff]  }
 0xaf6   : > { %v16469_v17 = vld [vmem:[#allocation19 + $0x984] ss:$16 sps:$4 sm:$0xff]  }
 0xaf7   : > { %12816 = vmatpush1.bf16.msra.mxu0 %v16419_v19  ;;  %v16472_v9 = vld [vmem:[#allocation19 + $0xb84] ss:$16 sps:$4 sm:$0xff]   ;;  %v16467_v19 = vld [vmem:[#allocation19 + $0x980] ss:$16 sps:$4 sm:$0xff]  }
 0xaf8   : > { %12859 = vmatpush1.bf16.msra.mxu1 %v16422_v8  ;;  %12817 = vmatprep.subr.bf16.mxu0 %v16427_v31  ;;  %v16470_v8 = vld [vmem:[#allocation19 + $0xb80] ss:$16 sps:$4 sm:$0xff]   ;;  %v16475_v31 = vld [vmem:[#allocation19 + $0x964] ss:$16 sps:$4 sm:$0xff]  }
 0xaf9   : > { %12860 = vmatprep.subr.bf16.mxu1 %v16430_v20  ;;  %v16478_v20 = vld [vmem:[#allocation19 + $0xb64] ss:$16 sps:$4 sm:$0xff]  }
 0xafb   : > { %12818 = vmatpush1.bf16.msra.mxu0 %v16425_v0  ;;  %v16473_v0 = vld [vmem:[#allocation19 + $0x960] ss:$16 sps:$4 sm:$0xff]  }
 0xafc   : > { %12861 = vmatpush1.bf16.msra.mxu1 %v16428_v13  ;;  %12819 = vmatprep.subr.bf16.mxu0 %v16433_v52  ;;  %v16476_v13 = vld [vmem:[#allocation19 + $0xb60] ss:$16 sps:$4 sm:$0xff]   ;;  %v16481_v52 = vld [vmem:[#allocation19 + $0x944] ss:$16 sps:$4 sm:$0xff]  }
 0xafd   : > { %12862 = vmatprep.subr.bf16.mxu1 %v16436_v7  ;;  %v16484_v7 = vld [vmem:[#allocation19 + $0xb44] ss:$16 sps:$4 sm:$0xff]  }
 0xaff   : > { %12820 = vmatpush1.bf16.msra.mxu0 %v16431_v48  ;;  %v9363_v48 = vpop.f32.mrf.mxu0 }
 0xb00   : > { %12863 = vmatpush1.bf16.msra.mxu1 %v16434_v14  ;;  %12821 = vmatprep.subr.bf16.mxu0 %v16439_v12  ;;  %v16479_v14 = vld [vmem:[#allocation19 + $0x940] ss:$16 sps:$4 sm:$0xff]   ;;  %v6222_v12 = vrot.slane %v18444_v45, %v6189_v49 }
 0xb01   : > { %12864 = vmatprep.subr.bf16.mxu1 %v16442_v62  ;;  %v16482_v62 = vld [vmem:[#allocation19 + $0xb40] ss:$16 sps:$4 sm:$0xff]  }
 0xb02   : > { %v16491_v49 = vld [vmem:[#allocation19 + $0x900] ss:$16 sps:$4 sm:$0xff]  }
 0xb03   : > { %12822 = vmatpush1.bf16.msra.mxu0 %v16437_v4  ;;  %v16487_v4 = vld [vmem:[#allocation19 + $0x924] ss:$16 sps:$4 sm:$0xff]  }
 0xb04   : > { %12865 = vmatpush1.bf16.msra.mxu1 %v16440_v32  ;;  %12823 = vmatprep.subr.bf16.mxu0 %v16445_v2  ;;  %v16490_v32 = vld [vmem:[#allocation19 + $0xb24] ss:$16 sps:$4 sm:$0xff]   ;;  %v9364_v2 = vadd.f32 %v9363_v48, %v6222_v12 }
 0xb05   : > { %12866 = vmatprep.subr.bf16.mxu1 %v16448_v37  ;;  %v16485_v37 = vld [vmem:[#allocation19 + $0x920] ss:$16 sps:$4 sm:$0xff]  }
 0xb07   : > { %12824 = vmatpush1.bf16.msra.mxu0 %v16443_v60  ;;  %v9360_v60 = vadd.f32 %v18523_v3, %v6222_v12  ;;  %v16497_v3 = vld [vmem:[#allocation19 + $0xce0] ss:$16 sps:$4 sm:$0xff]  }
 0xb08   : > { %12867 = vmatpush1.bf16.msra.mxu1 %v16446_v18  ;;  %12825 = vmatprep.subr.bf16.mxu0 %v16451_v21  ;;  %v16488_v18 = vld [vmem:[#allocation19 + $0xb20] ss:$16 sps:$4 sm:$0xff]   ;;  %v16493_v21 = vld [vmem:[#allocation19 + $0x904] ss:$16 sps:$4 sm:$0xff]  }
 0xb09   : > { %12868 = vmatprep.subr.bf16.mxu1 %v16454_v41  ;;  %v9406_v41 = vpop.f32.mrf.mxu1 }
 0xb0b   : > { %12826 = vmatpush2.bf16.msra.mxu0 %v16449_v61  ;;  %v16496_v61 = vld [vmem:[#allocation19 + $0xb04] ss:$16 sps:$4 sm:$0xff]  }
 0xb0c   : > { %12869 = vmatpush2.bf16.msra.mxu1 %v16452_v26  ;;  %12827 = vmatprep.subr.bf16.mxu0 %v16457_v29  ;;  %v9407_v26 = vadd.f32 %v9406_v41, %v9364_v2  ;;  %v9403_v29 = vadd.f32 %v18526_v15, %v9360_v60  ;;  %v16508_v15 = vld [vmem:[#allocation19 + $0xec4] ss:$16 sps:$4 sm:$0xff]   ;;  %v16518_v41 = vld [vmem:[#allocation19 + $0xe80] ss:$16 sps:$4 sm:$0xff]  }
 0xb0d   : > { %12870 = vmatprep.subr.bf16.mxu1 %v16460_v59  ;;  %v16494_v59 = vld [vmem:[#allocation19 + $0xb00] ss:$16 sps:$4 sm:$0xff]  }
 0xb0f   : > { %12828 = vmatpush2.bf16.msra.mxu0 %v16455_v34  ;;  %v16499_v34 = vld [vmem:[#allocation19 + $0xce4] ss:$16 sps:$4 sm:$0xff]  }
 0xb10   : > { %12871 = vmatpush2.bf16.msra.mxu1 %v16458_v57  ;;  %12829 = vmatprep.subr.bf16.mxu0 %v16463_v46  ;;  %v16502_v57 = vld [vmem:[#allocation19 + $0xee4] ss:$16 sps:$4 sm:$0xff]   ;;  %v9524_v46 = vmax.f32 %v9407_v26, 0.0 }
 0xb11   : > { %12872 = vmatprep.subr.bf16.mxu1 %v16466_v63  ;;  %v9508_v63 = vmax.f32 %v9403_v29, 0.0  ;;  %v16526_v29 = vld [vmem:[#allocation19 + $0xe64] ss:$16 sps:$4 sm:$0xff]  }
 0xb13   : > { %12830 = vmatpush2.bf16.msra.mxu0 %v16461_v10  ;;  %v16500_v10 = vld [vmem:[#allocation19 + $0xee0] ss:$16 sps:$4 sm:$0xff]  }
 0xb14   : > { %12873 = vmatpush2.bf16.msra.mxu1 %v16464_v58  ;;  %12831 = vmatprep.subr.bf16.mxu0 %v16469_v17  ;;  %v6230_v58 = vrot.slane %v18444_v45, %v6197_v28  ;;  %v16505_v17 = vld [vmem:[#allocation19 + $0xcc4] ss:$16 sps:$4 sm:$0xff]  }
 0xb15   : > { %12874 = vmatprep.subr.bf16.mxu1 %v16472_v9  ;;  %v18538_v9 = vpack.c.bf16 %v9524_v46, %v9508_v63  ;;  %v16511_v45 = vld [vmem:[#allocation19 + $0xca4] ss:$16 sps:$4 sm:$0xff]   ;;  %v16527_v63 = vld [vmem:[#allocation19 + $0xc40] ss:$16 sps:$4 sm:$0xff]  }
 0xb16   : > { %v16529_v46 = vld [vmem:[#allocation19 + $0xc44] ss:$16 sps:$4 sm:$0xff]  }
 0xb17   : > { %12832 = vmatpush2.bf16.msra.mxu0 %v16467_v19 }
 0xb18   : > { %12875 = vmatpush2.bf16.msra.mxu1 %v16470_v8  ;;  %12833 = vmatprep.subr.bf16.mxu0 %v16475_v31  ;;  %v16503_v31 = vld [vmem:[#allocation19 + $0xcc0] ss:$16 sps:$4 sm:$0xff]  }
 0xb19   : > { %12876 = vmatprep.subr.bf16.mxu1 %v16478_v20 }
 0xb1b   : > { %12834 = vmatpush2.bf16.msra.mxu0 %v16473_v0  ;;  %v16506_v0 = vld [vmem:[#allocation19 + $0xec0] ss:$16 sps:$4 sm:$0xff]  }
 0xb1c   : > { %12877 = vmatpush2.bf16.msra.mxu1 %v16476_v13  ;;  %12835 = vmatprep.subr.bf16.mxu0 %v16481_v52  ;;  %v16514_v52 = vld [vmem:[#allocation19 + $0xea4] ss:$16 sps:$4 sm:$0xff]  }
 0xb1d   : > { %12878 = vmatprep.subr.bf16.mxu1 %v16484_v7 }
 0xb1f   : > { %12836 = vmatpush2.bf16.msra.mxu0 %v16479_v14  ;;  %v16509_v14 = vld [vmem:[#allocation19 + $0xca0] ss:$16 sps:$4 sm:$0xff]  }
 0xb20   : > { %12879 = vmatpush2.bf16.msra.mxu1 %v16482_v62  ;;  %12837 = vmatprep.subr.bf16.mxu0 %v16487_v4  ;;  %v16512_v62 = vld [vmem:[#allocation19 + $0xea0] ss:$16 sps:$4 sm:$0xff]   ;;  %v16517_v4 = vld [vmem:[#allocation19 + $0xc84] ss:$16 sps:$4 sm:$0xff]  }
 0xb21   : > { %12880 = vmatprep.subr.bf16.mxu1 %v16490_v32 }
 0xb23   : > { %12838 = vmatpush2.bf16.msra.mxu0 %v16485_v37  ;;  %v16520_v37 = vld [vmem:[#allocation19 + $0xe84] ss:$16 sps:$4 sm:$0xff]  }
 0xb24   : > { %12881 = vmatpush2.bf16.msra.mxu1 %v16488_v18  ;;  %12839 = vmatprep.subr.bf16.mxu0 %v16493_v21  ;;  %v16515_v21 = vld [vmem:[#allocation19 + $0xc80] ss:$16 sps:$4 sm:$0xff]  }
 0xb25   : > { %12882 = vmatprep.subr.bf16.mxu1 %v16496_v61  ;;  %v16523_v61 = vld [vmem:[#allocation19 + $0xc64] ss:$16 sps:$4 sm:$0xff]  }
 0xb27   : > { %12840 = vmatpush2.bf16.msra.mxu0 %v16491_v49 }
 0xb28   : > { %12883 = vmatpush2.bf16.msra.mxu1 %v16494_v59  ;;  %12895 = vmatprep.subr.bf16.mxu0 %v16499_v34  ;;  %v16521_v34 = vld [vmem:[#allocation19 + $0xc60] ss:$16 sps:$4 sm:$0xff]  }
 0xb29   : > { %12938 = vmatprep.subr.bf16.mxu1 %v16502_v57  ;;  %v16524_v57 = vld [vmem:[#allocation19 + $0xe60] ss:$16 sps:$4 sm:$0xff]  }
 0xb2a   : > { %v18540_v19 = vpop.f32.mrf.mxu0  ;;  %12842 = vmatmul.mubr.bf16.vlgmr.msra.gmra.mxu0 %v18465_v35 }
 0xb2b   : > { %v18543_v8 = vpop.f32.mrf.mxu1  ;;  %12885 = vmatmul.mubr.bf16.vlgmr.msra.gmra.mxu1 %v18501_v39  ;;  %12896 = vmatpush1.bf16.msra.mxu0 %v16497_v3  ;;  %v16532_v3 = vld [vmem:[#allocation19 + $0xe44] ss:$16 sps:$4 sm:$0xff]  }
 0xb2c   : > { %12927 = vmatprep.mubr.bf16.mxu0 %v18538_v9  ;;  %12939 = vmatpush1.bf16.msra.mxu1 %v16500_v10  ;;  %v9445_v20 = vpop.f32.mrf.mxu0  ;;  %v16530_v10 = vld [vmem:[#allocation19 + $0xe40] ss:$16 sps:$4 sm:$0xff]  }
 0xb2d   : > { %v9446_v28 = vadd.f32 %v9445_v20, %v6230_v58  ;;  %v9488_v13 = vpop.f32.mrf.mxu1  ;;  %12897 = vmatprep.subr.bf16.mxu0 %v16505_v17  ;;  %12940 = vmatprep.subr.bf16.mxu1 %v16508_v15  ;;  %v16538_v17 = vld [vmem:[#allocation19 + $0xe24] ss:$16 sps:$4 sm:$0xff]   ;;  %v16533_v15 = vld [vmem:[#allocation19 + $0xc20] ss:$16 sps:$4 sm:$0xff]  }
 0xb2e   : > { %v18547_v7 = vpop.f32.mrf.mxu0  ;;  %v16541_v20 = vld [vmem:[#allocation19 + $0xc04] ss:$16 sps:$4 sm:$0xff]  }
 0xb2f   : > { %v18549_v48 = vpop.f32.mrf.mxu1  ;;  %12898 = vmatpush1.bf16.msra.mxu0 %v16503_v31  ;;  %v9489_v32 = vadd.f32 %v9488_v13, %v9446_v28  ;;  %v16536_v31 = vld [vmem:[#allocation19 + $0xe20] ss:$16 sps:$4 sm:$0xff]   ;;  %v16547_v13 = vld [vmem:[#allocation19 + $0xde4] ss:$16 sps:$4 sm:$0xff]  }
 0xb30   : > { %12941 = vmatpush1.bf16.msra.mxu1 %v16506_v0  ;;  %v9449_v12 = vpop.f32.mrf.mxu0  ;;  %12899 = vmatprep.subr.bf16.mxu0 %v16511_v45  ;;  %v16544_v0 = vld [vmem:[#allocation19 + $0xe04] ss:$16 sps:$4 sm:$0xff]   ;;  %v16539_v45 = vld [vmem:[#allocation19 + $0xc00] ss:$16 sps:$4 sm:$0xff]  }
 0xb31   : > { %v9450_v2 = vadd.f32 %v9449_v12, %v6230_v58  ;;  %12942 = vmatprep.subr.bf16.mxu1 %v16514_v52  ;;  %v9492_v60 = vpop.f32.mrf.mxu1  ;;  %v9510_v26 = vmax.f32 %v9489_v32, 0.0  ;;  %v16535_v58 = vld [vmem:[#allocation19 + $0xc24] ss:$16 sps:$4 sm:$0xff]   ;;  %v16542_v28 = vld [vmem:[#allocation19 + $0xe00] ss:$16 sps:$4 sm:$0xff]  }
 0xb32   : > { %v16550_v52 = vld [vmem:[#allocation19 + $0xfe4] ss:$16 sps:$4 sm:$0xff]   ;;  %v16548_v12 = vld [vmem:[#allocation19 + $0xfe0] ss:$16 sps:$4 sm:$0xff]  }
 0xb33   : > { %v9493_v18 = vadd.f32 %v9492_v60, %v9450_v2  ;;  %12900 = vmatpush1.bf16.msra.mxu0 %v16509_v14  ;;  %v16545_v14 = vld [vmem:[#allocation19 + $0xde0] ss:$16 sps:$4 sm:$0xff]   ;;  %v16562_v60 = vld [vmem:[#allocation19 + $0xfa4] ss:$16 sps:$4 sm:$0xff]  }
 0xb34   : > { %12943 = vmatpush1.bf16.msra.mxu1 %v16512_v62  ;;  %12901 = vmatprep.subr.bf16.mxu0 %v16517_v4  ;;  %v16553_v62 = vld [vmem:[#allocation19 + $0xdc4] ss:$16 sps:$4 sm:$0xff]   ;;  %v16551_v32 = vld [vmem:[#allocation19 + $0xdc0] ss:$16 sps:$4 sm:$0xff]  }
 0xb35   : > { %v9526_v49 = vmax.f32 %v9493_v18, 0.0  ;;  %12944 = vmatprep.subr.bf16.mxu1 %v16520_v37  ;;  %v16556_v4 = vld [vmem:[#allocation19 + $0xfc4] ss:$16 sps:$4 sm:$0xff]   ;;  %v16554_v2 = vld [vmem:[#allocation19 + $0xfc0] ss:$16 sps:$4 sm:$0xff]  }
 0xb36   : > { %v16559_v37 = vld [vmem:[#allocation19 + $0xda4] ss:$16 sps:$4 sm:$0xff]   ;;  %v16557_v18 = vld [vmem:[#allocation19 + $0xda0] ss:$16 sps:$4 sm:$0xff]  }
 0xb37   : > { %v18551_v59 = vpack.c.bf16 %v9526_v49, %v9510_v26  ;;  %12902 = vmatpush1.bf16.msra.mxu0 %v16515_v21  ;;  %v16560_v21 = vld [vmem:[#allocation19 + $0xfa0] ss:$16 sps:$4 sm:$0xff]  }
 0xb38   : > { %12945 = vmatpush1.bf16.msra.mxu1 %v16518_v41  ;;  %12903 = vmatprep.subr.bf16.mxu0 %v16523_v61  ;;  %v16565_v41 = vld [vmem:[#allocation19 + $0xd84] ss:$16 sps:$4 sm:$0xff]   ;;  %v16563_v26 = vld [vmem:[#allocation19 + $0xd80] ss:$16 sps:$4 sm:$0xff]  }
 0xb39   : > { %12970 = vmatprep.mubr.bf16.mxu1 %v18551_v59  ;;  %12946 = vmatprep.subr.bf16.mxu1 %v16526_v29  ;;  %v16568_v61 = vld [vmem:[#allocation19 + $0xf84] ss:$16 sps:$4 sm:$0xff]   ;;  %v16566_v49 = vld [vmem:[#allocation19 + $0xf80] ss:$16 sps:$4 sm:$0xff]  }
 0xb3a   : > { %v16571_v29 = vld [vmem:[#allocation19 + $0xd64] ss:$16 sps:$4 sm:$0xff]  }
 0xb3b   : > { %12904 = vmatpush1.bf16.msra.mxu0 %v16521_v34  ;;  %v16574_v34 = vld [vmem:[#allocation19 + $0xf64] ss:$16 sps:$4 sm:$0xff]  }
 0xb3c   : > { %12947 = vmatpush1.bf16.msra.mxu1 %v16524_v57  ;;  %12905 = vmatprep.subr.bf16.mxu0 %v16529_v46  ;;  %v16569_v57 = vld [vmem:[#allocation19 + $0xd60] ss:$16 sps:$4 sm:$0xff]  }
 0xb3d   : > { %12948 = vmatprep.subr.bf16.mxu1 %v16532_v3  ;;  %v16572_v46 = vld [vmem:[#allocation19 + $0xf60] ss:$16 sps:$4 sm:$0xff]   ;;  %v16577_v3 = vld [vmem:[#allocation19 + $0xd44] ss:$16 sps:$4 sm:$0xff]  }
 0xb3f   : > { %12906 = vmatpush1.bf16.msra.mxu0 %v16527_v63  ;;  %v16580_v63 = vld [vmem:[#allocation19 + $0xf44] ss:$16 sps:$4 sm:$0xff]  }
 0xb40   : > { %12949 = vmatpush1.bf16.msra.mxu1 %v16530_v10  ;;  %12907 = vmatprep.subr.bf16.mxu0 %v16535_v58  ;;  %v17060_v10 = vld [vmem:[#allocation17 + $0x8] sm:$0xff] }
 0xb41   : > { %12950 = vmatprep.subr.bf16.mxu1 %v16538_v17  ;;  %v6226_v58 = vrot.slane %v17060_v10, %v6193_v22  ;;  %v16575_v17 = vld [vmem:[#allocation19 + $0xd40] ss:$16 sps:$4 sm:$0xff]   ;;  %v16592_v22 = vld [vmem:[#allocation19 + $0xf04] ss:$16 sps:$4 sm:$0xff]   ;;  %v16625_v10 = vld [vmem:[#allocation19 + $0x4c] ss:$16 sps:$4 sm:$0xff]  }
 0xb43   : > { %12908 = vmatpush1.bf16.msra.mxu0 %v16533_v15  ;;  %v16578_v15 = vld [vmem:[#allocation19 + $0xf40] ss:$16 sps:$4 sm:$0xff]  }
 0xb44   : > { %12951 = vmatpush1.bf16.msra.mxu1 %v16536_v31  ;;  %12909 = vmatprep.subr.bf16.mxu0 %v16541_v20  ;;  %v16583_v31 = vld [vmem:[#allocation19 + $0xd24] ss:$16 sps:$4 sm:$0xff]   ;;  %v9448_v20 = vadd.f32 %v18547_v7, %v6226_v58  ;;  %v16590_v7 = vld [vmem:[#allocation19 + $0xf00] ss:$16 sps:$4 sm:$0xff]  }
 0xb45   : > { %12952 = vmatprep.subr.bf16.mxu1 %v16544_v0  ;;  %v16586_v0 = vld [vmem:[#allocation19 + $0xf24] ss:$16 sps:$4 sm:$0xff]  }
 0xb46   : > { %v9491_v51 = vadd.f32 %v18549_v48, %v9448_v20  ;;  %v16634_v20 = vld [vmem:[#allocation19 + $0x22c] ss:$16 sps:$4 sm:$0xff]  }
 0xb47   : > { %12910 = vmatpush1.bf16.msra.mxu0 %v16539_v45  ;;  %v9444_v45 = vadd.f32 %v18540_v19, %v6226_v58  ;;  %v16598_v19 = vld [vmem:[#allocation19 + $0x2ec] ss:$16 sps:$4 sm:$0xff]  }
 0xb48   : > { %12953 = vmatpush1.bf16.msra.mxu1 %v16542_v28  ;;  %12911 = vmatprep.subr.bf16.mxu0 %v16547_v13  ;;  %v16581_v28 = vld [vmem:[#allocation19 + $0xd20] ss:$16 sps:$4 sm:$0xff]   ;;  %v16628_v58 = vld [vmem:[#allocation19 + $0x24c] ss:$16 sps:$4 sm:$0xff]  }
 0xb49   : > { %12954 = vmatprep.subr.bf16.mxu1 %v16550_v52  ;;  %v16584_v13 = vld [vmem:[#allocation19 + $0xf20] ss:$16 sps:$4 sm:$0xff]   ;;  %v16589_v52 = vld [vmem:[#allocation19 + $0xd04] ss:$16 sps:$4 sm:$0xff]  }
 0xb4b   : > { %12912 = vmatpush2.bf16.msra.mxu0 %v16545_v14  ;;  %v9487_v14 = vadd.f32 %v18543_v8, %v9444_v45  ;;  %v16604_v8 = vld [vmem:[#allocation19 + $0x2cc] ss:$16 sps:$4 sm:$0xff]   ;;  %v16632_v45 = vld [vmem:[#allocation19 + $0x228] ss:$16 sps:$4 sm:$0xff]  }
 0xb4c   : > { %12955 = vmatpush2.bf16.msra.mxu1 %v16548_v12  ;;  %12913 = vmatprep.subr.bf16.mxu0 %v16553_v62  ;;  %v16587_v12 = vld [vmem:[#allocation19 + $0xd00] ss:$16 sps:$4 sm:$0xff]   ;;  %v16595_v62 = vld [vmem:[#allocation19 + $0xec] ss:$16 sps:$4 sm:$0xff]  }
 0xb4d   : > { %12956 = vmatprep.subr.bf16.mxu1 %v16556_v4  ;;  %v9525_v4 = vmax.f32 %v9491_v51, 0.0  ;;  %v16638_v51 = vld [vmem:[#allocation19 + $0x208] ss:$16 sps:$4 sm:$0xff]  }
 0xb4f   : > { %12914 = vmatpush2.bf16.msra.mxu0 %v16551_v32  ;;  %v9509_v32 = vmax.f32 %v9487_v14, 0.0  ;;  %v16646_v14 = vld [vmem:[#allocation19 + $0x3ec] ss:$16 sps:$4 sm:$0xff]  }
 0xb50   : > { %12957 = vmatpush2.bf16.msra.mxu1 %v16554_v2  ;;  %12915 = vmatprep.subr.bf16.mxu0 %v16559_v37  ;;  %v16593_v2 = vld [vmem:[#allocation19 + $0xe8] ss:$16 sps:$4 sm:$0xff]  }
 0xb51   : > { %12958 = vmatprep.subr.bf16.mxu1 %v16562_v60  ;;  %v16596_v37 = vld [vmem:[#allocation19 + $0x2e8] ss:$16 sps:$4 sm:$0xff]   ;;  %v18560_v48 = vpack.c.bf16 %v9525_v4, %v9509_v32  ;;  %v16601_v60 = vld [vmem:[#allocation19 + $0xcc] ss:$16 sps:$4 sm:$0xff]  }
 0xb52   : > { %v16652_v4 = vld [vmem:[#allocation19 + $0x3cc] ss:$16 sps:$4 sm:$0xff]   ;;  %v16650_v32 = vld [vmem:[#allocation19 + $0x3c8] ss:$16 sps:$4 sm:$0xff]  }
 0xb53   : > { %12916 = vmatpush2.bf16.msra.mxu0 %v16557_v18  ;;  %v16599_v18 = vld [vmem:[#allocation19 + $0xc8] ss:$16 sps:$4 sm:$0xff]  }
 0xb54   : > { %12959 = vmatpush2.bf16.msra.mxu1 %v16560_v21  ;;  %12917 = vmatprep.subr.bf16.mxu0 %v16565_v41  ;;  %v16602_v21 = vld [vmem:[#allocation19 + $0x2c8] ss:$16 sps:$4 sm:$0xff]   ;;  %v16607_v41 = vld [vmem:[#allocation19 + $0xac] ss:$16 sps:$4 sm:$0xff]  }
 0xb55   : > { %12960 = vmatprep.subr.bf16.mxu1 %v16568_v61  ;;  %v16610_v61 = vld [vmem:[#allocation19 + $0x2ac] ss:$16 sps:$4 sm:$0xff]  }
 0xb57   : > { %12918 = vmatpush2.bf16.msra.mxu0 %v16563_v26  ;;  %v16605_v26 = vld [vmem:[#allocation19 + $0xa8] ss:$16 sps:$4 sm:$0xff]  }
 0xb58   : > { %12961 = vmatpush2.bf16.msra.mxu1 %v16566_v49  ;;  %12919 = vmatprep.subr.bf16.mxu0 %v16571_v29  ;;  %v16608_v49 = vld [vmem:[#allocation19 + $0x2a8] ss:$16 sps:$4 sm:$0xff]   ;;  %v16613_v29 = vld [vmem:[#allocation19 + $0x8c] ss:$16 sps:$4 sm:$0xff]  }
 0xb59   : > { %12962 = vmatprep.subr.bf16.mxu1 %v16574_v34  ;;  %v16616_v34 = vld [vmem:[#allocation19 + $0x28c] ss:$16 sps:$4 sm:$0xff]  }
 0xb5b   : > { %12920 = vmatpush2.bf16.msra.mxu0 %v16569_v57  ;;  %v16611_v57 = vld [vmem:[#allocation19 + $0x88] ss:$16 sps:$4 sm:$0xff]  }
 0xb5c   : > { %12963 = vmatpush2.bf16.msra.mxu1 %v16572_v46  ;;  %12921 = vmatprep.subr.bf16.mxu0 %v16577_v3  ;;  %v16619_v46 = vld [vmem:[#allocation19 + $0x6c] ss:$16 sps:$4 sm:$0xff]  }
 0xb5d   : > { %12964 = vmatprep.subr.bf16.mxu1 %v16580_v63  ;;  %v16622_v3 = vld [vmem:[#allocation19 + $0x26c] ss:$16 sps:$4 sm:$0xff]   ;;  %v16620_v63 = vld [vmem:[#allocation19 + $0x268] ss:$16 sps:$4 sm:$0xff]  }
 0xb5f   : > { %12922 = vmatpush2.bf16.msra.mxu0 %v16575_v17  ;;  %v16623_v17 = vld [vmem:[#allocation19 + $0x48] ss:$16 sps:$4 sm:$0xff]  }
 0xb60   : > { %12965 = vmatpush2.bf16.msra.mxu1 %v16578_v15  ;;  %12923 = vmatprep.subr.bf16.mxu0 %v16583_v31  ;;  %v16626_v15 = vld [vmem:[#allocation19 + $0x248] ss:$16 sps:$4 sm:$0xff]   ;;  %v16631_v31 = vld [vmem:[#allocation19 + $0x2c] ss:$16 sps:$4 sm:$0xff]  }
 0xb61   : > { %12966 = vmatprep.subr.bf16.mxu1 %v16586_v0  ;;  %v16629_v0 = vld [vmem:[#allocation19 + $0x28] ss:$16 sps:$4 sm:$0xff]  }
 0xb63   : > { %12924 = vmatpush2.bf16.msra.mxu0 %v16581_v28  ;;  %v16637_v28 = vld [vmem:[#allocation19 + $0xc] ss:$16 sps:$4 sm:$0xff]  }
 0xb64   : > { %12967 = vmatpush2.bf16.msra.mxu1 %v16584_v13  ;;  %12925 = vmatprep.subr.bf16.mxu0 %v16589_v52  ;;  %v16640_v13 = vld [vmem:[#allocation19 + $0x20c] ss:$16 sps:$4 sm:$0xff]   ;;  %v16635_v52 = vld [vmem:[#allocation19 + $0x8] ss:$16 sps:$4 sm:$0xff]  }
 0xb65   : > { %12968 = vmatprep.subr.bf16.mxu1 %v16592_v22  ;;  %v16643_v22 = vld [vmem:[#allocation19 + $0x1ec] ss:$16 sps:$4 sm:$0xff]  }
 0xb67   : > { %12926 = vmatpush2.bf16.msra.mxu0 %v16587_v12  ;;  %v16641_v12 = vld [vmem:[#allocation19 + $0x1e8] ss:$16 sps:$4 sm:$0xff]  }
 0xb68   : > { %12969 = vmatpush2.bf16.msra.mxu1 %v16590_v7  ;;  %12981 = vmatprep.subr.bf16.mxu0 %v16595_v62  ;;  %v16644_v7 = vld [vmem:[#allocation19 + $0x3e8] ss:$16 sps:$4 sm:$0xff]   ;;  %v16649_v62 = vld [vmem:[#allocation19 + $0x1cc] ss:$16 sps:$4 sm:$0xff]  }
 0xb69   : > { %13024 = vmatprep.subr.bf16.mxu1 %v16598_v19  ;;  %v16647_v19 = vld [vmem:[#allocation19 + $0x1c8] ss:$16 sps:$4 sm:$0xff]  }
 0xb6a   : > { %12928 = vmatmul.mubr.bf16.vlgmr.msra.gmra.mxu0 %v18528_v40 }
 0xb6b   : > { %12971 = vmatmul.mubr.bf16.vlgmr.msra.gmra.mxu1 %v18560_v48  ;;  %12982 = vmatpush1.bf16.msra.mxu0 %v16593_v2  ;;  %v16655_v2 = vld [vmem:[#allocation19 + $0x1ac] ss:$16 sps:$4 sm:$0xff]  }
 0xb6c   : > { %13013 = vmatprep.mubr.bf16.mxu0 %v18453_v50  ;;  %13025 = vmatpush1.bf16.msra.mxu1 %v16596_v37  ;;  %v16614_v50 = vld [vmem:[#allocation19 + $0x288] ss:$16 sps:$4 sm:$0xff]   ;;  %v16658_v37 = vld [vmem:[#allocation19 + $0x3ac] ss:$16 sps:$4 sm:$0xff]  }
 0xb6d   : > { %13056 = vmatprep.mubr.bf16.mxu1 %v18456_v23  ;;  %12983 = vmatprep.subr.bf16.mxu0 %v16601_v60  ;;  %v16617_v23 = vld [vmem:[#allocation19 + $0x68] ss:$16 sps:$4 sm:$0xff]  }
 0xb6e   : > { %13026 = vmatprep.subr.bf16.mxu1 %v16604_v8  ;;  %v16653_v60 = vld [vmem:[#allocation19 + $0x1a8] ss:$16 sps:$4 sm:$0xff]  }
 0xb6f   : > { %12984 = vmatpush1.bf16.msra.mxu0 %v16599_v18  ;;  %v16656_v8 = vld [vmem:[#allocation19 + $0x3a8] ss:$16 sps:$4 sm:$0xff]   ;;  %v16661_v18 = vld [vmem:[#allocation19 + $0x18c] ss:$16 sps:$4 sm:$0xff]  }
 0xb70   : > { %13027 = vmatpush1.bf16.msra.mxu1 %v16602_v21  ;;  %12985 = vmatprep.subr.bf16.mxu0 %v16607_v41  ;;  %v16664_v21 = vld [vmem:[#allocation19 + $0x38c] ss:$16 sps:$4 sm:$0xff]   ;;  %v16659_v41 = vld [vmem:[#allocation19 + $0x188] ss:$16 sps:$4 sm:$0xff]  }
 0xb71   : > { %13028 = vmatprep.subr.bf16.mxu1 %v16610_v61  ;;  %v16662_v61 = vld [vmem:[#allocation19 + $0x388] ss:$16 sps:$4 sm:$0xff]  }
 0xb73   : > { %12986 = vmatpush1.bf16.msra.mxu0 %v16605_v26  ;;  %v16667_v26 = vld [vmem:[#allocation19 + $0x16c] ss:$16 sps:$4 sm:$0xff]  }
 0xb74   : > { %13029 = vmatpush1.bf16.msra.mxu1 %v16608_v49  ;;  %12987 = vmatprep.subr.bf16.mxu0 %v16613_v29  ;;  %v16670_v49 = vld [vmem:[#allocation19 + $0x36c] ss:$16 sps:$4 sm:$0xff]   ;;  %v16665_v29 = vld [vmem:[#allocation19 + $0x168] ss:$16 sps:$4 sm:$0xff]  }
 0xb75   : > { %13030 = vmatprep.subr.bf16.mxu1 %v16616_v34  ;;  %v16668_v34 = vld [vmem:[#allocation19 + $0x368] ss:$16 sps:$4 sm:$0xff]  }
 0xb77   : > { %12988 = vmatpush1.bf16.msra.mxu0 %v16611_v57  ;;  %v16673_v57 = vld [vmem:[#allocation19 + $0x14c] ss:$16 sps:$4 sm:$0xff]  }
 0xb78   : > { %13031 = vmatpush1.bf16.msra.mxu1 %v16614_v50  ;;  %12989 = vmatprep.subr.bf16.mxu0 %v16619_v46  ;;  %v16676_v50 = vld [vmem:[#allocation19 + $0x34c] ss:$16 sps:$4 sm:$0xff]   ;;  %v16671_v46 = vld [vmem:[#allocation19 + $0x148] ss:$16 sps:$4 sm:$0xff]  }
 0xb79   : > { %13032 = vmatprep.subr.bf16.mxu1 %v16622_v3  ;;  %v16674_v3 = vld [vmem:[#allocation19 + $0x348] ss:$16 sps:$4 sm:$0xff]  }
 0xb7b   : > { %12990 = vmatpush1.bf16.msra.mxu0 %v16617_v23  ;;  %v16679_v23 = vld [vmem:[#allocation19 + $0x12c] ss:$16 sps:$4 sm:$0xff]  }
 0xb7c   : > { %13033 = vmatpush1.bf16.msra.mxu1 %v16620_v63  ;;  %12991 = vmatprep.subr.bf16.mxu0 %v16625_v10  ;;  %v16682_v63 = vld [vmem:[#allocation19 + $0x32c] ss:$16 sps:$4 sm:$0xff]   ;;  %v16677_v10 = vld [vmem:[#allocation19 + $0x128] ss:$16 sps:$4 sm:$0xff]  }
 0xb7d   : > { %13034 = vmatprep.subr.bf16.mxu1 %v16628_v58  ;;  %v16680_v58 = vld [vmem:[#allocation19 + $0x328] ss:$16 sps:$4 sm:$0xff]  }
 0xb7f   : > { %12992 = vmatpush1.bf16.msra.mxu0 %v16623_v17  ;;  %v16685_v17 = vld [vmem:[#allocation19 + $0x10c] ss:$16 sps:$4 sm:$0xff]  }
 0xb80   : > { %13035 = vmatpush1.bf16.msra.mxu1 %v16626_v15  ;;  %12993 = vmatprep.subr.bf16.mxu0 %v16631_v31  ;;  %v16688_v15 = vld [vmem:[#allocation19 + $0x30c] ss:$16 sps:$4 sm:$0xff]   ;;  %v16683_v31 = vld [vmem:[#allocation19 + $0x108] ss:$16 sps:$4 sm:$0xff]  }
 0xb81   : > { %13036 = vmatprep.subr.bf16.mxu1 %v16634_v20  ;;  %v16686_v20 = vld [vmem:[#allocation19 + $0x308] ss:$16 sps:$4 sm:$0xff]  }
 0xb83   : > { %12994 = vmatpush1.bf16.msra.mxu0 %v16629_v0  ;;  %v16691_v0 = vld [vmem:[#allocation19 + $0x4ec] ss:$16 sps:$4 sm:$0xff]  }
 0xb84   : > { %13037 = vmatpush1.bf16.msra.mxu1 %v16632_v45  ;;  %12995 = vmatprep.subr.bf16.mxu0 %v16637_v28  ;;  %v16694_v45 = vld [vmem:[#allocation19 + $0x6ec] ss:$16 sps:$4 sm:$0xff]   ;;  %v16689_v28 = vld [vmem:[#allocation19 + $0x4e8] ss:$16 sps:$4 sm:$0xff]  }
 0xb85   : > { %13038 = vmatprep.subr.bf16.mxu1 %v16640_v13  ;;  %v16692_v13 = vld [vmem:[#allocation19 + $0x6e8] ss:$16 sps:$4 sm:$0xff]  }
 0xb87   : > { %12996 = vmatpush1.bf16.msra.mxu0 %v16635_v52  ;;  %v16697_v52 = vld [vmem:[#allocation19 + $0x4cc] ss:$16 sps:$4 sm:$0xff]  }
 0xb88   : > { %13039 = vmatpush1.bf16.msra.mxu1 %v16638_v51  ;;  %12997 = vmatprep.subr.bf16.mxu0 %v16643_v22  ;;  %v16700_v51 = vld [vmem:[#allocation19 + $0x6cc] ss:$16 sps:$4 sm:$0xff]   ;;  %v16695_v22 = vld [vmem:[#allocation19 + $0x4c8] ss:$16 sps:$4 sm:$0xff]  }
 0xb89   : > { %13040 = vmatprep.subr.bf16.mxu1 %v16646_v14  ;;  %v16698_v14 = vld [vmem:[#allocation19 + $0x6c8] ss:$16 sps:$4 sm:$0xff]  }
 0xb8b   : > { %12998 = vmatpush2.bf16.msra.mxu0 %v16641_v12  ;;  %v16703_v12 = vld [vmem:[#allocation19 + $0x4ac] ss:$16 sps:$4 sm:$0xff]  }
 0xb8c   : > { %13041 = vmatpush2.bf16.msra.mxu1 %v16644_v7  ;;  %12999 = vmatprep.subr.bf16.mxu0 %v16649_v62  ;;  %v16706_v7 = vld [vmem:[#allocation19 + $0x6ac] ss:$16 sps:$4 sm:$0xff]   ;;  %v16701_v62 = vld [vmem:[#allocation19 + $0x4a8] ss:$16 sps:$4 sm:$0xff]  }
 0xb8d   : > { %13042 = vmatprep.subr.bf16.mxu1 %v16652_v4  ;;  %v16709_v4 = vld [vmem:[#allocation19 + $0x48c] ss:$16 sps:$4 sm:$0xff]  }
 0xb8f   : > { %13000 = vmatpush2.bf16.msra.mxu0 %v16647_v19  ;;  %v16707_v19 = vld [vmem:[#allocation19 + $0x488] ss:$16 sps:$4 sm:$0xff]  }
 0xb90   : > { %13043 = vmatpush2.bf16.msra.mxu1 %v16650_v32  ;;  %13001 = vmatprep.subr.bf16.mxu0 %v16655_v2  ;;  %v16715_v32 = vld [vmem:[#allocation19 + $0x46c] ss:$16 sps:$4 sm:$0xff]  }
 0xb91   : > { %13044 = vmatprep.subr.bf16.mxu1 %v16658_v37  ;;  %v16718_v2 = vld [vmem:[#allocation19 + $0x66c] ss:$16 sps:$4 sm:$0xff]   ;;  %v16716_v37 = vld [vmem:[#allocation19 + $0x668] ss:$16 sps:$4 sm:$0xff]  }
 0xb93   : > { %13002 = vmatpush2.bf16.msra.mxu0 %v16653_v60  ;;  %v16721_v60 = vld [vmem:[#allocation19 + $0x44c] ss:$16 sps:$4 sm:$0xff]  }
 0xb94   : > { %13045 = vmatpush2.bf16.msra.mxu1 %v16656_v8  ;;  %13003 = vmatprep.subr.bf16.mxu0 %v16661_v18  ;;  %v16724_v8 = vld [vmem:[#allocation19 + $0x64c] ss:$16 sps:$4 sm:$0xff]   ;;  %v16719_v18 = vld [vmem:[#allocation19 + $0x448] ss:$16 sps:$4 sm:$0xff]  }
 0xb95   : > { %13046 = vmatprep.subr.bf16.mxu1 %v16664_v21  ;;  %v16722_v21 = vld [vmem:[#allocation19 + $0x648] ss:$16 sps:$4 sm:$0xff]  }
 0xb97   : > { %13004 = vmatpush2.bf16.msra.mxu0 %v16659_v41  ;;  %v16727_v41 = vld [vmem:[#allocation19 + $0x42c] ss:$16 sps:$4 sm:$0xff]  }
 0xb98   : > { %13047 = vmatpush2.bf16.msra.mxu1 %v16662_v61  ;;  %13005 = vmatprep.subr.bf16.mxu0 %v16667_v26  ;;  %v16730_v61 = vld [vmem:[#allocation19 + $0x62c] ss:$16 sps:$4 sm:$0xff]   ;;  %v16725_v26 = vld [vmem:[#allocation19 + $0x428] ss:$16 sps:$4 sm:$0xff]  }
 0xb99   : > { %13048 = vmatprep.subr.bf16.mxu1 %v16670_v49  ;;  %v16728_v49 = vld [vmem:[#allocation19 + $0x628] ss:$16 sps:$4 sm:$0xff]  }
 0xb9b   : > { %13006 = vmatpush2.bf16.msra.mxu0 %v16665_v29  ;;  %v16733_v29 = vld [vmem:[#allocation19 + $0x40c] ss:$16 sps:$4 sm:$0xff]  }
 0xb9c   : > { %13049 = vmatpush2.bf16.msra.mxu1 %v16668_v34  ;;  %13007 = vmatprep.subr.bf16.mxu0 %v16673_v57  ;;  %v16736_v34 = vld [vmem:[#allocation19 + $0x60c] ss:$16 sps:$4 sm:$0xff]   ;;  %v16731_v57 = vld [vmem:[#allocation19 + $0x408] ss:$16 sps:$4 sm:$0xff]  }
 0xb9d   : > { %13050 = vmatprep.subr.bf16.mxu1 %v16676_v50  ;;  %v16734_v50 = vld [vmem:[#allocation19 + $0x608] ss:$16 sps:$4 sm:$0xff]  }
 0xb9f   : > { %13008 = vmatpush2.bf16.msra.mxu0 %v16671_v46  ;;  %v16739_v46 = vld [vmem:[#allocation19 + $0x5ec] ss:$16 sps:$4 sm:$0xff]  }
 0xba0   : > { %13051 = vmatpush2.bf16.msra.mxu1 %v16674_v3  ;;  %13009 = vmatprep.subr.bf16.mxu0 %v16679_v23  ;;  %v16742_v3 = vld [vmem:[#allocation19 + $0x7ec] ss:$16 sps:$4 sm:$0xff]   ;;  %v16737_v23 = vld [vmem:[#allocation19 + $0x5e8] ss:$16 sps:$4 sm:$0xff]  }
 0xba1   : > { %13052 = vmatprep.subr.bf16.mxu1 %v16682_v63  ;;  %v16740_v63 = vld [vmem:[#allocation19 + $0x7e8] ss:$16 sps:$4 sm:$0xff]  }
 0xba3   : > { %13010 = vmatpush2.bf16.msra.mxu0 %v16677_v10  ;;  %v16745_v10 = vld [vmem:[#allocation19 + $0x5cc] ss:$16 sps:$4 sm:$0xff]  }
 0xba4   : > { %13053 = vmatpush2.bf16.msra.mxu1 %v16680_v58  ;;  %13011 = vmatprep.subr.bf16.mxu0 %v16685_v17  ;;  %v16748_v58 = vld [vmem:[#allocation19 + $0x7cc] ss:$16 sps:$4 sm:$0xff]   ;;  %v16743_v17 = vld [vmem:[#allocation19 + $0x5c8] ss:$16 sps:$4 sm:$0xff]  }
 0xba5   : > { %13054 = vmatprep.subr.bf16.mxu1 %v16688_v15  ;;  %v16746_v15 = vld [vmem:[#allocation19 + $0x7c8] ss:$16 sps:$4 sm:$0xff]  }
 0xba7   : > { %13012 = vmatpush2.bf16.msra.mxu0 %v16683_v31  ;;  %v16751_v31 = vld [vmem:[#allocation19 + $0x5ac] ss:$16 sps:$4 sm:$0xff]  }
 0xba8   : > { %13055 = vmatpush2.bf16.msra.mxu1 %v16686_v20  ;;  %13067 = vmatprep.subr.bf16.mxu0 %v16691_v0  ;;  %v16754_v20 = vld [vmem:[#allocation19 + $0x7ac] ss:$16 sps:$4 sm:$0xff]   ;;  %v16749_v0 = vld [vmem:[#allocation19 + $0x5a8] ss:$16 sps:$4 sm:$0xff]  }
 0xba9   : > { %13110 = vmatprep.subr.bf16.mxu1 %v16694_v45  ;;  %v16752_v45 = vld [vmem:[#allocation19 + $0x7a8] ss:$16 sps:$4 sm:$0xff]  }
 0xbaa   : > { %13014 = vmatmul.mubr.bf16.vlgmr.msra.gmra.mxu0 %v18377_v47  ;;  %v16704_v47 = vld [vmem:[#allocation19 + $0x6a8] ss:$16 sps:$4 sm:$0xff]  }
 0xbab   : > { %13057 = vmatmul.mubr.bf16.vlgmr.msra.gmra.mxu1 %v18393_v11  ;;  %13068 = vmatpush1.bf16.msra.mxu0 %v16689_v28  ;;  %v16712_v11 = vld [vmem:[#allocation19 + $0x68c] ss:$16 sps:$4 sm:$0xff]  }
 0xbac   : > { %13099 = vmatprep.mubr.bf16.mxu0 %v18489_v16  ;;  %13111 = vmatpush1.bf16.msra.mxu1 %v16692_v13  ;;  %v16710_v16 = vld [vmem:[#allocation19 + $0x688] ss:$16 sps:$4 sm:$0xff]   ;;  %v16757_v28 = vld [vmem:[#allocation19 + $0x58c] ss:$16 sps:$4 sm:$0xff]  }
 0xbad   : > { %13142 = vmatprep.mubr.bf16.mxu1 %v18492_v30  ;;  %13069 = vmatprep.subr.bf16.mxu0 %v16697_v52  ;;  %v16713_v30 = vld [vmem:[#allocation19 + $0x468] ss:$16 sps:$4 sm:$0xff]   ;;  %v16760_v13 = vld [vmem:[#allocation19 + $0x78c] ss:$16 sps:$4 sm:$0xff]  }
 0xbae   : > { %13112 = vmatprep.subr.bf16.mxu1 %v16700_v51  ;;  %v16755_v52 = vld [vmem:[#allocation19 + $0x588] ss:$16 sps:$4 sm:$0xff]  }
 0xbaf   : > { %13070 = vmatpush1.bf16.msra.mxu0 %v16695_v22  ;;  %v16758_v51 = vld [vmem:[#allocation19 + $0x788] ss:$16 sps:$4 sm:$0xff]   ;;  %v16763_v22 = vld [vmem:[#allocation19 + $0x56c] ss:$16 sps:$4 sm:$0xff]  }
 0xbb0   : > { %13113 = vmatpush1.bf16.msra.mxu1 %v16698_v14  ;;  %13071 = vmatprep.subr.bf16.mxu0 %v16703_v12  ;;  %v16766_v14 = vld [vmem:[#allocation19 + $0x76c] ss:$16 sps:$4 sm:$0xff]   ;;  %v16761_v12 = vld [vmem:[#allocation19 + $0x568] ss:$16 sps:$4 sm:$0xff]  }
 0xbb1   : > { %13114 = vmatprep.subr.bf16.mxu1 %v16706_v7  ;;  %v16764_v7 = vld [vmem:[#allocation19 + $0x768] ss:$16 sps:$4 sm:$0xff]  }
 0xbb3   : > { %13072 = vmatpush1.bf16.msra.mxu0 %v16701_v62  ;;  %v16769_v62 = vld [vmem:[#allocation19 + $0x54c] ss:$16 sps:$4 sm:$0xff]  }
 0xbb4   : > { %13115 = vmatpush1.bf16.msra.mxu1 %v16704_v47  ;;  %13073 = vmatprep.subr.bf16.mxu0 %v16709_v4  ;;  %v16772_v47 = vld [vmem:[#allocation19 + $0x74c] ss:$16 sps:$4 sm:$0xff]   ;;  %v16767_v4 = vld [vmem:[#allocation19 + $0x548] ss:$16 sps:$4 sm:$0xff]  }
 0xbb5   : > { %13116 = vmatprep.subr.bf16.mxu1 %v16712_v11  ;;  %v16770_v11 = vld [vmem:[#allocation19 + $0x748] ss:$16 sps:$4 sm:$0xff]  }
 0xbb7   : > { %13074 = vmatpush1.bf16.msra.mxu0 %v16707_v19  ;;  %v16775_v19 = vld [vmem:[#allocation19 + $0x52c] ss:$16 sps:$4 sm:$0xff]  }
 0xbb8   : > { %13117 = vmatpush1.bf16.msra.mxu1 %v16710_v16  ;;  %13075 = vmatprep.subr.bf16.mxu0 %v16715_v32  ;;  %v16778_v16 = vld [vmem:[#allocation19 + $0x72c] ss:$16 sps:$4 sm:$0xff]   ;;  %v16773_v32 = vld [vmem:[#allocation19 + $0x528] ss:$16 sps:$4 sm:$0xff]  }
 0xbb9   : > { %13118 = vmatprep.subr.bf16.mxu1 %v16718_v2  ;;  %v16776_v2 = vld [vmem:[#allocation19 + $0x728] ss:$16 sps:$4 sm:$0xff]  }
 0xbbb   : > { %13076 = vmatpush1.bf16.msra.mxu0 %v16713_v30  ;;  %v16781_v30 = vld [vmem:[#allocation19 + $0x50c] ss:$16 sps:$4 sm:$0xff]  }
 0xbbc   : > { %13119 = vmatpush1.bf16.msra.mxu1 %v16716_v37  ;;  %13077 = vmatprep.subr.bf16.mxu0 %v16721_v60  ;;  %v16784_v37 = vld [vmem:[#allocation19 + $0x70c] ss:$16 sps:$4 sm:$0xff]   ;;  %v16779_v60 = vld [vmem:[#allocation19 + $0x508] ss:$16 sps:$4 sm:$0xff]  }
 0xbbd   : > { %13120 = vmatprep.subr.bf16.mxu1 %v16724_v8  ;;  %v16782_v8 = vld [vmem:[#allocation19 + $0x708] ss:$16 sps:$4 sm:$0xff]  }
 0xbbf   : > { %13078 = vmatpush1.bf16.msra.mxu0 %v16719_v18  ;;  %v16787_v18 = vld [vmem:[#allocation19 + $0x8ec] ss:$16 sps:$4 sm:$0xff]  }
 0xbc0   : > { %13121 = vmatpush1.bf16.msra.mxu1 %v16722_v21  ;;  %13079 = vmatprep.subr.bf16.mxu0 %v16727_v41  ;;  %v16790_v21 = vld [vmem:[#allocation19 + $0xaec] ss:$16 sps:$4 sm:$0xff]   ;;  %v16785_v41 = vld [vmem:[#allocation19 + $0x8e8] ss:$16 sps:$4 sm:$0xff]  }
 0xbc1   : > { %13122 = vmatprep.subr.bf16.mxu1 %v16730_v61  ;;  %v16788_v61 = vld [vmem:[#allocation19 + $0xae8] ss:$16 sps:$4 sm:$0xff]  }
 0xbc3   : > { %13080 = vmatpush1.bf16.msra.mxu0 %v16725_v26  ;;  %v16793_v26 = vld [vmem:[#allocation19 + $0x8cc] ss:$16 sps:$4 sm:$0xff]  }
 0xbc4   : > { %13123 = vmatpush1.bf16.msra.mxu1 %v16728_v49  ;;  %13081 = vmatprep.subr.bf16.mxu0 %v16733_v29  ;;  %v16796_v49 = vld [vmem:[#allocation19 + $0xacc] ss:$16 sps:$4 sm:$0xff]   ;;  %v16791_v29 = vld [vmem:[#allocation19 + $0x8c8] ss:$16 sps:$4 sm:$0xff]  }
 0xbc5   : > { %13124 = vmatprep.subr.bf16.mxu1 %v16736_v34  ;;  %v16794_v34 = vld [vmem:[#allocation19 + $0xac8] ss:$16 sps:$4 sm:$0xff]  }
 0xbc7   : > { %13082 = vmatpush1.bf16.msra.mxu0 %v16731_v57  ;;  %v16799_v57 = vld [vmem:[#allocation19 + $0x8ac] ss:$16 sps:$4 sm:$0xff]  }
 0xbc8   : > { %13125 = vmatpush1.bf16.msra.mxu1 %v16734_v50  ;;  %13083 = vmatprep.subr.bf16.mxu0 %v16739_v46  ;;  %v16802_v50 = vld [vmem:[#allocation19 + $0xaac] ss:$16 sps:$4 sm:$0xff]   ;;  %v16797_v46 = vld [vmem:[#allocation19 + $0x8a8] ss:$16 sps:$4 sm:$0xff]  }
 0xbc9   : > { %13126 = vmatprep.subr.bf16.mxu1 %v16742_v3  ;;  %v16805_v3 = vld [vmem:[#allocation19 + $0x88c] ss:$16 sps:$4 sm:$0xff]  }
 0xbcb   : > { %13084 = vmatpush2.bf16.msra.mxu0 %v16737_v23  ;;  %v16803_v23 = vld [vmem:[#allocation19 + $0x888] ss:$16 sps:$4 sm:$0xff]  }
 0xbcc   : > { %13127 = vmatpush2.bf16.msra.mxu1 %v16740_v63  ;;  %13085 = vmatprep.subr.bf16.mxu0 %v16745_v10  ;;  %v16811_v63 = vld [vmem:[#allocation19 + $0x86c] ss:$16 sps:$4 sm:$0xff]  }
 0xbcd   : > { %13128 = vmatprep.subr.bf16.mxu1 %v16748_v58  ;;  %v16814_v10 = vld [vmem:[#allocation19 + $0xa6c] ss:$16 sps:$4 sm:$0xff]   ;;  %v16812_v58 = vld [vmem:[#allocation19 + $0xa68] ss:$16 sps:$4 sm:$0xff]  }
 0xbcf   : > { %13086 = vmatpush2.bf16.msra.mxu0 %v16743_v17  ;;  %v16817_v17 = vld [vmem:[#allocation19 + $0x84c] ss:$16 sps:$4 sm:$0xff]  }
 0xbd0   : > { %13129 = vmatpush2.bf16.msra.mxu1 %v16746_v15  ;;  %13087 = vmatprep.subr.bf16.mxu0 %v16751_v31  ;;  %v16820_v15 = vld [vmem:[#allocation19 + $0xa4c] ss:$16 sps:$4 sm:$0xff]   ;;  %v16815_v31 = vld [vmem:[#allocation19 + $0x848] ss:$16 sps:$4 sm:$0xff]  }
 0xbd1   : > { %13130 = vmatprep.subr.bf16.mxu1 %v16754_v20  ;;  %v16818_v20 = vld [vmem:[#allocation19 + $0xa48] ss:$16 sps:$4 sm:$0xff]  }
 0xbd3   : > { %13088 = vmatpush2.bf16.msra.mxu0 %v16749_v0  ;;  %v16823_v0 = vld [vmem:[#allocation19 + $0x82c] ss:$16 sps:$4 sm:$0xff]  }
 0xbd4   : > { %13131 = vmatpush2.bf16.msra.mxu1 %v16752_v45  ;;  %13089 = vmatprep.subr.bf16.mxu0 %v16757_v28  ;;  %v16826_v45 = vld [vmem:[#allocation19 + $0xa2c] ss:$16 sps:$4 sm:$0xff]   ;;  %v16821_v28 = vld [vmem:[#allocation19 + $0x828] ss:$16 sps:$4 sm:$0xff]  }
 0xbd5   : > { %13132 = vmatprep.subr.bf16.mxu1 %v16760_v13  ;;  %v18574_v13 = vpop.f32.mrf.mxu0 }
 0xbd7   : > { %13090 = vmatpush2.bf16.msra.mxu0 %v16755_v52  ;;  %v16824_v52 = vld [vmem:[#allocation19 + $0xa28] ss:$16 sps:$4 sm:$0xff]  }
 0xbd8   : > { %13133 = vmatpush2.bf16.msra.mxu1 %v16758_v51  ;;  %13091 = vmatprep.subr.bf16.mxu0 %v16763_v22  ;;  %v16829_v51 = vld [vmem:[#allocation19 + $0x80c] ss:$16 sps:$4 sm:$0xff]   ;;  %v18576_v22 = vpop.f32.mrf.mxu1 }
 0xbd9   : > { %13134 = vmatprep.subr.bf16.mxu1 %v16766_v14  ;;  %v16832_v14 = vld [vmem:[#allocation19 + $0xa0c] ss:$16 sps:$4 sm:$0xff]  }
 0xbdb   : > { %13092 = vmatpush2.bf16.msra.mxu0 %v16761_v12  ;;  %v16827_v12 = vld [vmem:[#allocation19 + $0x808] ss:$16 sps:$4 sm:$0xff]  }
 0xbdc   : > { %13135 = vmatpush2.bf16.msra.mxu1 %v16764_v7  ;;  %13093 = vmatprep.subr.bf16.mxu0 %v16769_v62  ;;  %v18578_v7 = vpop.f32.mrf.mxu0  ;;  %v16830_v62 = vld [vmem:[#allocation19 + $0xa08] ss:$16 sps:$4 sm:$0xff]  }
 0xbdd   : > { %13136 = vmatprep.subr.bf16.mxu1 %v16772_v47  ;;  %v16835_v47 = vld [vmem:[#allocation19 + $0x9ec] ss:$16 sps:$4 sm:$0xff]  }
 0xbdf   : > { %13094 = vmatpush2.bf16.msra.mxu0 %v16767_v4  ;;  %v18580_v4 = vpop.f32.mrf.mxu1 }
 0xbe0   : > { %13137 = vmatpush2.bf16.msra.mxu1 %v16770_v11  ;;  %13095 = vmatprep.subr.bf16.mxu0 %v16775_v19  ;;  %v16838_v11 = vld [vmem:[#allocation19 + $0xbec] ss:$16 sps:$4 sm:$0xff]   ;;  %v16833_v19 = vld [vmem:[#allocation19 + $0x9e8] ss:$16 sps:$4 sm:$0xff]  }
 0xbe1   : > { %13138 = vmatprep.subr.bf16.mxu1 %v16778_v16  ;;  %v18582_v16 = vpop.f32.mrf.mxu0 }
 0xbe3   : > { %13096 = vmatpush2.bf16.msra.mxu0 %v16773_v32  ;;  %v16836_v32 = vld [vmem:[#allocation19 + $0xbe8] ss:$16 sps:$4 sm:$0xff]  }
 0xbe4   : > { %13139 = vmatpush2.bf16.msra.mxu1 %v16776_v2  ;;  %13097 = vmatprep.subr.bf16.mxu0 %v16781_v30  ;;  %v16841_v2 = vld [vmem:[#allocation19 + $0x9cc] ss:$16 sps:$4 sm:$0xff]   ;;  %v18584_v30 = vpop.f32.mrf.mxu1 }
 0xbe5   : > { %13140 = vmatprep.subr.bf16.mxu1 %v16784_v37  ;;  %v16844_v37 = vld [vmem:[#allocation19 + $0xbcc] ss:$16 sps:$4 sm:$0xff]  }
 0xbe7   : > { %13098 = vmatpush2.bf16.msra.mxu0 %v16779_v60  ;;  %v16839_v60 = vld [vmem:[#allocation19 + $0x9c8] ss:$16 sps:$4 sm:$0xff]  }
 0xbe8   : > { %13141 = vmatpush2.bf16.msra.mxu1 %v16782_v8  ;;  %13153 = vmatprep.subr.bf16.mxu0 %v16787_v18  ;;  %v12677_v8 = vpop.f32.mrf.mxu0  ;;  %v16842_v18 = vld [vmem:[#allocation19 + $0xbc8] ss:$16 sps:$4 sm:$0xff]  }
 0xbe9   : > { %13196 = vmatprep.subr.bf16.mxu1 %v16790_v21  ;;  %v16847_v21 = vld [vmem:[#allocation19 + $0x9ac] ss:$16 sps:$4 sm:$0xff]  }
 0xbea   : > { %13100 = vmatmul.mubr.bf16.vlgmr.msra.gmra.mxu0 %v18411_v5  ;;  %v16800_v5 = vld [vmem:[#allocation19 + $0xaa8] ss:$16 sps:$4 sm:$0xff]  }
 0xbeb   : > { %13143 = vmatmul.mubr.bf16.vlgmr.msra.gmra.mxu1 %v18431_v33  ;;  %13154 = vmatpush1.bf16.msra.mxu0 %v16785_v41  ;;  %v16808_v33 = vld [vmem:[#allocation19 + $0xa8c] ss:$16 sps:$4 sm:$0xff]   ;;  %v18586_v41 = vpop.f32.mrf.mxu1 }
 0xbec   : > { %13185 = vmatprep.mubr.bf16.mxu0 %v18516_v6  ;;  %13197 = vmatpush1.bf16.msra.mxu1 %v16788_v61  ;;  %v16806_v6 = vld [vmem:[#allocation19 + $0xa88] ss:$16 sps:$4 sm:$0xff]   ;;  %v16850_v61 = vld [vmem:[#allocation19 + $0xbac] ss:$16 sps:$4 sm:$0xff]  }
 0xbed   : > { %13228 = vmatprep.mubr.bf16.mxu1 %v18519_v44  ;;  %13155 = vmatprep.subr.bf16.mxu0 %v16793_v26  ;;  %v16809_v44 = vld [vmem:[#allocation19 + $0x868] ss:$16 sps:$4 sm:$0xff]   ;;  %v12757_v26 = vpop.f32.mrf.mxu0 }
 0xbee   : > { %13198 = vmatprep.subr.bf16.mxu1 %v16796_v49  ;;  %v18588_v49 = vpop.f32.mrf.mxu1 }
 0xbef   : > { %13156 = vmatpush1.bf16.msra.mxu0 %v16791_v29  ;;  %v16845_v29 = vld [vmem:[#allocation19 + $0x9a8] ss:$16 sps:$4 sm:$0xff]  }
 0xbf0   : > { %13199 = vmatpush1.bf16.msra.mxu1 %v16794_v34  ;;  %13157 = vmatprep.subr.bf16.mxu0 %v16799_v57  ;;  %v16848_v34 = vld [vmem:[#allocation19 + $0xba8] ss:$16 sps:$4 sm:$0xff]   ;;  %v16853_v57 = vld [vmem:[#allocation19 + $0x98c] ss:$16 sps:$4 sm:$0xff]  }
 0xbf1   : > { %13200 = vmatprep.subr.bf16.mxu1 %v16802_v50  ;;  %v16856_v50 = vld [vmem:[#allocation19 + $0xb8c] ss:$16 sps:$4 sm:$0xff]  }
 0xbf3   : > { %13158 = vmatpush1.bf16.msra.mxu0 %v16797_v46  ;;  %v18590_v46 = vld [vmem:[#allocation20] sm:$0xf] }
 0xbf4   : > { %13201 = vmatpush1.bf16.msra.mxu1 %v16800_v5  ;;  %13159 = vmatprep.subr.bf16.mxu0 %v16805_v3  ;;  %v12759_v5 = vpop.f32.mrf.mxu0  ;;  %v12802_v3 = vpop.f32.mrf.mxu1 }
 0xbf5   : > { %13202 = vmatprep.subr.bf16.mxu1 %v16808_v33  ;;  %v16851_v33 = vld [vmem:[#allocation19 + $0x988] ss:$16 sps:$4 sm:$0xff]  }
 0xbf7   : > { %13160 = vmatpush1.bf16.msra.mxu0 %v16803_v23  ;;  %v16854_v23 = vld [vmem:[#allocation19 + $0xb88] ss:$16 sps:$4 sm:$0xff]  }
 0xbf8   : > { %13203 = vmatpush1.bf16.msra.mxu1 %v16806_v6  ;;  %13161 = vmatprep.subr.bf16.mxu0 %v16811_v63  ;;  %v16859_v6 = vld [vmem:[#allocation19 + $0x96c] ss:$16 sps:$4 sm:$0xff]   ;;  %v10060_v63 = vrot.slane %v18590_v46, %v17850_v55 }
 0xbf9   : > { %13204 = vmatprep.subr.bf16.mxu1 %v16814_v10  ;;  %v16862_v10 = vld [vmem:[#allocation19 + $0xb6c] ss:$16 sps:$4 sm:$0xff]  }
 0xbfb   : > { %13162 = vmatpush1.bf16.msra.mxu0 %v16809_v44  ;;  %v12761_v44 = vpop.f32.mrf.mxu0 }
 0xbfc   : > { %13205 = vmatpush1.bf16.msra.mxu1 %v16812_v58  ;;  %13163 = vmatprep.subr.bf16.mxu0 %v16817_v17  ;;  %v10064_v58 = vrot.slane %v18590_v46, %v17844_v53  ;;  %v12804_v17 = vpop.f32.mrf.mxu1  ;;  %v16866_v53 = vld [vmem:[#allocation19 + $0xb48] ss:$16 sps:$4 sm:$0xff]  }
 0xbfd   : > { %13206 = vmatprep.subr.bf16.mxu1 %v16820_v15  ;;  %v16857_v15 = vld [vmem:[#allocation19 + $0x968] ss:$16 sps:$4 sm:$0xff]  }
 0xbfe   : > { %v12674_v55 = vadd.f32 %v18578_v7, %v10064_v58  ;;  %v16869_v7 = vld [vmem:[#allocation19 + $0x928] ss:$16 sps:$4 sm:$0xff]  }
 0xbff   : > { %13164 = vmatpush1.bf16.msra.mxu0 %v16815_v31  ;;  %v16860_v31 = vld [vmem:[#allocation19 + $0xb68] ss:$16 sps:$4 sm:$0xff]  }
 0xc00   : > { %13207 = vmatpush1.bf16.msra.mxu1 %v16818_v20  ;;  %13165 = vmatprep.subr.bf16.mxu0 %v16823_v0  ;;  %v16865_v20 = vld [vmem:[#allocation19 + $0x94c] ss:$16 sps:$4 sm:$0xff]   ;;  %v12672_v0 = vadd.f32 %v18574_v13, %v10060_v63 }
 0xc01   : > { %13208 = vmatprep.subr.bf16.mxu1 %v16826_v45  ;;  %v16868_v45 = vld [vmem:[#allocation19 + $0xb4c] ss:$16 sps:$4 sm:$0xff]  }
 0xc02   : > { %v16874_v13 = vld [vmem:[#allocation19 + $0xb2c] ss:$16 sps:$4 sm:$0xff]  }
 0xc03   : > { %13166 = vmatpush1.bf16.msra.mxu0 %v16821_v28  ;;  %v12763_v28 = vpop.f32.mrf.mxu0 }
 0xc04   : > { %13209 = vmatpush1.bf16.msra.mxu1 %v16824_v52  ;;  %13167 = vmatprep.subr.bf16.mxu0 %v16829_v51  ;;  %v12806_v52 = vpop.f32.mrf.mxu1  ;;  %v16863_v51 = vld [vmem:[#allocation19 + $0x948] ss:$16 sps:$4 sm:$0xff]  }
 0xc05   : > { %13210 = vmatprep.subr.bf16.mxu1 %v16832_v14  ;;  %v12843_v14 = vpop.f32.mrf.mxu0 }
 0xc07   : > { %13168 = vmatpush1.bf16.msra.mxu0 %v16827_v12  ;;  %v16871_v12 = vld [vmem:[#allocation19 + $0x92c] ss:$16 sps:$4 sm:$0xff]  }
 0xc08   : > { %13211 = vmatpush1.bf16.msra.mxu1 %v16830_v62  ;;  %13169 = vmatprep.subr.bf16.mxu0 %v16835_v47  ;;  %v12715_v62 = vadd.f32 %v18576_v22, %v12672_v0  ;;  %v12676_v47 = vadd.f32 %v18582_v16, %v10060_v63  ;;  %v16880_v16 = vld [vmem:[#allocation19 + $0xb0c] ss:$16 sps:$4 sm:$0xff]  }
 0xc09   : > { %13212 = vmatprep.subr.bf16.mxu1 %v16838_v11  ;;  %v12886_v11 = vpop.f32.mrf.mxu1  ;;  %v16889_v0 = vld [vmem:[#allocation19 + $0xccc] ss:$16 sps:$4 sm:$0xff]  }
 0xc0b   : > { %13170 = vmatpush2.bf16.msra.mxu0 %v16833_v19  ;;  %v12717_v19 = vadd.f32 %v18580_v4, %v12674_v55  ;;  %v12888_v22 = vpop.f32.mrf.mxu1 }
 0xc0c   : > { %13213 = vmatpush2.bf16.msra.mxu1 %v16836_v32  ;;  %13171 = vmatprep.subr.bf16.mxu0 %v16841_v2  ;;  %v12678_v32 = vadd.f32 %v12677_v8, %v10064_v58  ;;  %v12758_v2 = vadd.f32 %v12757_v26, %v12715_v62  ;;  %v16875_v8 = vld [vmem:[#allocation19 + $0x908] ss:$16 sps:$4 sm:$0xff]  }
 0xc0d   : > { %13214 = vmatprep.subr.bf16.mxu1 %v16844_v37  ;;  %v12845_v37 = vpop.f32.mrf.mxu0 }
 0xc0f   : > { %13172 = vmatpush2.bf16.msra.mxu0 %v16839_v60  ;;  %v16872_v60 = vld [vmem:[#allocation19 + $0xb28] ss:$16 sps:$4 sm:$0xff]   ;;  %v12847_v26 = vpop.f32.mrf.mxu0 }
 0xc10   : > { %13215 = vmatpush2.bf16.msra.mxu1 %v16842_v18  ;;  %13173 = vmatprep.subr.bf16.mxu0 %v16847_v21  ;;  %v16877_v18 = vld [vmem:[#allocation19 + $0x90c] ss:$16 sps:$4 sm:$0xff]   ;;  %v12719_v21 = vadd.f32 %v18584_v30, %v12676_v47  ;;  %v12890_v30 = vpop.f32.mrf.mxu1 }
 0xc11   : > { %13216 = vmatprep.subr.bf16.mxu1 %v16850_v61  ;;  %v12760_v61 = vadd.f32 %v12759_v5, %v12717_v19  ;;  %v16886_v5 = vld [vmem:[#allocation19 + $0xeec] ss:$16 sps:$4 sm:$0xff]   ;;  %v12849_v58 = vpop.f32.mrf.mxu0 }
 0xc12   : > { %v12762_v4 = vadd.f32 %v12761_v44, %v12719_v21 }
 0xc13   : > { %13174 = vmatpush2.bf16.msra.mxu0 %v16845_v29  ;;  %v12721_v29 = vadd.f32 %v18586_v41, %v12678_v32  ;;  %v16881_v41 = vld [vmem:[#allocation19 + $0xce8] ss:$16 sps:$4 sm:$0xff]  }
 0xc14   : > { %13217 = vmatpush2.bf16.msra.mxu1 %v16848_v34  ;;  %13175 = vmatprep.subr.bf16.mxu0 %v16853_v57  ;;  %v12801_v34 = vadd.f32 %v18588_v49, %v12758_v2  ;;  %v16878_v57 = vld [vmem:[#allocation19 + $0xb08] ss:$16 sps:$4 sm:$0xff]   ;;  %v12805_v63 = vadd.f32 %v12804_v17, %v12762_v4 }
 0xc15   : > { %13218 = vmatprep.subr.bf16.mxu1 %v16856_v50  ;;  %v16883_v50 = vld [vmem:[#allocation19 + $0xcec] ss:$16 sps:$4 sm:$0xff]   ;;  %v16884_v49 = vld [vmem:[#allocation19 + $0xee8] ss:$16 sps:$4 sm:$0xff]  }
 0xc16   : > { %v16899_v4 = vld [vmem:[#allocation19 + $0xc88] ss:$16 sps:$4 sm:$0xff]  }
 0xc17   : > { %13176 = vmatpush2.bf16.msra.mxu0 %v16851_v33  ;;  %v12803_v33 = vadd.f32 %v12802_v3, %v12760_v61 }
 0xc18   : > { %13219 = vmatpush2.bf16.msra.mxu1 %v16854_v23  ;;  %13177 = vmatprep.subr.bf16.mxu0 %v16859_v6  ;;  %v12764_v23 = vadd.f32 %v12763_v28, %v12721_v29  ;;  %v12844_v6 = vadd.f32 %v12843_v14, %v12801_v34  ;;  %v16887_v14 = vld [vmem:[#allocation19 + $0xcc8] ss:$16 sps:$4 sm:$0xff]  }
 0xc19   : > { %13220 = vmatprep.subr.bf16.mxu1 %v16862_v10  ;;  %v12846_v10 = vadd.f32 %v12845_v37, %v12803_v33  ;;  %v16893_v37 = vld [vmem:[#allocation19 + $0xca8] ss:$16 sps:$4 sm:$0xff]  }
 0xc1a   : > { %v12807_v44 = vadd.f32 %v12806_v52, %v12764_v23  ;;  %v16908_v33 = vld [vmem:[#allocation19 + $0xe68] ss:$16 sps:$4 sm:$0xff]   ;;  %v16913_v23 = vld [vmem:[#allocation19 + $0xc4c] ss:$16 sps:$4 sm:$0xff]  }
 0xc1b   : > { %13178 = vmatpush2.bf16.msra.mxu0 %v16857_v15  ;;  %v12887_v15 = vadd.f32 %v12886_v11, %v12844_v6  ;;  %v12889_v28 = vadd.f32 %v12888_v22, %v12846_v10  ;;  %v16904_v22 = vld [vmem:[#allocation19 + $0xe8c] ss:$16 sps:$4 sm:$0xff]   ;;  %v16911_v6 = vld [vmem:[#allocation19 + $0xc48] ss:$16 sps:$4 sm:$0xff]  }
 0xc1c   : > { %13221 = vmatpush2.bf16.msra.mxu1 %v16860_v31  ;;  %13179 = vmatprep.subr.bf16.mxu0 %v16865_v20  ;;  %v12848_v31 = vadd.f32 %v12847_v26, %v12805_v63  ;;  %v12892_v20 = vpop.f32.mrf.mxu1  ;;  %v12850_v55 = vadd.f32 %v12849_v58, %v12807_v44  ;;  %v16907_v26 = vld [vmem:[#allocation19 + $0xc6c] ss:$16 sps:$4 sm:$0xff]   ;;  %v16920_v10 = vld [vmem:[#allocation19 + $0xe28] ss:$16 sps:$4 sm:$0xff]  }
 0xc1d   : > { %13222 = vmatprep.subr.bf16.mxu1 %v16868_v45  ;;  %v16892_v45 = vld [vmem:[#allocation19 + $0xecc] ss:$16 sps:$4 sm:$0xff]   ;;  %v16926_v44 = vld [vmem:[#allocation19 + $0xe08] ss:$16 sps:$4 sm:$0xff]  }
 0xc1e   : > { %v12891_v62 = vadd.f32 %v12890_v30, %v12848_v31  ;;  %v16914_v30 = vld [vmem:[#allocation19 + $0xe48] ss:$16 sps:$4 sm:$0xff]   ;;  %v16922_v63 = vld [vmem:[#allocation19 + $0xe2c] ss:$16 sps:$4 sm:$0xff]  }
 0xc1f   : > { %13180 = vmatpush2.bf16.msra.mxu0 %v16863_v51  ;;  %v16928_v58 = vld [vmem:[#allocation19 + $0xe0c] ss:$16 sps:$4 sm:$0xff]  }
 0xc20   : > { %13223 = vmatpush2.bf16.msra.mxu1 %v16866_v53  ;;  %13181 = vmatprep.subr.bf16.mxu0 %v16871_v12  ;;  %v16890_v53 = vld [vmem:[#allocation19 + $0xec8] ss:$16 sps:$4 sm:$0xff]   ;;  %v16895_v12 = vld [vmem:[#allocation19 + $0xcac] ss:$16 sps:$4 sm:$0xff]  }
 0xc21   : > { %13224 = vmatprep.subr.bf16.mxu1 %v16874_v13  ;;  %v16898_v13 = vld [vmem:[#allocation19 + $0xeac] ss:$16 sps:$4 sm:$0xff]  }
 0xc22   : > { %v16934_v31 = vld [vmem:[#allocation19 + $0xfec] ss:$16 sps:$4 sm:$0xff]  }
 0xc23   : > { %13182 = vmatpush2.bf16.msra.mxu0 %v16869_v7 }
 0xc24   : > { %13225 = vmatpush2.bf16.msra.mxu1 %v16872_v60  ;;  %13183 = vmatprep.subr.bf16.mxu0 %v16877_v18  ;;  %v16896_v18 = vld [vmem:[#allocation19 + $0xea8] ss:$16 sps:$4 sm:$0xff]  }
 0xc25   : > { %13226 = vmatprep.subr.bf16.mxu1 %v16880_v16 }
 0xc27   : > { %13184 = vmatpush2.bf16.msra.mxu0 %v16875_v8  ;;  %v16902_v8 = vld [vmem:[#allocation19 + $0xe88] ss:$16 sps:$4 sm:$0xff]  }
 0xc28   : > { %13227 = vmatpush2.bf16.msra.mxu1 %v16878_v57  ;;  %13239 = vmatprep.subr.bf16.mxu0 %v16883_v50  ;;  %v16905_v50 = vld [vmem:[#allocation19 + $0xc68] ss:$16 sps:$4 sm:$0xff]  }
 0xc29   : > { %13282 = vmatprep.subr.bf16.mxu1 %v16886_v5  ;;  %v16919_v5 = vld [vmem:[#allocation19 + $0xc2c] ss:$16 sps:$4 sm:$0xff]  }
 0xc2a   : > { %v12929_v3 = vpop.f32.mrf.mxu0  ;;  %13186 = vmatmul.mubr.bf16.vlgmr.msra.gmra.mxu0 %v18465_v35 }
 0xc2b   : > { %v12930_v17 = vadd.f32 %v12929_v3, %v12887_v15  ;;  %v12972_v51 = vpop.f32.mrf.mxu1  ;;  %13229 = vmatmul.mubr.bf16.vlgmr.msra.gmra.mxu1 %v18501_v39  ;;  %13240 = vmatpush1.bf16.msra.mxu0 %v16881_v41  ;;  %v12893_v39 = vadd.f32 %v12892_v20, %v12850_v55  ;;  %v16925_v41 = vld [vmem:[#allocation19 + $0xc0c] ss:$16 sps:$4 sm:$0xff]   ;;  %v16929_v20 = vld [vmem:[#allocation19 + $0xde8] ss:$16 sps:$4 sm:$0xff]  }
 0xc2c   : > { %13271 = vmatprep.mubr.bf16.mxu0 %v18538_v9  ;;  %13283 = vmatpush1.bf16.msra.mxu1 %v16884_v49  ;;  %v12931_v52 = vpop.f32.mrf.mxu0  ;;  %v16923_v49 = vld [vmem:[#allocation19 + $0xc08] ss:$16 sps:$4 sm:$0xff]   ;;  %v16931_v15 = vld [vmem:[#allocation19 + $0xdec] ss:$16 sps:$4 sm:$0xff]  }
 0xc2d   : > { %v12973_v47 = vadd.f32 %v12972_v51, %v12930_v17  ;;  %13314 = vmatprep.mubr.bf16.mxu1 %v18551_v59  ;;  %v12932_v35 = vadd.f32 %v12931_v52, %v12889_v28  ;;  %v12974_v11 = vpop.f32.mrf.mxu1  ;;  %13241 = vmatprep.subr.bf16.mxu0 %v16889_v0  ;;  %v16901_v59 = vld [vmem:[#allocation19 + $0xc8c] ss:$16 sps:$4 sm:$0xff]   ;;  %v16932_v0 = vld [vmem:[#allocation19 + $0xfe8] ss:$16 sps:$4 sm:$0xff]  }
 0xc2e   : > { %v12933_v19 = vpop.f32.mrf.mxu0  ;;  %13284 = vmatprep.subr.bf16.mxu1 %v16892_v45  ;;  %v16937_v3 = vld [vmem:[#allocation19 + $0xdcc] ss:$16 sps:$4 sm:$0xff]   ;;  %v16935_v28 = vld [vmem:[#allocation19 + $0xdc8] ss:$16 sps:$4 sm:$0xff]  }
 0xc2f   : > { %v13325_v32 = vadd.f32 %v12973_v47, %v18261_v25  ;;  %v12975_v2 = vadd.f32 %v12974_v11, %v12932_v35  ;;  %v12934_v9 = vadd.f32 %v12933_v19, %v12891_v62  ;;  %v12976_v7 = vpop.f32.mrf.mxu1  ;;  %13242 = vmatpush1.bf16.msra.mxu0 %v16887_v14  ;;  %v16940_v45 = vld [vmem:[#allocation19 + $0xfcc] ss:$16 sps:$4 sm:$0xff]   ;;  %v16938_v55 = vld [vmem:[#allocation19 + $0xfc8] ss:$16 sps:$4 sm:$0xff]  }
 0xc30   : > { %13285 = vmatpush1.bf16.msra.mxu1 %v16890_v53  ;;  %v12935_v60 = vpop.f32.mrf.mxu0  ;;  %13243 = vmatprep.subr.bf16.mxu0 %v16895_v12  ;;  %v16943_v17 = vld [vmem:[#allocation19 + $0xdac] ss:$16 sps:$4 sm:$0xff]   ;;  %v16941_v14 = vld [vmem:[#allocation19 + $0xda8] ss:$16 sps:$4 sm:$0xff]  }
 0xc31   : > { %13333 = vst [vmem:[%s18611_s3] sm:$0xff] %v13325_v32  ;;  %v13326_v21 = vadd.f32 %v12975_v2, %v18258_v27  ;;  %v12977_v25 = vadd.f32 %v12976_v7, %v12934_v9  ;;  %v12936_v61 = vadd.f32 %v12935_v60, %v12893_v39  ;;  %13286 = vmatprep.subr.bf16.mxu1 %v16898_v13  ;;  %v12978_v16 = vpop.f32.mrf.mxu1  ;;  %v16910_v27 = vld [vmem:[#allocation19 + $0xe6c] ss:$16 sps:$4 sm:$0xff]   ;;  %v16944_v52 = vld [vmem:[#allocation19 + $0xfa8] ss:$16 sps:$4 sm:$0xff]  }
 0xc32   : > { %v16946_v51 = vld [vmem:[#allocation19 + $0xfac] ss:$16 sps:$4 sm:$0xff]   ;;  %v16947_v62 = vld [vmem:[#allocation19 + $0xd88] ss:$16 sps:$4 sm:$0xff]  }
 0xc33   : > { %13334 = vst [vmem:[%s18611_s3 + $0x8] sm:$0xff] %v13326_v21  ;;  %v13329_v29 = vadd.f32 %v12977_v25, %v18267_v43  ;;  %v12979_v34 = vadd.f32 %v12978_v16, %v12936_v61  ;;  %13244 = vmatpush1.bf16.msra.mxu0 %v16893_v37  ;;  %v16916_v43 = vld [vmem:[#allocation19 + $0xe4c] ss:$16 sps:$4 sm:$0xff]   ;;  %v16950_v47 = vld [vmem:[#allocation19 + $0xf88] ss:$16 sps:$4 sm:$0xff]  }
 0xc34   : > { %13287 = vmatpush1.bf16.msra.mxu1 %v16896_v18  ;;  %13245 = vmatprep.subr.bf16.mxu0 %v16901_v59  ;;  %v16949_v53 = vld [vmem:[#allocation19 + $0xd8c] ss:$16 sps:$4 sm:$0xff]   ;;  %v16953_v13 = vld [vmem:[#allocation19 + $0xd68] ss:$16 sps:$4 sm:$0xff]  }
 0xc35   : > { %13337 = vst [vmem:[%s18611_s3 + $0x20] sm:$0xff] %v13329_v29  ;;  %v13330_v57 = vadd.f32 %v12979_v34, %v18264_v1  ;;  %13288 = vmatprep.subr.bf16.mxu1 %v16904_v22  ;;  %v16917_v1 = vld [vmem:[#allocation19 + $0xc28] ss:$16 sps:$4 sm:$0xff]   ;;  %v16952_v12 = vld [vmem:[#allocation19 + $0xf8c] ss:$16 sps:$4 sm:$0xff]  }
 0xc36   : > { %v16955_v35 = vld [vmem:[#allocation19 + $0xd6c] ss:$16 sps:$4 sm:$0xff]   ;;  %v16956_v19 = vld [vmem:[#allocation19 + $0xf68] ss:$16 sps:$4 sm:$0xff]  }
 0xc37   : > { %13338 = vst [vmem:[%s18611_s3 + $0x28] sm:$0xff] %v13330_v57  ;;  %13246 = vmatpush1.bf16.msra.mxu0 %v16899_v4  ;;  %v16958_v11 = vld [vmem:[#allocation19 + $0xf6c] ss:$16 sps:$4 sm:$0xff]   ;;  %v16959_v2 = vld [vmem:[#allocation19 + $0xd48] ss:$16 sps:$4 sm:$0xff]  }
 0xc38   : > { %13289 = vmatpush1.bf16.msra.mxu1 %v16902_v8  ;;  %13247 = vmatprep.subr.bf16.mxu0 %v16907_v26  ;;  %v16961_v39 = vld [vmem:[#allocation19 + $0xd4c] ss:$16 sps:$4 sm:$0xff]   ;;  %v16962_v9 = vld [vmem:[#allocation19 + $0xf48] ss:$16 sps:$4 sm:$0xff]  }
 0xc39   : > { %13290 = vmatprep.subr.bf16.mxu1 %v16910_v27  ;;  %v16964_v32 = vld [vmem:[#allocation19 + $0xf4c] ss:$16 sps:$4 sm:$0xff]   ;;  %v16965_v60 = vld [vmem:[#allocation19 + $0xd28] ss:$16 sps:$4 sm:$0xff]  }
 0xc3a   : > { %v16967_v7 = vld [vmem:[#allocation19 + $0xd2c] ss:$16 sps:$4 sm:$0xff]   ;;  %v16968_v18 = vld [vmem:[#allocation19 + $0xf28] ss:$16 sps:$4 sm:$0xff]  }
 0xc3b   : > { %13248 = vmatpush1.bf16.msra.mxu0 %v16905_v50  ;;  %v16970_v37 = vld [vmem:[#allocation19 + $0xf2c] ss:$16 sps:$4 sm:$0xff]   ;;  %v16971_v25 = vld [vmem:[#allocation19 + $0xd08] ss:$16 sps:$4 sm:$0xff]  }
 0xc3c   : > { %13291 = vmatpush1.bf16.msra.mxu1 %v16908_v33  ;;  %13249 = vmatprep.subr.bf16.mxu0 %v16913_v23  ;;  %v16973_v59 = vld [vmem:[#allocation19 + $0xd0c] ss:$16 sps:$4 sm:$0xff]   ;;  %v16974_v61 = vld [vmem:[#allocation19 + $0xf08] ss:$16 sps:$4 sm:$0xff]  }
 0xc3d   : > { %13292 = vmatprep.subr.bf16.mxu1 %v16916_v43  ;;  %v16976_v21 = vld [vmem:[#allocation19 + $0xf0c] ss:$16 sps:$4 sm:$0xff]   ;;  %v10068_v43 = vrot.slane %v18590_v46, %v17853_v56 }
 0xc3f   : > { %13250 = vmatpush1.bf16.msra.mxu0 %v16911_v6 }
 0xc40   : > { %13293 = vmatpush1.bf16.msra.mxu1 %v16914_v30  ;;  %13251 = vmatprep.subr.bf16.mxu0 %v16919_v5 }
 0xc41   : > { %13294 = vmatprep.subr.bf16.mxu1 %v16922_v63 }
 0xc43   : > { %13252 = vmatpush1.bf16.msra.mxu0 %v16917_v1 }
 0xc44   : > { %13295 = vmatpush1.bf16.msra.mxu1 %v16920_v10  ;;  %13253 = vmatprep.subr.bf16.mxu0 %v16925_v41 }
 0xc45   : > { %13296 = vmatprep.subr.bf16.mxu1 %v16928_v58 }
 0xc47   : > { %13254 = vmatpush1.bf16.msra.mxu0 %v16923_v49 }
 0xc48   : > { %13297 = vmatpush1.bf16.msra.mxu1 %v16926_v44  ;;  %13255 = vmatprep.subr.bf16.mxu0 %v16931_v15 }
 0xc49   : > { %13298 = vmatprep.subr.bf16.mxu1 %v16934_v31 }
 0xc4b   : > { %13256 = vmatpush2.bf16.msra.mxu0 %v16929_v20 }
 0xc4c   : > { %13299 = vmatpush2.bf16.msra.mxu1 %v16932_v0  ;;  %13257 = vmatprep.subr.bf16.mxu0 %v16937_v3 }
 0xc4d   : > { %13300 = vmatprep.subr.bf16.mxu1 %v16940_v45 }
 0xc4f   : > { %13258 = vmatpush2.bf16.msra.mxu0 %v16935_v28 }
 0xc50   : > { %13301 = vmatpush2.bf16.msra.mxu1 %v16938_v55  ;;  %13259 = vmatprep.subr.bf16.mxu0 %v16943_v17 }
 0xc51   : > { %13302 = vmatprep.subr.bf16.mxu1 %v16946_v51 }
 0xc53   : > { %13260 = vmatpush2.bf16.msra.mxu0 %v16941_v14 }
 0xc54   : > { %13303 = vmatpush2.bf16.msra.mxu1 %v16944_v52  ;;  %13261 = vmatprep.subr.bf16.mxu0 %v16949_v53 }
 0xc55   : > { %13304 = vmatprep.subr.bf16.mxu1 %v16952_v12 }
 0xc57   : > { %13262 = vmatpush2.bf16.msra.mxu0 %v16947_v62 }
 0xc58   : > { %13305 = vmatpush2.bf16.msra.mxu1 %v16950_v47  ;;  %13263 = vmatprep.subr.bf16.mxu0 %v16955_v35 }
 0xc59   : > { %13306 = vmatprep.subr.bf16.mxu1 %v16958_v11 }
 0xc5b   : > { %13264 = vmatpush2.bf16.msra.mxu0 %v16953_v13 }
 0xc5c   : > { %13307 = vmatpush2.bf16.msra.mxu1 %v16956_v19  ;;  %13265 = vmatprep.subr.bf16.mxu0 %v16961_v39 }
 0xc5d   : > { %13308 = vmatprep.subr.bf16.mxu1 %v16964_v32 }
 0xc5f   : > { %13266 = vmatpush2.bf16.msra.mxu0 %v16959_v2 }
 0xc60   : > { %13309 = vmatpush2.bf16.msra.mxu1 %v16962_v9  ;;  %13267 = vmatprep.subr.bf16.mxu0 %v16967_v7 }
 0xc61   : > { %13310 = vmatprep.subr.bf16.mxu1 %v16970_v37 }
 0xc63   : > { %13268 = vmatpush2.bf16.msra.mxu0 %v16965_v60 }
 0xc64   : > { %13311 = vmatpush2.bf16.msra.mxu1 %v16968_v18  ;;  %13269 = vmatprep.subr.bf16.mxu0 %v16973_v59 }
 0xc65   : > { %13312 = vmatprep.subr.bf16.mxu1 %v16976_v21 }
 0xc67   : > { %13270 = vmatpush2.bf16.msra.mxu0 %v16971_v25 }
 0xc68   : > { %13313 = vmatpush2.bf16.msra.mxu1 %v16974_v61 }
 0xc6a   : > { %13272 = vmatmul.mubr.bf16.vlgmr.msra.gmra.mxu0 %v18528_v40  ;;  %v13015_v22 = vpop.f32.mrf.mxu0  ;;  %v10072_v40 = vrot.slane %v18590_v46, %v17847_v54 }
 0xc6b   : > { %13315 = vmatmul.mubr.bf16.vlgmr.msra.gmra.mxu1 %v18560_v48  ;;  %v13058_v16 = vpop.f32.mrf.mxu1  ;;  %v13016_v30 = vadd.f32 %v13015_v22, %v10068_v43 }
 0xc6c   : > { %v13017_v29 = vpop.f32.mrf.mxu0 }
 0xc6d   : > { %v13060_v34 = vpop.f32.mrf.mxu1  ;;  %v13018_v63 = vadd.f32 %v13017_v29, %v10072_v40  ;;  %v13059_v41 = vadd.f32 %v13058_v16, %v13016_v30 }
 0xc6e   : > { %v13019_v4 = vpop.f32.mrf.mxu0 }
 0xc6f   : > { %v13062_v8 = vpop.f32.mrf.mxu1  ;;  %v13020_v58 = vadd.f32 %v13019_v4, %v10068_v43  ;;  %v13061_v44 = vadd.f32 %v13060_v34, %v13018_v63 }
 0xc70   : > { %v13021_v26 = vpop.f32.mrf.mxu0 }
 0xc71   : > { %v13064_v57 = vpop.f32.mrf.mxu1  ;;  %v13022_v15 = vadd.f32 %v13021_v26, %v10072_v40  ;;  %v13063_v0 = vadd.f32 %v13062_v8, %v13020_v58 }
 0xc73   : > { %v13065_v45 = vadd.f32 %v13064_v57, %v13022_v15 }
 0xcaa   : > { %v13101_v27 = vpop.f32.mrf.mxu0 }
 0xcab   : > { %v13144_v50 = vpop.f32.mrf.mxu1  ;;  %v13102_v31 = vadd.f32 %v13101_v27, %v13059_v41 }
 0xcac   : > { %v13103_v33 = vpop.f32.mrf.mxu0 }
 0xcad   : > { %v13146_v23 = vpop.f32.mrf.mxu1  ;;  %v13104_v3 = vadd.f32 %v13103_v33, %v13061_v44  ;;  %v13145_v28 = vadd.f32 %v13144_v50, %v13102_v31 }
 0xcae   : > { %v13105_v6 = vpop.f32.mrf.mxu0 }
 0xcaf   : > { %v13148_v48 = vpop.f32.mrf.mxu1  ;;  %v13106_v55 = vadd.f32 %v13105_v6, %v13063_v0  ;;  %v13147_v46 = vadd.f32 %v13146_v23, %v13104_v3 }
 0xcb0   : > { %v13107_v5 = vpop.f32.mrf.mxu0 }
 0xcb1   : > { %v13150_v1 = vpop.f32.mrf.mxu1  ;;  %v13108_v17 = vadd.f32 %v13107_v5, %v13065_v45  ;;  %v13149_v52 = vadd.f32 %v13148_v48, %v13106_v55 }
 0xcb3   : > { %v13151_v62 = vadd.f32 %v13150_v1, %v13108_v17 }
 0xcea   : > { %v13187_v10 = vpop.f32.mrf.mxu0 }
 0xceb   : > { %v13230_v49 = vpop.f32.mrf.mxu1  ;;  %v13188_v51 = vadd.f32 %v13187_v10, %v13145_v28 }
 0xcec   : > { %v13189_v20 = vpop.f32.mrf.mxu0 }
 0xced   : > { %v13232_v56 = vpop.f32.mrf.mxu1  ;;  %v13190_v53 = vadd.f32 %v13189_v20, %v13147_v46  ;;  %v13231_v47 = vadd.f32 %v13230_v49, %v13188_v51 }
 0xcee   : > { %v13191_v54 = vpop.f32.mrf.mxu0 }
 0xcef   : > { %v13234_v14 = vpop.f32.mrf.mxu1  ;;  %v13192_v35 = vadd.f32 %v13191_v54, %v13149_v52  ;;  %v13233_v19 = vadd.f32 %v13232_v56, %v13190_v53 }
 0xcf0   : > { %v13193_v12 = vpop.f32.mrf.mxu0 }
 0xcf1   : > { %v13236_v11 = vpop.f32.mrf.mxu1  ;;  %v13194_v39 = vadd.f32 %v13193_v12, %v13151_v62  ;;  %v13235_v7 = vadd.f32 %v13234_v14, %v13192_v35 }
 0xcf3   : > { %v13237_v21 = vadd.f32 %v13236_v11, %v13194_v39 }
 0xd2a   : > { %v13273_v13 = vpop.f32.mrf.mxu0 }
 0xd2b   : > { %v13274_v32 = vadd.f32 %v13273_v13, %v13231_v47  ;;  %v13316_v2 = vpop.f32.mrf.mxu1 }
 0xd2c   : > { %v13275_v9 = vpop.f32.mrf.mxu0 }
 0xd2d   : > { %v13317_v37 = vadd.f32 %v13316_v2, %v13274_v32  ;;  %v13276_v60 = vadd.f32 %v13275_v9, %v13233_v19  ;;  %v13318_v18 = vpop.f32.mrf.mxu1 }
 0xd2e   : > { %v13277_v59 = vpop.f32.mrf.mxu0 }
 0xd2f   : > { %v13327_v25 = vadd.f32 %v13317_v37, %v18272_v36  ;;  %v13319_v61 = vadd.f32 %v13318_v18, %v13276_v60  ;;  %v13278_v22 = vadd.f32 %v13277_v59, %v13235_v7  ;;  %v13320_v16 = vpop.f32.mrf.mxu1 }
 0xd30   : > { %v13279_v29 = vpop.f32.mrf.mxu0 }
 0xd31   : > { %13335 = vst [vmem:[%s18611_s3 + $0x10] sm:$0xff] %v13327_v25  ;;  %v13328_v34 = vadd.f32 %v13319_v61, %v18281_v24  ;;  %v13321_v4 = vadd.f32 %v13320_v16, %v13278_v22  ;;  %v13280_v8 = vadd.f32 %v13279_v29, %v13237_v21  ;;  %v13322_v26 = vpop.f32.mrf.mxu1 }
 0xd33   : > { %13336 = vst [vmem:[%s18611_s3 + $0x18] sm:$0xff] %v13328_v34  ;;  %v13331_v36 = vadd.f32 %v13321_v4, %v18291_v42  ;;  %v13323_v57 = vadd.f32 %v13322_v26, %v13280_v8 }
 0xd35   : > { %13339 = vst [vmem:[%s18611_s3 + $0x30] sm:$0xff] %v13331_v36  ;;  %v13332_v24 = vadd.f32 %v13323_v57, %v18297_v38 }
 0xd37   : > { %13340 = vst [vmem:[%s18611_s3 + $0x38] sm:$0xff] %v13332_v24 }
 0xd38   : > { %17388 = shalt.err (!%p17385_p11)
}
 0xd39   : > { %s17389_s6 = scalar_lea.hbm %s18638_s29, 1024  ;;  %s17393_s2 = scalar_lea.hbm %s18696_s12, 2048 }
 0xd3a   : > { %p17390_p10 = scmp.ne.s32.totalorder %s18638_s29, %s17389_s6  ;;  %p17394_p2 = scmp.lt.s32.totalorder %s18638_s29, %s18696_s12 }
 0xd3b   : > { %p17395_p3 = scmp.lt.s32.totalorder %s17393_s2, %s17389_s6 }
 0xd3c   : > { %p17391_p12 = pnand %p17390_p10, %p18743_p13 }
 0xd3d   : > { %p17396_p4 = por %p17395_p3, %p17394_p2 }
 0xd3e   : > { %p17392_p0 = pneg %p17391_p12 }
 0xd40   : > { %p17397_p7 = pnand %p17396_p4, %p17392_p0 }
 0xd42   : > { %17400 = shalt.err (!%p17397_p7)
}
 0xd43   : > { %s17489_s14 = smov 512   ;;  %s17490_s16 = smov 32  }
 0xd44   : > { %15297 = dma.vmem_to_hbm [thread:$0]  (%p18743_p13), %s18631_s28, 1024, %s18638_s29, %s13342_s27, %s17489_s14, %s17489_s14, %s17490_s16  }
 0xd45 PF: > { %s13370_s17 = sand.u32 1, %s17451_s21   ;;  %p18744_p6 = scmp.ne.s32.totalorder %s18723_s15, 0 }
 0xd46   : > { %p18745_p5 = scmp.ge.s32.totalorder %s17463_s24, 2  ;;  %s13371_s25 = scalar_lea.sflag [#allocation4], %s13370_s17 }
 0xd48   : > { %p15338_p1 = pnand %p18745_p5, %p18744_p6 }
 0xd4a   : > { %p15339_p8 = pneg %p15338_p1 }
 0xd4c   : > { %17446 = dma.done.wait (%p15339_p8), %s13371_s25, 1024  }
 0xd4d   : > { %17448 = vsyncadd (%p15339_p8), %s13371_s25, 4294966272  ;;  %p31_p9 = scmp.ge.s32.totalorder %s17700_s13, 4   ;;  %s18746_s21 = smov %s17455_s22 }
 0xd4e   : > { %s18747_s22 = smov %s17459_s23  ;;  %s18748_s23 = smov %s17712_s30 }
 0xd4f   : > { %s18749_s24 = smov %s17700_s13  ;;  %33 = sbr.rel (!%p31_p9) target bundleno = 18 (0x12), region = 157 }
 0xd54   :  { %13376 = vsyncpa [#allocation3], 1 }
 0xd55   :  { %13378 = vsyncpa [#allocation3 + $0x1], 1 }
 0xd56   :  { %13379 = vsyncpa [#allocation6], 1 }
 0xd57   :  { %13380 = vsyncpa [#allocation9], 1 }
 0xd58   :  { %13381 = vsyncpa [#allocation12], 1 }
 0xd59   :  { %13382 = vsyncpa [#allocation15], 1 }
 0xd5a   :  { %13383 = vsyncpa [#allocation18], 1 }
 0xd5b   :  { %13384 = vsyncpa [#allocation21], 1 }
 0xd5c   :  { %13385 = vsyncpa [#allocation4], 1 }
 0xd5d   :  { %13387 = vsyncpa [#allocation4 + $0x1], 1 }

</bundles_post_ra>
